<compile_context>
chip_gen: v6e
topology: v6e:2x2x1
jax: 0.10.0
libtpu: 0.0.40
codegen_flags: <defaults>
</compile_context>

<pallas_src>
from functools import partial

import jax
import jax.numpy as jnp
from jax.experimental import pallas as pl
from jax.experimental.pallas import tpu as pltpu

LN_EPS = 1e-6  # norm_layer is injected in the reference; PVT-style eps
               # (PyTorch nn.LayerNorm default would be 1e-5)


# ---------------------------------------------------------------------------
# In-kernel math helpers (traced inside the Pallas kernel body)
# ---------------------------------------------------------------------------
def _layernorm(x, gamma, beta):
    mean = jnp.mean(x, axis=-1, keepdims=True)
    var = jnp.mean(jnp.square(x - mean), axis=-1, keepdims=True)
    return (x - mean) * jax.lax.rsqrt(var + LN_EPS) * gamma + beta


def _gelu_tanh(x):
    # tanh-approx GELU (PyTorch nn.GELU default is erf-exact; erf has no
    # guaranteed Mosaic lowering -- numerically very close).
    c = 0.7978845608028654  # sqrt(2/pi)
    return 0.5 * x * (1.0 + jnp.tanh(c * (x + 0.044715 * x * x * x)))


# ---------------------------------------------------------------------------
# Fused Pallas kernel: all DEPTH transformer blocks for one batch tile.
# grid = (B // batch_tile,); weights are whole VMEM-resident stacks.
# ---------------------------------------------------------------------------
def fused_branch_kernel(
    x_ref,        # (Bt*N, C)      f32   input tokens for this batch tile
    wqkv_ref,     # (D, C, 3C)     bf16  fused Wq|Wk|Wv (scale folded into Wq)
    wp_ref,       # (D, C, C)      bf16  attention output projection
    w1_ref,       # (D, C, Hd)     bf16  MLP fc1
    w2_ref,       # (D, Hd, C)     bf16  MLP fc2
    vec_ref,      # (D, 8, VW)     f32   packed LN params + biases
    o_ref,        # (Bt*N, C)      f32   output tokens
    *, num_heads, depth, batch_tile, tokens,
):
    x = x_ref[...]                         # (M, C) f32, M = batch_tile * N
    M, C = x.shape
    hd = C // num_heads
    hidden = w1_ref.shape[2]
    N = tokens

    # Static loop over transformer blocks; x carried as a value (no scratch,
    # no HBM round-trip, no per-block weight DMA).
    for d in range(depth):
        vecs = vec_ref[d]                  # (8, VW) f32
        ln1_g = vecs[0:1, :C]
        ln1_b = vecs[1:2, :C]
        ln2_g = vecs[2:3, :C]
        ln2_b = vecs[3:4, :C]
        b_qkv = vecs[4:5, :3 * C]
        b_p = vecs[5:6, :C]
        b_1 = vecs[6:7, :hidden]
        b_2 = vecs[7:8, :C]

        wqkv = wqkv_ref[d]                 # (C, 3C) bf16
        wp = wp_ref[d]                     # (C, C)  bf16
        w1 = w1_ref[d]                     # (C, Hd) bf16
        w2 = w2_ref[d]                     # (Hd, C) bf16

        # ---------------- multi-head self-attention ----------------
        y = _layernorm(x, ln1_g, ln1_b)
        qkv = jnp.dot(y.astype(jnp.bfloat16), wqkv,
                      preferred_element_type=jnp.float32) + b_qkv   # (M, 3C) f32
        qkv_bf = qkv.astype(jnp.bfloat16)  # single cast; heads are lane views
        q = qkv_bf[:, :C]
        k = qkv_bf[:, C:2 * C]
        v = qkv_bf[:, 2 * C:3 * C]

        # Per-sample, per-head score / softmax / PV.  PV heads are lane-
        # concatenated and the output projection is ONE (M,C)@(C,C) matmul.
        pv_rows = []
        for b in range(batch_tile):        # static unroll over batch tile
            rs = slice(b * N, (b + 1) * N)
            pv_heads = []
            for h in range(num_heads):     # static unroll over heads
                cs = slice(h * hd, (h + 1) * hd)
                qh = q[rs, cs]             # (N, hd) bf16; scale folded into Wq
                kh = k[rs, cs]
                vh = v[rs, cs]
                s = jax.lax.dot_general(qh, kh, (((1,), (1,)), ((), ())),
                                        preferred_element_type=jnp.float32)  # (N, N)
                s = s - jnp.max(s, axis=-1, keepdims=True)
                p = jnp.exp(s)
                inv = pl.reciprocal(jnp.sum(p, axis=-1, keepdims=True),
                                    approx=True)
                p = (p * inv).astype(jnp.bfloat16)
                pv_heads.append(jnp.dot(p, vh,
                                        preferred_element_type=jnp.float32))  # (N, hd)
            pv_rows.append(jnp.concatenate(pv_heads, axis=-1))    # (N, C)
        pv = jnp.concatenate(pv_rows, axis=0)                     # (M, C) f32

        attn = jnp.dot(pv.astype(jnp.bfloat16), wp,
                       preferred_element_type=jnp.float32) + b_p  # (M, C)
        x = x + attn                       # residual (drop_path = identity)

        # ---------------- MLP ----------------
        z = _layernorm(x, ln2_g, ln2_b)
        h1 = jnp.dot(z.astype(jnp.bfloat16), w1,
                     preferred_element_type=jnp.float32) + b_1
        h1 = _gelu_tanh(h1)
        h2 = jnp.dot(h1.astype(jnp.bfloat16), w2,
                     preferred_element_type=jnp.float32) + b_2
        x = x + h2                         # residual

    o_ref[...] = x.astype(o_ref.dtype)


# ---------------------------------------------------------------------------
# Wrapper: one pallas_call for the whole branch
# ---------------------------------------------------------------------------
def fused_branch(x, packed, num_heads, batch_tile=None):
    """x: [B, N, C] f32; packed: dict of depth-stacked params."""
    B, N, C = x.shape
    D = packed["wqkv"].shape[0]
    hidden = packed["w1"].shape[2]
    VW = packed["vecs"].shape[2]

    if batch_tile is None:
        # Fill an MXU row tile (M >= 128) where possible.  On v7x (2 TCs)
        # prefer batch_tile = B // 2 to keep the parallel grid axis busy.
        bt = min(B, max(1, 128 // N))
        while B % bt:
            bt -= 1
    else:
        bt = batch_tile
        assert B % bt == 0
    M = bt * N

    x_flat = x.reshape(B * N, C)           # fold batch rows into the M dim

    in_specs = [
        pl.BlockSpec((M, C), lambda g: (g, 0)),                 # x tile
        pl.BlockSpec((D, C, 3 * C), lambda g: (0, 0, 0)),       # wqkv (resident)
        pl.BlockSpec((D, C, C), lambda g: (0, 0, 0)),           # wp   (resident)
        pl.BlockSpec((D, C, hidden), lambda g: (0, 0, 0)),      # w1   (resident)
        pl.BlockSpec((D, hidden, C), lambda g: (0, 0, 0)),      # w2   (resident)
        pl.BlockSpec((D, 8, VW), lambda g: (0, 0, 0)),          # vecs (resident)
    ]
    out_spec = pl.BlockSpec((M, C), lambda g: (g, 0))

    out = pl.pallas_call(
        partial(fused_branch_kernel, num_heads=num_heads, depth=D,
                batch_tile=bt, tokens=N),
        out_shape=jax.ShapeDtypeStruct((B * N, C), x.dtype),
        grid_spec=pltpu.PrefetchScalarGridSpec(
            num_scalar_prefetch=0,
            grid=(B // bt,),
            in_specs=in_specs,
            out_specs=out_spec,
        ),
        compiler_params=pltpu.CompilerParams(
            dimension_semantics=("parallel",)),
    )(x_flat, packed["wqkv"], packed["wp"], packed["w1"], packed["w2"],
      packed["vecs"])
    return out.reshape(B, N, C)


def hrtrans_forward(x_list, packed_branch0, num_heads, batch_tile=None):
    """HRTransModel.forward for num_branches == 1: [branches[0][0](x[0])]."""
    return [fused_branch(x_list[0], packed_branch0, num_heads, batch_tile)]


# ---------------------------------------------------------------------------
# One-time parameter packing (permanent weight transform, done at setup time):
#   * fold attention scale (head_dim ** -0.5) into Wq and bq
#   * fuse Wq|Wk|Wv -> [C, 3C] bf16, fuse biases -> one row
#   * pack LN params + biases into a single (8, VW) f32 tile per block
#   * stack everything along a leading depth axis
# ---------------------------------------------------------------------------
def pack_branch_params(blocks, num_heads):
    C = blocks[0]["wq"].shape[0]
    hidden = blocks[0]["w1"].shape[1]
    hd = C // num_heads
    scale = float(hd) ** -0.5             # qk_scale = None -> head_dim ** -0.5
    VW = ((max(3 * C, hidden, 128) + 127) // 128) * 128

    wqkv_l, wp_l, w1_l, w2_l, vec_l = [], [], [], [], []
    for p in blocks:
        wq = p["wq"] * scale
        bq = p["bq"] * scale
        wqkv_l.append(jnp.concatenate([wq, p["wk"], p["wv"]], axis=1)
                      .astype(jnp.bfloat16))
        wp_l.append(p["wp"].astype(jnp.bfloat16))
        w1_l.append(p["w1"].astype(jnp.bfloat16))
        w2_l.append(p["w2"].astype(jnp.bfloat16))

        v = jnp.zeros((8, VW), jnp.float32)
        v = v.at[0, :C].set(p["ln1_g"][0])
        v = v.at[1, :C].set(p["ln1_b"][0])
        v = v.at[2, :C].set(p["ln2_g"][0])
        v = v.at[3, :C].set(p["ln2_b"][0])
        v = v.at[4, :3 * C].set(jnp.concatenate([bq[0], p["bk"][0], p["bv"][0]]))
        v = v.at[5, :C].set(p["bp"][0])
        v = v.at[6, :hidden].set(p["b1"][0])
        v = v.at[7, :C].set(p["b2"][0])
        vec_l.append(v)

    return {
        "wqkv": jnp.stack(wqkv_l),   # [D, C, 3C]  bf16
        "wp": jnp.stack(wp_l),       # [D, C, C]   bf16
        "w1": jnp.stack(w1_l),       # [D, C, Hd]  bf16
        "w2": jnp.stack(w2_l),       # [D, Hd, C]  bf16
        "vecs": jnp.stack(vec_l),    # [D, 8, VW]  f32
    }


# ---------------------------------------------------------------------------
# Pure-JAX reference (same math, f32, original unpacked params)
# ---------------------------------------------------------------------------
def _ref_block(x, p, num_heads):
    B, N, C = x.shape
    hd = C // num_heads
    scale = hd ** -0.5

    def ln(v, g, b):
        m = jnp.mean(v, axis=-1, keepdims=True)
        var = jnp.mean(jnp.square(v - m), axis=-1, keepdims=True)
        return (v - m) * jax.lax.rsqrt(var + LN_EPS) * g + b

    y = ln(x, p["ln1_g"], p["ln1_b"])
    q = y @ p["wq"] + p["bq"]
    k = y @ p["wk"] + p["bk"]
    v = y @ p["wv"] + p["bv"]
    q = q.reshape(B, N, num_heads, hd).transpose(0, 2, 1, 3)
    k = k.reshape(B, N, num_heads, hd).transpose(0, 2, 1, 3)
    v = v.reshape(B, N, num_heads, hd).transpose(0, 2, 1, 3)
    s = jnp.einsum("bhnd,bhmd->bhnm", q, k) * scale
    a = jax.nn.softmax(s, axis=-1)
    o = jnp.einsum("bhnm,bhmd->bhnd", a, v).transpose(0, 2, 1, 3).reshape(B, N, C)
    o = o @ p["wp"] + p["bp"]
    x = x + o
    z = ln(x, p["ln2_g"], p["ln2_b"])
    h1 = _gelu_tanh(z @ p["w1"] + p["b1"])
    return x + (h1 @ p["w2"] + p["b2"])


def _ref_forward(x_list, blocks, num_heads):
    x = x_list[0]
    for p in blocks:
        x = _ref_block(x, p, num_heads)
    return [x]


# ---------------------------------------------------------------------------
# Deterministic parameter construction
# ---------------------------------------------------------------------------
def make_block_params(key, dim, num_heads, mlp_ratio):
    hidden = dim * mlp_ratio
    keys = jax.random.split(key, 8)
    std = 0.02

    def w(k, shape):
        return (std * jax.random.normal(k, shape)).astype(jnp.float32)

    return {
        "ln1_g": jnp.ones((1, dim), jnp.float32),
        "ln1_b": jnp.zeros((1, dim), jnp.float32),
        "wq": w(keys[0], (dim, dim)), "bq": jnp.zeros((1, dim), jnp.float32),
        "wk": w(keys[1], (dim, dim)), "bk": jnp.zeros((1, dim), jnp.float32),
        "wv": w(keys[2], (dim, dim)), "bv": jnp.zeros((1, dim), jnp.float32),
        "wp": w(keys[3], (dim, dim)), "bp": jnp.zeros((1, dim), jnp.float32),
        "ln2_g": jnp.ones((1, dim), jnp.float32),
        "ln2_b": jnp.zeros((1, dim), jnp.float32),
        "w1": w(keys[4], (dim, hidden)), "b1": jnp.zeros((1, hidden), jnp.float32),
        "w2": w(keys[5], (hidden, dim)), "b2": jnp.zeros((1, dim), jnp.float32),
    }


if __name__ == "__main__":
    # Small config implied by the module: EMBEDED_DIM=32, NUM_HEADS=4,
    # MLP_RATIO=4, NUM_BLOCKS[0]=2, SR_RATIO=1, num_branches=1.
    B, H, W = 2, 8, 8
    N = H * W                # 64 tokens
    C = 32                   # EMBEDED_DIM
    NUM_HEADS = 4
    MLP_RATIO = 4
    DEPTH = 2                # NUM_BLOCKS[0]

    key = jax.random.PRNGKey(0)
    kx, *kb = jax.random.split(key, DEPTH + 1)
    x0 = jax.random.normal(kx, (B, N, C), dtype=jnp.float32)
    blocks = [make_block_params(kb[d], C, NUM_HEADS, MLP_RATIO) for d in range(DEPTH)]

    packed = pack_branch_params(blocks, NUM_HEADS)   # one-time weight transform

    out = hrtrans_forward([x0], packed, NUM_HEADS)
    out = [jax.block_until_ready(o) for o in out]

    ref = _ref_forward([x0], blocks, NUM_HEADS)
    # bf16 MXU operands + approx reciprocal -> looser tolerance than pure f32
    if not jnp.allclose(out[0], ref[0], atol=2e-2, rtol=2e-2):
        raise AssertionError("Pallas kernel output mismatch vs JAX reference")

    print("KERNEL_OK")
</pallas_src>

<mosaic_0001>
module attributes {stable_mosaic.version = 11 : i64} {
  func.func @fused_branch_kernel(%arg0: i32, %arg1: memref<128x32xf32, #tpu.memory_space<vmem>>, %arg2: memref<2x32x96xbf16, #tpu.memory_space<vmem>>, %arg3: memref<2x32x32xbf16, #tpu.memory_space<vmem>>, %arg4: memref<2x32x128xbf16, #tpu.memory_space<vmem>>, %arg5: memref<2x128x32xbf16, #tpu.memory_space<vmem>>, %arg6: memref<2x8x128xf32, #tpu.memory_space<vmem>>, %arg7: memref<128x32xf32, #tpu.memory_space<vmem>>) attributes {dimension_semantics = [#tpu.dimension_semantics<parallel>], iteration_bounds = array<i64: 1>, scalar_prefetch = 0 : i64, scratch_operands = 0 : i64, tpu.core_type = #tpu.core_type<tc>, window_params = [{transform_indices = @transform_0, window_bounds = array<i64: 128, 32>}, {pipeline_mode = #tpu.pipeline_mode<synchronous>, transform_indices = @transform_1, window_bounds = array<i64: 2, 32, 96>}, {pipeline_mode = #tpu.pipeline_mode<synchronous>, transform_indices = @transform_2, window_bounds = array<i64: 2, 32, 32>}, {pipeline_mode = #tpu.pipeline_mode<synchronous>, transform_indices = @transform_3, window_bounds = array<i64: 2, 32, 128>}, {pipeline_mode = #tpu.pipeline_mode<synchronous>, transform_indices = @transform_4, window_bounds = array<i64: 2, 128, 32>}, {pipeline_mode = #tpu.pipeline_mode<synchronous>, transform_indices = @transform_5, window_bounds = array<i64: 2, 8, 128>}, {transform_indices = @transform_6, window_bounds = array<i64: 128, 32>}]} {
    %c0 = arith.constant 0 : index
    %c0_0 = arith.constant 0 : index
    %0 = vector.load %arg1[%c0, %c0_0] : memref<128x32xf32, #tpu.memory_space<vmem>>, vector<128x32xf32>
    %c0_1 = arith.constant 0 : index
    %c0_2 = arith.constant 0 : index
    %c0_3 = arith.constant 0 : index
    %1 = vector.load %arg6[%c0_1, %c0_2, %c0_3] : memref<2x8x128xf32, #tpu.memory_space<vmem>>, vector<1x8x128xf32>
    %2 = vector.shape_cast %1 : vector<1x8x128xf32> to vector<8x128xf32>
    %3 = vector.extract_strided_slice %2 {offsets = [0, 0], sizes = [1, 32], strides = [1, 1]} : vector<8x128xf32> to vector<1x32xf32>
    %4 = vector.extract_strided_slice %2 {offsets = [1, 0], sizes = [1, 32], strides = [1, 1]} : vector<8x128xf32> to vector<1x32xf32>
    %5 = vector.extract_strided_slice %2 {offsets = [2, 0], sizes = [1, 32], strides = [1, 1]} : vector<8x128xf32> to vector<1x32xf32>
    %6 = vector.extract_strided_slice %2 {offsets = [3, 0], sizes = [1, 32], strides = [1, 1]} : vector<8x128xf32> to vector<1x32xf32>
    %7 = vector.extract_strided_slice %2 {offsets = [4, 0], sizes = [1, 96], strides = [1, 1]} : vector<8x128xf32> to vector<1x96xf32>
    %8 = vector.extract_strided_slice %2 {offsets = [5, 0], sizes = [1, 32], strides = [1, 1]} : vector<8x128xf32> to vector<1x32xf32>
    %9 = vector.extract_strided_slice %2 {offsets = [6, 0], sizes = [1, 128], strides = [1, 1]} : vector<8x128xf32> to vector<1x128xf32>
    %10 = vector.extract_strided_slice %2 {offsets = [7, 0], sizes = [1, 32], strides = [1, 1]} : vector<8x128xf32> to vector<1x32xf32>
    %c0_4 = arith.constant 0 : index
    %c0_5 = arith.constant 0 : index
    %c0_6 = arith.constant 0 : index
    %11 = vector.load %arg2[%c0_4, %c0_5, %c0_6] : memref<2x32x96xbf16, #tpu.memory_space<vmem>>, vector<1x32x96xbf16>
    %12 = vector.shape_cast %11 : vector<1x32x96xbf16> to vector<32x96xbf16>
    %c0_7 = arith.constant 0 : index
    %c0_8 = arith.constant 0 : index
    %c0_9 = arith.constant 0 : index
    %13 = vector.load %arg3[%c0_7, %c0_8, %c0_9] : memref<2x32x32xbf16, #tpu.memory_space<vmem>>, vector<1x32x32xbf16>
    %14 = vector.shape_cast %13 : vector<1x32x32xbf16> to vector<32x32xbf16>
    %c0_10 = arith.constant 0 : index
    %c0_11 = arith.constant 0 : index
    %c0_12 = arith.constant 0 : index
    %15 = vector.load %arg4[%c0_10, %c0_11, %c0_12] : memref<2x32x128xbf16, #tpu.memory_space<vmem>>, vector<1x32x128xbf16>
    %16 = vector.shape_cast %15 : vector<1x32x128xbf16> to vector<32x128xbf16>
    %c0_13 = arith.constant 0 : index
    %c0_14 = arith.constant 0 : index
    %c0_15 = arith.constant 0 : index
    %17 = vector.load %arg5[%c0_13, %c0_14, %c0_15] : memref<2x128x32xbf16, #tpu.memory_space<vmem>>, vector<1x128x32xbf16>
    %18 = vector.shape_cast %17 : vector<1x128x32xbf16> to vector<128x32xbf16>
    %cst = arith.constant dense<0.000000e+00> : vector<128xf32>
    %19 = vector.multi_reduction <add>, %0, %cst [1] : vector<128x32xf32> to vector<128xf32>
    %20 = vector.shape_cast %19 : vector<128xf32> to vector<128x1xf32>
    %cst_16 = arith.constant 3.200000e+01 : f32
    %21 = vector.broadcast %cst_16 : f32 to vector<128x1xf32>
    %22 = arith.divf %20, %21 : vector<128x1xf32>
    %23 = vector.broadcast %22 : vector<128x1xf32> to vector<128x32xf32>
    %24 = arith.subf %0, %23 : vector<128x32xf32>
    %25 = arith.mulf %24, %24 : vector<128x32xf32>
    %cst_17 = arith.constant dense<0.000000e+00> : vector<128xf32>
    %26 = vector.multi_reduction <add>, %25, %cst_17 [1] : vector<128x32xf32> to vector<128xf32>
    %27 = vector.shape_cast %26 : vector<128xf32> to vector<128x1xf32>
    %cst_18 = arith.constant 3.200000e+01 : f32
    %28 = vector.broadcast %cst_18 : f32 to vector<128x1xf32>
    %29 = arith.divf %27, %28 : vector<128x1xf32>
    %30 = vector.broadcast %22 : vector<128x1xf32> to vector<128x32xf32>
    %31 = arith.subf %0, %30 : vector<128x32xf32>
    %cst_19 = arith.constant 9.99999997E-7 : f32
    %32 = vector.broadcast %cst_19 : f32 to vector<128x1xf32>
    %33 = arith.addf %29, %32 : vector<128x1xf32>
    %34 = math.rsqrt %33 : vector<128x1xf32>
    %35 = vector.broadcast %34 : vector<128x1xf32> to vector<128x32xf32>
    %36 = arith.mulf %31, %35 : vector<128x32xf32>
    %37 = vector.broadcast %3 : vector<1x32xf32> to vector<128x32xf32>
    %38 = arith.mulf %36, %37 : vector<128x32xf32>
    %39 = vector.broadcast %4 : vector<1x32xf32> to vector<128x32xf32>
    %40 = arith.addf %38, %39 : vector<128x32xf32>
    %41 = arith.truncf %40 : vector<128x32xf32> to vector<128x32xbf16>
    %cst_20 = arith.constant dense<0.000000e+00> : vector<128x96xf32>
    %42 = tpu.matmul %41, %12, %cst_20 {dimension_numbers = #tpu.dot_dimension_numbers<[1], [0], [0], [1], [0, 0, 1, 1], [], []>} : vector<128x32xbf16>, vector<32x96xbf16>, vector<128x96xf32> -> vector<128x96xf32>
    %43 = vector.broadcast %7 : vector<1x96xf32> to vector<128x96xf32>
    %44 = arith.addf %42, %43 : vector<128x96xf32>
    %45 = arith.truncf %44 : vector<128x96xf32> to vector<128x96xbf16>
    %46 = vector.extract_strided_slice %45 {offsets = [0, 0], sizes = [128, 32], strides = [1, 1]} : vector<128x96xbf16> to vector<128x32xbf16>
    %47 = vector.extract_strided_slice %45 {offsets = [0, 32], sizes = [128, 32], strides = [1, 1]} : vector<128x96xbf16> to vector<128x32xbf16>
    %48 = vector.extract_strided_slice %45 {offsets = [0, 64], sizes = [128, 32], strides = [1, 1]} : vector<128x96xbf16> to vector<128x32xbf16>
    %49 = vector.extract_strided_slice %46 {offsets = [0, 0], sizes = [64, 8], strides = [1, 1]} : vector<128x32xbf16> to vector<64x8xbf16>
    %50 = vector.extract_strided_slice %47 {offsets = [0, 0], sizes = [64, 8], strides = [1, 1]} : vector<128x32xbf16> to vector<64x8xbf16>
    %51 = vector.extract_strided_slice %48 {offsets = [0, 0], sizes = [64, 8], strides = [1, 1]} : vector<128x32xbf16> to vector<64x8xbf16>
    %cst_21 = arith.constant dense<0.000000e+00> : vector<64x64xf32>
    %52 = tpu.matmul %49, %50, %cst_21 {dimension_numbers = #tpu.dot_dimension_numbers<[1], [1], [0], [0], [0, 0, 1, 0], [], []>} : vector<64x8xbf16>, vector<64x8xbf16>, vector<64x64xf32> -> vector<64x64xf32>
    %cst_22 = arith.constant dense<0xFF800000> : vector<64xf32>
    %53 = vector.multi_reduction <maximumf>, %52, %cst_22 [1] : vector<64x64xf32> to vector<64xf32>
    %54 = vector.shape_cast %53 : vector<64xf32> to vector<64x1xf32>
    %55 = vector.broadcast %54 : vector<64x1xf32> to vector<64x64xf32>
    %56 = arith.subf %52, %55 : vector<64x64xf32>
    %57 = math.exp %56 : vector<64x64xf32>
    %cst_23 = arith.constant dense<0.000000e+00> : vector<64xf32>
    %58 = vector.multi_reduction <add>, %57, %cst_23 [1] : vector<64x64xf32> to vector<64xf32>
    %59 = vector.shape_cast %58 : vector<64xf32> to vector<64x1xf32>
    %60 = tpu.reciprocal %59 {approx = true} : vector<64x1xf32> -> vector<64x1xf32>
    %61 = vector.broadcast %60 : vector<64x1xf32> to vector<64x64xf32>
    %62 = arith.mulf %57, %61 : vector<64x64xf32>
    %63 = arith.truncf %62 : vector<64x64xf32> to vector<64x64xbf16>
    %cst_24 = arith.constant dense<0.000000e+00> : vector<64x8xf32>
    %64 = tpu.matmul %63, %51, %cst_24 {dimension_numbers = #tpu.dot_dimension_numbers<[1], [0], [0], [1], [0, 0, 1, 1], [], []>} : vector<64x64xbf16>, vector<64x8xbf16>, vector<64x8xf32> -> vector<64x8xf32>
    %65 = vector.extract_strided_slice %46 {offsets = [0, 8], sizes = [64, 8], strides = [1, 1]} : vector<128x32xbf16> to vector<64x8xbf16>
    %66 = vector.extract_strided_slice %47 {offsets = [0, 8], sizes = [64, 8], strides = [1, 1]} : vector<128x32xbf16> to vector<64x8xbf16>
    %67 = vector.extract_strided_slice %48 {offsets = [0, 8], sizes = [64, 8], strides = [1, 1]} : vector<128x32xbf16> to vector<64x8xbf16>
    %cst_25 = arith.constant dense<0.000000e+00> : vector<64x64xf32>
    %68 = tpu.matmul %65, %66, %cst_25 {dimension_numbers = #tpu.dot_dimension_numbers<[1], [1], [0], [0], [0, 0, 1, 0], [], []>} : vector<64x8xbf16>, vector<64x8xbf16>, vector<64x64xf32> -> vector<64x64xf32>
    %cst_26 = arith.constant dense<0xFF800000> : vector<64xf32>
    %69 = vector.multi_reduction <maximumf>, %68, %cst_26 [1] : vector<64x64xf32> to vector<64xf32>
    %70 = vector.shape_cast %69 : vector<64xf32> to vector<64x1xf32>
    %71 = vector.broadcast %70 : vector<64x1xf32> to vector<64x64xf32>
    %72 = arith.subf %68, %71 : vector<64x64xf32>
    %73 = math.exp %72 : vector<64x64xf32>
    %cst_27 = arith.constant dense<0.000000e+00> : vector<64xf32>
    %74 = vector.multi_reduction <add>, %73, %cst_27 [1] : vector<64x64xf32> to vector<64xf32>
    %75 = vector.shape_cast %74 : vector<64xf32> to vector<64x1xf32>
    %76 = tpu.reciprocal %75 {approx = true} : vector<64x1xf32> -> vector<64x1xf32>
    %77 = vector.broadcast %76 : vector<64x1xf32> to vector<64x64xf32>
    %78 = arith.mulf %73, %77 : vector<64x64xf32>
    %79 = arith.truncf %78 : vector<64x64xf32> to vector<64x64xbf16>
    %cst_28 = arith.constant dense<0.000000e+00> : vector<64x8xf32>
    %80 = tpu.matmul %79, %67, %cst_28 {dimension_numbers = #tpu.dot_dimension_numbers<[1], [0], [0], [1], [0, 0, 1, 1], [], []>} : vector<64x64xbf16>, vector<64x8xbf16>, vector<64x8xf32> -> vector<64x8xf32>
    %81 = vector.extract_strided_slice %46 {offsets = [0, 16], sizes = [64, 8], strides = [1, 1]} : vector<128x32xbf16> to vector<64x8xbf16>
    %82 = vector.extract_strided_slice %47 {offsets = [0, 16], sizes = [64, 8], strides = [1, 1]} : vector<128x32xbf16> to vector<64x8xbf16>
    %83 = vector.extract_strided_slice %48 {offsets = [0, 16], sizes = [64, 8], strides = [1, 1]} : vector<128x32xbf16> to vector<64x8xbf16>
    %cst_29 = arith.constant dense<0.000000e+00> : vector<64x64xf32>
    %84 = tpu.matmul %81, %82, %cst_29 {dimension_numbers = #tpu.dot_dimension_numbers<[1], [1], [0], [0], [0, 0, 1, 0], [], []>} : vector<64x8xbf16>, vector<64x8xbf16>, vector<64x64xf32> -> vector<64x64xf32>
    %cst_30 = arith.constant dense<0xFF800000> : vector<64xf32>
    %85 = vector.multi_reduction <maximumf>, %84, %cst_30 [1] : vector<64x64xf32> to vector<64xf32>
    %86 = vector.shape_cast %85 : vector<64xf32> to vector<64x1xf32>
    %87 = vector.broadcast %86 : vector<64x1xf32> to vector<64x64xf32>
    %88 = arith.subf %84, %87 : vector<64x64xf32>
    %89 = math.exp %88 : vector<64x64xf32>
    %cst_31 = arith.constant dense<0.000000e+00> : vector<64xf32>
    %90 = vector.multi_reduction <add>, %89, %cst_31 [1] : vector<64x64xf32> to vector<64xf32>
    %91 = vector.shape_cast %90 : vector<64xf32> to vector<64x1xf32>
    %92 = tpu.reciprocal %91 {approx = true} : vector<64x1xf32> -> vector<64x1xf32>
    %93 = vector.broadcast %92 : vector<64x1xf32> to vector<64x64xf32>
    %94 = arith.mulf %89, %93 : vector<64x64xf32>
    %95 = arith.truncf %94 : vector<64x64xf32> to vector<64x64xbf16>
    %cst_32 = arith.constant dense<0.000000e+00> : vector<64x8xf32>
    %96 = tpu.matmul %95, %83, %cst_32 {dimension_numbers = #tpu.dot_dimension_numbers<[1], [0], [0], [1], [0, 0, 1, 1], [], []>} : vector<64x64xbf16>, vector<64x8xbf16>, vector<64x8xf32> -> vector<64x8xf32>
    %97 = vector.extract_strided_slice %46 {offsets = [0, 24], sizes = [64, 8], strides = [1, 1]} : vector<128x32xbf16> to vector<64x8xbf16>
    %98 = vector.extract_strided_slice %47 {offsets = [0, 24], sizes = [64, 8], strides = [1, 1]} : vector<128x32xbf16> to vector<64x8xbf16>
    %99 = vector.extract_strided_slice %48 {offsets = [0, 24], sizes = [64, 8], strides = [1, 1]} : vector<128x32xbf16> to vector<64x8xbf16>
    %cst_33 = arith.constant dense<0.000000e+00> : vector<64x64xf32>
    %100 = tpu.matmul %97, %98, %cst_33 {dimension_numbers = #tpu.dot_dimension_numbers<[1], [1], [0], [0], [0, 0, 1, 0], [], []>} : vector<64x8xbf16>, vector<64x8xbf16>, vector<64x64xf32> -> vector<64x64xf32>
    %cst_34 = arith.constant dense<0xFF800000> : vector<64xf32>
    %101 = vector.multi_reduction <maximumf>, %100, %cst_34 [1] : vector<64x64xf32> to vector<64xf32>
    %102 = vector.shape_cast %101 : vector<64xf32> to vector<64x1xf32>
    %103 = vector.broadcast %102 : vector<64x1xf32> to vector<64x64xf32>
    %104 = arith.subf %100, %103 : vector<64x64xf32>
    %105 = math.exp %104 : vector<64x64xf32>
    %cst_35 = arith.constant dense<0.000000e+00> : vector<64xf32>
    %106 = vector.multi_reduction <add>, %105, %cst_35 [1] : vector<64x64xf32> to vector<64xf32>
    %107 = vector.shape_cast %106 : vector<64xf32> to vector<64x1xf32>
    %108 = tpu.reciprocal %107 {approx = true} : vector<64x1xf32> -> vector<64x1xf32>
    %109 = vector.broadcast %108 : vector<64x1xf32> to vector<64x64xf32>
    %110 = arith.mulf %105, %109 : vector<64x64xf32>
    %111 = arith.truncf %110 : vector<64x64xf32> to vector<64x64xbf16>
    %cst_36 = arith.constant dense<0.000000e+00> : vector<64x8xf32>
    %112 = tpu.matmul %111, %99, %cst_36 {dimension_numbers = #tpu.dot_dimension_numbers<[1], [0], [0], [1], [0, 0, 1, 1], [], []>} : vector<64x64xbf16>, vector<64x8xbf16>, vector<64x8xf32> -> vector<64x8xf32>
    %113 = tpu.concatenate %64, %80, %96, %112 in 1 : vector<64x8xf32>, vector<64x8xf32>, vector<64x8xf32>, vector<64x8xf32> -> vector<64x32xf32>
    %114 = vector.extract_strided_slice %46 {offsets = [64, 0], sizes = [64, 8], strides = [1, 1]} : vector<128x32xbf16> to vector<64x8xbf16>
    %115 = vector.extract_strided_slice %47 {offsets = [64, 0], sizes = [64, 8], strides = [1, 1]} : vector<128x32xbf16> to vector<64x8xbf16>
    %116 = vector.extract_strided_slice %48 {offsets = [64, 0], sizes = [64, 8], strides = [1, 1]} : vector<128x32xbf16> to vector<64x8xbf16>
    %cst_37 = arith.constant dense<0.000000e+00> : vector<64x64xf32>
    %117 = tpu.matmul %114, %115, %cst_37 {dimension_numbers = #tpu.dot_dimension_numbers<[1], [1], [0], [0], [0, 0, 1, 0], [], []>} : vector<64x8xbf16>, vector<64x8xbf16>, vector<64x64xf32> -> vector<64x64xf32>
    %cst_38 = arith.constant dense<0xFF800000> : vector<64xf32>
    %118 = vector.multi_reduction <maximumf>, %117, %cst_38 [1] : vector<64x64xf32> to vector<64xf32>
    %119 = vector.shape_cast %118 : vector<64xf32> to vector<64x1xf32>
    %120 = vector.broadcast %119 : vector<64x1xf32> to vector<64x64xf32>
    %121 = arith.subf %117, %120 : vector<64x64xf32>
    %122 = math.exp %121 : vector<64x64xf32>
    %cst_39 = arith.constant dense<0.000000e+00> : vector<64xf32>
    %123 = vector.multi_reduction <add>, %122, %cst_39 [1] : vector<64x64xf32> to vector<64xf32>
    %124 = vector.shape_cast %123 : vector<64xf32> to vector<64x1xf32>
    %125 = tpu.reciprocal %124 {approx = true} : vector<64x1xf32> -> vector<64x1xf32>
    %126 = vector.broadcast %125 : vector<64x1xf32> to vector<64x64xf32>
    %127 = arith.mulf %122, %126 : vector<64x64xf32>
    %128 = arith.truncf %127 : vector<64x64xf32> to vector<64x64xbf16>
    %cst_40 = arith.constant dense<0.000000e+00> : vector<64x8xf32>
    %129 = tpu.matmul %128, %116, %cst_40 {dimension_numbers = #tpu.dot_dimension_numbers<[1], [0], [0], [1], [0, 0, 1, 1], [], []>} : vector<64x64xbf16>, vector<64x8xbf16>, vector<64x8xf32> -> vector<64x8xf32>
    %130 = vector.extract_strided_slice %46 {offsets = [64, 8], sizes = [64, 8], strides = [1, 1]} : vector<128x32xbf16> to vector<64x8xbf16>
    %131 = vector.extract_strided_slice %47 {offsets = [64, 8], sizes = [64, 8], strides = [1, 1]} : vector<128x32xbf16> to vector<64x8xbf16>
    %132 = vector.extract_strided_slice %48 {offsets = [64, 8], sizes = [64, 8], strides = [1, 1]} : vector<128x32xbf16> to vector<64x8xbf16>
    %cst_41 = arith.constant dense<0.000000e+00> : vector<64x64xf32>
    %133 = tpu.matmul %130, %131, %cst_41 {dimension_numbers = #tpu.dot_dimension_numbers<[1], [1], [0], [0], [0, 0, 1, 0], [], []>} : vector<64x8xbf16>, vector<64x8xbf16>, vector<64x64xf32> -> vector<64x64xf32>
    %cst_42 = arith.constant dense<0xFF800000> : vector<64xf32>
    %134 = vector.multi_reduction <maximumf>, %133, %cst_42 [1] : vector<64x64xf32> to vector<64xf32>
    %135 = vector.shape_cast %134 : vector<64xf32> to vector<64x1xf32>
    %136 = vector.broadcast %135 : vector<64x1xf32> to vector<64x64xf32>
    %137 = arith.subf %133, %136 : vector<64x64xf32>
    %138 = math.exp %137 : vector<64x64xf32>
    %cst_43 = arith.constant dense<0.000000e+00> : vector<64xf32>
    %139 = vector.multi_reduction <add>, %138, %cst_43 [1] : vector<64x64xf32> to vector<64xf32>
    %140 = vector.shape_cast %139 : vector<64xf32> to vector<64x1xf32>
    %141 = tpu.reciprocal %140 {approx = true} : vector<64x1xf32> -> vector<64x1xf32>
    %142 = vector.broadcast %141 : vector<64x1xf32> to vector<64x64xf32>
    %143 = arith.mulf %138, %142 : vector<64x64xf32>
    %144 = arith.truncf %143 : vector<64x64xf32> to vector<64x64xbf16>
    %cst_44 = arith.constant dense<0.000000e+00> : vector<64x8xf32>
    %145 = tpu.matmul %144, %132, %cst_44 {dimension_numbers = #tpu.dot_dimension_numbers<[1], [0], [0], [1], [0, 0, 1, 1], [], []>} : vector<64x64xbf16>, vector<64x8xbf16>, vector<64x8xf32> -> vector<64x8xf32>
    %146 = vector.extract_strided_slice %46 {offsets = [64, 16], sizes = [64, 8], strides = [1, 1]} : vector<128x32xbf16> to vector<64x8xbf16>
    %147 = vector.extract_strided_slice %47 {offsets = [64, 16], sizes = [64, 8], strides = [1, 1]} : vector<128x32xbf16> to vector<64x8xbf16>
    %148 = vector.extract_strided_slice %48 {offsets = [64, 16], sizes = [64, 8], strides = [1, 1]} : vector<128x32xbf16> to vector<64x8xbf16>
    %cst_45 = arith.constant dense<0.000000e+00> : vector<64x64xf32>
    %149 = tpu.matmul %146, %147, %cst_45 {dimension_numbers = #tpu.dot_dimension_numbers<[1], [1], [0], [0], [0, 0, 1, 0], [], []>} : vector<64x8xbf16>, vector<64x8xbf16>, vector<64x64xf32> -> vector<64x64xf32>
    %cst_46 = arith.constant dense<0xFF800000> : vector<64xf32>
    %150 = vector.multi_reduction <maximumf>, %149, %cst_46 [1] : vector<64x64xf32> to vector<64xf32>
    %151 = vector.shape_cast %150 : vector<64xf32> to vector<64x1xf32>
    %152 = vector.broadcast %151 : vector<64x1xf32> to vector<64x64xf32>
    %153 = arith.subf %149, %152 : vector<64x64xf32>
    %154 = math.exp %153 : vector<64x64xf32>
    %cst_47 = arith.constant dense<0.000000e+00> : vector<64xf32>
    %155 = vector.multi_reduction <add>, %154, %cst_47 [1] : vector<64x64xf32> to vector<64xf32>
    %156 = vector.shape_cast %155 : vector<64xf32> to vector<64x1xf32>
    %157 = tpu.reciprocal %156 {approx = true} : vector<64x1xf32> -> vector<64x1xf32>
    %158 = vector.broadcast %157 : vector<64x1xf32> to vector<64x64xf32>
    %159 = arith.mulf %154, %158 : vector<64x64xf32>
    %160 = arith.truncf %159 : vector<64x64xf32> to vector<64x64xbf16>
    %cst_48 = arith.constant dense<0.000000e+00> : vector<64x8xf32>
    %161 = tpu.matmul %160, %148, %cst_48 {dimension_numbers = #tpu.dot_dimension_numbers<[1], [0], [0], [1], [0, 0, 1, 1], [], []>} : vector<64x64xbf16>, vector<64x8xbf16>, vector<64x8xf32> -> vector<64x8xf32>
    %162 = vector.extract_strided_slice %46 {offsets = [64, 24], sizes = [64, 8], strides = [1, 1]} : vector<128x32xbf16> to vector<64x8xbf16>
    %163 = vector.extract_strided_slice %47 {offsets = [64, 24], sizes = [64, 8], strides = [1, 1]} : vector<128x32xbf16> to vector<64x8xbf16>
    %164 = vector.extract_strided_slice %48 {offsets = [64, 24], sizes = [64, 8], strides = [1, 1]} : vector<128x32xbf16> to vector<64x8xbf16>
    %cst_49 = arith.constant dense<0.000000e+00> : vector<64x64xf32>
    %165 = tpu.matmul %162, %163, %cst_49 {dimension_numbers = #tpu.dot_dimension_numbers<[1], [1], [0], [0], [0, 0, 1, 0], [], []>} : vector<64x8xbf16>, vector<64x8xbf16>, vector<64x64xf32> -> vector<64x64xf32>
    %cst_50 = arith.constant dense<0xFF800000> : vector<64xf32>
    %166 = vector.multi_reduction <maximumf>, %165, %cst_50 [1] : vector<64x64xf32> to vector<64xf32>
    %167 = vector.shape_cast %166 : vector<64xf32> to vector<64x1xf32>
    %168 = vector.broadcast %167 : vector<64x1xf32> to vector<64x64xf32>
    %169 = arith.subf %165, %168 : vector<64x64xf32>
    %170 = math.exp %169 : vector<64x64xf32>
    %cst_51 = arith.constant dense<0.000000e+00> : vector<64xf32>
    %171 = vector.multi_reduction <add>, %170, %cst_51 [1] : vector<64x64xf32> to vector<64xf32>
    %172 = vector.shape_cast %171 : vector<64xf32> to vector<64x1xf32>
    %173 = tpu.reciprocal %172 {approx = true} : vector<64x1xf32> -> vector<64x1xf32>
    %174 = vector.broadcast %173 : vector<64x1xf32> to vector<64x64xf32>
    %175 = arith.mulf %170, %174 : vector<64x64xf32>
    %176 = arith.truncf %175 : vector<64x64xf32> to vector<64x64xbf16>
    %cst_52 = arith.constant dense<0.000000e+00> : vector<64x8xf32>
    %177 = tpu.matmul %176, %164, %cst_52 {dimension_numbers = #tpu.dot_dimension_numbers<[1], [0], [0], [1], [0, 0, 1, 1], [], []>} : vector<64x64xbf16>, vector<64x8xbf16>, vector<64x8xf32> -> vector<64x8xf32>
    %178 = tpu.concatenate %129, %145, %161, %177 in 1 : vector<64x8xf32>, vector<64x8xf32>, vector<64x8xf32>, vector<64x8xf32> -> vector<64x32xf32>
    %179 = tpu.concatenate %113, %178 in 0 : vector<64x32xf32>, vector<64x32xf32> -> vector<128x32xf32>
    %180 = arith.truncf %179 : vector<128x32xf32> to vector<128x32xbf16>
    %cst_53 = arith.constant dense<0.000000e+00> : vector<128x32xf32>
    %181 = tpu.matmul %180, %14, %cst_53 {dimension_numbers = #tpu.dot_dimension_numbers<[1], [0], [0], [1], [0, 0, 1, 1], [], []>} : vector<128x32xbf16>, vector<32x32xbf16>, vector<128x32xf32> -> vector<128x32xf32>
    %182 = vector.broadcast %8 : vector<1x32xf32> to vector<128x32xf32>
    %183 = arith.addf %181, %182 : vector<128x32xf32>
    %184 = arith.addf %0, %183 : vector<128x32xf32>
    %cst_54 = arith.constant dense<0.000000e+00> : vector<128xf32>
    %185 = vector.multi_reduction <add>, %184, %cst_54 [1] : vector<128x32xf32> to vector<128xf32>
    %186 = vector.shape_cast %185 : vector<128xf32> to vector<128x1xf32>
    %cst_55 = arith.constant 3.200000e+01 : f32
    %187 = vector.broadcast %cst_55 : f32 to vector<128x1xf32>
    %188 = arith.divf %186, %187 : vector<128x1xf32>
    %189 = vector.broadcast %188 : vector<128x1xf32> to vector<128x32xf32>
    %190 = arith.subf %184, %189 : vector<128x32xf32>
    %191 = arith.mulf %190, %190 : vector<128x32xf32>
    %cst_56 = arith.constant dense<0.000000e+00> : vector<128xf32>
    %192 = vector.multi_reduction <add>, %191, %cst_56 [1] : vector<128x32xf32> to vector<128xf32>
    %193 = vector.shape_cast %192 : vector<128xf32> to vector<128x1xf32>
    %cst_57 = arith.constant 3.200000e+01 : f32
    %194 = vector.broadcast %cst_57 : f32 to vector<128x1xf32>
    %195 = arith.divf %193, %194 : vector<128x1xf32>
    %196 = vector.broadcast %188 : vector<128x1xf32> to vector<128x32xf32>
    %197 = arith.subf %184, %196 : vector<128x32xf32>
    %cst_58 = arith.constant 9.99999997E-7 : f32
    %198 = vector.broadcast %cst_58 : f32 to vector<128x1xf32>
    %199 = arith.addf %195, %198 : vector<128x1xf32>
    %200 = math.rsqrt %199 : vector<128x1xf32>
    %201 = vector.broadcast %200 : vector<128x1xf32> to vector<128x32xf32>
    %202 = arith.mulf %197, %201 : vector<128x32xf32>
    %203 = vector.broadcast %5 : vector<1x32xf32> to vector<128x32xf32>
    %204 = arith.mulf %202, %203 : vector<128x32xf32>
    %205 = vector.broadcast %6 : vector<1x32xf32> to vector<128x32xf32>
    %206 = arith.addf %204, %205 : vector<128x32xf32>
    %207 = arith.truncf %206 : vector<128x32xf32> to vector<128x32xbf16>
    %cst_59 = arith.constant dense<0.000000e+00> : vector<128x128xf32>
    %208 = tpu.matmul %207, %16, %cst_59 {dimension_numbers = #tpu.dot_dimension_numbers<[1], [0], [0], [1], [0, 0, 1, 1], [], []>} : vector<128x32xbf16>, vector<32x128xbf16>, vector<128x128xf32> -> vector<128x128xf32>
    %209 = vector.broadcast %9 : vector<1x128xf32> to vector<128x128xf32>
    %210 = arith.addf %208, %209 : vector<128x128xf32>
    %cst_60 = arith.constant 5.000000e-01 : f32
    %211 = vector.broadcast %cst_60 : f32 to vector<128x128xf32>
    %212 = arith.mulf %211, %210 : vector<128x128xf32>
    %cst_61 = arith.constant 4.471500e-02 : f32
    %213 = vector.broadcast %cst_61 : f32 to vector<128x128xf32>
    %214 = arith.mulf %213, %210 : vector<128x128xf32>
    %215 = arith.mulf %214, %210 : vector<128x128xf32>
    %216 = arith.mulf %215, %210 : vector<128x128xf32>
    %217 = arith.addf %210, %216 : vector<128x128xf32>
    %cst_62 = arith.constant 0.797884583 : f32
    %218 = vector.broadcast %cst_62 : f32 to vector<128x128xf32>
    %219 = arith.mulf %218, %217 : vector<128x128xf32>
    %220 = math.tanh %219 : vector<128x128xf32>
    %cst_63 = arith.constant 1.000000e+00 : f32
    %221 = vector.broadcast %cst_63 : f32 to vector<128x128xf32>
    %222 = arith.addf %221, %220 : vector<128x128xf32>
    %223 = arith.mulf %212, %222 : vector<128x128xf32>
    %224 = arith.truncf %223 : vector<128x128xf32> to vector<128x128xbf16>
    %cst_64 = arith.constant dense<0.000000e+00> : vector<128x32xf32>
    %225 = tpu.matmul %224, %18, %cst_64 {dimension_numbers = #tpu.dot_dimension_numbers<[1], [0], [0], [1], [0, 0, 1, 1], [], []>} : vector<128x128xbf16>, vector<128x32xbf16>, vector<128x32xf32> -> vector<128x32xf32>
    %226 = vector.broadcast %10 : vector<1x32xf32> to vector<128x32xf32>
    %227 = arith.addf %225, %226 : vector<128x32xf32>
    %228 = arith.addf %184, %227 : vector<128x32xf32>
    %c1 = arith.constant 1 : index
    %c0_65 = arith.constant 0 : index
    %c0_66 = arith.constant 0 : index
    %229 = vector.load %arg6[%c1, %c0_65, %c0_66] : memref<2x8x128xf32, #tpu.memory_space<vmem>>, vector<1x8x128xf32>
    %230 = vector.shape_cast %229 : vector<1x8x128xf32> to vector<8x128xf32>
    %231 = vector.extract_strided_slice %230 {offsets = [0, 0], sizes = [1, 32], strides = [1, 1]} : vector<8x128xf32> to vector<1x32xf32>
    %232 = vector.extract_strided_slice %230 {offsets = [1, 0], sizes = [1, 32], strides = [1, 1]} : vector<8x128xf32> to vector<1x32xf32>
    %233 = vector.extract_strided_slice %230 {offsets = [2, 0], sizes = [1, 32], strides = [1, 1]} : vector<8x128xf32> to vector<1x32xf32>
    %234 = vector.extract_strided_slice %230 {offsets = [3, 0], sizes = [1, 32], strides = [1, 1]} : vector<8x128xf32> to vector<1x32xf32>
    %235 = vector.extract_strided_slice %230 {offsets = [4, 0], sizes = [1, 96], strides = [1, 1]} : vector<8x128xf32> to vector<1x96xf32>
    %236 = vector.extract_strided_slice %230 {offsets = [5, 0], sizes = [1, 32], strides = [1, 1]} : vector<8x128xf32> to vector<1x32xf32>
    %237 = vector.extract_strided_slice %230 {offsets = [6, 0], sizes = [1, 128], strides = [1, 1]} : vector<8x128xf32> to vector<1x128xf32>
    %238 = vector.extract_strided_slice %230 {offsets = [7, 0], sizes = [1, 32], strides = [1, 1]} : vector<8x128xf32> to vector<1x32xf32>
    %c1_67 = arith.constant 1 : index
    %c0_68 = arith.constant 0 : index
    %c0_69 = arith.constant 0 : index
    %239 = vector.load %arg2[%c1_67, %c0_68, %c0_69] : memref<2x32x96xbf16, #tpu.memory_space<vmem>>, vector<1x32x96xbf16>
    %240 = vector.shape_cast %239 : vector<1x32x96xbf16> to vector<32x96xbf16>
    %c1_70 = arith.constant 1 : index
    %c0_71 = arith.constant 0 : index
    %c0_72 = arith.constant 0 : index
    %241 = vector.load %arg3[%c1_70, %c0_71, %c0_72] : memref<2x32x32xbf16, #tpu.memory_space<vmem>>, vector<1x32x32xbf16>
    %242 = vector.shape_cast %241 : vector<1x32x32xbf16> to vector<32x32xbf16>
    %c1_73 = arith.constant 1 : index
    %c0_74 = arith.constant 0 : index
    %c0_75 = arith.constant 0 : index
    %243 = vector.load %arg4[%c1_73, %c0_74, %c0_75] : memref<2x32x128xbf16, #tpu.memory_space<vmem>>, vector<1x32x128xbf16>
    %244 = vector.shape_cast %243 : vector<1x32x128xbf16> to vector<32x128xbf16>
    %c1_76 = arith.constant 1 : index
    %c0_77 = arith.constant 0 : index
    %c0_78 = arith.constant 0 : index
    %245 = vector.load %arg5[%c1_76, %c0_77, %c0_78] : memref<2x128x32xbf16, #tpu.memory_space<vmem>>, vector<1x128x32xbf16>
    %246 = vector.shape_cast %245 : vector<1x128x32xbf16> to vector<128x32xbf16>
    %cst_79 = arith.constant dense<0.000000e+00> : vector<128xf32>
    %247 = vector.multi_reduction <add>, %228, %cst_79 [1] : vector<128x32xf32> to vector<128xf32>
    %248 = vector.shape_cast %247 : vector<128xf32> to vector<128x1xf32>
    %cst_80 = arith.constant 3.200000e+01 : f32
    %249 = vector.broadcast %cst_80 : f32 to vector<128x1xf32>
    %250 = arith.divf %248, %249 : vector<128x1xf32>
    %251 = vector.broadcast %250 : vector<128x1xf32> to vector<128x32xf32>
    %252 = arith.subf %228, %251 : vector<128x32xf32>
    %253 = arith.mulf %252, %252 : vector<128x32xf32>
    %cst_81 = arith.constant dense<0.000000e+00> : vector<128xf32>
    %254 = vector.multi_reduction <add>, %253, %cst_81 [1] : vector<128x32xf32> to vector<128xf32>
    %255 = vector.shape_cast %254 : vector<128xf32> to vector<128x1xf32>
    %cst_82 = arith.constant 3.200000e+01 : f32
    %256 = vector.broadcast %cst_82 : f32 to vector<128x1xf32>
    %257 = arith.divf %255, %256 : vector<128x1xf32>
    %258 = vector.broadcast %250 : vector<128x1xf32> to vector<128x32xf32>
    %259 = arith.subf %228, %258 : vector<128x32xf32>
    %cst_83 = arith.constant 9.99999997E-7 : f32
    %260 = vector.broadcast %cst_83 : f32 to vector<128x1xf32>
    %261 = arith.addf %257, %260 : vector<128x1xf32>
    %262 = math.rsqrt %261 : vector<128x1xf32>
    %263 = vector.broadcast %262 : vector<128x1xf32> to vector<128x32xf32>
    %264 = arith.mulf %259, %263 : vector<128x32xf32>
    %265 = vector.broadcast %231 : vector<1x32xf32> to vector<128x32xf32>
    %266 = arith.mulf %264, %265 : vector<128x32xf32>
    %267 = vector.broadcast %232 : vector<1x32xf32> to vector<128x32xf32>
    %268 = arith.addf %266, %267 : vector<128x32xf32>
    %269 = arith.truncf %268 : vector<128x32xf32> to vector<128x32xbf16>
    %cst_84 = arith.constant dense<0.000000e+00> : vector<128x96xf32>
    %270 = tpu.matmul %269, %240, %cst_84 {dimension_numbers = #tpu.dot_dimension_numbers<[1], [0], [0], [1], [0, 0, 1, 1], [], []>} : vector<128x32xbf16>, vector<32x96xbf16>, vector<128x96xf32> -> vector<128x96xf32>
    %271 = vector.broadcast %235 : vector<1x96xf32> to vector<128x96xf32>
    %272 = arith.addf %270, %271 : vector<128x96xf32>
    %273 = arith.truncf %272 : vector<128x96xf32> to vector<128x96xbf16>
    %274 = vector.extract_strided_slice %273 {offsets = [0, 0], sizes = [128, 32], strides = [1, 1]} : vector<128x96xbf16> to vector<128x32xbf16>
    %275 = vector.extract_strided_slice %273 {offsets = [0, 32], sizes = [128, 32], strides = [1, 1]} : vector<128x96xbf16> to vector<128x32xbf16>
    %276 = vector.extract_strided_slice %273 {offsets = [0, 64], sizes = [128, 32], strides = [1, 1]} : vector<128x96xbf16> to vector<128x32xbf16>
    %277 = vector.extract_strided_slice %274 {offsets = [0, 0], sizes = [64, 8], strides = [1, 1]} : vector<128x32xbf16> to vector<64x8xbf16>
    %278 = vector.extract_strided_slice %275 {offsets = [0, 0], sizes = [64, 8], strides = [1, 1]} : vector<128x32xbf16> to vector<64x8xbf16>
    %279 = vector.extract_strided_slice %276 {offsets = [0, 0], sizes = [64, 8], strides = [1, 1]} : vector<128x32xbf16> to vector<64x8xbf16>
    %cst_85 = arith.constant dense<0.000000e+00> : vector<64x64xf32>
    %280 = tpu.matmul %277, %278, %cst_85 {dimension_numbers = #tpu.dot_dimension_numbers<[1], [1], [0], [0], [0, 0, 1, 0], [], []>} : vector<64x8xbf16>, vector<64x8xbf16>, vector<64x64xf32> -> vector<64x64xf32>
    %cst_86 = arith.constant dense<0xFF800000> : vector<64xf32>
    %281 = vector.multi_reduction <maximumf>, %280, %cst_86 [1] : vector<64x64xf32> to vector<64xf32>
    %282 = vector.shape_cast %281 : vector<64xf32> to vector<64x1xf32>
    %283 = vector.broadcast %282 : vector<64x1xf32> to vector<64x64xf32>
    %284 = arith.subf %280, %283 : vector<64x64xf32>
    %285 = math.exp %284 : vector<64x64xf32>
    %cst_87 = arith.constant dense<0.000000e+00> : vector<64xf32>
    %286 = vector.multi_reduction <add>, %285, %cst_87 [1] : vector<64x64xf32> to vector<64xf32>
    %287 = vector.shape_cast %286 : vector<64xf32> to vector<64x1xf32>
    %288 = tpu.reciprocal %287 {approx = true} : vector<64x1xf32> -> vector<64x1xf32>
    %289 = vector.broadcast %288 : vector<64x1xf32> to vector<64x64xf32>
    %290 = arith.mulf %285, %289 : vector<64x64xf32>
    %291 = arith.truncf %290 : vector<64x64xf32> to vector<64x64xbf16>
    %cst_88 = arith.constant dense<0.000000e+00> : vector<64x8xf32>
    %292 = tpu.matmul %291, %279, %cst_88 {dimension_numbers = #tpu.dot_dimension_numbers<[1], [0], [0], [1], [0, 0, 1, 1], [], []>} : vector<64x64xbf16>, vector<64x8xbf16>, vector<64x8xf32> -> vector<64x8xf32>
    %293 = vector.extract_strided_slice %274 {offsets = [0, 8], sizes = [64, 8], strides = [1, 1]} : vector<128x32xbf16> to vector<64x8xbf16>
    %294 = vector.extract_strided_slice %275 {offsets = [0, 8], sizes = [64, 8], strides = [1, 1]} : vector<128x32xbf16> to vector<64x8xbf16>
    %295 = vector.extract_strided_slice %276 {offsets = [0, 8], sizes = [64, 8], strides = [1, 1]} : vector<128x32xbf16> to vector<64x8xbf16>
    %cst_89 = arith.constant dense<0.000000e+00> : vector<64x64xf32>
    %296 = tpu.matmul %293, %294, %cst_89 {dimension_numbers = #tpu.dot_dimension_numbers<[1], [1], [0], [0], [0, 0, 1, 0], [], []>} : vector<64x8xbf16>, vector<64x8xbf16>, vector<64x64xf32> -> vector<64x64xf32>
    %cst_90 = arith.constant dense<0xFF800000> : vector<64xf32>
    %297 = vector.multi_reduction <maximumf>, %296, %cst_90 [1] : vector<64x64xf32> to vector<64xf32>
    %298 = vector.shape_cast %297 : vector<64xf32> to vector<64x1xf32>
    %299 = vector.broadcast %298 : vector<64x1xf32> to vector<64x64xf32>
    %300 = arith.subf %296, %299 : vector<64x64xf32>
    %301 = math.exp %300 : vector<64x64xf32>
    %cst_91 = arith.constant dense<0.000000e+00> : vector<64xf32>
    %302 = vector.multi_reduction <add>, %301, %cst_91 [1] : vector<64x64xf32> to vector<64xf32>
    %303 = vector.shape_cast %302 : vector<64xf32> to vector<64x1xf32>
    %304 = tpu.reciprocal %303 {approx = true} : vector<64x1xf32> -> vector<64x1xf32>
    %305 = vector.broadcast %304 : vector<64x1xf32> to vector<64x64xf32>
    %306 = arith.mulf %301, %305 : vector<64x64xf32>
    %307 = arith.truncf %306 : vector<64x64xf32> to vector<64x64xbf16>
    %cst_92 = arith.constant dense<0.000000e+00> : vector<64x8xf32>
    %308 = tpu.matmul %307, %295, %cst_92 {dimension_numbers = #tpu.dot_dimension_numbers<[1], [0], [0], [1], [0, 0, 1, 1], [], []>} : vector<64x64xbf16>, vector<64x8xbf16>, vector<64x8xf32> -> vector<64x8xf32>
    %309 = vector.extract_strided_slice %274 {offsets = [0, 16], sizes = [64, 8], strides = [1, 1]} : vector<128x32xbf16> to vector<64x8xbf16>
    %310 = vector.extract_strided_slice %275 {offsets = [0, 16], sizes = [64, 8], strides = [1, 1]} : vector<128x32xbf16> to vector<64x8xbf16>
    %311 = vector.extract_strided_slice %276 {offsets = [0, 16], sizes = [64, 8], strides = [1, 1]} : vector<128x32xbf16> to vector<64x8xbf16>
    %cst_93 = arith.constant dense<0.000000e+00> : vector<64x64xf32>
    %312 = tpu.matmul %309, %310, %cst_93 {dimension_numbers = #tpu.dot_dimension_numbers<[1], [1], [0], [0], [0, 0, 1, 0], [], []>} : vector<64x8xbf16>, vector<64x8xbf16>, vector<64x64xf32> -> vector<64x64xf32>
    %cst_94 = arith.constant dense<0xFF800000> : vector<64xf32>
    %313 = vector.multi_reduction <maximumf>, %312, %cst_94 [1] : vector<64x64xf32> to vector<64xf32>
    %314 = vector.shape_cast %313 : vector<64xf32> to vector<64x1xf32>
    %315 = vector.broadcast %314 : vector<64x1xf32> to vector<64x64xf32>
    %316 = arith.subf %312, %315 : vector<64x64xf32>
    %317 = math.exp %316 : vector<64x64xf32>
    %cst_95 = arith.constant dense<0.000000e+00> : vector<64xf32>
    %318 = vector.multi_reduction <add>, %317, %cst_95 [1] : vector<64x64xf32> to vector<64xf32>
    %319 = vector.shape_cast %318 : vector<64xf32> to vector<64x1xf32>
    %320 = tpu.reciprocal %319 {approx = true} : vector<64x1xf32> -> vector<64x1xf32>
    %321 = vector.broadcast %320 : vector<64x1xf32> to vector<64x64xf32>
    %322 = arith.mulf %317, %321 : vector<64x64xf32>
    %323 = arith.truncf %322 : vector<64x64xf32> to vector<64x64xbf16>
    %cst_96 = arith.constant dense<0.000000e+00> : vector<64x8xf32>
    %324 = tpu.matmul %323, %311, %cst_96 {dimension_numbers = #tpu.dot_dimension_numbers<[1], [0], [0], [1], [0, 0, 1, 1], [], []>} : vector<64x64xbf16>, vector<64x8xbf16>, vector<64x8xf32> -> vector<64x8xf32>
    %325 = vector.extract_strided_slice %274 {offsets = [0, 24], sizes = [64, 8], strides = [1, 1]} : vector<128x32xbf16> to vector<64x8xbf16>
    %326 = vector.extract_strided_slice %275 {offsets = [0, 24], sizes = [64, 8], strides = [1, 1]} : vector<128x32xbf16> to vector<64x8xbf16>
    %327 = vector.extract_strided_slice %276 {offsets = [0, 24], sizes = [64, 8], strides = [1, 1]} : vector<128x32xbf16> to vector<64x8xbf16>
    %cst_97 = arith.constant dense<0.000000e+00> : vector<64x64xf32>
    %328 = tpu.matmul %325, %326, %cst_97 {dimension_numbers = #tpu.dot_dimension_numbers<[1], [1], [0], [0], [0, 0, 1, 0], [], []>} : vector<64x8xbf16>, vector<64x8xbf16>, vector<64x64xf32> -> vector<64x64xf32>
    %cst_98 = arith.constant dense<0xFF800000> : vector<64xf32>
    %329 = vector.multi_reduction <maximumf>, %328, %cst_98 [1] : vector<64x64xf32> to vector<64xf32>
    %330 = vector.shape_cast %329 : vector<64xf32> to vector<64x1xf32>
    %331 = vector.broadcast %330 : vector<64x1xf32> to vector<64x64xf32>
    %332 = arith.subf %328, %331 : vector<64x64xf32>
    %333 = math.exp %332 : vector<64x64xf32>
    %cst_99 = arith.constant dense<0.000000e+00> : vector<64xf32>
    %334 = vector.multi_reduction <add>, %333, %cst_99 [1] : vector<64x64xf32> to vector<64xf32>
    %335 = vector.shape_cast %334 : vector<64xf32> to vector<64x1xf32>
    %336 = tpu.reciprocal %335 {approx = true} : vector<64x1xf32> -> vector<64x1xf32>
    %337 = vector.broadcast %336 : vector<64x1xf32> to vector<64x64xf32>
    %338 = arith.mulf %333, %337 : vector<64x64xf32>
    %339 = arith.truncf %338 : vector<64x64xf32> to vector<64x64xbf16>
    %cst_100 = arith.constant dense<0.000000e+00> : vector<64x8xf32>
    %340 = tpu.matmul %339, %327, %cst_100 {dimension_numbers = #tpu.dot_dimension_numbers<[1], [0], [0], [1], [0, 0, 1, 1], [], []>} : vector<64x64xbf16>, vector<64x8xbf16>, vector<64x8xf32> -> vector<64x8xf32>
    %341 = tpu.concatenate %292, %308, %324, %340 in 1 : vector<64x8xf32>, vector<64x8xf32>, vector<64x8xf32>, vector<64x8xf32> -> vector<64x32xf32>
    %342 = vector.extract_strided_slice %274 {offsets = [64, 0], sizes = [64, 8], strides = [1, 1]} : vector<128x32xbf16> to vector<64x8xbf16>
    %343 = vector.extract_strided_slice %275 {offsets = [64, 0], sizes = [64, 8], strides = [1, 1]} : vector<128x32xbf16> to vector<64x8xbf16>
    %344 = vector.extract_strided_slice %276 {offsets = [64, 0], sizes = [64, 8], strides = [1, 1]} : vector<128x32xbf16> to vector<64x8xbf16>
    %cst_101 = arith.constant dense<0.000000e+00> : vector<64x64xf32>
    %345 = tpu.matmul %342, %343, %cst_101 {dimension_numbers = #tpu.dot_dimension_numbers<[1], [1], [0], [0], [0, 0, 1, 0], [], []>} : vector<64x8xbf16>, vector<64x8xbf16>, vector<64x64xf32> -> vector<64x64xf32>
    %cst_102 = arith.constant dense<0xFF800000> : vector<64xf32>
    %346 = vector.multi_reduction <maximumf>, %345, %cst_102 [1] : vector<64x64xf32> to vector<64xf32>
    %347 = vector.shape_cast %346 : vector<64xf32> to vector<64x1xf32>
    %348 = vector.broadcast %347 : vector<64x1xf32> to vector<64x64xf32>
    %349 = arith.subf %345, %348 : vector<64x64xf32>
    %350 = math.exp %349 : vector<64x64xf32>
    %cst_103 = arith.constant dense<0.000000e+00> : vector<64xf32>
    %351 = vector.multi_reduction <add>, %350, %cst_103 [1] : vector<64x64xf32> to vector<64xf32>
    %352 = vector.shape_cast %351 : vector<64xf32> to vector<64x1xf32>
    %353 = tpu.reciprocal %352 {approx = true} : vector<64x1xf32> -> vector<64x1xf32>
    %354 = vector.broadcast %353 : vector<64x1xf32> to vector<64x64xf32>
    %355 = arith.mulf %350, %354 : vector<64x64xf32>
    %356 = arith.truncf %355 : vector<64x64xf32> to vector<64x64xbf16>
    %cst_104 = arith.constant dense<0.000000e+00> : vector<64x8xf32>
    %357 = tpu.matmul %356, %344, %cst_104 {dimension_numbers = #tpu.dot_dimension_numbers<[1], [0], [0], [1], [0, 0, 1, 1], [], []>} : vector<64x64xbf16>, vector<64x8xbf16>, vector<64x8xf32> -> vector<64x8xf32>
    %358 = vector.extract_strided_slice %274 {offsets = [64, 8], sizes = [64, 8], strides = [1, 1]} : vector<128x32xbf16> to vector<64x8xbf16>
    %359 = vector.extract_strided_slice %275 {offsets = [64, 8], sizes = [64, 8], strides = [1, 1]} : vector<128x32xbf16> to vector<64x8xbf16>
    %360 = vector.extract_strided_slice %276 {offsets = [64, 8], sizes = [64, 8], strides = [1, 1]} : vector<128x32xbf16> to vector<64x8xbf16>
    %cst_105 = arith.constant dense<0.000000e+00> : vector<64x64xf32>
    %361 = tpu.matmul %358, %359, %cst_105 {dimension_numbers = #tpu.dot_dimension_numbers<[1], [1], [0], [0], [0, 0, 1, 0], [], []>} : vector<64x8xbf16>, vector<64x8xbf16>, vector<64x64xf32> -> vector<64x64xf32>
    %cst_106 = arith.constant dense<0xFF800000> : vector<64xf32>
    %362 = vector.multi_reduction <maximumf>, %361, %cst_106 [1] : vector<64x64xf32> to vector<64xf32>
    %363 = vector.shape_cast %362 : vector<64xf32> to vector<64x1xf32>
    %364 = vector.broadcast %363 : vector<64x1xf32> to vector<64x64xf32>
    %365 = arith.subf %361, %364 : vector<64x64xf32>
    %366 = math.exp %365 : vector<64x64xf32>
    %cst_107 = arith.constant dense<0.000000e+00> : vector<64xf32>
    %367 = vector.multi_reduction <add>, %366, %cst_107 [1] : vector<64x64xf32> to vector<64xf32>
    %368 = vector.shape_cast %367 : vector<64xf32> to vector<64x1xf32>
    %369 = tpu.reciprocal %368 {approx = true} : vector<64x1xf32> -> vector<64x1xf32>
    %370 = vector.broadcast %369 : vector<64x1xf32> to vector<64x64xf32>
    %371 = arith.mulf %366, %370 : vector<64x64xf32>
    %372 = arith.truncf %371 : vector<64x64xf32> to vector<64x64xbf16>
    %cst_108 = arith.constant dense<0.000000e+00> : vector<64x8xf32>
    %373 = tpu.matmul %372, %360, %cst_108 {dimension_numbers = #tpu.dot_dimension_numbers<[1], [0], [0], [1], [0, 0, 1, 1], [], []>} : vector<64x64xbf16>, vector<64x8xbf16>, vector<64x8xf32> -> vector<64x8xf32>
    %374 = vector.extract_strided_slice %274 {offsets = [64, 16], sizes = [64, 8], strides = [1, 1]} : vector<128x32xbf16> to vector<64x8xbf16>
    %375 = vector.extract_strided_slice %275 {offsets = [64, 16], sizes = [64, 8], strides = [1, 1]} : vector<128x32xbf16> to vector<64x8xbf16>
    %376 = vector.extract_strided_slice %276 {offsets = [64, 16], sizes = [64, 8], strides = [1, 1]} : vector<128x32xbf16> to vector<64x8xbf16>
    %cst_109 = arith.constant dense<0.000000e+00> : vector<64x64xf32>
    %377 = tpu.matmul %374, %375, %cst_109 {dimension_numbers = #tpu.dot_dimension_numbers<[1], [1], [0], [0], [0, 0, 1, 0], [], []>} : vector<64x8xbf16>, vector<64x8xbf16>, vector<64x64xf32> -> vector<64x64xf32>
    %cst_110 = arith.constant dense<0xFF800000> : vector<64xf32>
    %378 = vector.multi_reduction <maximumf>, %377, %cst_110 [1] : vector<64x64xf32> to vector<64xf32>
    %379 = vector.shape_cast %378 : vector<64xf32> to vector<64x1xf32>
    %380 = vector.broadcast %379 : vector<64x1xf32> to vector<64x64xf32>
    %381 = arith.subf %377, %380 : vector<64x64xf32>
    %382 = math.exp %381 : vector<64x64xf32>
    %cst_111 = arith.constant dense<0.000000e+00> : vector<64xf32>
    %383 = vector.multi_reduction <add>, %382, %cst_111 [1] : vector<64x64xf32> to vector<64xf32>
    %384 = vector.shape_cast %383 : vector<64xf32> to vector<64x1xf32>
    %385 = tpu.reciprocal %384 {approx = true} : vector<64x1xf32> -> vector<64x1xf32>
    %386 = vector.broadcast %385 : vector<64x1xf32> to vector<64x64xf32>
    %387 = arith.mulf %382, %386 : vector<64x64xf32>
    %388 = arith.truncf %387 : vector<64x64xf32> to vector<64x64xbf16>
    %cst_112 = arith.constant dense<0.000000e+00> : vector<64x8xf32>
    %389 = tpu.matmul %388, %376, %cst_112 {dimension_numbers = #tpu.dot_dimension_numbers<[1], [0], [0], [1], [0, 0, 1, 1], [], []>} : vector<64x64xbf16>, vector<64x8xbf16>, vector<64x8xf32> -> vector<64x8xf32>
    %390 = vector.extract_strided_slice %274 {offsets = [64, 24], sizes = [64, 8], strides = [1, 1]} : vector<128x32xbf16> to vector<64x8xbf16>
    %391 = vector.extract_strided_slice %275 {offsets = [64, 24], sizes = [64, 8], strides = [1, 1]} : vector<128x32xbf16> to vector<64x8xbf16>
    %392 = vector.extract_strided_slice %276 {offsets = [64, 24], sizes = [64, 8], strides = [1, 1]} : vector<128x32xbf16> to vector<64x8xbf16>
    %cst_113 = arith.constant dense<0.000000e+00> : vector<64x64xf32>
    %393 = tpu.matmul %390, %391, %cst_113 {dimension_numbers = #tpu.dot_dimension_numbers<[1], [1], [0], [0], [0, 0, 1, 0], [], []>} : vector<64x8xbf16>, vector<64x8xbf16>, vector<64x64xf32> -> vector<64x64xf32>
    %cst_114 = arith.constant dense<0xFF800000> : vector<64xf32>
    %394 = vector.multi_reduction <maximumf>, %393, %cst_114 [1] : vector<64x64xf32> to vector<64xf32>
    %395 = vector.shape_cast %394 : vector<64xf32> to vector<64x1xf32>
    %396 = vector.broadcast %395 : vector<64x1xf32> to vector<64x64xf32>
    %397 = arith.subf %393, %396 : vector<64x64xf32>
    %398 = math.exp %397 : vector<64x64xf32>
    %cst_115 = arith.constant dense<0.000000e+00> : vector<64xf32>
    %399 = vector.multi_reduction <add>, %398, %cst_115 [1] : vector<64x64xf32> to vector<64xf32>
    %400 = vector.shape_cast %399 : vector<64xf32> to vector<64x1xf32>
    %401 = tpu.reciprocal %400 {approx = true} : vector<64x1xf32> -> vector<64x1xf32>
    %402 = vector.broadcast %401 : vector<64x1xf32> to vector<64x64xf32>
    %403 = arith.mulf %398, %402 : vector<64x64xf32>
    %404 = arith.truncf %403 : vector<64x64xf32> to vector<64x64xbf16>
    %cst_116 = arith.constant dense<0.000000e+00> : vector<64x8xf32>
    %405 = tpu.matmul %404, %392, %cst_116 {dimension_numbers = #tpu.dot_dimension_numbers<[1], [0], [0], [1], [0, 0, 1, 1], [], []>} : vector<64x64xbf16>, vector<64x8xbf16>, vector<64x8xf32> -> vector<64x8xf32>
    %406 = tpu.concatenate %357, %373, %389, %405 in 1 : vector<64x8xf32>, vector<64x8xf32>, vector<64x8xf32>, vector<64x8xf32> -> vector<64x32xf32>
    %407 = tpu.concatenate %341, %406 in 0 : vector<64x32xf32>, vector<64x32xf32> -> vector<128x32xf32>
    %408 = arith.truncf %407 : vector<128x32xf32> to vector<128x32xbf16>
    %cst_117 = arith.constant dense<0.000000e+00> : vector<128x32xf32>
    %409 = tpu.matmul %408, %242, %cst_117 {dimension_numbers = #tpu.dot_dimension_numbers<[1], [0], [0], [1], [0, 0, 1, 1], [], []>} : vector<128x32xbf16>, vector<32x32xbf16>, vector<128x32xf32> -> vector<128x32xf32>
    %410 = vector.broadcast %236 : vector<1x32xf32> to vector<128x32xf32>
    %411 = arith.addf %409, %410 : vector<128x32xf32>
    %412 = arith.addf %228, %411 : vector<128x32xf32>
    %cst_118 = arith.constant dense<0.000000e+00> : vector<128xf32>
    %413 = vector.multi_reduction <add>, %412, %cst_118 [1] : vector<128x32xf32> to vector<128xf32>
    %414 = vector.shape_cast %413 : vector<128xf32> to vector<128x1xf32>
    %cst_119 = arith.constant 3.200000e+01 : f32
    %415 = vector.broadcast %cst_119 : f32 to vector<128x1xf32>
    %416 = arith.divf %414, %415 : vector<128x1xf32>
    %417 = vector.broadcast %416 : vector<128x1xf32> to vector<128x32xf32>
    %418 = arith.subf %412, %417 : vector<128x32xf32>
    %419 = arith.mulf %418, %418 : vector<128x32xf32>
    %cst_120 = arith.constant dense<0.000000e+00> : vector<128xf32>
    %420 = vector.multi_reduction <add>, %419, %cst_120 [1] : vector<128x32xf32> to vector<128xf32>
    %421 = vector.shape_cast %420 : vector<128xf32> to vector<128x1xf32>
    %cst_121 = arith.constant 3.200000e+01 : f32
    %422 = vector.broadcast %cst_121 : f32 to vector<128x1xf32>
    %423 = arith.divf %421, %422 : vector<128x1xf32>
    %424 = vector.broadcast %416 : vector<128x1xf32> to vector<128x32xf32>
    %425 = arith.subf %412, %424 : vector<128x32xf32>
    %cst_122 = arith.constant 9.99999997E-7 : f32
    %426 = vector.broadcast %cst_122 : f32 to vector<128x1xf32>
    %427 = arith.addf %423, %426 : vector<128x1xf32>
    %428 = math.rsqrt %427 : vector<128x1xf32>
    %429 = vector.broadcast %428 : vector<128x1xf32> to vector<128x32xf32>
    %430 = arith.mulf %425, %429 : vector<128x32xf32>
    %431 = vector.broadcast %233 : vector<1x32xf32> to vector<128x32xf32>
    %432 = arith.mulf %430, %431 : vector<128x32xf32>
    %433 = vector.broadcast %234 : vector<1x32xf32> to vector<128x32xf32>
    %434 = arith.addf %432, %433 : vector<128x32xf32>
    %435 = arith.truncf %434 : vector<128x32xf32> to vector<128x32xbf16>
    %cst_123 = arith.constant dense<0.000000e+00> : vector<128x128xf32>
    %436 = tpu.matmul %435, %244, %cst_123 {dimension_numbers = #tpu.dot_dimension_numbers<[1], [0], [0], [1], [0, 0, 1, 1], [], []>} : vector<128x32xbf16>, vector<32x128xbf16>, vector<128x128xf32> -> vector<128x128xf32>
    %437 = vector.broadcast %237 : vector<1x128xf32> to vector<128x128xf32>
    %438 = arith.addf %436, %437 : vector<128x128xf32>
    %cst_124 = arith.constant 5.000000e-01 : f32
    %439 = vector.broadcast %cst_124 : f32 to vector<128x128xf32>
    %440 = arith.mulf %439, %438 : vector<128x128xf32>
    %cst_125 = arith.constant 4.471500e-02 : f32
    %441 = vector.broadcast %cst_125 : f32 to vector<128x128xf32>
    %442 = arith.mulf %441, %438 : vector<128x128xf32>
    %443 = arith.mulf %442, %438 : vector<128x128xf32>
    %444 = arith.mulf %443, %438 : vector<128x128xf32>
    %445 = arith.addf %438, %444 : vector<128x128xf32>
    %cst_126 = arith.constant 0.797884583 : f32
    %446 = vector.broadcast %cst_126 : f32 to vector<128x128xf32>
    %447 = arith.mulf %446, %445 : vector<128x128xf32>
    %448 = math.tanh %447 : vector<128x128xf32>
    %cst_127 = arith.constant 1.000000e+00 : f32
    %449 = vector.broadcast %cst_127 : f32 to vector<128x128xf32>
    %450 = arith.addf %449, %448 : vector<128x128xf32>
    %451 = arith.mulf %440, %450 : vector<128x128xf32>
    %452 = arith.truncf %451 : vector<128x128xf32> to vector<128x128xbf16>
    %cst_128 = arith.constant dense<0.000000e+00> : vector<128x32xf32>
    %453 = tpu.matmul %452, %246, %cst_128 {dimension_numbers = #tpu.dot_dimension_numbers<[1], [0], [0], [1], [0, 0, 1, 1], [], []>} : vector<128x128xbf16>, vector<128x32xbf16>, vector<128x32xf32> -> vector<128x32xf32>
    %454 = vector.broadcast %238 : vector<1x32xf32> to vector<128x32xf32>
    %455 = arith.addf %453, %454 : vector<128x32xf32>
    %456 = arith.addf %412, %455 : vector<128x32xf32>
    %c0_129 = arith.constant 0 : index
    %c0_130 = arith.constant 0 : index
    %457 = vector.load %arg7[%c0_129, %c0_130] : memref<128x32xf32, #tpu.memory_space<vmem>>, vector<128x32xf32>
    tpu.vector_store %arg7[%c0_129, %c0_130], %456 {strides = array<i32>} : memref<128x32xf32, #tpu.memory_space<vmem>>, vector<128x32xf32>,
    return
  }
  func.func @transform_0(%arg0: i32) -> (i32, i32) {
    %c0_i32 = arith.constant 0 : i32
    %c0_i32_0 = arith.constant 0 : i32
    return %arg0, %c0_i32 : i32, i32
  }
  func.func @transform_1(%arg0: i32) -> (i32, i32, i32) {
    %c0_i32 = arith.constant 0 : i32
    %c0_i32_0 = arith.constant 0 : i32
    %c0_i32_1 = arith.constant 0 : i32
    %c0_i32_2 = arith.constant 0 : i32
    return %c0_i32, %c0_i32_0, %c0_i32_1 : i32, i32, i32
  }
  func.func @transform_2(%arg0: i32) -> (i32, i32, i32) {
    %c0_i32 = arith.constant 0 : i32
    %c0_i32_0 = arith.constant 0 : i32
    %c0_i32_1 = arith.constant 0 : i32
    %c0_i32_2 = arith.constant 0 : i32
    return %c0_i32, %c0_i32_0, %c0_i32_1 : i32, i32, i32
  }
  func.func @transform_3(%arg0: i32) -> (i32, i32, i32) {
    %c0_i32 = arith.constant 0 : i32
    %c0_i32_0 = arith.constant 0 : i32
    %c0_i32_1 = arith.constant 0 : i32
    %c0_i32_2 = arith.constant 0 : i32
    return %c0_i32, %c0_i32_0, %c0_i32_1 : i32, i32, i32
  }
  func.func @transform_4(%arg0: i32) -> (i32, i32, i32) {
    %c0_i32 = arith.constant 0 : i32
    %c0_i32_0 = arith.constant 0 : i32
    %c0_i32_1 = arith.constant 0 : i32
    %c0_i32_2 = arith.constant 0 : i32
    return %c0_i32, %c0_i32_0, %c0_i32_1 : i32, i32, i32
  }
  func.func @transform_5(%arg0: i32) -> (i32, i32, i32) {
    %c0_i32 = arith.constant 0 : i32
    %c0_i32_0 = arith.constant 0 : i32
    %c0_i32_1 = arith.constant 0 : i32
    %c0_i32_2 = arith.constant 0 : i32
    return %c0_i32, %c0_i32_0, %c0_i32_1 : i32, i32, i32
  }
  func.func @transform_6(%arg0: i32) -> (i32, i32) {
    %c0_i32 = arith.constant 0 : i32
    %c0_i32_0 = arith.constant 0 : i32
    return %arg0, %c0_i32 : i32, i32
  }
}

</mosaic_0001>

<bundles_post_ra>
// kernel: tpu_custom_call.1
= control target key start
LH: loop header
LB: loop body
LE: loop exit
PB: predicated region body
PF: predicated region fallthrough
CT: control target
= control target key end

     0   :  { %vm69_vm0 = vcmask 261120   ;;  %vm484_vm1 = vcmask 64512   ;;  %s10059_s11 = smov 96   ;;  %s10060_s12 = smov 88   ;;  %vm574_vm2 = vcmask 523264   ;;  %vm1718_vm3 = vcmask 130048   ;;  %s13548_s0 = inlined_call_operand.vmem [shape: f32[128,32], index: 0, kind: input, shape index: {}]   ;;  %s13549_s1 = inlined_call_operand.vmem [shape: bf16[2,32,96], index: 1, kind: input, shape index: {}]   ;;  %s13550_s5 = inlined_call_operand.vmem [shape: f32[2,8,128], index: 5, kind: input, shape index: {}]   ;;  %s13551_s2 = inlined_call_operand.vmem [shape: bf16[2,32,32], index: 2, kind: input, shape index: {}]   ;;  %s13552_s3 = inlined_call_operand.vmem [shape: bf16[2,32,128], index: 3, kind: input, shape index: {}]   ;;  %s13553_s4 = inlined_call_operand.vmem [shape: bf16[2,128,32], index: 4, kind: input, shape index: {}]   ;;  %s13554_s6 = inlined_call_operand.vmem [shape: f32[128,32], index: 6, kind: output, shape index: {}]  }
   0x1   :  { %v24_v0 = vld [vmem:[%s13548_s0] sm:$0xff]  ;;  %v26_v1 = vld [vmem:[%s13548_s0 + $0x10] sm:$0xff]  ;;  %v25_v2 = vld [vmem:[%s13548_s0 + $0x8] sm:$0xff]  ;;  %s10061_s13 = smov 120   ;;  %s10062_s14 = smov 64   ;;  %vm1727_vm4 = vcmask 195584  }
   0x2   :  { %v70_v3 = vsel %vm69_vm0, %v24_v0, 0.0  ;;  %v76_v4 = vsel %vm69_vm0, %v26_v1, 0.0  ;;  %v27_v5 = vld [vmem:[%s13548_s0 + $0x18] sm:$0xff]  ;;  %v73_v6 = vsel %vm69_vm0, %v25_v2, 0.0  ;;  %v28_v8 = vld [vmem:[%s13548_s0 + $0x20] sm:$0xff]  ;;  %v29_v9 = vld [vmem:[%s13548_s0 + $0x28] sm:$0xff] }
   0x3   :  { %71 = vadd.xlane.f32.xlu0 %v70_v3  ;;  %77 = vadd.xlane.f32.xlu1 %v76_v4  ;;  %v79_v7 = vsel %vm69_vm0, %v27_v5, 0.0  ;;  %v82_v10 = vsel %vm69_vm0, %v28_v8, 0.0  ;;  %v85_v11 = vsel %vm69_vm0, %v29_v9, 0.0  ;;  %v30_v12 = vld [vmem:[%s13548_s0 + $0x30] sm:$0xff]  ;;  %v31_v13 = vld [vmem:[%s13548_s0 + $0x38] sm:$0xff]  ;;  %v10181_v54 = vld [vmem:[%s13548_s0 + $0x40] sm:$0xff] }
   0x4   :  { %v88_v14 = vsel %vm69_vm0, %v30_v12, 0.0  ;;  %v91_v15 = vsel %vm69_vm0, %v31_v13, 0.0  ;;  %v94_v57 = vsel %vm69_vm0, %v10181_v54, 0.0  ;;  %v10190_v58 = vld [vmem:[%s13548_s0 + $0x48] sm:$0xff]  ;;  %v10195_v59 = vld [vmem:[%s13548_s0 + $0x50] sm:$0xff]  ;;  %v10204_v62 = vld [vmem:[%s13548_s0 + $0x58] sm:$0xff] }
   0x5   :  { %v97_v60 = vsel %vm69_vm0, %v10190_v58, 0.0  ;;  %v100_v61 = vsel %vm69_vm0, %v10195_v59, 0.0  ;;  %v10209_v63 = vld [vmem:[%s13548_s0 + $0x60] sm:$0xff]  ;;  %v10223_v3 = vld [vmem:[%s13548_s0 + $0x70] sm:$0xff]  ;;  %s10063_s15 = smov 56   ;;  %s10064_s16 = smov 80  }
   0x6   :  { %s10065_s17 = smov 112   ;;  %s10066_s18 = smov 48  }
   0x7   :  { %74 = vadd.xlane.f32.xlu0 %v73_v6  ;;  %80 = vadd.xlane.f32.xlu1 %v79_v7  ;;  %v10232_v6 = vld [vmem:[%s13548_s0 + $0x78] sm:$0xff]  ;;  %s10067_s19 = smov 72   ;;  %s10068_s20 = smov 104  }
   0x8   :  { %v115_v7 = vsel %vm69_vm0, %v10232_v6, 0.0  ;;  %s10069_s21 = smov 40   ;;  %s10070_s22 = smov 8  }
   0x9   :  { %s10071_s23 = smov 16   ;;  %s10072_s24 = smov 24  }
   0xb   :  { %83 = vadd.xlane.f32.xlu0 %v82_v10  ;;  %86 = vadd.xlane.f32.xlu1 %v85_v11 }
   0xf   :  { %89 = vadd.xlane.f32.xlu0 %v88_v14  ;;  %92 = vadd.xlane.f32.xlu1 %v91_v15 }
  0x8c   :  { %v72_v16 = vpop.xlane.xlu0 %71  ;;  %v78_v17 = vpop.xlane.xlu1 %77 }
  0x8d   :  { %v119_v18 = vmul.f32 0.03125, %v72_v16  ;;  %v121_v19 = vmul.f32 0.03125, %v78_v17  ;;  %v279_v17 = vlaneseq }
  0x8f   :  { %v10140_v20 = vsub.f32 %v24_v0, %v119_v18  ;;  %v10142_v21 = vsub.f32 %v26_v1, %v121_v19  ;;  %v103_v0 = vsel %vm69_vm0, %v10204_v62, 0.0  ;;  %v106_v1 = vsel %vm69_vm0, %v10209_v63, 0.0 }
  0x90   :  { %v75_v22 = vpop.xlane.xlu0 %74  ;;  %v81_v23 = vpop.xlane.xlu1 %80 }
  0x91   :  { %v120_v24 = vmul.f32 0.03125, %v75_v22  ;;  %v122_v25 = vmul.f32 0.03125, %v81_v23  ;;  %v151_v26 = vmul.f32 %v10140_v20, %v10140_v20  ;;  %v153_v27 = vmul.f32 %v10142_v21, %v10142_v21 }
  0x93   :  { %v10148_v28 = vsub.f32 %v25_v2, %v120_v24  ;;  %v10150_v29 = vsub.f32 %v27_v5, %v122_v25  ;;  %v167_v30 = vsel %vm69_vm0, %v151_v26, 0.0  ;;  %v173_v33 = vsel %vm69_vm0, %v153_v27, 0.0  ;;  %v10218_v2 = vld [vmem:[%s13548_s0 + $0x68] sm:$0xff] }
  0x94   :  { %168 = vadd.xlane.f32.xlu0 %v167_v30  ;;  %v84_v31 = vpop.xlane.xlu0 %83  ;;  %v87_v32 = vpop.xlane.xlu1 %86  ;;  %v109_v4 = vsel %vm69_vm0, %v10218_v2, 0.0  ;;  %v112_v5 = vsel %vm69_vm0, %v10223_v3, 0.0  ;;  %v10242_v26 = vshrl.u32 %v279_v17, 7 }
  0x95   :  { %v123_v34 = vmul.f32 0.03125, %v84_v31  ;;  %v124_v35 = vmul.f32 0.03125, %v87_v32  ;;  %v152_v36 = vmul.f32 %v10148_v28, %v10148_v28  ;;  %v154_v37 = vmul.f32 %v10150_v29, %v10150_v29 }
  0x96   :  { %13589 = vst [vmem:[#allocation2_spill] sm:$0xff] %v10242_v26 }
  0x97   :  { %v10158_v38 = vsub.f32 %v28_v8, %v123_v34  ;;  %v10160_v39 = vsub.f32 %v29_v9, %v124_v35  ;;  %v170_v40 = vsel %vm69_vm0, %v152_v36, 0.0  ;;  %v176_v43 = vsel %vm69_vm0, %v154_v37, 0.0  ;;  %v9308_v8 = vld [vmem:[%s13549_s1 + $0x8] sm:$0xff]   ;;  %v9309_v9 = vld [vmem:[%s13549_s1] sm:$0xff]  }
  0x98   :  { %174 = vadd.xlane.f32.xlu0 %v173_v33  ;;  %171 = vadd.xlane.f32.xlu1 %v170_v40  ;;  %v90_v41 = vpop.xlane.xlu0 %89  ;;  %v93_v42 = vpop.xlane.xlu1 %92  ;;  %v13557_v35 = vsub.s32 0, %v10242_v26  ;;  %v10248_v40 = vld [vmem:[%s13550_s5] sm:$0xff] }
  0x99   :  { %v125_v44 = vmul.f32 0.03125, %v90_v41  ;;  %v126_v45 = vmul.f32 0.03125, %v93_v42  ;;  %v155_v46 = vmul.f32 %v10158_v38, %v10158_v38  ;;  %v156_v47 = vmul.f32 %v10160_v39, %v10160_v39  ;;  %8294 = vmatprep.subr.bf16.mxu1 %v9308_v8 }
  0x9a   :  { %8295 = vmatpush3.bf16.msra.mxu1 %v9308_v8 }
  0x9b   :  { %v10168_v48 = vsub.f32 %v30_v12, %v125_v44  ;;  %v10170_v49 = vsub.f32 %v31_v13, %v126_v45  ;;  %v179_v50 = vsel %vm69_vm0, %v155_v46, 0.0  ;;  %v182_v51 = vsel %vm69_vm0, %v156_v47, 0.0  ;;  %8296 = vmatprep.subr.bf16.mxu1 %v9309_v9 }
  0x9c   :  { %177 = vadd.xlane.f32.xlu1 %v176_v43  ;;  %180 = vadd.xlane.f32.xlu0 %v179_v50  ;;  %v10253_v46 = vrot.slane %v10248_v40, %v13557_v35  ;;  %v13556_v47 = vsub.s32 1, %v10242_v26 }
  0x9d   :  { %v157_v52 = vmul.f32 %v10168_v48, %v10168_v48  ;;  %v158_v53 = vmul.f32 %v10170_v49, %v10170_v49 }
  0x9e   :  { %8297 = vmatpush3.bf16.msra.mxu1 %v9309_v9 }
  0x9f   :  { %v185_v55 = vsel %vm69_vm0, %v157_v52, 0.0  ;;  %v188_v56 = vsel %vm69_vm0, %v158_v53, 0.0 }
  0xa0   :  { %183 = vadd.xlane.f32.xlu1 %v182_v51  ;;  %186 = vadd.xlane.f32.xlu0 %v185_v55 }
  0xa4   :  { %189 = vadd.xlane.f32.xlu1 %v188_v56  ;;  %95 = vadd.xlane.f32.xlu0 %v94_v57 }
  0xa8   :  { %98 = vadd.xlane.f32.xlu1 %v97_v60  ;;  %101 = vadd.xlane.f32.xlu0 %v100_v61 }
  0xac   :  { %104 = vadd.xlane.f32.xlu1 %v103_v0  ;;  %107 = vadd.xlane.f32.xlu0 %v106_v1  ;;  %v10264_v0 = vrot.slane %v10248_v40, %v13556_v47 }
  0xb0   :  { %110 = vadd.xlane.f32.xlu1 %v109_v4  ;;  %113 = vadd.xlane.f32.xlu0 %v112_v5 }
  0xb4   :  { %116 = vadd.xlane.f32.xlu1 %v115_v7 }
 0x11d   :  { %v169_v10 = vpop.xlane.xlu0 %168 }
 0x11e   :  { %v215_v11 = vmul.f32 0.03125, %v169_v10 }
 0x120   :  { %v231_v12 = vadd.f32 1e-06, %v215_v11 }
 0x121   :  { %v172_v13 = vpop.xlane.xlu1 %171  ;;  %v175_v14 = vpop.xlane.xlu0 %174 }
 0x122   :  { %9336 = vrsqrt.f32 %v231_v12  ;;  %v216_v15 = vmul.f32 0.03125, %v172_v13  ;;  %v217_v16 = vmul.f32 0.03125, %v175_v14 }
 0x124   :  { %v232_v18 = vadd.f32 1e-06, %v216_v15  ;;  %v233_v19 = vadd.f32 1e-06, %v217_v16 }
 0x125   :  { %v178_v22 = vpop.xlane.xlu1 %177  ;;  %v181_v23 = vpop.xlane.xlu0 %180 }
 0x126   :  { %9338 = vrsqrt.f32 %v232_v18  ;;  %v218_v24 = vmul.f32 0.03125, %v178_v22  ;;  %v219_v25 = vmul.f32 0.03125, %v181_v23 }
 0x127   :  { %9340 = vrsqrt.f32 %v233_v19 }
 0x128   :  { %v234_v27 = vadd.f32 1e-06, %v218_v24  ;;  %v235_v30 = vadd.f32 1e-06, %v219_v25 }
 0x129   :  { %v184_v31 = vpop.xlane.xlu1 %183  ;;  %v187_v32 = vpop.xlane.xlu0 %186 }
 0x12a   :  { %9342 = vrsqrt.f32 %v234_v27  ;;  %v220_v33 = vmul.f32 0.03125, %v184_v31  ;;  %v221_v34 = vmul.f32 0.03125, %v187_v32 }
 0x12b   :  { %9344 = vrsqrt.f32 %v235_v30 }
 0x12c   :  { %v236_v36 = vadd.f32 1e-06, %v220_v33  ;;  %v237_v37 = vadd.f32 1e-06, %v221_v34 }
 0x12d   :  { %v190_v41 = vpop.xlane.xlu1 %189  ;;  %v96_v42 = vpop.xlane.xlu0 %95 }
 0x12e   :  { %9346 = vrsqrt.f32 %v236_v36  ;;  %v222_v43 = vmul.f32 0.03125, %v190_v41  ;;  %v127_v44 = vmul.f32 0.03125, %v96_v42 }
 0x12f   :  { %v9337_v45 = vpop.eup %9336  ;;  %9348 = vrsqrt.f32 %v237_v37 }
 0x130   :  { %v238_v50 = vadd.f32 1e-06, %v222_v43  ;;  %v263_v51 = vmul.f32 %v9337_v45, %v10140_v20  ;;  %v10258_v52 = vsub.f32 %v10181_v54, %v127_v44 }
 0x131   :  { %v99_v53 = vpop.xlane.xlu1 %98  ;;  %v102_v55 = vpop.xlane.xlu0 %101 }
 0x132   :  { %9350 = vrsqrt.f32 %v238_v50  ;;  %v128_v56 = vmul.f32 0.03125, %v99_v53  ;;  %v129_v57 = vmul.f32 0.03125, %v102_v55  ;;  %v283_v61 = vmul.f32 %v10253_v46, %v263_v51 }
 0x133   :  { %v9339_v60 = vpop.eup %9338  ;;  %v159_v1 = vmul.f32 %v10258_v52, %v10258_v52 }
 0x134   :  { %v9341_v20 = vpop.eup %9340  ;;  %v10269_v54 = vsub.f32 %v10190_v58, %v128_v56  ;;  %v264_v4 = vmul.f32 %v9339_v60, %v10148_v28  ;;  %v10273_v5 = vsub.f32 %v10195_v59, %v129_v57  ;;  %v303_v28 = vadd.f32 %v10264_v0, %v283_v61 }
 0x135   :  { %v105_v7 = vpop.xlane.xlu1 %104  ;;  %v265_v8 = vmul.f32 %v9341_v20, %v10142_v21  ;;  %v108_v9 = vpop.xlane.xlu0 %107  ;;  %v191_v10 = vsel %vm69_vm0, %v159_v1, 0.0 }
 0x136   :  { %v284_v11 = vmul.f32 %v10253_v46, %v264_v4  ;;  %v130_v12 = vmul.f32 0.03125, %v105_v7  ;;  %v160_v13 = vmul.f32 %v10269_v54, %v10269_v54  ;;  %v131_v14 = vmul.f32 0.03125, %v108_v9  ;;  %192 = vadd.xlane.f32.xlu0 %v191_v10 }
 0x137   :  { %v9343_v58 = vpop.eup %9342  ;;  %v285_v59 = vmul.f32 %v10253_v46, %v265_v8  ;;  %v161_v15 = vmul.f32 %v10273_v5, %v10273_v5 }
 0x138   :  { %v9345_v21 = vpop.eup %9344  ;;  %v304_v16 = vadd.f32 %v10264_v0, %v284_v11  ;;  %v10286_v17 = vsub.f32 %v10204_v62, %v130_v12  ;;  %v266_v18 = vmul.f32 %v9343_v58, %v10150_v29  ;;  %v194_v19 = vsel %vm69_vm0, %v160_v13, 0.0 }
 0x139   :  { %195 = vadd.xlane.f32.xlu1 %v194_v19  ;;  %v267_v22 = vmul.f32 %v9345_v21, %v10158_v38  ;;  %v10292_v23 = vsub.f32 %v10209_v63, %v131_v14  ;;  %v111_v24 = vpop.xlane.xlu1 %110  ;;  %v197_v25 = vsel %vm69_vm0, %v161_v15, 0.0  ;;  %v114_v27 = vpop.xlane.xlu0 %113  ;;  %v305_v33 = vadd.f32 %v10264_v0, %v285_v59 }
 0x13a   :  { %v319_v30 = vpack.c.bf16 %v304_v16, %v303_v28  ;;  %v286_v31 = vmul.f32 %v10253_v46, %v266_v18  ;;  %v162_v62 = vmul.f32 %v10286_v17, %v10286_v17  ;;  %v132_v32 = vmul.f32 0.03125, %v111_v24  ;;  %198 = vadd.xlane.f32.xlu0 %v197_v25 }
 0x13b   :  { %v9347_v29 = vpop.eup %9346  ;;  %v287_v38 = vmul.f32 %v10253_v46, %v267_v22  ;;  %v163_v63 = vmul.f32 %v10292_v23, %v10292_v23  ;;  %v133_v34 = vmul.f32 0.03125, %v114_v27 }
 0x13c   :  { %v9349_v36 = vpop.eup %9348  ;;  %8298 = vmatprep.mubr.msk.bf16.mxu1 %vm69_vm0, %v319_v30  ;;  %v306_v37 = vadd.f32 %v10264_v0, %v286_v31  ;;  %v268_v41 = vmul.f32 %v9347_v29, %v10160_v39  ;;  %v200_v42 = vsel %vm69_vm0, %v162_v62, 0.0  ;;  %v10307_v43 = vsub.f32 %v10218_v2, %v132_v32 }
 0x13d   :  { %201 = vadd.xlane.f32.xlu1 %v200_v42  ;;  %v269_v44 = vmul.f32 %v9349_v36, %v10168_v48  ;;  %v203_v45 = vsel %vm69_vm0, %v163_v63, 0.0  ;;  %v10312_v50 = vsub.f32 %v10223_v3, %v133_v34  ;;  %v117_v51 = vpop.xlane.xlu1 %116  ;;  %v307_v2 = vadd.f32 %v10264_v0, %v287_v38 }
 0x13e   :  { %v320_v53 = vpack.c.bf16 %v306_v37, %v305_v33  ;;  %v288_v55 = vmul.f32 %v10253_v46, %v268_v41  ;;  %v134_v56 = vmul.f32 0.03125, %v117_v51  ;;  %v164_v39 = vmul.f32 %v10307_v43, %v10307_v43 }
 0x13f   :  { %v9351_v57 = vpop.eup %9350  ;;  %v289_v3 = vmul.f32 %v10253_v46, %v269_v44  ;;  %v165_v61 = vmul.f32 %v10312_v50, %v10312_v50 }
 0x140   :  { %8299 = vmatmul.mubr.msk.bf16.vlgmr.msra.gmra.mxu1 %vm69_vm0, %v320_v53  ;;  %v308_v48 = vadd.f32 %v10264_v0, %v288_v55  ;;  %v270_v60 = vmul.f32 %v9351_v57, %v10170_v49  ;;  %v10326_v4 = vsub.f32 %v10232_v6, %v134_v56  ;;  %v206_v7 = vsel %vm69_vm0, %v164_v39, 0.0 }
 0x141   :  { %204 = vadd.xlane.f32.xlu1 %v203_v45  ;;  %v309_v8 = vadd.f32 %v10264_v0, %v289_v3  ;;  %v209_v10 = vsel %vm69_vm0, %v165_v61, 0.0 }
 0x142   :  { %v321_v1 = vpack.c.bf16 %v308_v48, %v307_v2  ;;  %v290_v20 = vmul.f32 %v10253_v46, %v270_v60  ;;  %v166_v11 = vmul.f32 %v10326_v4, %v10326_v4 }
 0x144   :  { %8302 = vmatprep.mubr.msk.bf16.mxu1 %vm69_vm0, %v321_v1  ;;  %v310_v49 = vadd.f32 %v10264_v0, %v290_v20  ;;  %v212_v6 = vsel %vm69_vm0, %v166_v11, 0.0 }
 0x145   :  { %207 = vadd.xlane.f32.xlu1 %v206_v7 }
 0x146   :  { %v322_v9 = vpack.c.bf16 %v310_v49, %v309_v8 }
 0x148   :  { %8303 = vmatmul.mubr.msk.bf16.gmra.mxu1 %vm69_vm0, %v322_v9 }
 0x149   :  { %210 = vadd.xlane.f32.xlu1 %v209_v10 }
 0x14d   :  { %213 = vadd.xlane.f32.xlu1 %v212_v6 }
 0x1bf   :  { %v193_v12 = vpop.xlane.xlu0 %192 }
 0x1c0   :  { %v223_v13 = vmul.f32 0.03125, %v193_v12 }
 0x1c2   :  { %v196_v14 = vpop.xlane.xlu1 %195  ;;  %v239_v58 = vadd.f32 1e-06, %v223_v13 }
 0x1c3   :  { %v224_v28 = vmul.f32 0.03125, %v196_v14  ;;  %v199_v59 = vpop.xlane.xlu0 %198 }
 0x1c4   :  { %9352 = vrsqrt.f32 %v239_v58  ;;  %v225_v15 = vmul.f32 0.03125, %v199_v59 }
 0x1c5   :  { %v240_v21 = vadd.f32 1e-06, %v224_v28 }
 0x1c6   :  { %v202_v16 = vpop.xlane.xlu1 %201  ;;  %v241_v18 = vadd.f32 1e-06, %v225_v15 }
 0x1c7   :  { %9354 = vrsqrt.f32 %v240_v21  ;;  %v226_v19 = vmul.f32 0.03125, %v202_v16 }
 0x1c8   :  { %9356 = vrsqrt.f32 %v241_v18 }
 0x1c9   :  { %v242_v22 = vadd.f32 1e-06, %v226_v19 }
 0x1ca   :  { %v205_v24 = vpop.xlane.xlu1 %204 }
 0x1cb   :  { %9358 = vrsqrt.f32 %v242_v22  ;;  %v227_v25 = vmul.f32 0.03125, %v205_v24 }
 0x1cd   :  { %v243_v27 = vadd.f32 1e-06, %v227_v25 }
 0x1ce   :  { %v208_v30 = vpop.xlane.xlu1 %207 }
 0x1cf   :  { %9360 = vrsqrt.f32 %v243_v27  ;;  %v228_v31 = vmul.f32 0.03125, %v208_v30 }
 0x1d1   :  { %v9353_v62 = vpop.eup %9352  ;;  %v244_v32 = vadd.f32 1e-06, %v228_v31 }
 0x1d2   :  { %v211_v29 = vpop.xlane.xlu1 %210  ;;  %v271_v33 = vmul.f32 %v9353_v62, %v10258_v52 }
 0x1d3   :  { %9362 = vrsqrt.f32 %v244_v32  ;;  %v229_v38 = vmul.f32 0.03125, %v211_v29 }
 0x1d4   :  { %v9355_v63 = vpop.eup %9354  ;;  %v291_v34 = vmul.f32 %v10253_v46, %v271_v33 }
 0x1d5   :  { %v9357_v36 = vpop.eup %9356  ;;  %v245_v37 = vadd.f32 1e-06, %v229_v38  ;;  %v272_v41 = vmul.f32 %v9355_v63, %v10269_v54 }
 0x1d6   :  { %v214_v42 = vpop.xlane.xlu1 %213  ;;  %v273_v44 = vmul.f32 %v9357_v36, %v10273_v5  ;;  %v311_v53 = vadd.f32 %v10264_v0, %v291_v34 }
 0x1d7   :  { %9364 = vrsqrt.f32 %v245_v37  ;;  %v230_v45 = vmul.f32 0.03125, %v214_v42  ;;  %v292_v51 = vmul.f32 %v10253_v46, %v272_v41 }
 0x1d8   :  { %v9359_v55 = vpop.eup %9358  ;;  %v293_v52 = vmul.f32 %v10253_v46, %v273_v44 }
 0x1d9   :  { %v246_v56 = vadd.f32 1e-06, %v230_v45  ;;  %v312_v39 = vadd.f32 %v10264_v0, %v292_v51  ;;  %v274_v57 = vmul.f32 %v9359_v55, %v10286_v17 }
 0x1da   :  { %v313_v5 = vadd.f32 %v10264_v0, %v293_v52 }
 0x1db   :  { %9366 = vrsqrt.f32 %v246_v56  ;;  %v323_v2 = vpack.c.bf16 %v312_v39, %v311_v53  ;;  %v294_v54 = vmul.f32 %v10253_v46, %v274_v57 }
 0x1dc   :  { %v9361_v48 = vpop.eup %9360 }
 0x1dd   :  { %8306 = vmatprep.mubr.msk.bf16.mxu1 %vm69_vm0, %v323_v2  ;;  %v314_v60 = vadd.f32 %v10264_v0, %v294_v54  ;;  %v275_v3 = vmul.f32 %v9361_v48, %v10292_v23 }
 0x1df   :  { %v324_v61 = vpack.c.bf16 %v314_v60, %v313_v5  ;;  %v295_v1 = vmul.f32 %v10253_v46, %v275_v3 }
 0x1e0   :  { %v9363_v20 = vpop.eup %9362 }
 0x1e1   :  { %8307 = vmatmul.mubr.msk.bf16.gmra.mxu1 %vm69_vm0, %v324_v61  ;;  %v276_v17 = vmul.f32 %v9363_v20, %v10307_v43  ;;  %v315_v8 = vadd.f32 %v10264_v0, %v295_v1 }
 0x1e3   :  { %v296_v7 = vmul.f32 %v10253_v46, %v276_v17 }
 0x1e4   :  { %v9365_v49 = vpop.eup %9364 }
 0x1e5   :  { %v316_v9 = vadd.f32 %v10264_v0, %v296_v7  ;;  %v277_v10 = vmul.f32 %v9365_v49, %v10312_v50  ;;  %v13555_v50 = vsub.s32 4, %v10242_v26 }
 0x1e7   :  { %v325_v11 = vpack.c.bf16 %v316_v9, %v315_v8  ;;  %v297_v23 = vmul.f32 %v10253_v46, %v277_v10  ;;  %v10369_v21 = vrot.slane %v10248_v40, %v13555_v50 }
 0x1e8   :  { %v9367_v6 = vpop.eup %9366 }
 0x1e9   :  { %8310 = vmatprep.mubr.msk.bf16.mxu1 %vm69_vm0, %v325_v11  ;;  %v278_v12 = vmul.f32 %v9367_v6, %v10326_v4  ;;  %v317_v43 = vadd.f32 %v10264_v0, %v297_v23 }
 0x1eb   :  { %v298_v13 = vmul.f32 %v10253_v46, %v278_v12 }
 0x1ed   :  { %v318_v14 = vadd.f32 %v10264_v0, %v298_v13 }
 0x1ef   :  { %v326_v58 = vpack.c.bf16 %v318_v14, %v317_v43 }
 0x1f1   :  { %8311 = vmatmul.mubr.msk.bf16.gmra.mxu1 %vm69_vm0, %v326_v58 }
 0x200   :  { %v8300_v28 = vpop.f32.mrf.mxu1 }
 0x201   :  { %v410_v32 = vadd.f32 %v8300_v28, %v10369_v21 }
 0x202   :  { %v401_v59 = vpop.f32.mrf.mxu1 }
 0x203   :  { %v402_v46 = vadd.f32 %v401_v59, %v10369_v21 }
 0x204   :  { %v8301_v15 = vpop.f32.mrf.mxu1 }
 0x205   :  { %v413_v27 = vadd.f32 %v8301_v15, %v10369_v21 }
 0x206   :  { %v404_v4 = vpop.f32.mrf.mxu1 }
 0x207   :  { %v405_v16 = vadd.f32 %v404_v4, %v10369_v21  ;;  %v10389_v33 = vpack.c.bf16 %v413_v27, %v410_v32 }
 0x208   :  { %v8304_v18 = vpop.f32.mrf.mxu1 }
 0x209   :  { %v10373_v0 = vpack.c.bf16 %v405_v16, %v402_v46  ;;  %v426_v24 = vadd.f32 %v8304_v18, %v10369_v21 }
 0x20a   :  { %v417_v19 = vpop.f32.mrf.mxu1 }
 0x20b   :  { %8322 = vmatprep.mubr.msk.bf16.mxu0 %vm484_vm1, %v10373_v0  ;;  %v418_v30 = vadd.f32 %v417_v19, %v10369_v21 }
 0x20c   :  { %v8305_v22 = vpop.f32.mrf.mxu1 }
 0x20d   :  { %v429_v25 = vadd.f32 %v8305_v22, %v10369_v21 }
 0x20e   :  { %v420_v40 = vpop.f32.mrf.mxu1 }
 0x20f   :  { %v10381_v31 = vpack.c.bf16 %v429_v25, %v426_v24  ;;  %v421_v62 = vadd.f32 %v420_v40, %v10369_v21 }
 0x211   :  { %v10385_v29 = vpack.c.bf16 %v421_v62, %v418_v30  ;;  %482 = vrot.lane.b32.xlu0 %v10381_v31, %s10059_s11 }
 0x213   :  { %480 = vrot.lane.b32.xlu1 %v10385_v29, %s10059_s11 }
 0x215   :  { %478 = vrot.lane.b32.xlu0 %v10389_v33, %s10059_s11 }
 0x217   :  { %768 = vrot.lane.b32.xlu1 %v10385_v29, %s10060_s12 }
 0x219   :  { %770 = vrot.lane.b32.xlu0 %v10381_v31, %s10060_s12 }
 0x21b   :  { %764 = vrot.lane.b32.xlu1 %v10373_v0, %s10060_s12 }
 0x21d   :  { %476 = vrot.lane.b32.xlu0 %v10373_v0, %s10059_s11 }
 0x21f   :  { %758 = vrot.lane.b32.xlu1 %v10389_v33, %s10061_s13 }
 0x221   :  { %766 = vrot.lane.b32.xlu0 %v10389_v33, %s10060_s12 }
 0x223   :  { %762 = vrot.lane.b32.xlu1 %v10381_v31, %s10061_s13 }
 0x225   :  { %756 = vrot.lane.b32.xlu0 %v10373_v0, %s10061_s13 }
 0x227   :  { %671 = vrot.lane.b32.xlu1 %v10385_v29, %s10062_s14 }
 0x229   :  { %760 = vrot.lane.b32.xlu0 %v10385_v29, %s10061_s13 }
 0x22d   :  { %673 = vrot.lane.b32.xlu0 %v10381_v31, %s10062_s14 }
 0x231   :  { %669 = vrot.lane.b32.xlu0 %v10389_v33, %s10062_s14 }
 0x235   :  { %667 = vrot.lane.b32.xlu0 %v10373_v0, %s10062_s14 }
 0x283   :  { %v483_v38 = vpop.permute.xlu0 %482 }
 0x284   :  { %8990 = vmatprep.subr.msk.bf16.mxu0 %vm484_vm1, %v483_v38  ;;  %v507_v63 = vsel %vm484_vm1, %v483_v38, 0 }
 0x285   :  { %v481_v34 = vpop.permute.xlu1 %480  ;;  %8315 = vmatpush3.bf16.xpose.msra.mxu0 %v507_v63 }
 0x286   :  { %8991 = vmatprep.subr.msk.bf16.mxu0 %vm484_vm1, %v481_v34  ;;  %v504_v41 = vsel %vm484_vm1, %v481_v34, 0 }
 0x287   :  { %v479_v36 = vpop.permute.xlu0 %478 }
 0x288   :  { %v501_v55 = vsel %vm484_vm1, %v479_v36, 0 }
 0x289   :  { %v769_v44 = vpop.permute.xlu1 %768 }
 0x28a   :  { %v791_v52 = vsel %vm484_vm1, %v769_v44, 0 }
 0x28b   :  { %v771_v37 = vpop.permute.xlu0 %770 }
 0x28c   :  { %8994 = vmatprep.subr.msk.bf16.mxu1 %vm484_vm1, %v771_v37  ;;  %v794_v42 = vsel %vm484_vm1, %v771_v37, 0 }
 0x28d   :  { %8317 = vmatpush3.bf16.xpose.msra.mxu0 %v504_v41  ;;  %8347 = vmatpush3.bf16.xpose.msra.mxu1 %v794_v42  ;;  %v765_v51 = vpop.permute.xlu1 %764 }
 0x28e   :  { %8992 = vmatprep.subr.msk.bf16.mxu0 %vm484_vm1, %v479_v36  ;;  %8995 = vmatprep.subr.msk.bf16.mxu1 %vm484_vm1, %v769_v44  ;;  %v785_v20 = vsel %vm484_vm1, %v765_v51, 0 }
 0x28f   :  { %v477_v45 = vpop.permute.xlu0 %476 }
 0x290   :  { %v498_v2 = vsel %vm484_vm1, %v477_v45, 0 }
 0x291   :  { %v759_v39 = vpop.permute.xlu1 %758 }
 0x293   :  { %v767_v53 = vpop.permute.xlu0 %766 }
 0x294   :  { %v788_v54 = vsel %vm484_vm1, %v767_v53, 0 }
 0x295   :  { %8319 = vmatpush3.bf16.xpose.msra.mxu0 %v501_v55  ;;  %8349 = vmatpush3.bf16.xpose.msra.mxu1 %v791_v52  ;;  %v763_v5 = vpop.permute.xlu1 %762 }
 0x296   :  { %8993 = vmatprep.subr.msk.bf16.mxu0 %vm484_vm1, %v477_v45  ;;  %8996 = vmatprep.subr.msk.bf16.mxu1 %vm484_vm1, %v767_v53 }
 0x297   :  { %v757_v56 = vpop.permute.xlu0 %756 }
 0x298   :  { %8354 = vmatprep.mubr.msk.bf16.mxu1 %vm484_vm1, %v757_v56 }
 0x299   :  { %v672_v1 = vpop.permute.xlu1 %671 }
 0x29b   :  { %v761_v57 = vpop.permute.xlu0 %760 }
 0x29d   :  { %8321 = vmatpush3.bf16.xpose.msra.mxu0 %v498_v2  ;;  %8351 = vmatpush3.bf16.xpose.msra.mxu1 %v788_v54 }
 0x29e   :  { %8997 = vmatprep.subr.msk.bf16.mxu1 %vm484_vm1, %v765_v51 }
 0x29f   :  { %v674_v48 = vpop.permute.xlu0 %673 }
 0x2a0   :  { %8330 = vmatprep.subr.bf16.mxu0 %v674_v48 }
 0x2a1   :  { %v8308_v60 = vpop.f32.mrf.mxu1 }
 0x2a2   :  { %v442_v61 = vadd.f32 %v8308_v60, %v10369_v21 }
 0x2a3   :  { %v10437_v3 = vpop.f32.mrf.mxu1  ;;  %v670_v8 = vpop.permute.xlu0 %669 }
 0x2a4   :  { %8323 = vmatmul.mubr.msk.bf16.vlgmr.msra.gmra.mxu0 %vm484_vm1, %v10389_v33 }
 0x2a5   :  { %8326 = vmatprep.mubr.msk.bf16.mxu0 %vm484_vm1, %v10385_v29  ;;  %8331 = vmatpush3.bf16.msra.mxu0 %v674_v48  ;;  %v8309_v17 = vpop.f32.mrf.mxu1 }
 0x2a6   :  { %8353 = vmatpush3.bf16.xpose.msra.mxu1 %v785_v20  ;;  %8332 = vmatprep.subr.bf16.mxu0 %v672_v1  ;;  %v445_v7 = vadd.f32 %v8309_v17, %v10369_v21 }
 0x2a7   :  { %v668_v9 = vpop.permute.xlu0 %667  ;;  %v10452_v10 = vpop.f32.mrf.mxu1 }
 0x2a8   :  { %v10446_v49 = vpack.c.bf16 %v445_v7, %v442_v61 }
 0x2a9   :  { %8333 = vmatpush3.bf16.msra.mxu0 %v672_v1 }
 0x2aa   :  { %8334 = vmatprep.subr.bf16.mxu0 %v670_v8 }
 0x2ac   :  { %8327 = vmatmul.mubr.msk.bf16.gmra.mxu0 %vm484_vm1, %v10381_v31 }
 0x2ad   :  { %8355 = vmatmul.mubr.msk.bf16.vlgmr.msra.gmra.mxu1 %vm484_vm1, %v759_v39  ;;  %8335 = vmatpush3.bf16.msra.mxu0 %v670_v8 }
 0x2ae   :  { %8358 = vmatprep.mubr.msk.bf16.mxu1 %vm484_vm1, %v761_v57  ;;  %8336 = vmatprep.subr.bf16.mxu0 %v668_v9 }
 0x2b1   :  { %8337 = vmatpush3.bf16.msra.mxu0 %v668_v9  ;;  %v8312_v11 = vpop.f32.mrf.mxu1 }
 0x2b2   :  { %v458_v6 = vadd.f32 %v8312_v11, %v10369_v21 }
 0x2b3   :  { %v10454_v23 = vpop.f32.mrf.mxu1 }
 0x2b5   :  { %8359 = vmatmul.mubr.msk.bf16.gmra.mxu1 %vm484_vm1, %v763_v5  ;;  %v8313_v12 = vpop.f32.mrf.mxu1 }
 0x2b6   :  { %v461_v13 = vadd.f32 %v8313_v12, %v10369_v21 }
 0x2b7   :  { %v10462_v59 = vpop.f32.mrf.mxu1 }
 0x2b8   :  { %v10459_v43 = vpack.c.bf16 %v461_v13, %v458_v6 }
 0x364   :  { %v8324_v14 = vpop.f32.mrf.mxu0 }
 0x365   :  { %v581_v58 = vsel %vm574_vm2, %v8324_v14, -inf }
 0x366   :  { %582 = vmax.xlane.f32.xlu0 %v581_v58  ;;  %v543_v28 = vpop.f32.mrf.mxu0 }
 0x367   :  { %v575_v22 = vsel %vm574_vm2, %v543_v28, -inf }
 0x368   :  { %v10464_v15 = vpop.f32.mrf.mxu0 }
 0x369   :  { %v584_v38 = vsel %vm574_vm2, %v10464_v15, -inf }
 0x36a   :  { %v10467_v16 = vpop.f32.mrf.mxu0 }
 0x36b   :  { %v578_v30 = vsel %vm574_vm2, %v10467_v16, -inf }
 0x36c   :  { %v10474_v25 = vpop.f32.mrf.mxu0 }
 0x36d   :  { %v8356_v4 = vpop.f32.mrf.mxu1  ;;  %v593_v37 = vsel %vm574_vm2, %v10474_v25, -inf }
 0x36e   :  { %v867_v46 = vsel %vm574_vm2, %v8356_v4, -inf  ;;  %v10481_v62 = vpop.f32.mrf.mxu0 }
 0x36f   :  { %868 = vmax.xlane.f32.xlu0 %v867_v46  ;;  %v830_v18 = vpop.f32.mrf.mxu1  ;;  %v587_v53 = vsel %vm574_vm2, %v10481_v62, -inf }
 0x370   :  { %v861_v27 = vsel %vm574_vm2, %v830_v18, -inf  ;;  %v10489_v34 = vpop.f32.mrf.mxu0 }
 0x371   :  { %v10469_v19 = vpop.f32.mrf.mxu1  ;;  %v596_v41 = vsel %vm574_vm2, %v10489_v34, -inf }
 0x372   :  { %v870_v24 = vsel %vm574_vm2, %v10469_v19, -inf  ;;  %v10503_v51 = vpop.f32.mrf.mxu0 }
 0x373   :  { %576 = vmax.xlane.f32.xlu0 %v575_v22  ;;  %871 = vmax.xlane.f32.xlu1 %v870_v24  ;;  %v10476_v40 = vpop.f32.mrf.mxu1  ;;  %v590_v55 = vsel %vm574_vm2, %v10503_v51, -inf }
 0x374   :  { %v864_v63 = vsel %vm574_vm2, %v10476_v40, -inf }
 0x375   :  { %v10483_v32 = vpop.f32.mrf.mxu1 }
 0x376   :  { %v879_v44 = vsel %vm574_vm2, %v10483_v32, -inf }
 0x377   :  { %862 = vmax.xlane.f32.xlu0 %v861_v27  ;;  %579 = vmax.xlane.f32.xlu1 %v578_v30  ;;  %v10491_v36 = vpop.f32.mrf.mxu1 }
 0x378   :  { %v873_v39 = vsel %vm574_vm2, %v10491_v36, -inf }
 0x379   :  { %v10497_v42 = vpop.f32.mrf.mxu1 }
 0x37a   :  { %v882_v45 = vsel %vm574_vm2, %v10497_v42, -inf }
 0x37b   :  { %585 = vmax.xlane.f32.xlu0 %v584_v38  ;;  %865 = vmax.xlane.f32.xlu1 %v864_v63  ;;  %v10509_v52 = vpop.f32.mrf.mxu1 }
 0x37c   :  { %v876_v56 = vsel %vm574_vm2, %v10509_v52, -inf }
 0x37f   :  { %594 = vmax.xlane.f32.xlu0 %v593_v37  ;;  %597 = vmax.xlane.f32.xlu1 %v596_v41 }
 0x383   :  { %880 = vmax.xlane.f32.xlu0 %v879_v44  ;;  %883 = vmax.xlane.f32.xlu1 %v882_v45 }
 0x387   :  { %588 = vmax.xlane.f32.xlu0 %v587_v53  ;;  %591 = vmax.xlane.f32.xlu1 %v590_v55 }
 0x38b   :  { %877 = vmax.xlane.f32.xlu1 %v876_v56 }
 0x39c   :  { %957 = vrot.lane.b32.xlu1 %v10385_v29, %s10063_s15 }
 0x39d   :  { %959 = vrot.lane.b32.xlu0 %v10381_v31, %s10063_s15 }
 0x3bc   :  { %874 = vmax.xlane.f32.xlu0 %v873_v39 }
 0x3d2   :  { %955 = vrot.lane.b32.xlu0 %v10389_v33, %s10063_s15 }
 0x3ef   :  { %v583_v57 = vpop.xlane.xlu0 %582 }
 0x3f0   :  { %v601_v2 = vsub.f32 %v8324_v14, %v583_v57 }
 0x3f2   :  { %v611_v54 = vmul.f32 1.442695, %v601_v2 }
 0x3f4   :  { %9368 = vpow2.f32 %v611_v54 }
 0x3f8   :  { %v869_v5 = vpop.xlane.xlu0 %868 }
 0x3f9   :  { %v887_v48 = vsub.f32 %v8356_v4, %v869_v5 }
 0x3fb   :  { %v897_v60 = vmul.f32 1.442695, %v887_v48 }
 0x3fc   :  { %v872_v61 = vpop.xlane.xlu1 %871  ;;  %v577_v1 = vpop.xlane.xlu0 %576 }
 0x3fd   :  { %9370 = vpow2.f32 %v897_v60  ;;  %v599_v20 = vsub.f32 %v543_v28, %v577_v1  ;;  %v888_v13 = vsub.f32 %v10469_v19, %v872_v61 }
 0x3ff   :  { %v607_v17 = vmul.f32 1.442695, %v599_v20  ;;  %v899_v46 = vmul.f32 1.442695, %v888_v13 }
 0x400   :  { %v580_v7 = vpop.xlane.xlu1 %579  ;;  %v863_v8 = vpop.xlane.xlu0 %862 }
 0x401   :  { %v10521_v9 = vpop.eup %9368  ;;  %v885_v11 = vsub.f32 %v830_v18, %v863_v8  ;;  %9372 = vpow2.f32 %v607_v17  ;;  %v600_v22 = vsub.f32 %v10467_v16, %v580_v7 }
 0x402   :  { %v629_v6 = vsel %vm574_vm2, %v10521_v9, 0.0 }
 0x403   :  { %v893_v12 = vmul.f32 1.442695, %v885_v11  ;;  %630 = vadd.xlane.f32.xlu0 %v629_v6  ;;  %v609_v63 = vmul.f32 1.442695, %v600_v22 }
 0x404   :  { %v866_v14 = vpop.xlane.xlu1 %865  ;;  %v586_v58 = vpop.xlane.xlu0 %585 }
 0x405   :  { %v602_v4 = vsub.f32 %v10464_v15, %v586_v58  ;;  %9374 = vpow2.f32 %v893_v12  ;;  %v886_v15 = vsub.f32 %v10476_v40, %v866_v14 }
 0x407   :  { %v613_v28 = vmul.f32 1.442695, %v602_v4  ;;  %v895_v45 = vmul.f32 1.442695, %v886_v15 }
 0x408   :  { %v10528_v24 = vpop.xlane.xlu1 %597  ;;  %v595_v18 = vpop.xlane.xlu0 %594 }
 0x409   :  { %v605_v27 = vsub.f32 %v10474_v25, %v595_v18  ;;  %9376 = vpow2.f32 %v613_v28  ;;  %v606_v18 = vsub.f32 %v10489_v34, %v10528_v24 }
 0x40a   :  { %v10531_v30 = vpop.eup %9370  ;;  %9378 = vpow2.f32 %v899_v46 }
 0x40b   :  { %v619_v38 = vmul.f32 1.442695, %v605_v27  ;;  %v915_v19 = vsel %vm574_vm2, %v10531_v30, 0.0 }
 0x40c   :  { %v884_v37 = vpop.xlane.xlu1 %883  ;;  %916 = vadd.xlane.f32.xlu1 %v915_v19  ;;  %v881_v41 = vpop.xlane.xlu0 %880  ;;  %v621_v19 = vmul.f32 1.442695, %v606_v18 }
 0x40d   :  { %v891_v16 = vsub.f32 %v10483_v32, %v881_v41  ;;  %9380 = vpow2.f32 %v619_v38  ;;  %v892_v53 = vsub.f32 %v10497_v42, %v884_v37 }
 0x40e   :  { %v10537_v44 = vpop.eup %9372  ;;  %9382 = vpow2.f32 %v609_v63 }
 0x40f   :  { %v905_v25 = vmul.f32 1.442695, %v891_v16  ;;  %v623_v56 = vsel %vm574_vm2, %v10537_v44, 0.0  ;;  %v907_v2 = vmul.f32 1.442695, %v892_v53 }
 0x410   :  { %v592_v55 = vpop.xlane.xlu1 %591  ;;  %v589_v39 = vpop.xlane.xlu0 %588  ;;  %624 = vadd.xlane.f32.xlu0 %v623_v56 }
 0x411   :  { %v603_v40 = vsub.f32 %v10481_v62, %v589_v39  ;;  %9384 = vpow2.f32 %v905_v25  ;;  %v604_v63 = vsub.f32 %v10503_v51, %v592_v55 }
 0x412   :  { %v10543_v57 = vpop.eup %9374  ;;  %9386 = vpow2.f32 %v895_v45 }
 0x413   :  { %v615_v32 = vmul.f32 1.442695, %v603_v40  ;;  %v909_v5 = vsel %vm574_vm2, %v10543_v57, 0.0  ;;  %v617_v37 = vmul.f32 1.442695, %v604_v63 }
 0x414   :  { %v878_v54 = vpop.xlane.xlu1 %877  ;;  %v10547_v48 = vpop.permute.xlu0 %959  ;;  %910 = vadd.xlane.f32.xlu1 %v909_v5 }
 0x415   :  { %v890_v42 = vsub.f32 %v10509_v52, %v878_v54  ;;  %8362 = vmatprep.subr.bf16.mxu0 %v10547_v48  ;;  %9388 = vpow2.f32 %v615_v32 }
 0x416   :  { %v10551_v60 = vpop.eup %9376  ;;  %9390 = vpow2.f32 %v907_v2 }
 0x417   :  { %v903_v62 = vmul.f32 1.442695, %v890_v42  ;;  %v632_v61 = vsel %vm574_vm2, %v10551_v60, 0.0  ;;  %v10555_v1 = vpop.eup %9378 }
 0x418   :  { %633 = vadd.xlane.f32.xlu1 %v632_v61  ;;  %v918_v52 = vsel %vm574_vm2, %v10555_v1, 0.0  ;;  %v958_v25 = vpop.permute.xlu1 %957 }
 0x419   :  { %9392 = vpow2.f32 %v903_v62 }
 0x41a   :  { %v10557_v20 = vpop.eup %9380 }
 0x41b   :  { %v641_v17 = vsel %vm574_vm2, %v10557_v20, 0.0  ;;  %v10563_v7 = vpop.eup %9382 }
 0x41c   :  { %919 = vadd.xlane.f32.xlu1 %v918_v52  ;;  %642 = vadd.xlane.f32.xlu0 %v641_v17  ;;  %v626_v11 = vsel %vm574_vm2, %v10563_v7, 0.0 }
 0x41e   :  { %v10565_v8 = vpop.eup %9384 }
 0x41f   :  { %v927_v6 = vsel %vm574_vm2, %v10565_v8, 0.0  ;;  %v10571_v12 = vpop.eup %9386 }
 0x420   :  { %627 = vadd.xlane.f32.xlu1 %v626_v11  ;;  %928 = vadd.xlane.f32.xlu0 %v927_v6  ;;  %v912_v14 = vsel %vm574_vm2, %v10571_v12, 0.0 }
 0x422   :  { %v10573_v13 = vpop.eup %9388 }
 0x423   :  { %v635_v58 = vsel %vm574_vm2, %v10573_v13, 0.0  ;;  %v10579_v4 = vpop.eup %9390 }
 0x424   :  { %913 = vadd.xlane.f32.xlu1 %v912_v14  ;;  %636 = vadd.xlane.f32.xlu0 %v635_v58  ;;  %v930_v28 = vsel %vm574_vm2, %v10579_v4, 0.0 }
 0x426   :  { %v10583_v46 = vpop.eup %9392 }
 0x427   :  { %v924_v22 = vsel %vm574_vm2, %v10583_v46, 0.0 }
 0x428   :  { %931 = vadd.xlane.f32.xlu0 %v930_v28 }
 0x42c   :  { %925 = vadd.xlane.f32.xlu0 %v924_v22 }
 0x442   :  { %1056 = vrot.lane.b32.xlu0 %v10381_v31, %s10064_s16 }
 0x445   :  { %v875_v27 = vpop.xlane.xlu0 %874 }
 0x446   :  { %v889_v38 = vsub.f32 %v10491_v36, %v875_v27  ;;  %1042 = vrot.lane.b32.xlu0 %v10373_v0, %s10065_s17 }
 0x448   :  { %v901_v15 = vmul.f32 1.442695, %v889_v38 }
 0x449   :  { %v956_v53 = vpop.permute.xlu0 %955 }
 0x44a   :  { %9394 = vpow2.f32 %v901_v15  ;;  %1046 = vrot.lane.b32.xlu0 %v10385_v29, %s10065_s17 }
 0x44b   :  { %9396 = vpow2.f32 %v621_v19 }
 0x44c   :  { %9398 = vpow2.f32 %v617_v37 }
 0x457   :  { %v10597_v41 = vpop.eup %9394 }
 0x458   :  { %v921_v34 = vsel %vm574_vm2, %v10597_v41, 0.0  ;;  %v10601_v36 = vpop.eup %9396 }
 0x459   :  { %922 = vadd.xlane.f32.xlu1 %v921_v34  ;;  %v644_v24 = vsel %vm574_vm2, %v10601_v36, 0.0  ;;  %v10605_v51 = vpop.eup %9398 }
 0x45a   :  { %v638_v16 = vsel %vm574_vm2, %v10605_v51, 0.0 }
 0x45d   :  { %645 = vadd.xlane.f32.xlu1 %v644_v24 }
 0x461   :  { %639 = vadd.xlane.f32.xlu1 %v638_v16 }
 0x472   :  { %953 = vrot.lane.b32.xlu1 %v10373_v0, %s10063_s15 }
 0x476   :  { %1054 = vrot.lane.b32.xlu1 %v10385_v29, %s10064_s16 }
 0x47a   :  { %1052 = vrot.lane.b32.xlu1 %v10389_v33, %s10064_s16 }
 0x47e   :  { %1050 = vrot.lane.b32.xlu1 %v10373_v0, %s10064_s16 }
 0x482   :  { %1044 = vrot.lane.b32.xlu1 %v10389_v33, %s10065_s17 }
 0x486   :  { %1048 = vrot.lane.b32.xlu1 %v10381_v31, %s10065_s17 }
 0x48c   :  { %v631_v56 = vpop.xlane.xlu0 %630 }
 0x495   :  { %v917_v45 = vpop.xlane.xlu1 %916 }
 0x499   :  { %v625_v40 = vpop.xlane.xlu0 %624 }
 0x49d   :  { %v911_v55 = vpop.xlane.xlu1 %910 }
 0x4a1   :  { %v634_v39 = vpop.xlane.xlu1 %633 }
 0x4a2   :  { %9400 = vrcp.f32 %v634_v39 }
 0x4a3   :  { %9402 = vrcp.f32 %v625_v40 }
 0x4a4   :  { %9404 = vrcp.f32 %v631_v56 }
 0x4a5   :  { %v920_v32 = vpop.xlane.xlu1 %919  ;;  %v643_v58 = vpop.xlane.xlu0 %642 }
 0x4a9   :  { %v628_v2 = vpop.xlane.xlu1 %627 }
 0x4aa   :  { %9406 = vrcp.f32 %v628_v2 }
 0x4ab   :  { %9408 = vrcp.f32 %v911_v55 }
 0x4ad   :  { %v914_v28 = vpop.xlane.xlu1 %913 }
 0x4ae   :  { %9410 = vrcp.f32 %v914_v28 }
 0x4af   :  { %v9401_v54 = vpop.eup %9400 }
 0x4b0   :  { %v9403_v5 = vpop.eup %9402  ;;  %v658_v61 = vmul.f32 %v9401_v54, %v10551_v60  ;;  %v929_v60 = vpop.xlane.xlu0 %928 }
 0x4b1   :  { %v9405_v42 = vpop.eup %9404  ;;  %v655_v52 = vmul.f32 %v9403_v5, %v10537_v44 }
 0x4b2   :  { %v657_v11 = vmul.f32 %v9405_v42, %v10521_v9 }
 0x4b4   :  { %v664_v14 = vpack.c.bf16 %v658_v61, %v657_v11  ;;  %v637_v44 = vpop.xlane.xlu0 %636 }
 0x4b7   :  { %v9407_v62 = vpop.eup %9406 }
 0x4b8   :  { %v656_v17 = vmul.f32 %v9407_v62, %v10563_v7  ;;  %v932_v7 = vpop.xlane.xlu0 %931  ;;  %v9409_v19 = vpop.eup %9408 }
 0x4b9   :  { %v941_v39 = vmul.f32 %v9409_v19, %v10543_v57 }
 0x4ba   :  { %v663_v6 = vpack.c.bf16 %v656_v17, %v655_v52 }
 0x4bb   :  { %v9411_v63 = vpop.eup %9410 }
 0x4bc   :  { %8338 = vmatprep.mubr.msk.bf16.mxu0 %vm574_vm2, %v663_v6  ;;  %v926_v18 = vpop.xlane.xlu0 %925  ;;  %v942_v55 = vmul.f32 %v9411_v63, %v10571_v12 }
 0x4bd   :  { %8339 = vmatmul.mubr.msk.bf16.vlgmr.msra.gmra.mxu0 %vm574_vm2, %v664_v14 }
 0x4be   :  { %8363 = vmatpush3.bf16.msra.mxu0 %v10547_v48  ;;  %v949_v2 = vpack.c.bf16 %v942_v55, %v941_v39 }
 0x4bf   :  { %8364 = vmatprep.subr.bf16.mxu0 %v958_v25 }
 0x4c0   :  { %v1057_v38 = vpop.permute.xlu0 %1056 }
 0x4c1   :  { %v1080_v61 = vsel %vm484_vm1, %v1057_v38, 0 }
 0x4c2   :  { %8365 = vmatpush3.bf16.msra.mxu0 %v958_v25 }
 0x4c3   :  { %8366 = vmatprep.subr.bf16.mxu0 %v956_v53 }
 0x4c6   :  { %8367 = vmatpush3.bf16.msra.mxu0 %v956_v53 }
 0x4e2   :  { %v923_v22 = vpop.xlane.xlu1 %922 }
 0x4e6   :  { %v646_v9 = vpop.xlane.xlu1 %645 }
 0x4e7   :  { %9412 = vrcp.f32 %v646_v9 }
 0x4e8   :  { %9414 = vrcp.f32 %v637_v44 }
 0x4e9   :  { %9416 = vrcp.f32 %v643_v58 }
 0x4ea   :  { %v640_v27 = vpop.xlane.xlu1 %639 }
 0x4eb   :  { %9418 = vrcp.f32 %v640_v27 }
 0x4ec   :  { %9420 = vrcp.f32 %v920_v32 }
 0x4ed   :  { %9422 = vrcp.f32 %v923_v22 }
 0x4ee   :  { %v954_v48 = vpop.permute.xlu1 %953  ;;  %9424 = vrcp.f32 %v917_v45 }
 0x4ef   :  { %8368 = vmatprep.subr.bf16.mxu0 %v954_v48  ;;  %9426 = vrcp.f32 %v926_v18 }
 0x4f0   :  { %8369 = vmatpush3.bf16.msra.mxu0 %v954_v48  ;;  %9428 = vrcp.f32 %v932_v7 }
 0x4f1   :  { %8998 = vmatprep.subr.msk.bf16.mxu0 %vm484_vm1, %v1057_v38  ;;  %9430 = vrcp.f32 %v929_v60 }
 0x4f2   :  { %v1055_v17 = vpop.permute.xlu1 %1054 }
 0x4f3   :  { %v1077_v11 = vsel %vm484_vm1, %v1055_v17, 0 }
 0x4f4   :  { %v9413_v15 = vpop.eup %9412 }
 0x4f5   :  { %v9415_v37 = vpop.eup %9414  ;;  %v662_v16 = vmul.f32 %v9413_v15, %v10601_v36 }
 0x4f6   :  { %v9417_v34 = vpop.eup %9416  ;;  %v659_v25 = vmul.f32 %v9415_v37, %v10573_v13  ;;  %v1053_v6 = vpop.permute.xlu1 %1052 }
 0x4f7   :  { %v661_v56 = vmul.f32 %v9417_v34, %v10557_v20  ;;  %v1074_v14 = vsel %vm484_vm1, %v1053_v6, 0 }
 0x4f8   :  { %v9419_v24 = vpop.eup %9418 }
 0x4f9   :  { %v660_v53 = vmul.f32 %v9419_v24, %v10605_v51  ;;  %v666_v40 = vpack.c.bf16 %v662_v16, %v661_v56  ;;  %v9421_v32 = vpop.eup %9420 }
 0x4fa   :  { %v9423_v54 = vpop.eup %9422  ;;  %v944_v12 = vmul.f32 %v9421_v32, %v10555_v1  ;;  %v1051_v58 = vpop.permute.xlu1 %1050 }
 0x4fb   :  { %v665_v45 = vpack.c.bf16 %v660_v53, %v659_v25  ;;  %v9425_v36 = vpop.eup %9424  ;;  %v945_v51 = vmul.f32 %v9423_v54, %v10597_v41 }
 0x4fc   :  { %v9427_v13 = vpop.eup %9426  ;;  %v943_v20 = vmul.f32 %v9425_v36, %v10531_v30 }
 0x4fd   :  { %8342 = vmatprep.mubr.msk.bf16.mxu0 %vm574_vm2, %v665_v45  ;;  %v946_v57 = vmul.f32 %v9427_v13, %v10583_v46  ;;  %v9429_v42 = vpop.eup %9428  ;;  %v1043_v46 = vpop.permute.xlu0 %1042 }
 0x4fe   :  { %8343 = vmatmul.mubr.msk.bf16.gmra.mxu0 %vm574_vm2, %v666_v40  ;;  %v950_v5 = vpack.c.bf16 %v944_v12, %v943_v20  ;;  %v9431_v52 = vpop.eup %9430  ;;  %v948_v1 = vmul.f32 %v9429_v42, %v10579_v4  ;;  %v1045_v4 = vpop.permute.xlu1 %1044 }
 0x4ff   :  { %8370 = vmatprep.mubr.msk.bf16.mxu0 %vm574_vm2, %v949_v2  ;;  %v951_v62 = vpack.c.bf16 %v946_v57, %v945_v51  ;;  %v947_v30 = vmul.f32 %v9431_v52, %v10565_v8  ;;  %v1071_v8 = vsel %vm484_vm1, %v1051_v58, 0 }
 0x501   :  { %v952_v41 = vpack.c.bf16 %v948_v1, %v947_v30  ;;  %v1047_v60 = vpop.permute.xlu0 %1046 }
 0x502   :  { %v1049_v28 = vpop.permute.xlu1 %1048 }
 0x506   :  { %8371 = vmatmul.mubr.msk.bf16.vlgmr.msra.gmra.mxu0 %vm574_vm2, %v950_v5 }
 0x507   :  { %8379 = vmatpush3.bf16.xpose.msra.mxu0 %v1080_v61  ;;  %8374 = vmatprep.mubr.msk.bf16.mxu0 %vm574_vm2, %v951_v62 }
 0x508   :  { %8999 = vmatprep.subr.msk.bf16.mxu0 %vm484_vm1, %v1055_v17 }
 0x50e   :  { %8375 = vmatmul.mubr.msk.bf16.gmra.mxu0 %vm574_vm2, %v952_v41 }
 0x50f   :  { %8381 = vmatpush3.bf16.xpose.msra.mxu0 %v1077_v11  ;;  %8386 = vmatprep.mubr.msk.bf16.mxu0 %vm484_vm1, %v1043_v46 }
 0x510   :  { %9000 = vmatprep.subr.msk.bf16.mxu0 %vm484_vm1, %v1053_v6 }
 0x517   :  { %8383 = vmatpush3.bf16.xpose.msra.mxu0 %v1074_v14 }
 0x518   :  { %9001 = vmatprep.subr.msk.bf16.mxu0 %vm484_vm1, %v1051_v58 }
 0x51f   :  { %8385 = vmatpush3.bf16.xpose.msra.mxu0 %v1071_v8 }
 0x526   :  { %8387 = vmatmul.mubr.msk.bf16.vlgmr.msra.gmra.mxu0 %vm484_vm1, %v1045_v4 }
 0x527   :  { %8390 = vmatprep.mubr.msk.bf16.mxu0 %vm484_vm1, %v1047_v60 }
 0x52e   :  { %8391 = vmatmul.mubr.msk.bf16.gmra.mxu0 %vm484_vm1, %v1049_v28 }
 0x57d   :  { %v10658_v44 = vpop.f32.mrf.mxu0 }
 0x57f   :  { %v10660_v22 = vpop.f32.mrf.mxu0 }
 0x581   :  { %v10662_v7 = vpop.f32.mrf.mxu0 }
 0x583   :  { %v10664_v9 = vpop.f32.mrf.mxu0 }
 0x5be   :  { %v10666_v18 = vpop.f32.mrf.mxu0 }
 0x5c0   :  { %v10668_v27 = vpop.f32.mrf.mxu0 }
 0x5c2   :  { %v10670_v48 = vpop.f32.mrf.mxu0 }
 0x5c4   :  { %v10672_v38 = vpop.f32.mrf.mxu0 }
 0x5c6   :  { %v10674_v19 = vpop.f32.mrf.mxu0 }
 0x5c8   :  { %v10676_v63 = vpop.f32.mrf.mxu0 }
 0x5ca   :  { %v10678_v15 = vpop.f32.mrf.mxu0 }
 0x5cc   :  { %v10682_v34 = vpop.f32.mrf.mxu0 }
 0x5ce   :  { %v10684_v24 = vpop.f32.mrf.mxu0 }
 0x5d0   :  { %v10686_v16 = vpop.f32.mrf.mxu0 }
 0x5d2   :  { %v10688_v25 = vpop.f32.mrf.mxu0 }
 0x5d4   :  { %v10692_v55 = vpop.f32.mrf.mxu0 }
 0x5e6   :  { %v8388_v56 = vpop.f32.mrf.mxu0 }
 0x5e7   :  { %v1153_v2 = vsel %vm574_vm2, %v8388_v56, -inf }
 0x5e8   :  { %v1116_v45 = vpop.f32.mrf.mxu0 }
 0x5e9   :  { %v1147_v39 = vsel %vm574_vm2, %v1116_v45, -inf }
 0x5ea   :  { %1148 = vmax.xlane.f32.xlu0 %v1147_v39  ;;  %v8389_v40 = vpop.f32.mrf.mxu0 }
 0x5eb   :  { %v1156_v12 = vsel %vm574_vm2, %v8389_v40, -inf }
 0x5ec   :  { %v1119_v32 = vpop.f32.mrf.mxu0 }
 0x5ed   :  { %v1150_v54 = vsel %vm574_vm2, %v1119_v32, -inf }
 0x5ee   :  { %1154 = vmax.xlane.f32.xlu0 %v1153_v2  ;;  %1151 = vmax.xlane.f32.xlu1 %v1150_v54  ;;  %v8392_v36 = vpop.f32.mrf.mxu0 }
 0x5ef   :  { %v1165_v5 = vsel %vm574_vm2, %v8392_v36, -inf }
 0x5f0   :  { %v1132_v13 = vpop.f32.mrf.mxu0 }
 0x5f1   :  { %v1159_v62 = vsel %vm574_vm2, %v1132_v13, -inf }
 0x5f2   :  { %1157 = vmax.xlane.f32.xlu0 %v1156_v12  ;;  %v8393_v51 = vpop.f32.mrf.mxu0 }
 0x5f3   :  { %v1168_v20 = vsel %vm574_vm2, %v8393_v51, -inf }
 0x5f4   :  { %1169 = vmax.xlane.f32.xlu1 %v1168_v20  ;;  %v1135_v57 = vpop.f32.mrf.mxu0 }
 0x5f5   :  { %v1162_v42 = vsel %vm574_vm2, %v1135_v57, -inf }
 0x5f6   :  { %1166 = vmax.xlane.f32.xlu0 %v1165_v5 }
 0x5f8   :  { %1163 = vmax.xlane.f32.xlu1 %v1162_v42 }
 0x5fa   :  { %1160 = vmax.xlane.f32.xlu0 %v1159_v62 }
 0x609   :  { %1243 = vrot.lane.b32.xlu1 %v10385_v29, %s10066_s18 }
 0x60d   :  { %1241 = vrot.lane.b32.xlu1 %v10389_v33, %s10066_s18 }
 0x610   :  { %1245 = vrot.lane.b32.xlu0 %v10381_v31, %s10066_s18 }
 0x611   :  { %1239 = vrot.lane.b32.xlu1 %v10373_v0, %s10066_s18 }
 0x673   :  { %v1149_v61 = vpop.xlane.xlu0 %1148 }
 0x674   :  { %v1171_v52 = vsub.f32 %v1116_v45, %v1149_v61 }
 0x676   :  { %v1179_v11 = vmul.f32 1.442695, %v1171_v52 }
 0x677   :  { %v1152_v17 = vpop.xlane.xlu1 %1151  ;;  %v1155_v1 = vpop.xlane.xlu0 %1154 }
 0x678   :  { %v1173_v30 = vsub.f32 %v8388_v56, %v1155_v1  ;;  %v1172_v41 = vsub.f32 %v1119_v32, %v1152_v17 }
 0x67a   :  { %v1183_v46 = vmul.f32 1.442695, %v1173_v30  ;;  %v1181_v8 = vmul.f32 1.442695, %v1172_v41 }
 0x67b   :  { %v1158_v6 = vpop.xlane.xlu0 %1157 }
 0x67c   :  { %v1174_v14 = vsub.f32 %v8389_v40, %v1158_v6  ;;  %9432 = vpow2.f32 %v1183_v46 }
 0x67d   :  { %v1170_v58 = vpop.xlane.xlu1 %1169  ;;  %9434 = vpow2.f32 %v1179_v11 }
 0x67e   :  { %v1185_v4 = vmul.f32 1.442695, %v1174_v14  ;;  %v1178_v60 = vsub.f32 %v8393_v51, %v1170_v58 }
 0x67f   :  { %v1167_v28 = vpop.xlane.xlu0 %1166 }
 0x680   :  { %9436 = vpow2.f32 %v1185_v4  ;;  %v1177_v39 = vsub.f32 %v8392_v36, %v1167_v28  ;;  %v1193_v54 = vmul.f32 1.442695, %v1178_v60 }
 0x681   :  { %v1164_v2 = vpop.xlane.xlu1 %1163  ;;  %9438 = vpow2.f32 %v1181_v8 }
 0x682   :  { %v1191_v45 = vmul.f32 1.442695, %v1177_v39  ;;  %v1176_v12 = vsub.f32 %v1135_v57, %v1164_v2 }
 0x683   :  { %v1161_v56 = vpop.xlane.xlu0 %1160 }
 0x684   :  { %9440 = vpow2.f32 %v1191_v45  ;;  %v1175_v32 = vsub.f32 %v1132_v13, %v1161_v56  ;;  %v1189_v40 = vmul.f32 1.442695, %v1176_v12 }
 0x685   :  { %v1244_v20 = vpop.permute.xlu1 %1243  ;;  %9442 = vpow2.f32 %v1193_v54 }
 0x686   :  { %v1187_v5 = vmul.f32 1.442695, %v1175_v32 }
 0x687   :  { %v1246_v42 = vpop.permute.xlu0 %1245 }
 0x688   :  { %9444 = vpow2.f32 %v1187_v5  ;;  %8394 = vmatprep.subr.bf16.mxu1 %v1246_v42 }
 0x689   :  { %8395 = vmatpush3.bf16.msra.mxu1 %v1246_v42  ;;  %v10710_v51 = vpop.eup %9432  ;;  %9446 = vpow2.f32 %v1189_v40  ;;  %v1242_v36 = vpop.permute.xlu1 %1241 }
 0x68a   :  { %8396 = vmatprep.subr.bf16.mxu1 %v1244_v20  ;;  %v1201_v62 = vsel %vm574_vm2, %v10710_v51, 0.0  ;;  %v9435_v57 = vpop.eup %9434 }
 0x68b   :  { %1202 = vadd.xlane.f32.xlu0 %v1201_v62  ;;  %v1195_v17 = vsel %vm574_vm2, %v9435_v57, 0.0 }
 0x68d   :  { %v9437_v61 = vpop.eup %9436  ;;  %8397 = vmatpush3.bf16.msra.mxu1 %v1244_v20  ;;  %v1240_v30 = vpop.permute.xlu1 %1239 }
 0x68e   :  { %8398 = vmatprep.subr.bf16.mxu1 %v1242_v36  ;;  %v1204_v13 = vsel %vm574_vm2, %v9437_v61, 0.0  ;;  %v9439_v52 = vpop.eup %9438 }
 0x68f   :  { %1205 = vadd.xlane.f32.xlu1 %v1204_v13  ;;  %1196 = vadd.xlane.f32.xlu0 %v1195_v17  ;;  %v1198_v41 = vsel %vm574_vm2, %v9439_v52, 0.0 }
 0x691   :  { %v10716_v1 = vpop.eup %9440  ;;  %8399 = vmatpush3.bf16.msra.mxu1 %v1242_v36 }
 0x692   :  { %8400 = vmatprep.subr.bf16.mxu1 %v1240_v30  ;;  %v1213_v46 = vsel %vm574_vm2, %v10716_v1, 0.0  ;;  %v9443_v11 = vpop.eup %9442 }
 0x693   :  { %1199 = vadd.xlane.f32.xlu1 %v1198_v41  ;;  %1214 = vadd.xlane.f32.xlu0 %v1213_v46  ;;  %v1216_v58 = vsel %vm574_vm2, %v9443_v11, 0.0 }
 0x695   :  { %v9445_v6 = vpop.eup %9444  ;;  %8401 = vmatpush3.bf16.msra.mxu1 %v1240_v30 }
 0x696   :  { %v1207_v14 = vsel %vm574_vm2, %v9445_v6, 0.0  ;;  %v9447_v8 = vpop.eup %9446 }
 0x697   :  { %1208 = vadd.xlane.f32.xlu1 %v1207_v14  ;;  %1217 = vadd.xlane.f32.xlu0 %v1216_v58  ;;  %v1210_v4 = vsel %vm574_vm2, %v9447_v8, 0.0 }
 0x69b   :  { %1211 = vadd.xlane.f32.xlu0 %v1210_v4 }
 0x6a8   :  { %1340 = vrot.lane.b32.xlu1 %v10385_v29, %s10067_s19 }
 0x6ac   :  { %1338 = vrot.lane.b32.xlu1 %v10389_v33, %s10067_s19 }
 0x6b0   :  { %1336 = vrot.lane.b32.xlu1 %v10373_v0, %s10067_s19 }
 0x6b1   :  { %1342 = vrot.lane.b32.xlu0 %v10381_v31, %s10067_s19 }
 0x6b4   :  { %1330 = vrot.lane.b32.xlu1 %v10389_v33, %s10068_s20 }
 0x6b5   :  { %1328 = vrot.lane.b32.xlu0 %v10373_v0, %s10068_s20 }
 0x6b8   :  { %1334 = vrot.lane.b32.xlu1 %v10381_v31, %s10068_s20 }
 0x6b9   :  { %1332 = vrot.lane.b32.xlu0 %v10385_v29, %s10068_s20 }
 0x714   :  { %v1203_v60 = vpop.xlane.xlu0 %1202 }
 0x718   :  { %v1206_v28 = vpop.xlane.xlu1 %1205  ;;  %v1197_v39 = vpop.xlane.xlu0 %1196 }
 0x719   :  { %9448 = vrcp.f32 %v1206_v28 }
 0x71a   :  { %9450 = vrcp.f32 %v1197_v39 }
 0x71b   :  { %9452 = vrcp.f32 %v1203_v60 }
 0x71c   :  { %v1200_v2 = vpop.xlane.xlu1 %1199  ;;  %v1215_v45 = vpop.xlane.xlu0 %1214 }
 0x71d   :  { %9454 = vrcp.f32 %v1200_v2 }
 0x720   :  { %v1209_v54 = vpop.xlane.xlu1 %1208  ;;  %v1218_v12 = vpop.xlane.xlu0 %1217 }
 0x721   :  { %9456 = vrcp.f32 %v1218_v12 }
 0x722   :  { %9458 = vrcp.f32 %v1209_v54 }
 0x723   :  { %9460 = vrcp.f32 %v1215_v45 }
 0x724   :  { %v1212_v56 = vpop.xlane.xlu0 %1211  ;;  %v1341_v4 = vpop.permute.xlu1 %1340 }
 0x725   :  { %9462 = vrcp.f32 %v1212_v56  ;;  %v1363_v54 = vsel %vm484_vm1, %v1341_v4, 0 }
 0x726   :  { %v9449_v32 = vpop.eup %9448 }
 0x727   :  { %v9451_v20 = vpop.eup %9450  ;;  %v1230_v36 = vmul.f32 %v9449_v32, %v9437_v61 }
 0x728   :  { %v9453_v5 = vpop.eup %9452  ;;  %v1343_v40 = vpop.permute.xlu0 %1342  ;;  %v1227_v62 = vmul.f32 %v9451_v20, %v9435_v57 }
 0x729   :  { %9002 = vmatprep.subr.msk.bf16.mxu1 %vm484_vm1, %v1343_v40  ;;  %v1229_v17 = vmul.f32 %v9453_v5, %v10710_v51  ;;  %v1366_v14 = vsel %vm484_vm1, %v1343_v40, 0  ;;  %v1339_v12 = vpop.permute.xlu1 %1338 }
 0x72a   :  { %v9455_v42 = vpop.eup %9454 }
 0x72b   :  { %v1228_v13 = vmul.f32 %v9455_v42, %v9439_v52  ;;  %v1236_v41 = vpack.c.bf16 %v1230_v36, %v1229_v17 }
 0x72c   :  { %v1329_v45 = vpop.permute.xlu0 %1328 }
 0x72d   :  { %v1235_v30 = vpack.c.bf16 %v1228_v13, %v1227_v62 }
 0x72e   :  { %v9457_v46 = vpop.eup %9456 }
 0x72f   :  { %8402 = vmatprep.mubr.msk.bf16.mxu1 %vm574_vm2, %v1235_v30  ;;  %v9459_v58 = vpop.eup %9458  ;;  %v1234_v57 = vmul.f32 %v9457_v46, %v9443_v11  ;;  %v1360_v11 = vsel %vm484_vm1, %v1339_v12, 0 }
 0x730   :  { %8403 = vmatmul.mubr.msk.bf16.vlgmr.msra.gmra.mxu1 %vm574_vm2, %v1236_v41  ;;  %v9461_v60 = vpop.eup %9460  ;;  %v1231_v52 = vmul.f32 %v9459_v58, %v9445_v6  ;;  %v1337_v6 = vpop.permute.xlu1 %1336 }
 0x731   :  { %8411 = vmatpush3.bf16.xpose.msra.mxu1 %v1366_v14  ;;  %v1233_v51 = vmul.f32 %v9461_v60, %v10716_v1  ;;  %v1357_v1 = vsel %vm484_vm1, %v1337_v6, 0  ;;  %v1333_v56 = vpop.permute.xlu0 %1332 }
 0x732   :  { %9003 = vmatprep.subr.msk.bf16.mxu1 %vm484_vm1, %v1341_v4  ;;  %v9463_v61 = vpop.eup %9462 }
 0x733   :  { %v1232_v28 = vmul.f32 %v9463_v61, %v9447_v8  ;;  %v1238_v2 = vpack.c.bf16 %v1234_v57, %v1233_v51 }
 0x734   :  { %v1331_v8 = vpop.permute.xlu1 %1330 }
 0x735   :  { %v1237_v39 = vpack.c.bf16 %v1232_v28, %v1231_v52 }
 0x737   :  { %8406 = vmatprep.mubr.msk.bf16.mxu1 %vm574_vm2, %v1237_v39 }
 0x738   :  { %8407 = vmatmul.mubr.msk.bf16.gmra.mxu1 %vm574_vm2, %v1238_v2  ;;  %v1335_v32 = vpop.permute.xlu1 %1334 }
 0x739   :  { %8413 = vmatpush3.bf16.xpose.msra.mxu1 %v1363_v54  ;;  %8418 = vmatprep.mubr.msk.bf16.mxu1 %vm484_vm1, %v1329_v45 }
 0x73a   :  { %9004 = vmatprep.subr.msk.bf16.mxu1 %vm484_vm1, %v1339_v12 }
 0x741   :  { %8415 = vmatpush3.bf16.xpose.msra.mxu1 %v1360_v11 }
 0x742   :  { %9005 = vmatprep.subr.msk.bf16.mxu1 %vm484_vm1, %v1337_v6 }
 0x749   :  { %8417 = vmatpush3.bf16.xpose.msra.mxu1 %v1357_v1 }
 0x750   :  { %8419 = vmatmul.mubr.msk.bf16.vlgmr.msra.gmra.mxu1 %vm484_vm1, %v1331_v8 }
 0x751   :  { %8422 = vmatprep.mubr.msk.bf16.mxu1 %vm484_vm1, %v1333_v56 }
 0x758   :  { %8423 = vmatmul.mubr.msk.bf16.gmra.mxu1 %vm484_vm1, %v1335_v32 }
 0x7f0   :  { %v10758_v20 = vpop.f32.mrf.mxu1 }
 0x7f2   :  { %v10760_v5 = vpop.f32.mrf.mxu1 }
 0x7f4   :  { %v10762_v40 = vpop.f32.mrf.mxu1 }
 0x7f6   :  { %v10766_v36 = vpop.f32.mrf.mxu1 }
 0x7f8   :  { %v10768_v62 = vpop.f32.mrf.mxu1 }
 0x7fa   :  { %v10770_v13 = vpop.f32.mrf.mxu1 }
 0x7fc   :  { %v10772_v17 = vpop.f32.mrf.mxu1 }
 0x7fe   :  { %v10776_v41 = vpop.f32.mrf.mxu1 }
 0x810   :  { %v8420_v46 = vpop.f32.mrf.mxu1 }
 0x811   :  { %v1439_v61 = vsel %vm574_vm2, %v8420_v46, -inf }
 0x812   :  { %v1402_v14 = vpop.f32.mrf.mxu1 }
 0x813   :  { %v1433_v58 = vsel %vm574_vm2, %v1402_v14, -inf }
 0x814   :  { %1434 = vmax.xlane.f32.xlu0 %v1433_v58  ;;  %v8421_v4 = vpop.f32.mrf.mxu1 }
 0x815   :  { %v1442_v51 = vsel %vm574_vm2, %v8421_v4, -inf }
 0x816   :  { %v1405_v60 = vpop.f32.mrf.mxu1 }
 0x817   :  { %v1436_v57 = vsel %vm574_vm2, %v1405_v60, -inf }
 0x818   :  { %1440 = vmax.xlane.f32.xlu0 %v1439_v61  ;;  %1437 = vmax.xlane.f32.xlu1 %v1436_v57  ;;  %v8424_v52 = vpop.f32.mrf.mxu1 }
 0x819   :  { %v1451_v54 = vsel %vm574_vm2, %v8424_v52, -inf }
 0x81a   :  { %v1418_v28 = vpop.f32.mrf.mxu1 }
 0x81b   :  { %v1445_v11 = vsel %vm574_vm2, %v1418_v28, -inf }
 0x81c   :  { %1443 = vmax.xlane.f32.xlu0 %v1442_v51  ;;  %v8425_v39 = vpop.f32.mrf.mxu1 }
 0x81d   :  { %v1454_v2 = vsel %vm574_vm2, %v8425_v39, -inf }
 0x81e   :  { %1455 = vmax.xlane.f32.xlu1 %v1454_v2  ;;  %v1421_v45 = vpop.f32.mrf.mxu1 }
 0x81f   :  { %v1448_v12 = vsel %vm574_vm2, %v1421_v45, -inf }
 0x820   :  { %1452 = vmax.xlane.f32.xlu0 %v1451_v54 }
 0x822   :  { %1449 = vmax.xlane.f32.xlu1 %v1448_v12 }
 0x824   :  { %1446 = vmax.xlane.f32.xlu0 %v1445_v11 }
 0x833   :  { %1529 = vrot.lane.b32.xlu1 %v10385_v29, %s10069_s21 }
 0x837   :  { %1527 = vrot.lane.b32.xlu1 %v10389_v33, %s10069_s21 }
 0x83a   :  { %1531 = vrot.lane.b32.xlu0 %v10381_v31, %s10069_s21 }
 0x83b   :  { %1525 = vrot.lane.b32.xlu1 %v10373_v0, %s10069_s21 }
 0x89d   :  { %v1435_v6 = vpop.xlane.xlu0 %1434 }
 0x89e   :  { %v1457_v1 = vsub.f32 %v1402_v14, %v1435_v6 }
 0x8a0   :  { %v1465_v57 = vmul.f32 1.442695, %v1457_v1 }
 0x8a1   :  { %v1438_v8 = vpop.xlane.xlu1 %1437  ;;  %v1441_v56 = vpop.xlane.xlu0 %1440 }
 0x8a2   :  { %v1459_v32 = vsub.f32 %v8420_v46, %v1441_v56  ;;  %v1458_v58 = vsub.f32 %v1405_v60, %v1438_v8 }
 0x8a4   :  { %v1469_v61 = vmul.f32 1.442695, %v1459_v32  ;;  %v1467_v54 = vmul.f32 1.442695, %v1458_v58 }
 0x8a5   :  { %v1444_v51 = vpop.xlane.xlu0 %1443 }
 0x8a6   :  { %v1460_v2 = vsub.f32 %v8421_v4, %v1444_v51  ;;  %9464 = vpow2.f32 %v1469_v61 }
 0x8a7   :  { %v1456_v29 = vpop.xlane.xlu1 %1455  ;;  %9466 = vpow2.f32 %v1465_v57 }
 0x8a8   :  { %v1471_v33 = vmul.f32 1.442695, %v1460_v2  ;;  %v1464_v12 = vsub.f32 %v8425_v39, %v1456_v29 }
 0x8a9   :  { %v1453_v31 = vpop.xlane.xlu0 %1452 }
 0x8aa   :  { %9468 = vpow2.f32 %v1471_v33  ;;  %v1463_v11 = vsub.f32 %v8424_v52, %v1453_v31  ;;  %v1479_v6 = vmul.f32 1.442695, %v1464_v12 }
 0x8ab   :  { %v1450_v0 = vpop.xlane.xlu1 %1449  ;;  %9470 = vpow2.f32 %v1467_v54 }
 0x8ac   :  { %v1477_v14 = vmul.f32 1.442695, %v1463_v11  ;;  %v1462_v50 = vsub.f32 %v1421_v45, %v1450_v0 }
 0x8ad   :  { %v1447_v46 = vpop.xlane.xlu0 %1446 }
 0x8ae   :  { %9472 = vpow2.f32 %v1477_v14  ;;  %v1461_v60 = vsub.f32 %v1418_v28, %v1447_v46  ;;  %v1475_v4 = vmul.f32 1.442695, %v1462_v50  ;;  %v450_v14 = vadd.f32 %v10454_v23, %v10369_v21 }
 0x8af   :  { %v1530_v1 = vpop.permute.xlu1 %1529  ;;  %9474 = vpow2.f32 %v1479_v6  ;;  %v453_v6 = vadd.f32 %v10462_v59, %v10369_v21 }
 0x8b0   :  { %v1473_v8 = vmul.f32 1.442695, %v1461_v60  ;;  %v434_v60 = vadd.f32 %v10437_v3, %v10369_v21 }
 0x8b1   :  { %v1532_v56 = vpop.permute.xlu0 %1531  ;;  %v10812_v46 = vpack.c.bf16 %v453_v6, %v450_v14 }
 0x8b2   :  { %9476 = vpow2.f32 %v1473_v8  ;;  %8426 = vmatprep.subr.bf16.mxu0 %v1532_v56 }
 0x8b3   :  { %8427 = vmatpush3.bf16.msra.mxu0 %v1532_v56  ;;  %v10794_v39 = vpop.eup %9464  ;;  %9478 = vpow2.f32 %v1475_v4  ;;  %v1528_v52 = vpop.permute.xlu1 %1527 }
 0x8b4   :  { %8428 = vmatprep.subr.bf16.mxu0 %v1530_v1  ;;  %v1487_v32 = vsel %vm574_vm2, %v10794_v39, 0.0  ;;  %v9467_v45 = vpop.eup %9466 }
 0x8b5   :  { %1488 = vadd.xlane.f32.xlu0 %v1487_v32  ;;  %v1481_v61 = vsel %vm574_vm2, %v9467_v45, 0.0 }
 0x8b7   :  { %v9469_v58 = vpop.eup %9468  ;;  %8429 = vmatpush3.bf16.msra.mxu0 %v1530_v1  ;;  %v1526_v51 = vpop.permute.xlu1 %1525  ;;  %v437_v1 = vadd.f32 %v10452_v10, %v10369_v21 }
 0x8b8   :  { %8430 = vmatprep.subr.bf16.mxu0 %v1528_v52  ;;  %v1490_v28 = vsel %vm574_vm2, %v9469_v58, 0.0  ;;  %v9471_v50 = vpop.eup %9470 }
 0x8b9   :  { %1491 = vadd.xlane.f32.xlu1 %v1490_v28  ;;  %1482 = vadd.xlane.f32.xlu0 %v1481_v61  ;;  %v1484_v2 = vsel %vm574_vm2, %v9471_v50, 0.0  ;;  %v10822_v8 = vpack.c.bf16 %v437_v1, %v434_v60 }
 0x8bb   :  { %v10800_v57 = vpop.eup %9472  ;;  %8431 = vmatpush3.bf16.msra.mxu0 %v1528_v52 }
 0x8bc   :  { %8432 = vmatprep.subr.bf16.mxu0 %v1526_v51  ;;  %v1499_v29 = vsel %vm574_vm2, %v10800_v57, 0.0  ;;  %v9475_v54 = vpop.eup %9474 }
 0x8bd   :  { %1485 = vadd.xlane.f32.xlu1 %v1484_v2  ;;  %1500 = vadd.xlane.f32.xlu0 %v1499_v29  ;;  %v1502_v31 = vsel %vm574_vm2, %v9475_v54, 0.0 }
 0x8bf   :  { %v9477_v33 = vpop.eup %9476  ;;  %8433 = vmatpush3.bf16.msra.mxu0 %v1526_v51 }
 0x8c0   :  { %v1493_v12 = vsel %vm574_vm2, %v9477_v33, 0.0  ;;  %v9479_v11 = vpop.eup %9478 }
 0x8c1   :  { %1494 = vadd.xlane.f32.xlu1 %v1493_v12  ;;  %1503 = vadd.xlane.f32.xlu0 %v1502_v31  ;;  %v1496_v0 = vsel %vm574_vm2, %v9479_v11, 0.0 }
 0x8c5   :  { %1497 = vadd.xlane.f32.xlu0 %v1496_v0 }
 0x8d2   :  { %1744 = vrot.lane.b32.xlu1 %v10812_v46, %s10059_s11 }
 0x8d6   :  { %1742 = vrot.lane.b32.xlu1 %v10446_v49, %s10059_s11 }
 0x8da   :  { %1740 = vrot.lane.b32.xlu1 %v10822_v8, %s10059_s11 }
 0x8db   :  { %1746 = vrot.lane.b32.xlu0 %v10459_v43, %s10059_s11 }
 0x93e   :  { %v1489_v23 = vpop.xlane.xlu0 %1488 }
 0x942   :  { %v1492_v59 = vpop.xlane.xlu1 %1491  ;;  %v1483_v4 = vpop.xlane.xlu0 %1482 }
 0x943   :  { %9480 = vrcp.f32 %v1492_v59 }
 0x944   :  { %9482 = vrcp.f32 %v1483_v4 }
 0x945   :  { %9484 = vrcp.f32 %v1489_v23 }
 0x946   :  { %v1486_v3 = vpop.xlane.xlu1 %1485  ;;  %v1501_v21 = vpop.xlane.xlu0 %1500 }
 0x947   :  { %9486 = vrcp.f32 %v1486_v3 }
 0x94a   :  { %v1495_v10 = vpop.xlane.xlu1 %1494  ;;  %v1504_v56 = vpop.xlane.xlu0 %1503 }
 0x94b   :  { %9488 = vrcp.f32 %v1504_v56 }
 0x94c   :  { %9490 = vrcp.f32 %v1495_v10 }
 0x94d   :  { %9492 = vrcp.f32 %v1501_v21 }
 0x94e   :  { %v1498_v52 = vpop.xlane.xlu0 %1497  ;;  %v1745_v59 = vpop.permute.xlu1 %1744 }
 0x94f   :  { %9494 = vrcp.f32 %v1498_v52  ;;  %v1767_v56 = vsel %vm484_vm1, %v1745_v59, 0 }
 0x950   :  { %v9481_v32 = vpop.eup %9480 }
 0x951   :  { %v9483_v28 = vpop.eup %9482  ;;  %v1516_v29 = vmul.f32 %v9481_v32, %v9469_v58 }
 0x952   :  { %v9485_v61 = vpop.eup %9484  ;;  %v1747_v51 = vpop.permute.xlu0 %1746  ;;  %v1513_v12 = vmul.f32 %v9483_v28, %v9467_v45 }
 0x953   :  { %9006 = vmatprep.subr.msk.bf16.mxu0 %vm484_vm1, %v1747_v51  ;;  %v1515_v0 = vmul.f32 %v9485_v61, %v10794_v39  ;;  %v1770_v1 = vsel %vm484_vm1, %v1747_v51, 0  ;;  %v1743_v52 = vpop.permute.xlu1 %1742 }
 0x954   :  { %v9487_v2 = vpop.eup %9486 }
 0x955   :  { %v1514_v31 = vmul.f32 %v9487_v2, %v9471_v50  ;;  %v1522_v6 = vpack.c.bf16 %v1516_v29, %v1515_v0 }
 0x957   :  { %v1521_v14 = vpack.c.bf16 %v1514_v31, %v1513_v12 }
 0x958   :  { %v9489_v60 = vpop.eup %9488 }
 0x959   :  { %8434 = vmatprep.mubr.msk.bf16.mxu0 %vm574_vm2, %v1521_v14  ;;  %v9491_v23 = vpop.eup %9490  ;;  %v1520_v45 = vmul.f32 %v9489_v60, %v9475_v54  ;;  %v1764_v54 = vsel %vm484_vm1, %v1743_v52, 0 }
 0x95a   :  { %8435 = vmatmul.mubr.msk.bf16.vlgmr.msra.gmra.mxu0 %vm574_vm2, %v1522_v6  ;;  %v9493_v4 = vpop.eup %9492  ;;  %v1517_v50 = vmul.f32 %v9491_v23, %v9477_v33  ;;  %v1741_v33 = vpop.permute.xlu1 %1740 }
 0x95b   :  { %8443 = vmatpush3.bf16.xpose.msra.mxu0 %v1770_v1  ;;  %v1519_v39 = vmul.f32 %v9493_v4, %v10800_v57  ;;  %v1761_v57 = vsel %vm484_vm1, %v1741_v33, 0 }
 0x95c   :  { %9007 = vmatprep.subr.msk.bf16.mxu0 %vm484_vm1, %v1745_v59  ;;  %v9495_v58 = vpop.eup %9494 }
 0x95d   :  { %v1518_v3 = vmul.f32 %v9495_v58, %v9479_v11  ;;  %v1524_v10 = vpack.c.bf16 %v1520_v45, %v1519_v39 }
 0x95f   :  { %v1523_v21 = vpack.c.bf16 %v1518_v3, %v1517_v50 }
 0x961   :  { %8438 = vmatprep.mubr.msk.bf16.mxu0 %vm574_vm2, %v1523_v21 }
 0x962   :  { %8439 = vmatmul.mubr.msk.bf16.gmra.mxu0 %vm574_vm2, %v1524_v10 }
 0x963   :  { %8445 = vmatpush3.bf16.xpose.msra.mxu0 %v1767_v56  ;;  %8450 = vmatprep.mubr.msk.bf16.mxu0 %vm484_vm1, %v10822_v8 }
 0x964   :  { %9008 = vmatprep.subr.msk.bf16.mxu0 %vm484_vm1, %v1743_v52 }
 0x96b   :  { %8447 = vmatpush3.bf16.xpose.msra.mxu0 %v1764_v54 }
 0x96c   :  { %9009 = vmatprep.subr.msk.bf16.mxu0 %vm484_vm1, %v1741_v33 }
 0x973   :  { %8449 = vmatpush3.bf16.xpose.msra.mxu0 %v1761_v57 }
 0x97a   :  { %8451 = vmatmul.mubr.msk.bf16.vlgmr.msra.gmra.mxu0 %vm484_vm1, %v10446_v49 }
 0x97b   :  { %8454 = vmatprep.mubr.msk.bf16.mxu0 %vm484_vm1, %v10812_v46 }
 0x982   :  { %8455 = vmatmul.mubr.msk.bf16.gmra.mxu0 %vm484_vm1, %v10459_v43 }
 0xa1a   :  { %v10850_v11 = vpop.f32.mrf.mxu0 }
 0xa1c   :  { %v10852_v32 = vpop.f32.mrf.mxu0 }
 0xa1e   :  { %v10854_v28 = vpop.f32.mrf.mxu0 }
 0xa20   :  { %v10858_v51 = vpop.f32.mrf.mxu0 }
 0xa22   :  { %v10860_v2 = vpop.f32.mrf.mxu0 }
 0xa24   :  { %v10862_v29 = vpop.f32.mrf.mxu0 }
 0xa26   :  { %v10864_v12 = vpop.f32.mrf.mxu0 }
 0xa28   :  { %v10868_v0 = vpop.f32.mrf.mxu0 }
 0xa3a   :  { %v8452_v14 = vpop.f32.mrf.mxu0 }
 0xa3b   :  { %v1843_v59 = vsel %vm574_vm2, %v8452_v14, -inf }
 0xa3c   :  { %v1806_v6 = vpop.f32.mrf.mxu0 }
 0xa3d   :  { %v1837_v60 = vsel %vm574_vm2, %v1806_v6, -inf }
 0xa3e   :  { %1838 = vmax.xlane.f32.xlu0 %v1837_v60  ;;  %v8453_v1 = vpop.f32.mrf.mxu0 }
 0xa3f   :  { %v1846_v50 = vsel %vm574_vm2, %v8453_v1, -inf }
 0xa40   :  { %v1809_v23 = vpop.f32.mrf.mxu0 }
 0xa41   :  { %v1840_v4 = vsel %vm574_vm2, %v1809_v23, -inf }
 0xa42   :  { %1844 = vmax.xlane.f32.xlu0 %v1843_v59  ;;  %1841 = vmax.xlane.f32.xlu1 %v1840_v4  ;;  %v8456_v58 = vpop.f32.mrf.mxu0 }
 0xa43   :  { %v1855_v10 = vsel %vm574_vm2, %v8456_v58, -inf }
 0xa44   :  { %v1822_v45 = vpop.f32.mrf.mxu0 }
 0xa45   :  { %v1849_v52 = vsel %vm574_vm2, %v1822_v45, -inf }
 0xa46   :  { %1847 = vmax.xlane.f32.xlu0 %v1846_v50  ;;  %v8457_v3 = vpop.f32.mrf.mxu0 }
 0xa47   :  { %v1858_v39 = vsel %vm574_vm2, %v8457_v3, -inf }
 0xa48   :  { %1859 = vmax.xlane.f32.xlu1 %v1858_v39  ;;  %v1825_v21 = vpop.f32.mrf.mxu0 }
 0xa49   :  { %v1852_v56 = vsel %vm574_vm2, %v1825_v21, -inf }
 0xa4a   :  { %1856 = vmax.xlane.f32.xlu0 %v1855_v10 }
 0xa4c   :  { %1853 = vmax.xlane.f32.xlu1 %v1852_v56 }
 0xa4e   :  { %1850 = vmax.xlane.f32.xlu0 %v1849_v52 }
 0xa5d   :  { %1933 = vrot.lane.b32.xlu1 %v10812_v46, %s10062_s14 }
 0xa61   :  { %1931 = vrot.lane.b32.xlu1 %v10446_v49, %s10062_s14 }
 0xa64   :  { %1935 = vrot.lane.b32.xlu0 %v10459_v43, %s10062_s14 }
 0xa65   :  { %1929 = vrot.lane.b32.xlu1 %v10822_v8, %s10062_s14 }
 0xac7   :  { %v1839_v54 = vpop.xlane.xlu0 %1838 }
 0xac8   :  { %v1861_v33 = vsub.f32 %v1806_v6, %v1839_v54 }
 0xaca   :  { %v1869_v4 = vmul.f32 1.442695, %v1861_v33 }
 0xacb   :  { %v1845_v57 = vpop.xlane.xlu0 %1844  ;;  %v1842_v60 = vpop.xlane.xlu1 %1841 }
 0xacc   :  { %v1863_v59 = vsub.f32 %v8452_v14, %v1845_v57  ;;  %v1862_v39 = vsub.f32 %v1809_v23, %v1842_v60 }
 0xace   :  { %v1873_v50 = vmul.f32 1.442695, %v1863_v59  ;;  %v1871_v47 = vmul.f32 1.442695, %v1862_v39 }
 0xacf   :  { %v1848_v10 = vpop.xlane.xlu0 %1847 }
 0xad0   :  { %9496 = vpow2.f32 %v1873_v50  ;;  %v1864_v56 = vsub.f32 %v8453_v1, %v1848_v10 }
 0xad1   :  { %v1860_v52 = vpop.xlane.xlu1 %1859  ;;  %9498 = vpow2.f32 %v1869_v4 }
 0xad2   :  { %v1875_v35 = vmul.f32 1.442695, %v1864_v56  ;;  %v1868_v31 = vsub.f32 %v8457_v3, %v1860_v52 }
 0xad3   :  { %v1857_v30 = vpop.xlane.xlu0 %1856 }
 0xad4   :  { %9500 = vpow2.f32 %v1875_v35  ;;  %v1867_v53 = vsub.f32 %v8456_v58, %v1857_v30  ;;  %v1883_v6 = vmul.f32 1.442695, %v1868_v31 }
 0xad5   :  { %v1854_v61 = vpop.xlane.xlu1 %1853  ;;  %9502 = vpow2.f32 %v1871_v47 }
 0xad6   :  { %v1881_v54 = vmul.f32 1.442695, %v1867_v53  ;;  %v1866_v42 = vsub.f32 %v1825_v21, %v1854_v61 }
 0xad7   :  { %v1851_v14 = vpop.xlane.xlu0 %1850 }
 0xad8   :  { %9504 = vpow2.f32 %v1881_v54  ;;  %v1865_v33 = vsub.f32 %v1822_v45, %v1851_v14  ;;  %v1879_v57 = vmul.f32 1.442695, %v1866_v42 }
 0xad9   :  { %v1934_v23 = vpop.permute.xlu1 %1933  ;;  %9506 = vpow2.f32 %v1883_v6 }
 0xada   :  { %v1877_v1 = vmul.f32 1.442695, %v1865_v33 }
 0xadb   :  { %v1936_v60 = vpop.permute.xlu0 %1935 }
 0xadc   :  { %9508 = vpow2.f32 %v1877_v1  ;;  %8458 = vmatprep.subr.bf16.mxu1 %v1936_v60 }
 0xadd   :  { %v10886_v59 = vpop.eup %9496  ;;  %8459 = vmatpush3.bf16.msra.mxu1 %v1936_v60  ;;  %9510 = vpow2.f32 %v1879_v57  ;;  %v1932_v53 = vpop.permute.xlu1 %1931 }
 0xade   :  { %8460 = vmatprep.subr.bf16.mxu1 %v1934_v23  ;;  %v1891_v35 = vsel %vm574_vm2, %v10886_v59, 0.0  ;;  %v9499_v47 = vpop.eup %9498 }
 0xadf   :  { %1892 = vadd.xlane.f32.xlu0 %v1891_v35  ;;  %v1885_v42 = vsel %vm574_vm2, %v9499_v47, 0.0 }
 0xae1   :  { %v9501_v30 = vpop.eup %9500  ;;  %8461 = vmatpush3.bf16.msra.mxu1 %v1934_v23  ;;  %v1930_v45 = vpop.permute.xlu1 %1929 }
 0xae2   :  { %8462 = vmatprep.subr.bf16.mxu1 %v1932_v53  ;;  %v1894_v61 = vsel %vm574_vm2, %v9501_v30, 0.0  ;;  %v9503_v31 = vpop.eup %9502 }
 0xae3   :  { %1886 = vadd.xlane.f32.xlu0 %v1885_v42  ;;  %1895 = vadd.xlane.f32.xlu1 %v1894_v61  ;;  %v1888_v21 = vsel %vm574_vm2, %v9503_v31, 0.0 }
 0xae5   :  { %v10892_v58 = vpop.eup %9504  ;;  %8463 = vmatpush3.bf16.msra.mxu1 %v1932_v53 }
 0xae6   :  { %8464 = vmatprep.subr.bf16.mxu1 %v1930_v45  ;;  %v1903_v3 = vsel %vm574_vm2, %v10892_v58, 0.0  ;;  %v9507_v4 = vpop.eup %9506 }
 0xae7   :  { %1904 = vadd.xlane.f32.xlu0 %v1903_v3  ;;  %1889 = vadd.xlane.f32.xlu1 %v1888_v21  ;;  %v1906_v39 = vsel %vm574_vm2, %v9507_v4, 0.0 }
 0xae9   :  { %v9509_v50 = vpop.eup %9508  ;;  %8465 = vmatpush3.bf16.msra.mxu1 %v1930_v45 }
 0xaea   :  { %v1897_v10 = vsel %vm574_vm2, %v9509_v50, 0.0  ;;  %v9511_v56 = vpop.eup %9510 }
 0xaeb   :  { %1907 = vadd.xlane.f32.xlu0 %v1906_v39  ;;  %1898 = vadd.xlane.f32.xlu1 %v1897_v10  ;;  %v1900_v52 = vsel %vm574_vm2, %v9511_v56, 0.0 }
 0xaef   :  { %1901 = vadd.xlane.f32.xlu0 %v1900_v52 }
 0xafc   :  { %2030 = vrot.lane.b32.xlu1 %v10812_v46, %s10060_s12 }
 0xb00   :  { %2028 = vrot.lane.b32.xlu1 %v10446_v49, %s10060_s12 }
 0xb04   :  { %2026 = vrot.lane.b32.xlu1 %v10822_v8, %s10060_s12 }
 0xb05   :  { %2032 = vrot.lane.b32.xlu0 %v10459_v43, %s10060_s12 }
 0xb08   :  { %2020 = vrot.lane.b32.xlu1 %v10446_v49, %s10061_s13 }
 0xb09   :  { %2018 = vrot.lane.b32.xlu0 %v10822_v8, %s10061_s13 }
 0xb0c   :  { %2024 = vrot.lane.b32.xlu1 %v10459_v43, %s10061_s13 }
 0xb0d   :  { %2022 = vrot.lane.b32.xlu0 %v10812_v46, %s10061_s13 }
 0xb68   :  { %v1893_v6 = vpop.xlane.xlu0 %1892 }
 0xb6c   :  { %v1887_v54 = vpop.xlane.xlu0 %1886  ;;  %v1896_v14 = vpop.xlane.xlu1 %1895 }
 0xb6d   :  { %9512 = vrcp.f32 %v1896_v14 }
 0xb6e   :  { %9514 = vrcp.f32 %v1887_v54 }
 0xb6f   :  { %9516 = vrcp.f32 %v1893_v6 }
 0xb70   :  { %v1905_v33 = vpop.xlane.xlu0 %1904  ;;  %v1890_v23 = vpop.xlane.xlu1 %1889 }
 0xb71   :  { %9518 = vrcp.f32 %v1890_v23 }
 0xb74   :  { %v1908_v57 = vpop.xlane.xlu0 %1907  ;;  %v1899_v1 = vpop.xlane.xlu1 %1898 }
 0xb75   :  { %9520 = vrcp.f32 %v1908_v57 }
 0xb76   :  { %9522 = vrcp.f32 %v1899_v1 }
 0xb77   :  { %9524 = vrcp.f32 %v1905_v33 }
 0xb78   :  { %v1902_v60 = vpop.xlane.xlu0 %1901  ;;  %v2031_v1 = vpop.permute.xlu1 %2030 }
 0xb79   :  { %9526 = vrcp.f32 %v1902_v60 }
 0xb7a   :  { %v9513_v35 = vpop.eup %9512 }
 0xb7b   :  { %v9515_v42 = vpop.eup %9514  ;;  %v1920_v3 = vmul.f32 %v9513_v35, %v9501_v30 }
 0xb7c   :  { %v2033_v53 = vpop.permute.xlu0 %2032  ;;  %v9517_v61 = vpop.eup %9516  ;;  %v1917_v21 = vmul.f32 %v9515_v42, %v9499_v47 }
 0xb7d   :  { %9010 = vmatprep.subr.msk.bf16.mxu1 %vm484_vm1, %v2033_v53  ;;  %v1919_v10 = vmul.f32 %v9517_v61, %v10886_v59  ;;  %v2056_v23 = vsel %vm484_vm1, %v2033_v53, 0  ;;  %v2053_v61 = vsel %vm484_vm1, %v2031_v1, 0  ;;  %v2029_v53 = vpop.permute.xlu1 %2028 }
 0xb7e   :  { %v9519_v45 = vpop.eup %9518 }
 0xb7f   :  { %v1918_v39 = vmul.f32 %v9519_v45, %v9503_v31  ;;  %v1926_v54 = vpack.c.bf16 %v1920_v3, %v1919_v10 }
 0xb80   :  { %v2019_v42 = vpop.permute.xlu0 %2018 }
 0xb81   :  { %v1925_v52 = vpack.c.bf16 %v1918_v39, %v1917_v21 }
 0xb82   :  { %v9521_v6 = vpop.eup %9520 }
 0xb83   :  { %v9523_v14 = vpop.eup %9522  ;;  %8466 = vmatprep.mubr.msk.bf16.mxu1 %vm574_vm2, %v1925_v52  ;;  %v1924_v31 = vmul.f32 %v9521_v6, %v9507_v4  ;;  %v2027_v4 = vpop.permute.xlu1 %2026 }
 0xb84   :  { %v9525_v33 = vpop.eup %9524  ;;  %8467 = vmatmul.mubr.msk.bf16.vlgmr.msra.gmra.mxu1 %vm574_vm2, %v1926_v54  ;;  %v1921_v47 = vmul.f32 %v9523_v14, %v9509_v50  ;;  %v2050_v50 = vsel %vm484_vm1, %v2029_v53, 0  ;;  %v2023_v45 = vpop.permute.xlu0 %2022 }
 0xb85   :  { %8475 = vmatpush3.bf16.xpose.msra.mxu1 %v2056_v23  ;;  %v1923_v60 = vmul.f32 %v9525_v33, %v10892_v58  ;;  %v2047_v58 = vsel %vm484_vm1, %v2027_v4, 0 }
 0xb86   :  { %v9527_v57 = vpop.eup %9526  ;;  %9011 = vmatprep.subr.msk.bf16.mxu1 %vm484_vm1, %v2031_v1 }
 0xb87   :  { %v1922_v30 = vmul.f32 %v9527_v57, %v9511_v56  ;;  %v1928_v35 = vpack.c.bf16 %v1924_v31, %v1923_v60  ;;  %v2021_v56 = vpop.permute.xlu1 %2020 }
 0xb89   :  { %v1927_v59 = vpack.c.bf16 %v1922_v30, %v1921_v47 }
 0xb8b   :  { %8470 = vmatprep.mubr.msk.bf16.mxu1 %vm574_vm2, %v1927_v59  ;;  %v2025_v3 = vpop.permute.xlu1 %2024 }
 0xb8c   :  { %8471 = vmatmul.mubr.msk.bf16.gmra.mxu1 %vm574_vm2, %v1928_v35 }
 0xb8d   :  { %8477 = vmatpush3.bf16.xpose.msra.mxu1 %v2053_v61  ;;  %8482 = vmatprep.mubr.msk.bf16.mxu1 %vm484_vm1, %v2019_v42 }
 0xb8e   :  { %9012 = vmatprep.subr.msk.bf16.mxu1 %vm484_vm1, %v2029_v53 }
 0xb95   :  { %8479 = vmatpush3.bf16.xpose.msra.mxu1 %v2050_v50 }
 0xb96   :  { %9013 = vmatprep.subr.msk.bf16.mxu1 %vm484_vm1, %v2027_v4 }
 0xb9d   :  { %8481 = vmatpush3.bf16.xpose.msra.mxu1 %v2047_v58 }
 0xba4   :  { %8483 = vmatmul.mubr.msk.bf16.vlgmr.msra.gmra.mxu1 %vm484_vm1, %v2021_v56 }
 0xba5   :  { %8486 = vmatprep.mubr.msk.bf16.mxu1 %vm484_vm1, %v2023_v45 }
 0xbac   :  { %8487 = vmatmul.mubr.msk.bf16.gmra.mxu1 %vm484_vm1, %v2025_v3 }
 0xc44   :  { %v10934_v21 = vpop.f32.mrf.mxu1 }
 0xc45   :  { %13590 = vst [vmem:[#allocation3_spill] sm:$0xff] %v10934_v21 }
 0xc46   :  { %v10936_v39 = vpop.f32.mrf.mxu1 }
 0xc47   :  { %13591 = vst [vmem:[#allocation4_spill] sm:$0xff] %v10936_v39 }
 0xc48   :  { %v10938_v10 = vpop.f32.mrf.mxu1 }
 0xc49   :  { %13592 = vst [vmem:[#allocation5_spill] sm:$0xff] %v10938_v10 }
 0xc4a   :  { %v10940_v52 = vpop.f32.mrf.mxu1 }
 0xc4b   :  { %13593 = vst [vmem:[#allocation6_spill] sm:$0xff] %v10940_v52 }
 0xc4c   :  { %v10942_v6 = vpop.f32.mrf.mxu1 }
 0xc4d   :  { %13594 = vst [vmem:[#allocation7_spill] sm:$0xff] %v10942_v6 }
 0xc4e   :  { %v10944_v54 = vpop.f32.mrf.mxu1 }
 0xc4f   :  { %13595 = vst [vmem:[#allocation8_spill] sm:$0xff] %v10944_v54 }
 0xc50   :  { %v10946_v14 = vpop.f32.mrf.mxu1 }
 0xc51   :  { %13596 = vst [vmem:[#allocation9_spill] sm:$0xff] %v10946_v14 }
 0xc52   :  { %v10948_v33 = vpop.f32.mrf.mxu1 }
 0xc53   :  { %13597 = vst [vmem:[#allocation10_spill] sm:$0xff] %v10948_v33 }
 0xc64   :  { %v8484_v23 = vpop.f32.mrf.mxu1 }
 0xc65   :  { %v2129_v31 = vsel %vm574_vm2, %v8484_v23, -inf }
 0xc66   :  { %v2092_v57 = vpop.f32.mrf.mxu1 }
 0xc67   :  { %v2123_v1 = vsel %vm574_vm2, %v2092_v57, -inf }
 0xc68   :  { %2124 = vmax.xlane.f32.xlu0 %v2123_v1  ;;  %v8485_v47 = vpop.f32.mrf.mxu1 }
 0xc69   :  { %v2132_v42 = vsel %vm574_vm2, %v8485_v47, -inf }
 0xc6a   :  { %v2095_v30 = vpop.f32.mrf.mxu1 }
 0xc6b   :  { %v2126_v59 = vsel %vm574_vm2, %v2095_v30, -inf }
 0xc6c   :  { %2130 = vmax.xlane.f32.xlu0 %v2129_v31  ;;  %2127 = vmax.xlane.f32.xlu1 %v2126_v59  ;;  %v8488_v60 = vpop.f32.mrf.mxu1 }
 0xc6d   :  { %v2141_v4 = vsel %vm574_vm2, %v8488_v60, -inf }
 0xc6e   :  { %v2108_v35 = vpop.f32.mrf.mxu1 }
 0xc6f   :  { %v2135_v56 = vsel %vm574_vm2, %v2108_v35, -inf }
 0xc70   :  { %2133 = vmax.xlane.f32.xlu0 %v2132_v42  ;;  %v8489_v61 = vpop.f32.mrf.mxu1 }
 0xc71   :  { %v2144_v53 = vsel %vm574_vm2, %v8489_v61, -inf }
 0xc72   :  { %2145 = vmax.xlane.f32.xlu1 %v2144_v53  ;;  %v2111_v50 = vpop.f32.mrf.mxu1 }
 0xc73   :  { %v2138_v58 = vsel %vm574_vm2, %v2111_v50, -inf }
 0xc74   :  { %2142 = vmax.xlane.f32.xlu0 %v2141_v4 }
 0xc76   :  { %2139 = vmax.xlane.f32.xlu1 %v2138_v58 }
 0xc78   :  { %2136 = vmax.xlane.f32.xlu0 %v2135_v56 }
 0xc87   :  { %2219 = vrot.lane.b32.xlu1 %v10812_v46, %s10063_s15 }
 0xc8b   :  { %2217 = vrot.lane.b32.xlu1 %v10446_v49, %s10063_s15 }
 0xc8e   :  { %2221 = vrot.lane.b32.xlu0 %v10459_v43, %s10063_s15 }
 0xc8f   :  { %2215 = vrot.lane.b32.xlu1 %v10822_v8, %s10063_s15 }
 0xcf1   :  { %v2125_v45 = vpop.xlane.xlu0 %2124 }
 0xcf2   :  { %v2147_v3 = vsub.f32 %v2092_v57, %v2125_v45 }
 0xcf4   :  { %v2155_v42 = vmul.f32 1.442695, %v2147_v3 }
 0xcf5   :  { %v2131_v1 = vpop.xlane.xlu0 %2130  ;;  %v2128_v31 = vpop.xlane.xlu1 %2127 }
 0xcf6   :  { %v2149_v59 = vsub.f32 %v8484_v23, %v2131_v1  ;;  %v2148_v4 = vsub.f32 %v2095_v30, %v2128_v31 }
 0xcf8   :  { %v2159_v53 = vmul.f32 1.442695, %v2149_v59  ;;  %v2157_v6 = vmul.f32 1.442695, %v2148_v4 }
 0xcf9   :  { %v2134_v58 = vpop.xlane.xlu0 %2133 }
 0xcfa   :  { %9528 = vpow2.f32 %v2159_v53  ;;  %v2150_v56 = vsub.f32 %v8485_v47, %v2134_v58 }
 0xcfb   :  { %v2146_v37 = vpop.xlane.xlu1 %2145  ;;  %9530 = vpow2.f32 %v2155_v42 }
 0xcfc   :  { %v2161_v14 = vmul.f32 1.442695, %v2150_v56  ;;  %v2154_v33 = vsub.f32 %v8489_v61, %v2146_v37 }
 0xcfd   :  { %v2143_v54 = vpop.xlane.xlu0 %2142 }
 0xcfe   :  { %9532 = vpow2.f32 %v2161_v14  ;;  %v2153_v21 = vsub.f32 %v8488_v60, %v2143_v54  ;;  %v2169_v57 = vmul.f32 1.442695, %v2154_v33 }
 0xcff   :  { %v2140_v10 = vpop.xlane.xlu1 %2139  ;;  %9534 = vpow2.f32 %v2157_v6 }
 0xd00   :  { %v2167_v45 = vmul.f32 1.442695, %v2153_v21  ;;  %v2152_v39 = vsub.f32 %v2111_v50, %v2140_v10 }
 0xd01   :  { %v2137_v23 = vpop.xlane.xlu0 %2136 }
 0xd02   :  { %9536 = vpow2.f32 %v2167_v45  ;;  %v2151_v3 = vsub.f32 %v2108_v35, %v2137_v23  ;;  %v2165_v1 = vmul.f32 1.442695, %v2152_v39 }
 0xd03   :  { %v2220_v30 = vpop.permute.xlu1 %2219  ;;  %9538 = vpow2.f32 %v2169_v57 }
 0xd04   :  { %v2163_v47 = vmul.f32 1.442695, %v2151_v3 }
 0xd05   :  { %v2222_v31 = vpop.permute.xlu0 %2221 }
 0xd06   :  { %9540 = vpow2.f32 %v2163_v47  ;;  %8490 = vmatprep.subr.bf16.mxu0 %v2222_v31 }
 0xd07   :  { %v10966_v59 = vpop.eup %9528  ;;  %8491 = vmatpush3.bf16.msra.mxu0 %v2222_v31  ;;  %9542 = vpow2.f32 %v2165_v1  ;;  %v2218_v10 = vpop.permute.xlu1 %2217 }
 0xd08   :  { %8492 = vmatprep.subr.bf16.mxu0 %v2220_v30  ;;  %v2177_v37 = vsel %vm574_vm2, %v10966_v59, 0.0  ;;  %v9531_v21 = vpop.eup %9530 }
 0xd09   :  { %2178 = vadd.xlane.f32.xlu0 %v2177_v37  ;;  %v2171_v39 = vsel %vm574_vm2, %v9531_v21, 0.0 }
 0xd0b   :  { %v9533_v6 = vpop.eup %9532  ;;  %8493 = vmatpush3.bf16.msra.mxu0 %v2220_v30  ;;  %v2216_v60 = vpop.permute.xlu1 %2215 }
 0xd0c   :  { %8494 = vmatprep.subr.bf16.mxu0 %v2218_v10  ;;  %v2180_v54 = vsel %vm574_vm2, %v9533_v6, 0.0  ;;  %v9535_v14 = vpop.eup %9534 }
 0xd0d   :  { %2172 = vadd.xlane.f32.xlu0 %v2171_v39  ;;  %2181 = vadd.xlane.f32.xlu1 %v2180_v54  ;;  %v2174_v61 = vsel %vm574_vm2, %v9535_v14, 0.0 }
 0xd0f   :  { %v10972_v33 = vpop.eup %9536  ;;  %8495 = vmatpush3.bf16.msra.mxu0 %v2218_v10 }
 0xd10   :  { %8496 = vmatprep.subr.bf16.mxu0 %v2216_v60  ;;  %v2189_v35 = vsel %vm574_vm2, %v10972_v33, 0.0  ;;  %v9539_v50 = vpop.eup %9538 }
 0xd11   :  { %2190 = vadd.xlane.f32.xlu0 %v2189_v35  ;;  %2175 = vadd.xlane.f32.xlu1 %v2174_v61  ;;  %v2192_v4 = vsel %vm574_vm2, %v9539_v50, 0.0 }
 0xd13   :  { %v9541_v42 = vpop.eup %9540  ;;  %8497 = vmatpush3.bf16.msra.mxu0 %v2216_v60 }
 0xd14   :  { %v2183_v53 = vsel %vm574_vm2, %v9541_v42, 0.0  ;;  %v9543_v58 = vpop.eup %9542 }
 0xd15   :  { %2184 = vadd.xlane.f32.xlu1 %v2183_v53  ;;  %2193 = vadd.xlane.f32.xlu0 %v2192_v4  ;;  %v2186_v56 = vsel %vm574_vm2, %v9543_v58, 0.0 }
 0xd19   :  { %2187 = vadd.xlane.f32.xlu0 %v2186_v56 }
 0xd26   :  { %2316 = vrot.lane.b32.xlu1 %v10812_v46, %s10064_s16 }
 0xd2a   :  { %2314 = vrot.lane.b32.xlu1 %v10446_v49, %s10064_s16 }
 0xd2e   :  { %2312 = vrot.lane.b32.xlu1 %v10822_v8, %s10064_s16 }
 0xd2f   :  { %2318 = vrot.lane.b32.xlu0 %v10459_v43, %s10064_s16 }
 0xd32   :  { %2306 = vrot.lane.b32.xlu1 %v10446_v49, %s10065_s17 }
 0xd33   :  { %2304 = vrot.lane.b32.xlu0 %v10822_v8, %s10065_s17 }
 0xd36   :  { %2310 = vrot.lane.b32.xlu1 %v10459_v43, %s10065_s17 }
 0xd37   :  { %2308 = vrot.lane.b32.xlu0 %v10812_v46, %s10065_s17 }
 0xd92   :  { %v2179_v57 = vpop.xlane.xlu0 %2178 }
 0xd96   :  { %v2173_v45 = vpop.xlane.xlu0 %2172  ;;  %v2182_v23 = vpop.xlane.xlu1 %2181 }
 0xd97   :  { %9544 = vrcp.f32 %v2182_v23 }
 0xd98   :  { %9546 = vrcp.f32 %v2173_v45 }
 0xd99   :  { %9548 = vrcp.f32 %v2179_v57 }
 0xd9a   :  { %v2191_v3 = vpop.xlane.xlu0 %2190  ;;  %v2176_v30 = vpop.xlane.xlu1 %2175 }
 0xd9b   :  { %9550 = vrcp.f32 %v2176_v30 }
 0xd9e   :  { %v2194_v1 = vpop.xlane.xlu0 %2193  ;;  %v2185_v47 = vpop.xlane.xlu1 %2184 }
 0xd9f   :  { %9552 = vrcp.f32 %v2194_v1 }
 0xda0   :  { %9554 = vrcp.f32 %v2185_v47 }
 0xda1   :  { %9556 = vrcp.f32 %v2191_v3 }
 0xda2   :  { %v2188_v31 = vpop.xlane.xlu0 %2187  ;;  %v2317_v47 = vpop.permute.xlu1 %2316 }
 0xda3   :  { %9558 = vrcp.f32 %v2188_v31 }
 0xda4   :  { %v9545_v37 = vpop.eup %9544 }
 0xda5   :  { %v9547_v39 = vpop.eup %9546  ;;  %v2206_v35 = vmul.f32 %v9545_v37, %v9533_v6 }
 0xda6   :  { %v2319_v10 = vpop.permute.xlu0 %2318  ;;  %v9549_v54 = vpop.eup %9548  ;;  %v2203_v61 = vmul.f32 %v9547_v39, %v9531_v21 }
 0xda7   :  { %9014 = vmatprep.subr.msk.bf16.mxu0 %vm484_vm1, %v2319_v10  ;;  %v2205_v4 = vmul.f32 %v9549_v54, %v10966_v59  ;;  %v2342_v30 = vsel %vm484_vm1, %v2319_v10, 0  ;;  %v2339_v54 = vsel %vm484_vm1, %v2317_v47, 0  ;;  %v2315_v10 = vpop.permute.xlu1 %2314 }
 0xda8   :  { %v9551_v60 = vpop.eup %9550 }
 0xda9   :  { %v2204_v53 = vmul.f32 %v9551_v60, %v9535_v14  ;;  %v2212_v45 = vpack.c.bf16 %v2206_v35, %v2205_v4 }
 0xdaa   :  { %v2305_v39 = vpop.permute.xlu0 %2304 }
 0xdab   :  { %v2211_v56 = vpack.c.bf16 %v2204_v53, %v2203_v61 }
 0xdac   :  { %v9553_v57 = vpop.eup %9552 }
 0xdad   :  { %v9555_v23 = vpop.eup %9554  ;;  %8498 = vmatprep.mubr.msk.bf16.mxu0 %vm574_vm2, %v2211_v56  ;;  %v2210_v14 = vmul.f32 %v9553_v57, %v9539_v50  ;;  %v2313_v50 = vpop.permute.xlu1 %2312 }
 0xdae   :  { %v9557_v3 = vpop.eup %9556  ;;  %8499 = vmatmul.mubr.msk.bf16.vlgmr.msra.gmra.mxu0 %vm574_vm2, %v2212_v45  ;;  %v2207_v21 = vmul.f32 %v9555_v23, %v9541_v42  ;;  %v2336_v42 = vsel %vm484_vm1, %v2315_v10, 0  ;;  %v2309_v60 = vpop.permute.xlu0 %2308 }
 0xdaf   :  { %8507 = vmatpush3.bf16.xpose.msra.mxu0 %v2342_v30  ;;  %v2209_v31 = vmul.f32 %v9557_v3, %v10972_v33  ;;  %v2333_v33 = vsel %vm484_vm1, %v2313_v50, 0 }
 0xdb0   :  { %v9559_v1 = vpop.eup %9558  ;;  %9015 = vmatprep.subr.msk.bf16.mxu0 %vm484_vm1, %v2317_v47 }
 0xdb1   :  { %v2208_v6 = vmul.f32 %v9559_v1, %v9543_v58  ;;  %v2214_v37 = vpack.c.bf16 %v2210_v14, %v2209_v31  ;;  %v2307_v58 = vpop.permute.xlu1 %2306 }
 0xdb3   :  { %v2213_v59 = vpack.c.bf16 %v2208_v6, %v2207_v21 }
 0xdb5   :  { %8502 = vmatprep.mubr.msk.bf16.mxu0 %vm574_vm2, %v2213_v59  ;;  %v2311_v35 = vpop.permute.xlu1 %2310 }
 0xdb6   :  { %8503 = vmatmul.mubr.msk.bf16.gmra.mxu0 %vm574_vm2, %v2214_v37 }
 0xdb7   :  { %8509 = vmatpush3.bf16.xpose.msra.mxu0 %v2339_v54  ;;  %8514 = vmatprep.mubr.msk.bf16.mxu0 %vm484_vm1, %v2305_v39 }
 0xdb8   :  { %9016 = vmatprep.subr.msk.bf16.mxu0 %vm484_vm1, %v2315_v10 }
 0xdbf   :  { %8511 = vmatpush3.bf16.xpose.msra.mxu0 %v2336_v42 }
 0xdc0   :  { %9017 = vmatprep.subr.msk.bf16.mxu0 %vm484_vm1, %v2313_v50 }
 0xdc7   :  { %8513 = vmatpush3.bf16.xpose.msra.mxu0 %v2333_v33 }
 0xdce   :  { %8515 = vmatmul.mubr.msk.bf16.vlgmr.msra.gmra.mxu0 %vm484_vm1, %v2307_v58 }
 0xdcf   :  { %8518 = vmatprep.mubr.msk.bf16.mxu0 %vm484_vm1, %v2309_v60 }
 0xdd6   :  { %8519 = vmatmul.mubr.msk.bf16.gmra.mxu0 %vm484_vm1, %v2311_v35 }
 0xe6e   :  { %v11014_v61 = vpop.f32.mrf.mxu0 }
 0xe6f   :  { %13598 = vst [vmem:[#allocation11_spill] sm:$0xff] %v11014_v61 }
 0xe70   :  { %v11016_v53 = vpop.f32.mrf.mxu0 }
 0xe71   :  { %13599 = vst [vmem:[#allocation12_spill] sm:$0xff] %v11016_v53 }
 0xe72   :  { %v11018_v4 = vpop.f32.mrf.mxu0 }
 0xe74   :  { %v11022_v57 = vpop.f32.mrf.mxu0 }
 0xe75   :  { %13600 = vst [vmem:[#allocation13_spill] sm:$0xff] %v11022_v57 }
 0xe76   :  { %v11024_v45 = vpop.f32.mrf.mxu0 }
 0xe77   :  { %13601 = vst [vmem:[#allocation14_spill] sm:$0xff] %v11024_v45 }
 0xe78   :  { %v11026_v23 = vpop.f32.mrf.mxu0 }
 0xe79   :  { %13602 = vst [vmem:[#allocation15_spill] sm:$0xff] %v11026_v23 }
 0xe7a   :  { %v11028_v3 = vpop.f32.mrf.mxu0 }
 0xe7b   :  { %13603 = vst [vmem:[#allocation16_spill] sm:$0xff] %v11028_v3 }
 0xe7c   :  { %v11032_v1 = vpop.f32.mrf.mxu0 }
 0xe7d   :  { %13604 = vst [vmem:[#allocation17_spill] sm:$0xff] %v11032_v1 }
 0xe8e   :  { %v8516_v47 = vpop.f32.mrf.mxu0 }
 0xe8f   :  { %v2415_v31 = vsel %vm574_vm2, %v8516_v47, -inf }
 0xe90   :  { %v2378_v21 = vpop.f32.mrf.mxu0 }
 0xe91   :  { %v2409_v6 = vsel %vm574_vm2, %v2378_v21, -inf }
 0xe92   :  { %2410 = vmax.xlane.f32.xlu0 %v2409_v6  ;;  %v8517_v14 = vpop.f32.mrf.mxu0 }
 0xe93   :  { %v2418_v10 = vsel %vm574_vm2, %v8517_v14, -inf }
 0xe94   :  { %v2381_v59 = vpop.f32.mrf.mxu0 }
 0xe95   :  { %v2412_v37 = vsel %vm574_vm2, %v2381_v59, -inf }
 0xe96   :  { %2416 = vmax.xlane.f32.xlu0 %v2415_v31  ;;  %2413 = vmax.xlane.f32.xlu1 %v2412_v37  ;;  %v8520_v39 = vpop.f32.mrf.mxu0 }
 0xe97   :  { %v2427_v58 = vsel %vm574_vm2, %v8520_v39, -inf }
 0xe98   :  { %v2394_v54 = vpop.f32.mrf.mxu0 }
 0xe99   :  { %v2421_v35 = vsel %vm574_vm2, %v2394_v54, -inf }
 0xe9a   :  { %2419 = vmax.xlane.f32.xlu0 %v2418_v10  ;;  %v8521_v42 = vpop.f32.mrf.mxu0 }
 0xe9b   :  { %v2430_v50 = vsel %vm574_vm2, %v8521_v42, -inf }
 0xe9c   :  { %2431 = vmax.xlane.f32.xlu1 %v2430_v50  ;;  %v2397_v33 = vpop.f32.mrf.mxu0 }
 0xe9d   :  { %v2424_v60 = vsel %vm574_vm2, %v2397_v33, -inf }
 0xe9e   :  { %2428 = vmax.xlane.f32.xlu0 %v2427_v58 }
 0xea0   :  { %2425 = vmax.xlane.f32.xlu1 %v2424_v60 }
 0xea2   :  { %2422 = vmax.xlane.f32.xlu0 %v2421_v35 }
 0xeb1   :  { %2505 = vrot.lane.b32.xlu1 %v10812_v46, %s10066_s18 }
 0xeb5   :  { %2503 = vrot.lane.b32.xlu1 %v10446_v49, %s10066_s18 }
 0xeb8   :  { %2507 = vrot.lane.b32.xlu0 %v10459_v43, %s10066_s18 }
 0xeb9   :  { %2501 = vrot.lane.b32.xlu1 %v10822_v8, %s10066_s18 }
 0xf1b   :  { %v2411_v6 = vpop.xlane.xlu0 %2410 }
 0xf1c   :  { %v2433_v31 = vsub.f32 %v2378_v21, %v2411_v6 }
 0xf1e   :  { %v2441_v58 = vmul.f32 1.442695, %v2433_v31 }
 0xf1f   :  { %v2417_v37 = vpop.xlane.xlu0 %2416  ;;  %v2414_v10 = vpop.xlane.xlu1 %2413 }
 0xf20   :  { %v2435_v50 = vsub.f32 %v8516_v47, %v2417_v37  ;;  %v2434_v35 = vsub.f32 %v2381_v59, %v2414_v10 }
 0xf22   :  { %v2445_v60 = vmul.f32 1.442695, %v2435_v50  ;;  %v2443_v45 = vmul.f32 1.442695, %v2434_v35 }
 0xf23   :  { %v2420_v30 = vpop.xlane.xlu0 %2419 }
 0xf24   :  { %9560 = vpow2.f32 %v2445_v60  ;;  %v2436_v56 = vsub.f32 %v8517_v14, %v2420_v30 }
 0xf25   :  { %v2432_v52 = vpop.xlane.xlu1 %2431  ;;  %9562 = vpow2.f32 %v2441_v58 }
 0xf26   :  { %v2447_v3 = vmul.f32 1.442695, %v2436_v56  ;;  %v2440_v1 = vsub.f32 %v8521_v42, %v2432_v52 }
 0xf27   :  { %v2429_v23 = vpop.xlane.xlu0 %2428 }
 0xf28   :  { %9564 = vpow2.f32 %v2447_v3  ;;  %v2439_v57 = vsub.f32 %v8520_v39, %v2429_v23  ;;  %v2455_v21 = vmul.f32 1.442695, %v2440_v1 }
 0xf29   :  { %v2426_v53 = vpop.xlane.xlu1 %2425  ;;  %9566 = vpow2.f32 %v2443_v45 }
 0xf2a   :  { %v2453_v6 = vmul.f32 1.442695, %v2439_v57  ;;  %v2438_v61 = vsub.f32 %v2397_v33, %v2426_v53 }
 0xf2b   :  { %v2423_v47 = vpop.xlane.xlu0 %2422 }
 0xf2c   :  { %9568 = vpow2.f32 %v2453_v6  ;;  %v2437_v31 = vsub.f32 %v2394_v54, %v2423_v47  ;;  %v2451_v37 = vmul.f32 1.442695, %v2438_v61 }
 0xf2d   :  { %v2506_v59 = vpop.permute.xlu1 %2505  ;;  %9570 = vpow2.f32 %v2455_v21 }
 0xf2e   :  { %v2449_v30 = vmul.f32 1.442695, %v2437_v31 }
 0xf2f   :  { %v2508_v14 = vpop.permute.xlu0 %2507 }
 0xf30   :  { %9572 = vpow2.f32 %v2449_v30  ;;  %8522 = vmatprep.subr.bf16.mxu1 %v2508_v14 }
 0xf31   :  { %v11050_v56 = vpop.eup %9560  ;;  %8523 = vmatpush3.bf16.msra.mxu1 %v2508_v14  ;;  %9574 = vpow2.f32 %v2451_v37  ;;  %v2504_v53 = vpop.permute.xlu1 %2503 }
 0xf32   :  { %8524 = vmatprep.subr.bf16.mxu1 %v2506_v59  ;;  %v2463_v52 = vsel %vm574_vm2, %v11050_v56, 0.0  ;;  %v9563_v57 = vpop.eup %9562 }
 0xf33   :  { %2464 = vadd.xlane.f32.xlu0 %v2463_v52  ;;  %v2457_v61 = vsel %vm574_vm2, %v9563_v57, 0.0 }
 0xf35   :  { %v9565_v45 = vpop.eup %9564  ;;  %8525 = vmatpush3.bf16.msra.mxu1 %v2506_v59  ;;  %v2502_v39 = vpop.permute.xlu1 %2501 }
 0xf36   :  { %8526 = vmatprep.subr.bf16.mxu1 %v2504_v53  ;;  %v2466_v23 = vsel %vm574_vm2, %v9565_v45, 0.0  ;;  %v9567_v3 = vpop.eup %9566 }
 0xf37   :  { %2458 = vadd.xlane.f32.xlu0 %v2457_v61  ;;  %2467 = vadd.xlane.f32.xlu1 %v2466_v23  ;;  %v2460_v42 = vsel %vm574_vm2, %v9567_v3, 0.0 }
 0xf39   :  { %v11056_v1 = vpop.eup %9568  ;;  %8527 = vmatpush3.bf16.msra.mxu1 %v2504_v53 }
 0xf3a   :  { %8528 = vmatprep.subr.bf16.mxu1 %v2502_v39  ;;  %v2475_v54 = vsel %vm574_vm2, %v11056_v1, 0.0  ;;  %v9571_v33 = vpop.eup %9570 }
 0xf3b   :  { %2476 = vadd.xlane.f32.xlu0 %v2475_v54  ;;  %2461 = vadd.xlane.f32.xlu1 %v2460_v42  ;;  %v2478_v58 = vsel %vm574_vm2, %v9571_v33, 0.0 }
 0xf3d   :  { %v9573_v10 = vpop.eup %9572  ;;  %8529 = vmatpush3.bf16.msra.mxu1 %v2502_v39 }
 0xf3e   :  { %v2469_v50 = vsel %vm574_vm2, %v9573_v10, 0.0  ;;  %v9575_v60 = vpop.eup %9574 }
 0xf3f   :  { %2470 = vadd.xlane.f32.xlu1 %v2469_v50  ;;  %2479 = vadd.xlane.f32.xlu0 %v2478_v58  ;;  %v2472_v35 = vsel %vm574_vm2, %v9575_v60, 0.0 }
 0xf43   :  { %2473 = vadd.xlane.f32.xlu0 %v2472_v35 }
 0xf50   :  { %2602 = vrot.lane.b32.xlu1 %v10812_v46, %s10067_s19 }
 0xf54   :  { %2600 = vrot.lane.b32.xlu1 %v10446_v49, %s10067_s19 }
 0xf58   :  { %2598 = vrot.lane.b32.xlu1 %v10822_v8, %s10067_s19 }
 0xf59   :  { %2604 = vrot.lane.b32.xlu0 %v10459_v43, %s10067_s19 }
 0xf5c   :  { %2592 = vrot.lane.b32.xlu1 %v10446_v49, %s10068_s20 }
 0xf5d   :  { %2590 = vrot.lane.b32.xlu0 %v10822_v8, %s10068_s20 }
 0xf60   :  { %2596 = vrot.lane.b32.xlu1 %v10459_v43, %s10068_s20 }
 0xf61   :  { %2594 = vrot.lane.b32.xlu0 %v10812_v46, %s10068_s20 }
 0xfbc   :  { %v2465_v21 = vpop.xlane.xlu0 %2464 }
 0xfc0   :  { %v2459_v6 = vpop.xlane.xlu0 %2458  ;;  %v2468_v47 = vpop.xlane.xlu1 %2467 }
 0xfc1   :  { %9576 = vrcp.f32 %v2468_v47 }
 0xfc2   :  { %9578 = vrcp.f32 %v2459_v6 }
 0xfc3   :  { %9580 = vrcp.f32 %v2465_v21 }
 0xfc4   :  { %v2477_v31 = vpop.xlane.xlu0 %2476  ;;  %v2462_v59 = vpop.xlane.xlu1 %2461 }
 0xfc5   :  { %9582 = vrcp.f32 %v2462_v59 }
 0xfc8   :  { %v2480_v37 = vpop.xlane.xlu0 %2479  ;;  %v2471_v30 = vpop.xlane.xlu1 %2470 }
 0xfc9   :  { %9584 = vrcp.f32 %v2480_v37 }
 0xfca   :  { %9586 = vrcp.f32 %v2471_v30 }
 0xfcb   :  { %9588 = vrcp.f32 %v2477_v31 }
 0xfcc   :  { %v2474_v14 = vpop.xlane.xlu0 %2473  ;;  %v2603_v30 = vpop.permute.xlu1 %2602 }
 0xfcd   :  { %9590 = vrcp.f32 %v2474_v14 }
 0xfce   :  { %v9577_v52 = vpop.eup %9576 }
 0xfcf   :  { %v9579_v61 = vpop.eup %9578  ;;  %v2492_v54 = vmul.f32 %v9577_v52, %v9565_v45 }
 0xfd0   :  { %v2605_v53 = vpop.permute.xlu0 %2604  ;;  %v9581_v23 = vpop.eup %9580  ;;  %v2489_v42 = vmul.f32 %v9579_v61, %v9563_v57 }
 0xfd1   :  { %9018 = vmatprep.subr.msk.bf16.mxu1 %vm484_vm1, %v2605_v53  ;;  %v2491_v58 = vmul.f32 %v9581_v23, %v11050_v56  ;;  %v2628_v59 = vsel %vm484_vm1, %v2605_v53, 0  ;;  %v2625_v23 = vsel %vm484_vm1, %v2603_v30, 0  ;;  %v2601_v53 = vpop.permute.xlu1 %2600 }
 0xfd2   :  { %v9583_v39 = vpop.eup %9582 }
 0xfd3   :  { %v2490_v50 = vmul.f32 %v9583_v39, %v9567_v3  ;;  %v2498_v6 = vpack.c.bf16 %v2492_v54, %v2491_v58 }
 0xfd4   :  { %v2591_v61 = vpop.permute.xlu0 %2590 }
 0xfd5   :  { %v2497_v35 = vpack.c.bf16 %v2490_v50, %v2489_v42 }
 0xfd6   :  { %v9585_v21 = vpop.eup %9584 }
 0xfd7   :  { %v9587_v47 = vpop.eup %9586  ;;  %8530 = vmatprep.mubr.msk.bf16.mxu1 %vm574_vm2, %v2497_v35  ;;  %v2496_v3 = vmul.f32 %v9585_v21, %v9571_v33  ;;  %v2599_v33 = vpop.permute.xlu1 %2598 }
 0xfd8   :  { %v9589_v31 = vpop.eup %9588  ;;  %8531 = vmatmul.mubr.msk.bf16.vlgmr.msra.gmra.mxu1 %vm574_vm2, %v2498_v6  ;;  %v2493_v57 = vmul.f32 %v9587_v47, %v9573_v10  ;;  %v2622_v10 = vsel %vm484_vm1, %v2601_v53, 0  ;;  %v2595_v39 = vpop.permute.xlu0 %2594 }
 0xfd9   :  { %8539 = vmatpush3.bf16.xpose.msra.mxu1 %v2628_v59  ;;  %v2495_v14 = vmul.f32 %v9589_v31, %v11056_v1  ;;  %v2619_v1 = vsel %vm484_vm1, %v2599_v33, 0 }
 0xfda   :  { %v9591_v37 = vpop.eup %9590  ;;  %9019 = vmatprep.subr.msk.bf16.mxu1 %vm484_vm1, %v2603_v30 }
 0xfdb   :  { %v2494_v45 = vmul.f32 %v9591_v37, %v9575_v60  ;;  %v2500_v52 = vpack.c.bf16 %v2496_v3, %v2495_v14  ;;  %v2593_v60 = vpop.permute.xlu1 %2592 }
 0xfdd   :  { %v2499_v56 = vpack.c.bf16 %v2494_v45, %v2493_v57 }
 0xfdf   :  { %8534 = vmatprep.mubr.msk.bf16.mxu1 %vm574_vm2, %v2499_v56  ;;  %v2597_v54 = vpop.permute.xlu1 %2596 }
 0xfe0   :  { %8535 = vmatmul.mubr.msk.bf16.gmra.mxu1 %vm574_vm2, %v2500_v52 }
 0xfe1   :  { %8541 = vmatpush3.bf16.xpose.msra.mxu1 %v2625_v23  ;;  %8546 = vmatprep.mubr.msk.bf16.mxu1 %vm484_vm1, %v2591_v61 }
 0xfe2   :  { %9020 = vmatprep.subr.msk.bf16.mxu1 %vm484_vm1, %v2601_v53 }
 0xfe9   :  { %8543 = vmatpush3.bf16.xpose.msra.mxu1 %v2622_v10 }
 0xfea   :  { %9021 = vmatprep.subr.msk.bf16.mxu1 %vm484_vm1, %v2599_v33 }
 0xff1   :  { %8545 = vmatpush3.bf16.xpose.msra.mxu1 %v2619_v1  ;;  %v13605_v1 = vpack.i.bf16 %v10678_v15, %v10674_v19 }
 0xff8   :  { %8547 = vmatmul.mubr.msk.bf16.vlgmr.msra.gmra.mxu1 %vm484_vm1, %v2593_v60  ;;  %v9068_v60 = vpack.i.bf16 %v10682_v34, %v10676_v63  ;;  %v13606_v63 = vpack.i.bf16 %v10762_v40, %v10758_v20 }
 0xff9   :  { %8550 = vmatprep.mubr.msk.bf16.mxu1 %vm484_vm1, %v2595_v39 }
0x1000   :  { %8551 = vmatmul.mubr.msk.bf16.gmra.mxu1 %vm484_vm1, %v2597_v54 }
0x1098   :  { %v11098_v42 = vpop.f32.mrf.mxu1 }
0x109a   :  { %v11100_v50 = vpop.f32.mrf.mxu1 }
0x109c   :  { %v11102_v58 = vpop.f32.mrf.mxu1 }
0x109d   :  { %v9143_v35 = vpack.i.bf16 %v11102_v58, %v11098_v42  ;;  %v13618_v42 = vld [vmem:[#allocation14_spill] sm:$0xff] }
0x109e   :  { %v11106_v21 = vpop.f32.mrf.mxu1 }
0x10a0   :  { %v11108_v6 = vpop.f32.mrf.mxu1 }
0x10a2   :  { %v11110_v47 = vpop.f32.mrf.mxu1 }
0x10a4   :  { %v11112_v31 = vpop.f32.mrf.mxu1 }
0x10a5   :  { %v9173_v59 = vpack.i.bf16 %v11112_v31, %v11108_v6 }
0x10a6   :  { %v11116_v37 = vpop.f32.mrf.mxu1 }
0x10b8   :  { %v8548_v30 = vpop.f32.mrf.mxu1 }
0x10b9   :  { %v2701_v57 = vsel %vm574_vm2, %v8548_v30, -inf }
0x10ba   :  { %2702 = vmax.xlane.f32.xlu0 %v2701_v57  ;;  %v2664_v45 = vpop.f32.mrf.mxu1 }
0x10bb   :  { %v2695_v56 = vsel %vm574_vm2, %v2664_v45, -inf }
0x10bc   :  { %v8549_v3 = vpop.f32.mrf.mxu1 }
0x10bd   :  { %v2704_v23 = vsel %vm574_vm2, %v8549_v3, -inf }
0x10be   :  { %2696 = vmax.xlane.f32.xlu0 %v2695_v56  ;;  %v2667_v14 = vpop.f32.mrf.mxu1 }
0x10bf   :  { %v2698_v52 = vsel %vm574_vm2, %v2667_v14, -inf }
0x10c0   :  { %2699 = vmax.xlane.f32.xlu1 %v2698_v52  ;;  %v8552_v61 = vpop.f32.mrf.mxu1 }
0x10c1   :  { %v2713_v33 = vsel %vm574_vm2, %v8552_v61, -inf }
0x10c2   :  { %2705 = vmax.xlane.f32.xlu0 %v2704_v23  ;;  %v2680_v53 = vpop.f32.mrf.mxu1 }
0x10c3   :  { %v2707_v10 = vsel %vm574_vm2, %v2680_v53, -inf }
0x10c6   :  { %2708 = vmax.xlane.f32.xlu0 %v2707_v10 }
0x10ca   :  { %2714 = vmax.xlane.f32.xlu0 %v2713_v33 }
0x10d1   :  { %2791 = vrot.lane.b32.xlu1 %v10812_v46, %s10069_s21  ;;  %v11142_v46 = vpop.f32.mrf.mxu1 }
0x10d2   :  { %v2716_v19 = vsel %vm574_vm2, %v11142_v46, -inf }
0x10d3   :  { %v11146_v15 = vpop.f32.mrf.mxu1 }
0x10d5   :  { %2789 = vrot.lane.b32.xlu1 %v10446_v49, %s10069_s21  ;;  %v9078_v49 = vpack.i.bf16 %v10766_v36, %v10760_v5 }
0x10d9   :  { %2787 = vrot.lane.b32.xlu1 %v10822_v8, %s10069_s21 }
0x10dd   :  { %9074 = vrot.lane.b32.xlu1 %v13605_v1, %s10070_s22 }
0x10e0   :  { %2793 = vrot.lane.b32.xlu0 %v10459_v43, %s10069_s21  ;;  %v2710_v43 = vsel %vm574_vm2, %v11146_v15, -inf }
0x10e4   :  { %9069 = vrot.lane.b32.xlu0 %v9068_v60, %s10070_s22 }
0x10e8   :  { %9079 = vrot.lane.b32.xlu0 %v9078_v49, %s10071_s23 }
0x1101   :  { %2717 = vmax.xlane.f32.xlu1 %v2716_v19 }
0x1105   :  { %2711 = vmax.xlane.f32.xlu1 %v2710_v43 }
0x1116   :  { %9084 = vrot.lane.b32.xlu1 %v13606_v63, %s10071_s23 }
0x1143   :  { %v2703_v34 = vpop.xlane.xlu0 %2702 }
0x1144   :  { %v2721_v5 = vsub.f32 %v8548_v30, %v2703_v34 }
0x1146   :  { %v2731_v36 = vmul.f32 1.442695, %v2721_v5 }
0x1147   :  { %v2697_v8 = vpop.xlane.xlu0 %2696 }
0x1148   :  { %9592 = vpow2.f32 %v2731_v36  ;;  %v2719_v39 = vsub.f32 %v2664_v45, %v2697_v8 }
0x1149   :  { %v2700_v54 = vpop.xlane.xlu1 %2699 }
0x114a   :  { %v2727_v57 = vmul.f32 1.442695, %v2719_v39  ;;  %v2720_v56 = vsub.f32 %v2667_v14, %v2700_v54 }
0x114b   :  { %v2706_v52 = vpop.xlane.xlu0 %2705 }
0x114c   :  { %9594 = vpow2.f32 %v2727_v57  ;;  %v2722_v23 = vsub.f32 %v8549_v3, %v2706_v52  ;;  %v2729_v10 = vmul.f32 1.442695, %v2720_v56  ;;  %v13607_v52 = vpack.i.bf16 %v10854_v28, %v10850_v11 }
0x114d   :  { %v2792_v30 = vpop.permute.xlu1 %2791  ;;  %v9118_v11 = vpack.i.bf16 %v10868_v0, %v10862_v29  ;;  %v13608_v0 = vpack.i.bf16 %v10688_v25, %v10684_v24 }
0x114e   :  { %v2733_v33 = vmul.f32 1.442695, %v2722_v23  ;;  %v9088_v23 = vpack.i.bf16 %v10858_v51, %v10852_v32 }
0x114f   :  { %v2709_v1 = vpop.xlane.xlu0 %2708 }
0x1150   :  { %9596 = vpow2.f32 %v2733_v33  ;;  %v2723_v60 = vsub.f32 %v2680_v53, %v2709_v1  ;;  %v9108_v1 = vpack.i.bf16 %v10776_v41, %v10770_v13 }
0x1151   :  { %9598 = vpow2.f32 %v2729_v10  ;;  %v2790_v53 = vpop.permute.xlu1 %2789  ;;  %v9098_v10 = vpack.i.bf16 %v10692_v55, %v10686_v16 }
0x1152   :  { %v2735_v19 = vmul.f32 1.442695, %v2723_v60 }
0x1153   :  { %v2715_v20 = vpop.xlane.xlu0 %2714 }
0x1154   :  { %v2725_v40 = vsub.f32 %v8552_v61, %v2715_v20 }
0x1155   :  { %v11154_v49 = vpop.eup %9592  ;;  %v2788_v36 = vpop.permute.xlu1 %2787 }
0x1156   :  { %v2739_v43 = vmul.f32 1.442695, %v2725_v40  ;;  %v2749_v45 = vsel %vm574_vm2, %v11154_v49, 0.0  ;;  %v13610_v40 = vpack.i.bf16 %v10864_v12, %v10860_v2 }
0x1157   :  { %2750 = vadd.xlane.f32.xlu0 %v2749_v45  ;;  %v2794_v14 = vpop.permute.xlu0 %2793 }
0x1158   :  { %9600 = vpow2.f32 %v2739_v43  ;;  %8554 = vmatprep.subr.bf16.mxu0 %v2794_v14 }
0x1159   :  { %v11158_v3 = vpop.eup %9594  ;;  %8555 = vmatpush3.bf16.msra.mxu0 %v2794_v14  ;;  %9602 = vpow2.f32 %v2735_v19  ;;  %v11185_v33 = vpop.permute.xlu1 %9074 }
0x115a   :  { %8556 = vmatprep.subr.bf16.mxu0 %v2792_v30  ;;  %v2743_v61 = vsel %vm574_vm2, %v11158_v3, 0.0 }
0x115b   :  { %2744 = vadd.xlane.f32.xlu0 %v2743_v61 }
0x115d   :  { %v11162_v63 = vpop.eup %9596  ;;  %8557 = vmatpush3.bf16.msra.mxu0 %v2792_v30  ;;  %v9070_v30 = vpop.permute.xlu0 %9069 }
0x115e   :  { %8558 = vmatprep.subr.bf16.mxu0 %v2790_v53  ;;  %v2752_v34 = vsel %vm574_vm2, %v11162_v63, 0.0  ;;  %v9599_v5 = vpop.eup %9598 }
0x115f   :  { %2753 = vadd.xlane.f32.xlu1 %v2752_v34  ;;  %v2746_v8 = vsel %vm574_vm2, %v9599_v5, 0.0 }
0x1161   :  { %8559 = vmatpush3.bf16.msra.mxu0 %v2790_v53  ;;  %v9080_v19 = vpop.permute.xlu0 %9079 }
0x1162   :  { %8560 = vmatprep.subr.bf16.mxu0 %v2788_v36 }
0x1163   :  { %2747 = vadd.xlane.f32.xlu1 %v2746_v8 }
0x1165   :  { %v11167_v39 = vpop.eup %9600  ;;  %8561 = vmatpush3.bf16.msra.mxu0 %v2788_v36 }
0x1166   :  { %v2761_v54 = vsel %vm574_vm2, %v11167_v39, 0.0  ;;  %v11171_v57 = vpop.eup %9602 }
0x1167   :  { %2762 = vadd.xlane.f32.xlu0 %v2761_v54  ;;  %v2755_v56 = vsel %vm574_vm2, %v11171_v57, 0.0 }
0x116b   :  { %2756 = vadd.xlane.f32.xlu0 %v2755_v56  ;;  %v9311_v56 = vld [vmem:[%s13551_s2] sm:$0xff]  }
0x1174   :  { %9094 = vrot.lane.b32.xlu1 %v13607_v52, %s10072_s24 }
0x1181   :  { %9089 = vrot.lane.b32.xlu0 %v9088_v23, %s10072_s24 }
0x1185   :  { %9099 = vrot.lane.b32.xlu0 %v9098_v10, %s10070_s22 }
0x1189   :  { %9109 = vrot.lane.b32.xlu0 %v9108_v1, %s10071_s23  ;;  %v9071_v1 = vunpack.i.l.bf16 %v9070_v30 }
0x118a   :  { %v2718_v60 = vpop.xlane.xlu1 %2717 }
0x118b   :  { %v2726_v32 = vsub.f32 %v11142_v46, %v2718_v60  ;;  %v13609_v46 = vpack.i.bf16 %v10772_v17, %v10768_v62  ;;  %v9072_v60 = vunpack.i.h.bf16 %v9070_v30 }
0x118d   :  { %v2741_v28 = vmul.f32 1.442695, %v2726_v32  ;;  %9119 = vrot.lane.b32.xlu0 %v9118_v11, %s10072_s24  ;;  %v9081_v11 = vunpack.i.l.bf16 %v9080_v19 }
0x118e   :  { %v2712_v51 = vpop.xlane.xlu1 %2711 }
0x118f   :  { %9604 = vpow2.f32 %v2741_v28  ;;  %v2724_v16 = vsub.f32 %v11146_v15, %v2712_v51  ;;  %v9310_v15 = vld [vmem:[%s13551_s2 + $0x8] sm:$0xff]   ;;  %v9082_v28 = vunpack.i.h.bf16 %v9080_v19 }
0x1190   :  { %8570 = vmatprep.subr.bf16.mxu0 %v9310_v15 }
0x1191   :  { %v2737_v55 = vmul.f32 1.442695, %v2724_v16 }
0x1192   :  { %v11218_v24 = vpop.permute.xlu1 %9084 }
0x1193   :  { %9606 = vpow2.f32 %v2737_v55 }
0x119c   :  { %v11195_v20 = vpop.eup %9604 }
0x119d   :  { %v2764_v13 = vsel %vm574_vm2, %v11195_v20, 0.0 }
0x119e   :  { %2765 = vadd.xlane.f32.xlu1 %v2764_v13 }
0x11a0   :  { %v11199_v41 = vpop.eup %9606 }
0x11a1   :  { %v2758_v29 = vsel %vm574_vm2, %v11199_v41, 0.0 }
0x11a2   :  { %2759 = vadd.xlane.f32.xlu1 %v2758_v29 }
0x11b3   :  { %9104 = vrot.lane.b32.xlu1 %v13608_v0, %s10070_s22 }
0x11b7   :  { %9114 = vrot.lane.b32.xlu1 %v13609_v46, %s10071_s23  ;;  %v1710_v46 = vsel %vm484_vm1, %v10660_v22, %v9071_v1 }
0x11bb   :  { %9124 = vrot.lane.b32.xlu1 %v13610_v40, %s10072_s24  ;;  %v1711_v40 = vsel %vm484_vm1, %v10664_v9, %v9072_v60  ;;  %v9076_v9 = vunpack.i.l.bf16 %v11185_v33 }
0x11e0   :  { %v2751_v43 = vpop.xlane.xlu0 %2750 }
0x11e4   :  { %v2745_v25 = vpop.xlane.xlu0 %2744 }
0x11e8   :  { %v2754_v45 = vpop.xlane.xlu1 %2753 }
0x11e9   :  { %9608 = vrcp.f32 %v2754_v45 }
0x11ea   :  { %9610 = vrcp.f32 %v2745_v25  ;;  %v1720_v25 = vsel %vm1718_vm3, %v1711_v40, %v9082_v28 }
0x11eb   :  { %9612 = vrcp.f32 %v2751_v43  ;;  %v1719_v43 = vsel %vm1718_vm3, %v1710_v46, %v9081_v11 }
0x11ec   :  { %v2748_v62 = vpop.xlane.xlu1 %2747 }
0x11ed   :  { %9614 = vrcp.f32 %v2748_v62  ;;  %v9077_v62 = vunpack.i.h.bf16 %v11185_v33 }
0x11f0   :  { %v2763_v52 = vpop.xlane.xlu0 %2762 }
0x11f6   :  { %v9609_v17 = vpop.eup %9608 }
0x11f7   :  { %v9611_v14 = vpop.eup %9610  ;;  %v2778_v34 = vmul.f32 %v9609_v17, %v11162_v63  ;;  %v11228_v63 = vpop.permute.xlu1 %9094 }
0x11f8   :  { %v9613_v61 = vpop.eup %9612  ;;  %v2775_v2 = vmul.f32 %v9611_v14, %v11158_v3  ;;  %v2757_v3 = vpop.xlane.xlu0 %2756 }
0x11f9   :  { %v2777_v36 = vmul.f32 %v9613_v61, %v11154_v49  ;;  %v9087_v61 = vunpack.i.h.bf16 %v11218_v24 }
0x11fa   :  { %v9615_v53 = vpop.eup %9614 }
0x11fb   :  { %v2776_v12 = vmul.f32 %v9615_v53, %v9599_v5  ;;  %v2784_v54 = vpack.c.bf16 %v2778_v34, %v2777_v36 }
0x11fc   :  { %v9090_v49 = vpop.permute.xlu0 %9089 }
0x11fd   :  { %v2783_v8 = vpack.c.bf16 %v2776_v12, %v2775_v2  ;;  %v9092_v55 = vunpack.i.h.bf16 %v9090_v49  ;;  %v9091_v13 = vunpack.i.l.bf16 %v9090_v49 }
0x11ff   :  { %8562 = vmatprep.mubr.msk.bf16.mxu0 %vm574_vm2, %v2783_v8  ;;  %v1728_v17 = vsel %vm1727_vm4, %v1719_v43, %v9091_v13  ;;  %v1729_v22 = vsel %vm1727_vm4, %v1720_v25, %v9092_v55  ;;  %v9096_v8 = vunpack.i.l.bf16 %v11228_v63 }
0x1200   :  { %8563 = vmatmul.mubr.msk.bf16.vlgmr.msra.gmra.mxu0 %vm574_vm2, %v2784_v54  ;;  %v9100_v10 = vpop.permute.xlu0 %9099 }
0x1201   :  { %8571 = vmatpush3.bf16.msra.mxu0 %v9310_v15  ;;  %v9102_v2 = vunpack.i.h.bf16 %v9100_v10 }
0x1202   :  { %8572 = vmatprep.subr.bf16.mxu0 %v9311_v56 }
0x1203   :  { %v1715_v49 = vsel %vm484_vm1, %v10672_v38, %v9102_v2 }
0x1204   :  { %v9110_v51 = vpop.permute.xlu0 %9109 }
0x1205   :  { %8573 = vmatpush3.bf16.msra.mxu0 %v9311_v56  ;;  %v9112_v54 = vunpack.i.h.bf16 %v9110_v51  ;;  %v9111_v56 = vunpack.i.l.bf16 %v9110_v51 }
0x1208   :  { %v9120_v53 = vpop.permute.xlu0 %9119 }
0x1209   :  { %v9122_v33 = vunpack.i.h.bf16 %v9120_v53 }
0x1227   :  { %v2766_v5 = vpop.xlane.xlu1 %2765 }
0x1228   :  { %9616 = vrcp.f32 %v2766_v5 }
0x1229   :  { %9618 = vrcp.f32 %v2757_v3  ;;  %v1712_v3 = vsel %vm484_vm1, %v10658_v44, %v9076_v9  ;;  %v1724_v44 = vsel %vm1718_vm3, %v1715_v49, %v9112_v54 }
0x122a   :  { %9620 = vrcp.f32 %v2763_v52  ;;  %v9121_v52 = vunpack.i.l.bf16 %v9120_v53  ;;  %v1733_v11 = vsel %vm1727_vm4, %v1724_v44, %v9122_v33  ;;  %v11302_v53 = vld [vmem:[%s13550_s5] sm:$0xff] }
0x122b   :  { %v2760_v23 = vpop.xlane.xlu1 %2759 }
0x122c   :  { %9622 = vrcp.f32 %v2760_v23 }
0x122f   :  { %v9105_v29 = vpop.permute.xlu1 %9104 }
0x1230   :  { %v9107_v28 = vunpack.i.h.bf16 %v9105_v29  ;;  %v9106_v51 = vunpack.i.l.bf16 %v9105_v29 }
0x1232   :  { %v1717_v46 = vsel %vm484_vm1, %v10670_v48, %v9107_v28 }
0x1233   :  { %v9115_v12 = vpop.permute.xlu1 %9114 }
0x1234   :  { %v9117_v38 = vunpack.i.h.bf16 %v9115_v12  ;;  %v9116_v55 = vunpack.i.l.bf16 %v9115_v12 }
0x1235   :  { %v9617_v32 = vpop.eup %9616 }
0x1236   :  { %v9619_v16 = vpop.eup %9618  ;;  %v2782_v30 = vmul.f32 %v9617_v32, %v11195_v20  ;;  %v9086_v20 = vunpack.i.l.bf16 %v11218_v24  ;;  %v1713_v24 = vsel %vm484_vm1, %v10662_v7, %v9077_v62  ;;  %v1726_v29 = vsel %vm1718_vm3, %v1717_v46, %v9117_v38  ;;  %v10047_v46 = vld [vmem:[%s13548_s0 + $0x30] sm:$0xff] }
0x1237   :  { %v9621_v0 = vpop.eup %9620  ;;  %v2779_v19 = vmul.f32 %v9619_v16, %v11171_v57  ;;  %v9097_v57 = vunpack.i.h.bf16 %v11228_v63  ;;  %v1722_v63 = vsel %vm1718_vm3, %v1713_v24, %v9087_v61  ;;  %v9125_v32 = vpop.permute.xlu1 %9124 }
0x1238   :  { %v2781_v14 = vmul.f32 %v9621_v0, %v11167_v39  ;;  %v2996_v39 = vpack.c.bf16 %v1729_v22, %v1728_v17  ;;  %v1721_v5 = vsel %vm1718_vm3, %v1712_v3, %v9086_v20  ;;  %v9127_v13 = vunpack.i.h.bf16 %v9125_v32 }
0x1239   :  { %v9623_v15 = vpop.eup %9622  ;;  %v1731_v1 = vsel %vm1727_vm4, %v1722_v63, %v9097_v57  ;;  %v10043_v63 = vld [vmem:[%s13548_s0 + $0x8] sm:$0xff] }
0x123a   :  { %v2780_v45 = vmul.f32 %v9623_v15, %v11199_v41  ;;  %v9101_v41 = vunpack.i.l.bf16 %v9100_v10  ;;  %v2786_v36 = vpack.c.bf16 %v2782_v30, %v2781_v14  ;;  %v1730_v10 = vsel %vm1727_vm4, %v1721_v5, %v9096_v8  ;;  %v10041_v8 = vld [vmem:[%s13548_s0] sm:$0xff] }
0x123b   :  { %v2997_v16 = vpack.c.bf16 %v1731_v1, %v1730_v10  ;;  %v1716_v15 = vsel %vm484_vm1, %v10666_v18, %v9106_v51  ;;  %v1735_v30 = vsel %vm1727_vm4, %v1726_v29, %v9127_v13  ;;  %v13565_v14 = vsub.s32 5, %v10242_v26  ;;  %v10044_v10 = vld [vmem:[%s13548_s0 + $0x18] sm:$0xff]  ;;  %v10045_v51 = vld [vmem:[%s13548_s0 + $0x20] sm:$0xff] }
0x123c   :  { %v2785_v34 = vpack.c.bf16 %v2780_v45, %v2779_v19  ;;  %v1714_v23 = vsel %vm484_vm1, %v10668_v27, %v9101_v41  ;;  %v9126_v27 = vunpack.i.l.bf16 %v9125_v32  ;;  %v1725_v40 = vsel %vm1718_vm3, %v1716_v15, %v9116_v55 }
0x123d   :  { %v1723_v7 = vsel %vm1718_vm3, %v1714_v23, %v9111_v56 }
0x123e   :  { %8566 = vmatprep.mubr.msk.bf16.mxu0 %vm574_vm2, %v2785_v34  ;;  %v1732_v60 = vsel %vm1727_vm4, %v1723_v7, %v9121_v52  ;;  %v1734_v43 = vsel %vm1727_vm4, %v1725_v40, %v9126_v27  ;;  %v11307_v34 = vrot.slane %v11302_v53, %v13565_v14  ;;  %v10046_v27 = vld [vmem:[%s13548_s0 + $0x28] sm:$0xff]  ;;  %v10048_v40 = vld [vmem:[%s13548_s0 + $0x38] sm:$0xff] }
0x123f   :  { %8567 = vmatmul.mubr.msk.bf16.gmra.mxu0 %vm574_vm2, %v2786_v36  ;;  %v2998_v0 = vpack.c.bf16 %v1733_v11, %v1732_v60  ;;  %v2999_v25 = vpack.c.bf16 %v1735_v30, %v1734_v43 }
0x1240   :  { %8574 = vmatprep.mubr.msk.bf16.mxu0 %vm69_vm0, %v2996_v39  ;;  %v10042_v39 = vld [vmem:[%s13548_s0 + $0x10] sm:$0xff] }
0x1247   :  { %8575 = vmatmul.mubr.msk.bf16.vlgmr.msra.gmra.mxu0 %vm69_vm0, %v2997_v16 }
0x1248   :  { %8578 = vmatprep.mubr.msk.bf16.mxu0 %vm69_vm0, %v2998_v0 }
0x124f   :  { %8579 = vmatmul.mubr.msk.bf16.gmra.mxu0 %vm69_vm0, %v2999_v25 }
0x12c0   :  { %v11278_v19 = vpop.f32.mrf.mxu0 }
0x12c2   :  { %v11280_v45 = vpop.f32.mrf.mxu0 }
0x12c4   :  { %v11282_v48 = vpop.f32.mrf.mxu0 }
0x12c5   :  { %v9153_v18 = vpack.i.bf16 %v11282_v48, %v11278_v19 }
0x12c6   :  { %v11286_v62 = vpop.f32.mrf.mxu0 }
0x12ff   :  { %v11288_v17 = vpop.f32.mrf.mxu0 }
0x1301   :  { %v11290_v22 = vpop.f32.mrf.mxu0 }
0x1303   :  { %v11293_v9 = vpop.f32.mrf.mxu0 }
0x1304   :  { %v9183_v61 = vpack.i.bf16 %v11293_v9, %v11288_v17 }
0x1305   :  { %v11297_v20 = vpop.f32.mrf.mxu0 }
0x1307   :  { %v8576_v57 = vpop.f32.mrf.mxu0 }
0x1308   :  { %v3087_v41 = vadd.f32 %v8576_v57, %v11307_v34 }
0x1309   :  { %v3078_v2 = vpop.f32.mrf.mxu0 }
0x130a   :  { %v3079_v12 = vadd.f32 %v3078_v2, %v11307_v34  ;;  %v11319_v33 = vadd.f32 %v10042_v39, %v3087_v41 }
0x130b   :  { %v8577_v36 = vpop.f32.mrf.mxu0 }
0x130c   :  { %v11314_v54 = vadd.f32 %v10041_v8, %v3079_v12  ;;  %v3090_v52 = vadd.f32 %v8577_v36, %v11307_v34  ;;  %v3163_v60 = vsel %vm69_vm0, %v11319_v33, 0.0 }
0x130d   :  { %v3081_v56 = vpop.f32.mrf.mxu0 }
0x130e   :  { %v3082_v24 = vadd.f32 %v3081_v56, %v11307_v34  ;;  %v3157_v3 = vsel %vm69_vm0, %v11314_v54, 0.0  ;;  %v11333_v1 = vadd.f32 %v10044_v10, %v3090_v52 }
0x130f   :  { %v8580_v5 = vpop.f32.mrf.mxu0  ;;  %3158 = vadd.xlane.f32.xlu0 %v3157_v3 }
0x1310   :  { %v11328_v49 = vadd.f32 %v10043_v63, %v3082_v24  ;;  %v3103_v32 = vadd.f32 %v8580_v5, %v11307_v34  ;;  %v3166_v13 = vsel %vm69_vm0, %v11333_v1, 0.0 }
0x1311   :  { %v3094_v23 = vpop.f32.mrf.mxu0 }
0x1312   :  { %v3095_v7 = vadd.f32 %v3094_v23, %v11307_v34  ;;  %v3160_v44 = vsel %vm69_vm0, %v11328_v49, 0.0  ;;  %v11358_v15 = vadd.f32 %v10047_v46, %v3103_v32 }
0x1313   :  { %v8581_v11 = vpop.f32.mrf.mxu0  ;;  %3161 = vadd.xlane.f32.xlu1 %v3160_v44  ;;  %3164 = vadd.xlane.f32.xlu0 %v3163_v60 }
0x1314   :  { %v11344_v16 = vadd.f32 %v10045_v51, %v3095_v7  ;;  %v3106_v38 = vadd.f32 %v8581_v11, %v11307_v34  ;;  %v3175_v57 = vsel %vm69_vm0, %v11358_v15, 0.0 }
0x1315   :  { %v3097_v28 = vpop.f32.mrf.mxu0 }
0x1316   :  { %v3098_v55 = vadd.f32 %v3097_v28, %v11307_v34  ;;  %v11363_v29 = vadd.f32 %v10048_v40, %v3106_v38  ;;  %v3169_v30 = vsel %vm69_vm0, %v11344_v16, 0.0 }
0x1317   :  { %3167 = vadd.xlane.f32.xlu0 %v3166_v13 }
0x1318   :  { %v11353_v0 = vadd.f32 %v10046_v27, %v3098_v55  ;;  %v3178_v25 = vsel %vm69_vm0, %v11363_v29, 0.0 }
0x131a   :  { %v3172_v43 = vsel %vm69_vm0, %v11353_v0, 0.0 }
0x131b   :  { %3173 = vadd.xlane.f32.xlu1 %v3172_v43  ;;  %3170 = vadd.xlane.f32.xlu0 %v3169_v30 }
0x131f   :  { %3179 = vadd.xlane.f32.xlu1 %v3178_v25  ;;  %3176 = vadd.xlane.f32.xlu0 %v3175_v57 }
0x1398   :  { %v3159_v2 = vpop.xlane.xlu0 %3158 }
0x1399   :  { %v3205_v41 = vmul.f32 0.03125, %v3159_v2 }
0x139b   :  { %v11374_v12 = vsub.f32 %v11314_v54, %v3205_v41 }
0x139c   :  { %v3162_v36 = vpop.xlane.xlu1 %3161  ;;  %v3165_v8 = vpop.xlane.xlu0 %3164 }
0x139d   :  { %v3206_v56 = vmul.f32 0.03125, %v3162_v36  ;;  %v3207_v39 = vmul.f32 0.03125, %v3165_v8  ;;  %v3237_v52 = vmul.f32 %v11374_v12, %v11374_v12 }
0x139f   :  { %v11379_v24 = vsub.f32 %v11328_v49, %v3206_v56  ;;  %v11382_v3 = vsub.f32 %v11319_v33, %v3207_v39  ;;  %v3253_v5 = vsel %vm69_vm0, %v3237_v52, 0.0 }
0x13a0   :  { %3254 = vadd.xlane.f32.xlu0 %v3253_v5  ;;  %v3168_v63 = vpop.xlane.xlu0 %3167 }
0x13a1   :  { %v3208_v23 = vmul.f32 0.03125, %v3168_v63  ;;  %v3238_v10 = vmul.f32 %v11379_v24, %v11379_v24  ;;  %v3239_v7 = vmul.f32 %v11382_v3, %v11382_v3 }
0x13a3   :  { %v11390_v44 = vsub.f32 %v11333_v1, %v3208_v23  ;;  %v3256_v60 = vsel %vm69_vm0, %v3238_v10, 0.0  ;;  %v3259_v11 = vsel %vm69_vm0, %v3239_v7, 0.0  ;;  %v13611_v23 = vld [vmem:[#allocation11_spill] sm:$0xff]  ;;  %v9138_v7 = vpack.i.bf16 %v11106_v21, %v11100_v50 }
0x13a4   :  { %3257 = vadd.xlane.f32.xlu1 %v3256_v60  ;;  %v3174_v32 = vpop.xlane.xlu1 %3173  ;;  %3260 = vadd.xlane.f32.xlu0 %v3259_v11  ;;  %v3171_v28 = vpop.xlane.xlu0 %3170  ;;  %v13612_v10 = vpack.i.bf16 %v11018_v4, %v13611_v23  ;;  %v9312_v60 = vld [vmem:[%s13552_s3 + $0x8] sm:$0xff]   ;;  %v13613_v11 = vld [vmem:[#allocation12_spill] sm:$0xff]  ;;  %v9313_v4 = vld [vmem:[%s13552_s3] sm:$0xff]   ;;  %v9148_v50 = vpack.i.bf16 %v11286_v62, %v11280_v45  ;;  %v9168_v45 = vpack.i.bf16 %v11116_v37, %v11110_v47 }
0x13a5   :  { %v3210_v51 = vmul.f32 0.03125, %v3174_v32  ;;  %v3209_v38 = vmul.f32 0.03125, %v3171_v28  ;;  %v3240_v55 = vmul.f32 %v11390_v44, %v11390_v44  ;;  %v13614_v32 = vld [vmem:[#allocation13_spill] sm:$0xff]  ;;  %8590 = vmatprep.subr.bf16.mxu1 %v9312_v60  ;;  %v13615_v21 = vld [vmem:[#allocation15_spill] sm:$0xff]  ;;  %v13617_v62 = vld [vmem:[#allocation16_spill] sm:$0xff] }
0x13a6   :  { %v9128_v28 = vpack.i.bf16 %v13614_v32, %v13613_v11  ;;  %8591 = vmatpush3.bf16.msra.mxu1 %v9312_v60  ;;  %v13619_v58 = vpack.i.bf16 %v13617_v62, %v13618_v42  ;;  %v13563_v60 = vsub.s32 3, %v10242_v26 }
0x13a7   :  { %v11397_v13 = vsub.f32 %v11353_v0, %v3210_v51  ;;  %v11400_v27 = vsub.f32 %v11344_v16, %v3209_v38  ;;  %v3262_v46 = vsel %vm69_vm0, %v3240_v55, 0.0  ;;  %8592 = vmatprep.subr.bf16.mxu1 %v9313_v4  ;;  %v13616_v51 = vld [vmem:[#allocation17_spill] sm:$0xff] }
0x13a8   :  { %v3180_v40 = vpop.xlane.xlu1 %3179  ;;  %3263 = vadd.xlane.f32.xlu1 %v3262_v46  ;;  %v3177_v43 = vpop.xlane.xlu0 %3176  ;;  %v9158_v38 = vpack.i.bf16 %v13616_v51, %v13615_v21 }
0x13a9   :  { %v3212_v30 = vmul.f32 0.03125, %v3180_v40  ;;  %v3211_v25 = vmul.f32 0.03125, %v3177_v43  ;;  %v3242_v57 = vmul.f32 %v11397_v13, %v11397_v13  ;;  %v3241_v2 = vmul.f32 %v11400_v27, %v11400_v27 }
0x13aa   :  { %8593 = vmatpush3.bf16.msra.mxu1 %v9313_v4 }
0x13ab   :  { %v11408_v41 = vsub.f32 %v11363_v29, %v3212_v30  ;;  %v11411_v36 = vsub.f32 %v11358_v15, %v3211_v25  ;;  %v3268_v8 = vsel %vm69_vm0, %v3242_v57, 0.0  ;;  %v3265_v56 = vsel %vm69_vm0, %v3241_v2, 0.0 }
0x13ac   :  { %3269 = vadd.xlane.f32.xlu1 %v3268_v8  ;;  %3266 = vadd.xlane.f32.xlu0 %v3265_v56  ;;  %v13564_v25 = vsub.s32 2, %v10242_v26 }
0x13ad   :  { %v3244_v39 = vmul.f32 %v11408_v41, %v11408_v41  ;;  %v3243_v52 = vmul.f32 %v11411_v36, %v11411_v36 }
0x13af   :  { %v3274_v5 = vsel %vm69_vm0, %v3244_v39, 0.0  ;;  %v3271_v63 = vsel %vm69_vm0, %v3243_v52, 0.0 }
0x13b0   :  { %3275 = vadd.xlane.f32.xlu1 %v3274_v5  ;;  %3272 = vadd.xlane.f32.xlu0 %v3271_v63  ;;  %v11473_v63 = vrot.slane %v11302_v53, %v13564_v25 }
0x13c1   :  { %9134 = vrot.lane.b32.xlu1 %v13612_v10, %s10070_s22 }
0x13c5   :  { %9139 = vrot.lane.b32.xlu1 %v9138_v7, %s10071_s23 }
0x13c6   :  { %9129 = vrot.lane.b32.xlu0 %v9128_v28, %s10070_s22 }
0x13c9   :  { %9144 = vrot.lane.b32.xlu1 %v9143_v35, %s10071_s23  ;;  %v9178_v35 = vpack.i.bf16 %v11297_v20, %v11290_v22 }
0x13ca   :  { %9149 = vrot.lane.b32.xlu0 %v9148_v50, %s10072_s24 }
0x13cd   :  { %9154 = vrot.lane.b32.xlu1 %v9153_v18, %s10072_s24 }
0x13ce   :  { %9159 = vrot.lane.b32.xlu0 %v9158_v38, %s10070_s22 }
0x13d1   :  { %9164 = vrot.lane.b32.xlu1 %v13619_v58, %s10070_s22 }
0x13d2   :  { %9169 = vrot.lane.b32.xlu0 %v9168_v45, %s10071_s23 }
0x13d5   :  { %9174 = vrot.lane.b32.xlu1 %v9173_v59, %s10071_s23 }
0x13d6   :  { %9179 = vrot.lane.b32.xlu0 %v9178_v35, %s10072_s24 }
0x13d9   :  { %9184 = vrot.lane.b32.xlu1 %v9183_v61, %s10072_s24 }
0x1429   :  { %v3255_v47 = vpop.xlane.xlu0 %3254 }
0x142a   :  { %v3301_v37 = vmul.f32 0.03125, %v3255_v47 }
0x142c   :  { %v3317_v19 = vadd.f32 1e-06, %v3301_v37 }
0x142d   :  { %v3258_v48 = vpop.xlane.xlu1 %3257  ;;  %v3261_v18 = vpop.xlane.xlu0 %3260 }
0x142e   :  { %9624 = vrsqrt.f32 %v3317_v19  ;;  %v3302_v55 = vmul.f32 0.03125, %v3258_v48  ;;  %v3303_v22 = vmul.f32 0.03125, %v3261_v18  ;;  %v13620_v48 = vld [vmem:[#allocation6_spill] sm:$0xff] }
0x1430   :  { %v3318_v20 = vadd.f32 1e-06, %v3302_v55  ;;  %v3319_v46 = vadd.f32 1e-06, %v3303_v22 }
0x1431   :  { %v3264_v40 = vpop.xlane.xlu1 %3263 }
0x1432   :  { %9626 = vrsqrt.f32 %v3318_v20  ;;  %v3304_v6 = vmul.f32 0.03125, %v3264_v40 }
0x1433   :  { %9628 = vrsqrt.f32 %v3319_v46 }
0x1434   :  { %v3320_v31 = vadd.f32 1e-06, %v3304_v6 }
0x1435   :  { %v3270_v59 = vpop.xlane.xlu1 %3269  ;;  %v3267_v43 = vpop.xlane.xlu0 %3266 }
0x1436   :  { %9630 = vrsqrt.f32 %v3320_v31  ;;  %v3306_v17 = vmul.f32 0.03125, %v3270_v59  ;;  %v3305_v9 = vmul.f32 0.03125, %v3267_v43 }
0x1438   :  { %v3322_v61 = vadd.f32 1e-06, %v3306_v17  ;;  %v3321_v30 = vadd.f32 1e-06, %v3305_v9 }
0x1439   :  { %v3276_v57 = vpop.xlane.xlu1 %3275  ;;  %v3273_v2 = vpop.xlane.xlu0 %3272 }
0x143a   :  { %9632 = vrsqrt.f32 %v3322_v61  ;;  %v3308_v8 = vmul.f32 0.03125, %v3276_v57  ;;  %v3307_v56 = vmul.f32 0.03125, %v3273_v2 }
0x143b   :  { %v9625_v39 = vpop.eup %9624  ;;  %9634 = vrsqrt.f32 %v3321_v30 }
0x143c   :  { %v3324_v52 = vadd.f32 1e-06, %v3308_v8  ;;  %v3323_v5 = vadd.f32 1e-06, %v3307_v56  ;;  %v3349_v7 = vmul.f32 %v9625_v39, %v11374_v12  ;;  %v11483_v12 = vrot.slane %v11302_v53, %v13563_v60 }
0x143d   :  { %v9135_v23 = vpop.permute.xlu1 %9134  ;;  %v9130_v10 = vpop.permute.xlu0 %9129 }
0x143e   :  { %9636 = vrsqrt.f32 %v3324_v52  ;;  %v9132_v32 = vunpack.i.h.bf16 %v9130_v10  ;;  %v9131_v28 = vunpack.i.l.bf16 %v9130_v10  ;;  %v9137_v51 = vunpack.i.h.bf16 %v9135_v23 }
0x143f   :  { %v9627_v11 = vpop.eup %9626  ;;  %9638 = vrsqrt.f32 %v3323_v5  ;;  %v3369_v62 = vmul.f32 %v11473_v63, %v3349_v7  ;;  %v9136_v19 = vunpack.i.l.bf16 %v9135_v23  ;;  %v13623_v5 = vld [vmem:[#allocation3_spill] sm:$0xff] }
0x1440   :  { %v9629_v4 = vpop.eup %9628  ;;  %v3350_v50 = vmul.f32 %v9627_v11, %v11379_v24  ;;  %v2973_v24 = vsel %vm484_vm1, %v13620_v48, %v9132_v32 }
0x1441   :  { %v3351_v21 = vmul.f32 %v9629_v4, %v11382_v3  ;;  %v9140_v38 = vpop.permute.xlu1 %9139  ;;  %v9150_v45 = vpop.permute.xlu0 %9149  ;;  %v13621_v3 = vld [vmem:[#allocation4_spill] sm:$0xff]  ;;  %v3389_v17 = vadd.f32 %v11483_v12, %v3369_v62  ;;  %v2974_v23 = vsel %vm484_vm1, %v13623_v5, %v9136_v19 }
0x1442   :  { %v9142_v42 = vunpack.i.h.bf16 %v9140_v38  ;;  %v9141_v58 = vunpack.i.l.bf16 %v9140_v38  ;;  %v9152_v35 = vunpack.i.h.bf16 %v9150_v45  ;;  %v9151_v47 = vunpack.i.l.bf16 %v9150_v45 }
0x1443   :  { %v9631_v37 = vpop.eup %9630  ;;  %v2972_v18 = vsel %vm484_vm1, %v13621_v3, %v9131_v28  ;;  %v3370_v55 = vmul.f32 %v11473_v63, %v3350_v50  ;;  %v3371_v22 = vmul.f32 %v11473_v63, %v3351_v21 }
0x1444   :  { %v3352_v20 = vmul.f32 %v9631_v37, %v11390_v44  ;;  %v2980_v46 = vsel %vm1718_vm3, %v2972_v18, %v9141_v58  ;;  %v2981_v40 = vsel %vm1718_vm3, %v2973_v24, %v9142_v42  ;;  %v13622_v44 = vld [vmem:[#allocation5_spill] sm:$0xff]  ;;  %v13624_v24 = vld [vmem:[#allocation8_spill] sm:$0xff] }
0x1445   :  { %v2988_v6 = vsel %vm1727_vm4, %v2980_v46, %v9151_v47  ;;  %v2989_v31 = vsel %vm1727_vm4, %v2981_v40, %v9152_v35  ;;  %v9145_v59 = vpop.permute.xlu1 %9144  ;;  %v9160_v43 = vpop.permute.xlu0 %9159  ;;  %v3390_v9 = vadd.f32 %v11483_v12, %v3370_v55  ;;  %v2975_v8 = vsel %vm484_vm1, %v13622_v44, %v9137_v51 }
0x1446   :  { %v3372_v61 = vmul.f32 %v11473_v63, %v3352_v20  ;;  %v9147_v30 = vunpack.i.h.bf16 %v9145_v59  ;;  %v9146_v57 = vunpack.i.l.bf16 %v9145_v59  ;;  %v3000_v56 = vpack.c.bf16 %v2989_v31, %v2988_v6  ;;  %v13625_v6 = vld [vmem:[#allocation10_spill] sm:$0xff] }
0x1447   :  { %v9633_v2 = vpop.eup %9632  ;;  %v3405_v39 = vpack.c.bf16 %v3390_v9, %v3389_v17  ;;  %v9161_v10 = vunpack.i.l.bf16 %v9160_v43  ;;  %v3391_v7 = vadd.f32 %v11483_v12, %v3371_v22  ;;  %v9162_v28 = vunpack.i.h.bf16 %v9160_v43 }
0x1448   :  { %v9635_v52 = vpop.eup %9634  ;;  %v3392_v11 = vadd.f32 %v11483_v12, %v3372_v61  ;;  %v2982_v32 = vsel %vm1718_vm3, %v2974_v23, %v9146_v57  ;;  %8582 = vmatprep.mubr.msk.bf16.mxu0 %vm69_vm0, %v3000_v56  ;;  %v3354_v51 = vmul.f32 %v9633_v2, %v11397_v13  ;;  %v2983_v38 = vsel %vm1718_vm3, %v2975_v8, %v9147_v30 }
0x1449   :  { %8594 = vmatprep.mubr.msk.bf16.mxu1 %vm69_vm0, %v3405_v39  ;;  %v9155_v4 = vpop.permute.xlu1 %9154  ;;  %v9170_v50 = vpop.permute.xlu0 %9169  ;;  %v3353_v21 = vmul.f32 %v9635_v52, %v11400_v27  ;;  %v2976_v3 = vsel %vm484_vm1, %v13624_v24, %v9161_v10  ;;  %v2977_v31 = vsel %vm484_vm1, %v13625_v6, %v9162_v28  ;;  %v9319_v24 = vld [vmem:[%s13553_s4 + $0x10] sm:$0xff]  }
0x144a   :  { %v9157_v45 = vunpack.i.h.bf16 %v9155_v4  ;;  %v9156_v62 = vunpack.i.l.bf16 %v9155_v4  ;;  %v9171_v42 = vunpack.i.l.bf16 %v9170_v50  ;;  %v9172_v35 = vunpack.i.h.bf16 %v9170_v50  ;;  %v13627_v4 = vld [vmem:[#allocation7_spill] sm:$0xff] }
0x144b   :  { %v9637_v58 = vpop.eup %9636  ;;  %v3406_v47 = vpack.c.bf16 %v3392_v11, %v3391_v7  ;;  %v3373_v37 = vmul.f32 %v11473_v63, %v3353_v21  ;;  %v3374_v19 = vmul.f32 %v11473_v63, %v3354_v51 }
0x144c   :  { %v9639_v48 = vpop.eup %9638  ;;  %v2990_v27 = vsel %vm1727_vm4, %v2982_v32, %v9156_v62  ;;  %v2991_v13 = vsel %vm1727_vm4, %v2983_v38, %v9157_v45  ;;  %v2984_v59 = vsel %vm1718_vm3, %v2976_v3, %v9171_v42  ;;  %v2985_v9 = vsel %vm1718_vm3, %v2977_v31, %v9172_v35  ;;  %v13626_v32 = vld [vmem:[#allocation9_spill] sm:$0xff]  ;;  %v9320_v3 = vld [vmem:[%s13553_s4 + $0x8] sm:$0xff]  }
0x144d   :  { %8595 = vmatmul.mubr.msk.bf16.vlgmr.msra.gmra.mxu1 %vm69_vm0, %v3406_v47  ;;  %v9165_v18 = vpop.permute.xlu1 %9164  ;;  %v9180_v55 = vpop.permute.xlu0 %9179  ;;  %v3001_v22 = vpack.c.bf16 %v2991_v13, %v2990_v27  ;;  %v3393_v20 = vadd.f32 %v11483_v12, %v3373_v37  ;;  %v3394_v46 = vadd.f32 %v11483_v12, %v3374_v19  ;;  %v3355_v40 = vmul.f32 %v9639_v48, %v11411_v36  ;;  %v9314_v35 = vld [vmem:[%s13553_s4 + $0x38] sm:$0xff]   ;;  %v9315_v47 = vld [vmem:[%s13553_s4 + $0x30] sm:$0xff]   ;;  %v9316_v37 = vld [vmem:[%s13553_s4 + $0x28] sm:$0xff]  }
0x144e   :  { %v9182_v43 = vunpack.i.h.bf16 %v9180_v55  ;;  %v9181_v17 = vunpack.i.l.bf16 %v9180_v55  ;;  %v3356_v30 = vmul.f32 %v9637_v58, %v11408_v41  ;;  %v9167_v52 = vunpack.i.h.bf16 %v9165_v18  ;;  %8610 = vmatprep.subr.bf16.mxu0 %v9314_v35  ;;  %v9317_v19 = vld [vmem:[%s13553_s4 + $0x20] sm:$0xff]   ;;  %v9318_v48 = vld [vmem:[%s13553_s4 + $0x18] sm:$0xff]  }
0x144f   :  { %8583 = vmatmul.mubr.msk.bf16.gmra.mxu0 %vm69_vm0, %v3001_v22  ;;  %v3407_v61 = vpack.c.bf16 %v3394_v46, %v3393_v20  ;;  %v3375_v57 = vmul.f32 %v11473_v63, %v3355_v40  ;;  %v9166_v5 = vunpack.i.l.bf16 %v9165_v18  ;;  %v9321_v27 = vld [vmem:[%s13553_s4] sm:$0xff]   ;;  %v13562_v13 = vsub.s32 6, %v10242_v26 }
0x1450   :  { %v2992_v2 = vsel %vm1727_vm4, %v2984_v59, %v9181_v17  ;;  %v2993_v36 = vsel %vm1727_vm4, %v2985_v9, %v9182_v43  ;;  %v3376_v56 = vmul.f32 %v11473_v63, %v3356_v30  ;;  %v2979_v28 = vsel %vm484_vm1, %v13626_v32, %v9167_v52  ;;  %8611 = vmatpush3.bf16.msra.mxu0 %v9314_v35  ;;  %v10050_v52 = vld [vmem:[%s13548_s0 + $0x40] sm:$0xff]  ;;  %v10052_v35 = vld [vmem:[%s13548_s0 + $0x58] sm:$0xff] }
0x1451   :  { %8598 = vmatprep.mubr.msk.bf16.mxu1 %vm69_vm0, %v3407_v61  ;;  %v9175_v44 = vpop.permute.xlu1 %9174  ;;  %v3002_v8 = vpack.c.bf16 %v2993_v36, %v2992_v2  ;;  %v3395_v39 = vadd.f32 %v11483_v12, %v3375_v57  ;;  %v2978_v50 = vsel %vm484_vm1, %v13627_v4, %v9166_v5  ;;  %8612 = vmatprep.subr.bf16.mxu0 %v9315_v47 }
0x1452   :  { %v9177_v23 = vunpack.i.h.bf16 %v9175_v44  ;;  %v9176_v10 = vunpack.i.l.bf16 %v9175_v44  ;;  %v3396_v41 = vadd.f32 %v11483_v12, %v3376_v56  ;;  %v11573_v18 = vrot.slane %v11302_v53, %v13562_v13  ;;  %v10049_v56 = vld [vmem:[%s13548_s0 + $0x50] sm:$0xff] }
0x1453   :  { %8586 = vmatprep.mubr.msk.bf16.mxu0 %vm69_vm0, %v3002_v8 }
0x1454   :  { %v3408_v7 = vpack.c.bf16 %v3396_v41, %v3395_v39  ;;  %v2986_v38 = vsel %vm1718_vm3, %v2978_v50, %v9176_v10  ;;  %v2987_v45 = vsel %vm1718_vm3, %v2979_v28, %v9177_v23  ;;  %8613 = vmatpush3.bf16.msra.mxu0 %v9315_v47 }
0x1455   :  { %v9185_v11 = vpop.permute.xlu1 %9184  ;;  %8614 = vmatprep.subr.bf16.mxu0 %v9316_v37 }
0x1456   :  { %v9187_v21 = vunpack.i.h.bf16 %v9185_v11  ;;  %v9186_v51 = vunpack.i.l.bf16 %v9185_v11  ;;  %8599 = vmatmul.mubr.msk.bf16.gmra.mxu1 %vm69_vm0, %v3408_v7 }
0x1458   :  { %v2994_v62 = vsel %vm1727_vm4, %v2986_v38, %v9186_v51  ;;  %v2995_v42 = vsel %vm1727_vm4, %v2987_v45, %v9187_v21  ;;  %8615 = vmatpush3.bf16.msra.mxu0 %v9316_v37 }
0x1459   :  { %v3003_v58 = vpack.c.bf16 %v2995_v42, %v2994_v62  ;;  %8616 = vmatprep.subr.bf16.mxu0 %v9317_v19  ;;  %v10051_v62 = vld [vmem:[%s13548_s0 + $0x48] sm:$0xff] }
0x145b   :  { %8587 = vmatmul.mubr.msk.bf16.gmra.mxu0 %vm69_vm0, %v3003_v58 }
0x145c   :  { %8617 = vmatpush3.bf16.msra.mxu0 %v9317_v19 }
0x145d   :  { %8618 = vmatprep.subr.bf16.mxu0 %v9318_v48 }
0x1460   :  { %8619 = vmatpush3.bf16.msra.mxu0 %v9318_v48 }
0x1461   :  { %8620 = vmatprep.subr.bf16.mxu0 %v9319_v24 }
0x1464   :  { %8621 = vmatpush3.bf16.msra.mxu0 %v9319_v24 }
0x1465   :  { %8622 = vmatprep.subr.bf16.mxu0 %v9320_v3 }
0x1468   :  { %8623 = vmatpush3.bf16.msra.mxu0 %v9320_v3 }
0x1469   :  { %8624 = vmatprep.subr.bf16.mxu0 %v9321_v27 }
0x146c   :  { %8625 = vmatpush3.bf16.msra.mxu0 %v9321_v27 }
0x150d   :  { %v8596_v55 = vpop.f32.mrf.mxu1 }
0x150e   :  { %v11576_v22 = vadd.f32 %v8596_v55, %v11573_v18 }
0x150f   :  { %v3487_v20 = vpop.f32.mrf.mxu1  ;;  %v8584_v46 = vpop.f32.mrf.mxu0 }
0x1510   :  { %v3568_v40 = vmul.f32 0.044715, %v11576_v22  ;;  %v11580_v6 = vadd.f32 %v3487_v20, %v11573_v18  ;;  %v3119_v31 = vadd.f32 %v8584_v46, %v11307_v34 }
0x1511   :  { %v8597_v59 = vpop.f32.mrf.mxu1  ;;  %v3110_v43 = vpop.f32.mrf.mxu0 }
0x1512   :  { %v3584_v17 = vmul.f32 %v3568_v40, %v11576_v22  ;;  %v3566_v9 = vmul.f32 0.044715, %v11580_v6  ;;  %v11586_v61 = vadd.f32 %v8597_v59, %v11573_v18  ;;  %v3111_v30 = vadd.f32 %v3110_v43, %v11307_v34 }
0x1513   :  { %v3490_v57 = vpop.f32.mrf.mxu1  ;;  %v8585_v2 = vpop.f32.mrf.mxu0  ;;  %v11595_v39 = vadd.f32 %v10049_v56, %v3119_v31 }
0x1514   :  { %v3600_v36 = vmul.f32 %v3584_v17, %v11576_v22  ;;  %v3582_v44 = vmul.f32 %v3566_v9, %v11580_v6  ;;  %v3569_v8 = vmul.f32 0.044715, %v11586_v61  ;;  %v11600_v5 = vadd.f32 %v10050_v52, %v3111_v30 }
0x1515   :  { %v11603_v23 = vadd.f32 %v3490_v57, %v11573_v18  ;;  %v3122_v10 = vadd.f32 %v8585_v2, %v11307_v34  ;;  %v3113_v41 = vpop.f32.mrf.mxu0  ;;  %v3187_v27 = vsel %vm69_vm0, %v11595_v39, 0.0 }
0x1516   :  { %v3616_v7 = vadd.f32 %v3600_v36, %v11576_v22  ;;  %v3598_v11 = vmul.f32 %v3582_v44, %v11580_v6  ;;  %v3585_v32 = vmul.f32 %v3569_v8, %v11586_v61  ;;  %v3114_v28 = vadd.f32 %v3113_v41, %v11307_v34  ;;  %v8600_v50 = vpop.f32.mrf.mxu1 }
0x1517   :  { %v3567_v4 = vmul.f32 0.044715, %v11603_v23  ;;  %v3181_v21 = vsel %vm69_vm0, %v11600_v5, 0.0  ;;  %v11615_v45 = vadd.f32 %v8600_v50, %v11573_v18  ;;  %v11626_v47 = vadd.f32 %v10052_v35, %v3122_v10  ;;  %v10053_v50 = vld [vmem:[%s13548_s0 + $0x60] sm:$0xff] }
0x1518   :  { %v3632_v51 = vmul.f32 0.7978846, %v3616_v7  ;;  %v3601_v38 = vmul.f32 %v3585_v32, %v11586_v61  ;;  %v11620_v42 = vadd.f32 %v10051_v62, %v3114_v28  ;;  %3182 = vadd.xlane.f32.xlu0 %v3181_v21  ;;  %v3503_v37 = vpop.f32.mrf.mxu1  ;;  %v3614_v19 = vadd.f32 %v3598_v11, %v11580_v6  ;;  %v10054_v62 = vld [vmem:[%s13548_s0 + $0x70] sm:$0xff] }
0x1519   :  { %v3583_v58 = vmul.f32 %v3567_v4, %v11603_v23  ;;  %v3572_v24 = vmul.f32 0.044715, %v11615_v45  ;;  %v11632_v3 = vadd.f32 %v3503_v37, %v11573_v18  ;;  %v3190_v2 = vsel %vm69_vm0, %v11626_v47, 0.0 }
0x151a   :  { %v3617_v48 = vadd.f32 %v3601_v38, %v11586_v61  ;;  %9640 = vtanh.f32 %v3632_v51  ;;  %v8601_v20 = vpop.f32.mrf.mxu1  ;;  %v3184_v40 = vsel %vm69_vm0, %v11620_v42, 0.0  ;;  %v3630_v31 = vmul.f32 0.7978846, %v3614_v19 }
0x151b   :  { %v3599_v55 = vmul.f32 %v3583_v58, %v11603_v23  ;;  %v8588_v46 = vpop.f32.mrf.mxu0  ;;  %v3588_v43 = vmul.f32 %v3572_v24, %v11615_v45  ;;  %v3570_v17 = vmul.f32 0.044715, %v11632_v3  ;;  %v11642_v9 = vadd.f32 %v8601_v20, %v11573_v18  ;;  %3185 = vadd.xlane.f32.xlu1 %v3184_v40 }
0x151c   :  { %v3633_v59 = vmul.f32 0.7978846, %v3617_v48  ;;  %3188 = vadd.xlane.f32.xlu0 %v3187_v27  ;;  %v3506_v30 = vpop.f32.mrf.mxu1  ;;  %9642 = vtanh.f32 %v3630_v31  ;;  %v3135_v56 = vadd.f32 %v8588_v46, %v11307_v34 }
0x151d   :  { %v3126_v57 = vpop.f32.mrf.mxu0  ;;  %v3615_v36 = vadd.f32 %v3599_v55, %v11603_v23  ;;  %v3586_v44 = vmul.f32 %v3570_v17, %v11632_v3  ;;  %v3573_v8 = vmul.f32 0.044715, %v11642_v9  ;;  %v3604_v52 = vmul.f32 %v3588_v43, %v11615_v45  ;;  %v10055_v55 = vld [vmem:[%s13548_s0 + $0x68] sm:$0xff] }
0x151e   :  { %9644 = vtanh.f32 %v3633_v59  ;;  %v11652_v10 = vadd.f32 %v3506_v30, %v11573_v18  ;;  %v3127_v41 = vadd.f32 %v3126_v57, %v11307_v34  ;;  %v11667_v58 = vadd.f32 %v10054_v62, %v3135_v56  ;;  %v10056_v59 = vld [vmem:[%s13548_s0 + $0x78] sm:$0xff] }
0x151f   :  { %v8589_v7 = vpop.f32.mrf.mxu0  ;;  %v3631_v11 = vmul.f32 0.7978846, %v3615_v36  ;;  %v3602_v32 = vmul.f32 %v3586_v44, %v11632_v3  ;;  %v3589_v28 = vmul.f32 %v3573_v8, %v11642_v9  ;;  %v3620_v27 = vadd.f32 %v3604_v52, %v11615_v45 }
0x1520   :  { %3191 = vadd.xlane.f32.xlu0 %v3190_v2  ;;  %v3571_v4 = vmul.f32 0.044715, %v11652_v10  ;;  %v11661_v21 = vadd.f32 %v10053_v50, %v3127_v41  ;;  %v3138_v35 = vadd.f32 %v8589_v7, %v11307_v34  ;;  %v3199_v57 = vsel %vm69_vm0, %v11667_v58, 0.0 }
0x1521   :  { %v3129_v51 = vpop.f32.mrf.mxu0  ;;  %9646 = vtanh.f32 %v3631_v11  ;;  %v3605_v38 = vmul.f32 %v3589_v28, %v11642_v9  ;;  %v3618_v24 = vadd.f32 %v3602_v32, %v11632_v3  ;;  %v3636_v31 = vmul.f32 0.7978846, %v3620_v27 }
0x1522   :  { %v3130_v37 = vadd.f32 %v3129_v51, %v11307_v34  ;;  %v3587_v19 = vmul.f32 %v3571_v4, %v11652_v10  ;;  %v3193_v48 = vsel %vm69_vm0, %v11661_v21, 0.0  ;;  %v11686_v43 = vadd.f32 %v10056_v59, %v3138_v35 }
0x1523   :  { %v3621_v46 = vadd.f32 %v3605_v38, %v11642_v9  ;;  %v3634_v40 = vmul.f32 0.7978846, %v3618_v24  ;;  %v3553_v32 = vmul.f32 0.5, %v11586_v61  ;;  %v3550_v4 = vmul.f32 0.5, %v11580_v6 }
0x1524   :  { %v11679_v20 = vadd.f32 %v10055_v55, %v3130_v37  ;;  %3194 = vadd.xlane.f32.xlu0 %v3193_v48  ;;  %v3603_v34 = vmul.f32 %v3587_v19, %v11652_v10  ;;  %v3202_v56 = vsel %vm69_vm0, %v11686_v43, 0.0  ;;  %v3551_v50 = vmul.f32 0.5, %v11603_v23 }
0x1525   :  { %v3637_v30 = vmul.f32 0.7978846, %v3621_v46  ;;  %9648 = vtanh.f32 %v3634_v40  ;;  %v3552_v38 = vmul.f32 0.5, %v11576_v22  ;;  %v3557_v6 = vmul.f32 0.5, %v11642_v9 }
0x1526   :  { %v3196_v17 = vsel %vm69_vm0, %v11679_v20, 0.0  ;;  %v3619_v2 = vadd.f32 %v3603_v34, %v11652_v10  ;;  %9650 = vtanh.f32 %v3636_v31  ;;  %v3554_v31 = vmul.f32 0.5, %v11632_v3 }
0x1527   :  { %3197 = vadd.xlane.f32.xlu1 %v3196_v17  ;;  %v9641_v36 = vpop.eup %9640  ;;  %9652 = vtanh.f32 %v3637_v30  ;;  %v3555_v22 = vmul.f32 0.5, %v11652_v10  ;;  %v3556_v17 = vmul.f32 0.5, %v11615_v45 }
0x1528   :  { %3200 = vadd.xlane.f32.xlu0 %v3199_v57  ;;  %v3635_v44 = vmul.f32 0.7978846, %v3619_v2  ;;  %v3664_v28 = vadd.f32 1.0, %v9641_v36 }
0x1529   :  { %v9643_v8 = vpop.eup %9642 }
0x152a   :  { %9654 = vtanh.f32 %v3635_v44  ;;  %v3662_v7 = vadd.f32 1.0, %v9643_v8  ;;  %v3680_v19 = vmul.f32 %v3664_v28, %v3552_v38 }
0x152b   :  { %v9645_v52 = vpop.eup %9644  ;;  %3203 = vadd.xlane.f32.xlu1 %v3202_v56  ;;  %v13561_v56 = vsub.s32 7, %v10242_v26 }
0x152c   :  { %v3665_v41 = vadd.f32 1.0, %v9645_v52  ;;  %v3678_v35 = vmul.f32 %v3662_v7, %v3550_v4 }
0x152d   :  { %v11707_v3 = vrot.slane %v11302_v53, %v13561_v56 }
0x152e   :  { %v9647_v11 = vpop.eup %9646  ;;  %v3681_v62 = vmul.f32 %v3665_v41, %v3553_v32 }
0x152f   :  { %v3663_v51 = vadd.f32 1.0, %v9647_v11 }
0x1530   :  { %v3695_v27 = vpack.c.bf16 %v3681_v62, %v3680_v19 }
0x1531   :  { %v3679_v37 = vmul.f32 %v3663_v51, %v3551_v50 }
0x1532   :  { %v9649_v24 = vpop.eup %9648 }
0x1533   :  { %v3694_v48 = vpack.c.bf16 %v3679_v37, %v3678_v35  ;;  %v9651_v55 = vpop.eup %9650  ;;  %v3666_v61 = vadd.f32 1.0, %v9649_v24 }
0x1534   :  { %v9653_v46 = vpop.eup %9652  ;;  %v3668_v23 = vadd.f32 1.0, %v9651_v55 }
0x1535   :  { %8626 = vmatprep.mubr.bf16.mxu0 %v3694_v48  ;;  %v3669_v34 = vadd.f32 1.0, %v9653_v46  ;;  %v3682_v57 = vmul.f32 %v3666_v61, %v3554_v31 }
0x1536   :  { %8627 = vmatmul.mubr.bf16.vlgmr.msra.gmra.mxu0 %v3695_v27  ;;  %v3684_v36 = vmul.f32 %v3668_v23, %v3556_v17 }
0x1537   :  { %v9655_v40 = vpop.eup %9654  ;;  %v3685_v30 = vmul.f32 %v3669_v34, %v3557_v6 }
0x1538   :  { %v3667_v59 = vadd.f32 1.0, %v9655_v40 }
0x1539   :  { %v3697_v8 = vpack.c.bf16 %v3685_v30, %v3684_v36 }
0x153a   :  { %v3683_v2 = vmul.f32 %v3667_v59, %v3555_v22 }
0x153c   :  { %v3696_v44 = vpack.c.bf16 %v3683_v2, %v3682_v57 }
0x153e   :  { %8630 = vmatprep.mubr.bf16.mxu0 %v3696_v44 }
0x153f   :  { %8631 = vmatmul.mubr.bf16.gmra.mxu0 %v3697_v8 }
0x15a1   :  { %v3183_v52 = vpop.xlane.xlu0 %3182 }
0x15a2   :  { %v3213_v19 = vmul.f32 0.03125, %v3183_v52 }
0x15a4   :  { %v3186_v24 = vpop.xlane.xlu1 %3185  ;;  %v11739_v61 = vsub.f32 %v11600_v5, %v3213_v19 }
0x15a5   :  { %v3189_v7 = vpop.xlane.xlu0 %3188  ;;  %v3214_v34 = vmul.f32 0.03125, %v3186_v24 }
0x15a6   :  { %v3215_v40 = vmul.f32 0.03125, %v3189_v7  ;;  %v3245_v36 = vmul.f32 %v11739_v61, %v11739_v61 }
0x15a7   :  { %v11752_v30 = vsub.f32 %v11620_v42, %v3214_v34 }
0x15a8   :  { %v11755_v57 = vsub.f32 %v11595_v39, %v3215_v40 }
0x15a9   :  { %v3192_v62 = vpop.xlane.xlu0 %3191 }
0x15aa   :  { %v3216_v2 = vmul.f32 0.03125, %v3192_v62 }
0x15ad   :  { %v3195_v6 = vpop.xlane.xlu0 %3194 }
0x15ae   :  { %v3217_v44 = vmul.f32 0.03125, %v3195_v6 }
0x15b0   :  { %v11775_v7 = vsub.f32 %v11661_v21, %v3217_v44 }
0x15f6   :  { %v8628_v9 = vpop.f32.mrf.mxu0 }
0x15f7   :  { %v3797_v45 = vadd.f32 %v8628_v9, %v11707_v3  ;;  %v3201_v9 = vpop.xlane.xlu0 %3200 }
0x15f8   :  { %v3788_v10 = vpop.f32.mrf.mxu0 }
0x15f9   :  { %v3789_v41 = vadd.f32 %v3788_v10, %v11707_v3  ;;  %v11715_v4 = vadd.f32 %v3797_v45, %v11319_v33  ;;  %v11767_v10 = vsub.f32 %v11626_v47, %v3216_v2  ;;  %v3277_v45 = vsel %vm69_vm0, %v3245_v36, 0.0 }
0x15fa   :  { %v8629_v11 = vpop.f32.mrf.mxu0 }
0x15fb   :  { %v11712_v32 = vadd.f32 %v3789_v41, %v11314_v54  ;;  %13629 = vst [vmem:[#allocation12_spill] sm:$0xff] %v11715_v4  ;;  %v3800_v50 = vadd.f32 %v8629_v11, %v11707_v3  ;;  %v3907_v37 = vsel %vm69_vm0, %v11715_v4, 0.0  ;;  %v3246_v41 = vmul.f32 %v11752_v30, %v11752_v30 }
0x15fc   :  { %v3791_v28 = vpop.f32.mrf.mxu0 }
0x15fd   :  { %13628 = vst [vmem:[#allocation11_spill] sm:$0xff] %v11712_v32  ;;  %v3792_v53 = vadd.f32 %v3791_v28, %v11707_v3  ;;  %v3901_v51 = vsel %vm69_vm0, %v11712_v32, 0.0  ;;  %v11725_v54 = vadd.f32 %v3800_v50, %v11333_v1  ;;  %v3219_v28 = vmul.f32 0.03125, %v3201_v9 }
0x15fe   :  { %3902 = vadd.xlane.f32.xlu0 %v3901_v51  ;;  %v3280_v51 = vsel %vm69_vm0, %v3246_v41, 0.0 }
0x15ff   :  { %v11722_v38 = vadd.f32 %v3792_v53, %v11328_v49  ;;  %v8632_v35 = vpop.f32.mrf.mxu0  ;;  %13631 = vst [vmem:[#allocation15_spill] sm:$0xff] %v11725_v54  ;;  %v3910_v1 = vsel %vm69_vm0, %v11725_v54, 0.0 }
0x1600   :  { %v3813_v27 = vadd.f32 %v8632_v35, %v11707_v3  ;;  %v3248_v35 = vmul.f32 %v11767_v10, %v11767_v10 }
0x1601   :  { %13630 = vst [vmem:[#allocation13_spill] sm:$0xff] %v11722_v38  ;;  %v3904_v33 = vsel %vm69_vm0, %v11722_v38, 0.0  ;;  %v3804_v48 = vpop.f32.mrf.mxu0 }
0x1602   :  { %3905 = vadd.xlane.f32.xlu1 %v3904_v33  ;;  %3908 = vadd.xlane.f32.xlu0 %v3907_v37  ;;  %v3805_v49 = vadd.f32 %v3804_v48, %v11707_v3  ;;  %v11742_v31 = vadd.f32 %v3813_v27, %v11358_v15  ;;  %v3198_v15 = vpop.xlane.xlu1 %3197  ;;  %v11787_v37 = vsub.f32 %v11667_v58, %v3219_v28  ;;  %v3286_v24 = vsel %vm69_vm0, %v3248_v35, 0.0 }
0x1603   :  { %v8633_v55 = vpop.f32.mrf.mxu0  ;;  %v3218_v11 = vmul.f32 0.03125, %v3198_v15  ;;  %v3249_v48 = vmul.f32 %v11775_v7, %v11775_v7 }
0x1604   :  { %v11734_v46 = vadd.f32 %v3805_v49, %v11344_v16  ;;  %13633 = vst [vmem:[#allocation16_spill] sm:$0xff] %v11742_v31  ;;  %v3816_v22 = vadd.f32 %v8633_v55, %v11707_v3 }
0x1605   :  { %v3807_v23 = vpop.f32.mrf.mxu0  ;;  %v11784_v33 = vsub.f32 %v11679_v20, %v3218_v11  ;;  %v3289_v49 = vsel %vm69_vm0, %v3249_v48, 0.0 }
0x1606   :  { %13632 = vst [vmem:[#allocation17_spill] sm:$0xff] %v11734_v46  ;;  %3911 = vadd.xlane.f32.xlu1 %v3910_v1  ;;  %v3808_v59 = vadd.f32 %v3807_v23, %v11707_v3  ;;  %v3913_v16 = vsel %vm69_vm0, %v11734_v46, 0.0  ;;  %v11760_v8 = vadd.f32 %v3816_v22, %v11363_v29  ;;  %v3247_v29 = vmul.f32 %v11755_v57, %v11755_v57  ;;  %v3204_v53 = vpop.xlane.xlu1 %3203 }
0x1607   :  { %3914 = vadd.xlane.f32.xlu0 %v3913_v16  ;;  %v3220_v19 = vmul.f32 0.03125, %v3204_v53  ;;  %v3250_v55 = vmul.f32 %v11784_v33, %v11784_v33  ;;  %v3251_v1 = vmul.f32 %v11787_v37, %v11787_v37 }
0x1608   :  { %v11749_v17 = vadd.f32 %v3808_v59, %v11353_v0  ;;  %13635 = vst [vmem:[#allocation6_spill] sm:$0xff] %v11760_v8  ;;  %v3919_v0 = vsel %vm69_vm0, %v11742_v31, 0.0  ;;  %v3922_v50 = vsel %vm69_vm0, %v11760_v8, 0.0  ;;  %v3283_v62 = vsel %vm69_vm0, %v3247_v29, 0.0 }
0x1609   :  { %v11793_v27 = vsub.f32 %v11686_v43, %v3220_v19  ;;  %v3292_v34 = vsel %vm69_vm0, %v3250_v55, 0.0  ;;  %v3295_v40 = vsel %vm69_vm0, %v3251_v1, 0.0 }
0x160a   :  { %13634 = vst [vmem:[#allocation14_spill] sm:$0xff] %v11749_v17  ;;  %v3916_v52 = vsel %vm69_vm0, %v11749_v17, 0.0 }
0x160b   :  { %3917 = vadd.xlane.f32.xlu1 %v3916_v52  ;;  %3920 = vadd.xlane.f32.xlu0 %v3919_v0  ;;  %v3252_v6 = vmul.f32 %v11793_v27, %v11793_v27 }
0x160d   :  { %v3298_v23 = vsel %vm69_vm0, %v3252_v6, 0.0 }
0x160f   :  { %3923 = vadd.xlane.f32.xlu1 %v3922_v50  ;;  %3278 = vadd.xlane.f32.xlu0 %v3277_v45 }
0x1613   :  { %3281 = vadd.xlane.f32.xlu1 %v3280_v51  ;;  %3284 = vadd.xlane.f32.xlu0 %v3283_v62 }
0x1617   :  { %3287 = vadd.xlane.f32.xlu1 %v3286_v24  ;;  %3290 = vadd.xlane.f32.xlu0 %v3289_v49 }
0x161b   :  { %3293 = vadd.xlane.f32.xlu1 %v3292_v34  ;;  %3296 = vadd.xlane.f32.xlu0 %v3295_v40 }
0x161f   :  { %3299 = vadd.xlane.f32.xlu1 %v3298_v23 }
0x1687   :  { %v3903_v22 = vpop.xlane.xlu0 %3902 }
0x1688   :  { %v3949_v59 = vmul.f32 0.03125, %v3903_v22 }
0x168a   :  { %v11806_v16 = vsub.f32 %v11712_v32, %v3949_v59 }
0x168b   :  { %v3906_v2 = vpop.xlane.xlu1 %3905  ;;  %v3909_v15 = vpop.xlane.xlu0 %3908 }
0x168c   :  { %v3950_v36 = vmul.f32 0.03125, %v3906_v2  ;;  %v3951_v44 = vmul.f32 0.03125, %v3909_v15  ;;  %v3981_v52 = vmul.f32 %v11806_v16, %v11806_v16 }
0x168e   :  { %v11811_v0 = vsub.f32 %v11722_v38, %v3950_v36  ;;  %v11814_v9 = vsub.f32 %v11715_v4, %v3951_v44  ;;  %v3997_v45 = vsel %vm69_vm0, %v3981_v52, 0.0 }
0x168f   :  { %v3912_v41 = vpop.xlane.xlu1 %3911  ;;  %3998 = vadd.xlane.f32.xlu0 %v3997_v45 }
0x1690   :  { %v3952_v29 = vmul.f32 0.03125, %v3912_v41  ;;  %v3982_v11 = vmul.f32 %v11811_v0, %v11811_v0  ;;  %v3983_v28 = vmul.f32 %v11814_v9, %v11814_v9  ;;  %v3915_v50 = vpop.xlane.xlu0 %3914 }
0x1691   :  { %v3953_v51 = vmul.f32 0.03125, %v3915_v50 }
0x1692   :  { %v11822_v53 = vsub.f32 %v11725_v54, %v3952_v29  ;;  %v4000_v62 = vsel %vm69_vm0, %v3982_v11, 0.0  ;;  %v4003_v35 = vsel %vm69_vm0, %v3983_v28, 0.0 }
0x1693   :  { %4001 = vadd.xlane.f32.xlu1 %v4000_v62  ;;  %4004 = vadd.xlane.f32.xlu0 %v4003_v35  ;;  %v11827_v19 = vsub.f32 %v11734_v46, %v3953_v51  ;;  %v9322_v51 = vld [vmem:[%s13549_s1 + $0x18] sm:$0xff]  }
0x1694   :  { %v3984_v48 = vmul.f32 %v11822_v53, %v11822_v53  ;;  %v3918_v24 = vpop.xlane.xlu1 %3917  ;;  %v3921_v49 = vpop.xlane.xlu0 %3920  ;;  %8642 = vmatprep.subr.bf16.mxu1 %v9322_v51 }
0x1695   :  { %v3954_v55 = vmul.f32 0.03125, %v3918_v24  ;;  %v3955_v1 = vmul.f32 0.03125, %v3921_v49  ;;  %v3985_v40 = vmul.f32 %v11827_v19, %v11827_v19  ;;  %8643 = vmatpush3.bf16.msra.mxu1 %v9322_v51 }
0x1696   :  { %v4006_v34 = vsel %vm69_vm0, %v3984_v48, 0.0 }
0x1697   :  { %4007 = vadd.xlane.f32.xlu1 %v4006_v34  ;;  %v11835_v6 = vsub.f32 %v11749_v17, %v3954_v55  ;;  %v11838_v23 = vsub.f32 %v11742_v31, %v3955_v1  ;;  %v4009_v22 = vsel %vm69_vm0, %v3985_v40, 0.0 }
0x1698   :  { %v3924_v59 = vpop.xlane.xlu1 %3923  ;;  %4010 = vadd.xlane.f32.xlu0 %v4009_v22  ;;  %v3279_v2 = vpop.xlane.xlu0 %3278 }
0x1699   :  { %v3956_v15 = vmul.f32 0.03125, %v3924_v59  ;;  %v3309_v36 = vmul.f32 0.03125, %v3279_v2  ;;  %v3986_v44 = vmul.f32 %v11835_v6, %v11835_v6  ;;  %v3987_v52 = vmul.f32 %v11838_v23, %v11838_v23 }
0x169b   :  { %v11846_v45 = vsub.f32 %v11760_v8, %v3956_v15  ;;  %v3325_v41 = vadd.f32 1e-06, %v3309_v36  ;;  %v4012_v29 = vsel %vm69_vm0, %v3986_v44, 0.0  ;;  %v4015_v11 = vsel %vm69_vm0, %v3987_v52, 0.0 }
0x169c   :  { %v3282_v28 = vpop.xlane.xlu1 %3281  ;;  %4013 = vadd.xlane.f32.xlu1 %v4012_v29  ;;  %4016 = vadd.xlane.f32.xlu0 %v4015_v11  ;;  %v3285_v50 = vpop.xlane.xlu0 %3284 }
0x169d   :  { %9656 = vrsqrt.f32 %v3325_v41  ;;  %v3310_v62 = vmul.f32 0.03125, %v3282_v28  ;;  %v3311_v35 = vmul.f32 0.03125, %v3285_v50  ;;  %v3988_v48 = vmul.f32 %v11846_v45, %v11846_v45 }
0x169f   :  { %v3326_v24 = vadd.f32 1e-06, %v3310_v62  ;;  %v3327_v49 = vadd.f32 1e-06, %v3311_v35  ;;  %v4018_v55 = vsel %vm69_vm0, %v3988_v48, 0.0 }
0x16a0   :  { %4019 = vadd.xlane.f32.xlu1 %v4018_v55  ;;  %v3288_v1 = vpop.xlane.xlu1 %3287  ;;  %v3291_v34 = vpop.xlane.xlu0 %3290 }
0x16a1   :  { %9658 = vrsqrt.f32 %v3326_v24  ;;  %v3312_v40 = vmul.f32 0.03125, %v3288_v1  ;;  %v3313_v22 = vmul.f32 0.03125, %v3291_v34 }
0x16a2   :  { %9660 = vrsqrt.f32 %v3327_v49 }
0x16a3   :  { %v3328_v59 = vadd.f32 1e-06, %v3312_v40  ;;  %v3329_v2 = vadd.f32 1e-06, %v3313_v22 }
0x16a4   :  { %v3294_v15 = vpop.xlane.xlu1 %3293  ;;  %v3297_v36 = vpop.xlane.xlu0 %3296 }
0x16a5   :  { %9662 = vrsqrt.f32 %v3328_v59  ;;  %v3314_v44 = vmul.f32 0.03125, %v3294_v15  ;;  %v3315_v52 = vmul.f32 0.03125, %v3297_v36 }
0x16a6   :  { %9664 = vrsqrt.f32 %v3329_v2 }
0x16a7   :  { %v3330_v41 = vadd.f32 1e-06, %v3314_v44  ;;  %v3331_v29 = vadd.f32 1e-06, %v3315_v52 }
0x16a8   :  { %v3300_v11 = vpop.xlane.xlu1 %3299 }
0x16a9   :  { %9666 = vrsqrt.f32 %v3330_v41  ;;  %v3316_v28 = vmul.f32 0.03125, %v3300_v11 }
0x16aa   :  { %v9657_v50 = vpop.eup %9656  ;;  %9668 = vrsqrt.f32 %v3331_v29 }
0x16ab   :  { %v3332_v51 = vadd.f32 1e-06, %v3316_v28  ;;  %v3357_v62 = vmul.f32 %v9657_v50, %v11739_v61 }
0x16ad   :  { %9670 = vrsqrt.f32 %v3332_v51  ;;  %v3377_v49 = vmul.f32 %v11473_v63, %v3357_v62 }
0x16ae   :  { %v9659_v35 = vpop.eup %9658 }
0x16af   :  { %v9661_v48 = vpop.eup %9660  ;;  %v3358_v24 = vmul.f32 %v9659_v35, %v11752_v30  ;;  %v3397_v59 = vadd.f32 %v11483_v12, %v3377_v49  ;;  %v9323_v30 = vld [vmem:[%s13549_s1 + $0x10] sm:$0xff]  }
0x16b0   :  { %v3359_v55 = vmul.f32 %v9661_v48, %v11755_v57  ;;  %8644 = vmatprep.subr.bf16.mxu1 %v9323_v30 }
0x16b1   :  { %v3378_v1 = vmul.f32 %v11473_v63, %v3358_v24  ;;  %8645 = vmatpush3.bf16.msra.mxu1 %v9323_v30 }
0x16b2   :  { %v9663_v34 = vpop.eup %9662  ;;  %v3379_v40 = vmul.f32 %v11473_v63, %v3359_v55 }
0x16b3   :  { %v9665_v22 = vpop.eup %9664  ;;  %v3398_v2 = vadd.f32 %v11483_v12, %v3378_v1  ;;  %v3360_v61 = vmul.f32 %v9663_v34, %v11767_v10 }
0x16b4   :  { %v3361_v15 = vmul.f32 %v9665_v22, %v11775_v7  ;;  %v3399_v52 = vadd.f32 %v11483_v12, %v3379_v40 }
0x16b5   :  { %v3409_v36 = vpack.c.bf16 %v3398_v2, %v3397_v59  ;;  %v3380_v57 = vmul.f32 %v11473_v63, %v3360_v61 }
0x16b6   :  { %v9667_v44 = vpop.eup %9666  ;;  %v3381_v7 = vmul.f32 %v11473_v63, %v3361_v15 }
0x16b7   :  { %v9669_v41 = vpop.eup %9668  ;;  %8602 = vmatprep.mubr.msk.bf16.mxu1 %vm69_vm0, %v3409_v36  ;;  %v3400_v29 = vadd.f32 %v11483_v12, %v3380_v57  ;;  %v3362_v10 = vmul.f32 %v9667_v44, %v11784_v33 }
0x16b8   :  { %v3363_v11 = vmul.f32 %v9669_v41, %v11787_v37  ;;  %v3401_v62 = vadd.f32 %v11483_v12, %v3381_v7 }
0x16b9   :  { %v3410_v28 = vpack.c.bf16 %v3400_v29, %v3399_v52  ;;  %v3382_v50 = vmul.f32 %v11473_v63, %v3362_v10 }
0x16ba   :  { %v9671_v51 = vpop.eup %9670  ;;  %v3383_v24 = vmul.f32 %v11473_v63, %v3363_v11  ;;  %v11890_v11 = vld [vmem:[%s13550_s5 + $0x8] sm:$0xff] }
0x16bb   :  { %8603 = vmatmul.mubr.msk.bf16.gmra.mxu1 %vm69_vm0, %v3410_v28  ;;  %v3402_v35 = vadd.f32 %v11483_v12, %v3382_v50  ;;  %v3364_v48 = vmul.f32 %v9671_v51, %v11793_v27 }
0x16bc   :  { %v3403_v37 = vadd.f32 %v11483_v12, %v3383_v24 }
0x16bd   :  { %v3411_v33 = vpack.c.bf16 %v3402_v35, %v3401_v62  ;;  %v3384_v49 = vmul.f32 %v11473_v63, %v3364_v48  ;;  %v13636_v35 = vsub.s32 0, %v10242_v26 }
0x16bf   :  { %8606 = vmatprep.mubr.msk.bf16.mxu1 %vm69_vm0, %v3411_v33  ;;  %v3404_v55 = vadd.f32 %v11483_v12, %v3384_v49  ;;  %v11895_v48 = vrot.slane %v11890_v11, %v13636_v35 }
0x16c1   :  { %v3412_v1 = vpack.c.bf16 %v3404_v55, %v3403_v37 }
0x16c3   :  { %8607 = vmatmul.mubr.msk.bf16.gmra.mxu1 %vm69_vm0, %v3412_v1  ;;  %v13637_v1 = vsub.s32 1, %v10242_v26 }
0x1718   :  { %v3999_v34 = vpop.xlane.xlu0 %3998 }
0x1719   :  { %v4045_v40 = vmul.f32 0.03125, %v3999_v34  ;;  %v11901_v34 = vrot.slane %v11890_v11, %v13637_v1 }
0x171b   :  { %v4061_v22 = vadd.f32 1e-06, %v4045_v40 }
0x171c   :  { %v4002_v59 = vpop.xlane.xlu1 %4001  ;;  %v4005_v2 = vpop.xlane.xlu0 %4004 }
0x171d   :  { %9672 = vrsqrt.f32 %v4061_v22  ;;  %v4046_v27 = vmul.f32 0.03125, %v4002_v59  ;;  %v4047_v61 = vmul.f32 0.03125, %v4005_v2 }
0x171f   :  { %v4062_v15 = vadd.f32 1e-06, %v4046_v27  ;;  %v4063_v30 = vadd.f32 1e-06, %v4047_v61 }
0x1720   :  { %v4008_v63 = vpop.xlane.xlu1 %4007 }
0x1721   :  { %9674 = vrsqrt.f32 %v4062_v15  ;;  %v4048_v36 = vmul.f32 0.03125, %v4008_v63  ;;  %v4011_v57 = vpop.xlane.xlu0 %4010 }
0x1722   :  { %9676 = vrsqrt.f32 %v4063_v30  ;;  %v4049_v12 = vmul.f32 0.03125, %v4011_v57 }
0x1723   :  { %v4064_v44 = vadd.f32 1e-06, %v4048_v36 }
0x1724   :  { %v4065_v52 = vadd.f32 1e-06, %v4049_v12 }
0x1725   :  { %9678 = vrsqrt.f32 %v4064_v44  ;;  %v4014_v41 = vpop.xlane.xlu1 %4013  ;;  %v4017_v29 = vpop.xlane.xlu0 %4016 }
0x1726   :  { %9680 = vrsqrt.f32 %v4065_v52  ;;  %v4050_v10 = vmul.f32 0.03125, %v4014_v41  ;;  %v4051_v7 = vmul.f32 0.03125, %v4017_v29 }
0x1728   :  { %v4066_v28 = vadd.f32 1e-06, %v4050_v10  ;;  %v4067_v50 = vadd.f32 1e-06, %v4051_v7 }
0x1729   :  { %v4020_v62 = vpop.xlane.xlu1 %4019 }
0x172a   :  { %v9673_v51 = vpop.eup %9672  ;;  %9682 = vrsqrt.f32 %v4066_v28  ;;  %v4052_v24 = vmul.f32 0.03125, %v4020_v62 }
0x172b   :  { %v4093_v33 = vmul.f32 %v9673_v51, %v11806_v16  ;;  %9684 = vrsqrt.f32 %v4067_v50 }
0x172c   :  { %v4068_v49 = vadd.f32 1e-06, %v4052_v24 }
0x172d   :  { %v4113_v22 = vmul.f32 %v11895_v48, %v4093_v33 }
0x172e   :  { %v9675_v37 = vpop.eup %9674  ;;  %9686 = vrsqrt.f32 %v4068_v49 }
0x172f   :  { %v9677_v55 = vpop.eup %9676  ;;  %v4094_v40 = vmul.f32 %v9675_v37, %v11811_v0  ;;  %v4133_v15 = vadd.f32 %v11901_v34, %v4113_v22 }
0x1730   :  { %v4095_v59 = vmul.f32 %v9677_v55, %v11814_v9 }
0x1731   :  { %v4114_v2 = vmul.f32 %v11895_v48, %v4094_v40 }
0x1732   :  { %v9679_v27 = vpop.eup %9678  ;;  %v4115_v16 = vmul.f32 %v11895_v48, %v4095_v59 }
0x1733   :  { %v4096_v61 = vmul.f32 %v9679_v27, %v11822_v53  ;;  %v4134_v30 = vadd.f32 %v11901_v34, %v4114_v2  ;;  %v9681_v63 = vpop.eup %9680 }
0x1734   :  { %v4097_v0 = vmul.f32 %v9681_v63, %v11827_v19  ;;  %v4135_v9 = vadd.f32 %v11901_v34, %v4115_v16 }
0x1735   :  { %v4116_v36 = vmul.f32 %v11895_v48, %v4096_v61  ;;  %v4149_v57 = vpack.c.bf16 %v4134_v30, %v4133_v15 }
0x1736   :  { %v4117_v29 = vmul.f32 %v11895_v48, %v4097_v0 }
0x1737   :  { %8646 = vmatprep.mubr.msk.bf16.mxu1 %vm69_vm0, %v4149_v57  ;;  %v4136_v44 = vadd.f32 %v11901_v34, %v4116_v36  ;;  %v9683_v12 = vpop.eup %9682 }
0x1738   :  { %v9685_v52 = vpop.eup %9684  ;;  %v4098_v53 = vmul.f32 %v9683_v12, %v11835_v6  ;;  %v4137_v28 = vadd.f32 %v11901_v34, %v4117_v29 }
0x1739   :  { %v4150_v41 = vpack.c.bf16 %v4136_v44, %v4135_v9  ;;  %v4099_v10 = vmul.f32 %v9685_v52, %v11838_v23 }
0x173a   :  { %v4118_v7 = vmul.f32 %v11895_v48, %v4098_v53 }
0x173b   :  { %8647 = vmatmul.mubr.msk.bf16.vlgmr.msra.gmra.mxu1 %vm69_vm0, %v4150_v41  ;;  %v9687_v19 = vpop.eup %9686  ;;  %v4119_v62 = vmul.f32 %v11895_v48, %v4099_v10 }
0x173c   :  { %v4138_v50 = vadd.f32 %v11901_v34, %v4118_v7  ;;  %v4100_v51 = vmul.f32 %v9687_v19, %v11846_v45 }
0x173d   :  { %v4139_v23 = vadd.f32 %v11901_v34, %v4119_v62 }
0x173e   :  { %v4151_v35 = vpack.c.bf16 %v4138_v50, %v4137_v28  ;;  %v4120_v6 = vmul.f32 %v11895_v48, %v4100_v51 }
0x1740   :  { %8650 = vmatprep.mubr.msk.bf16.mxu1 %vm69_vm0, %v4151_v35  ;;  %v4140_v24 = vadd.f32 %v11901_v34, %v4120_v6 }
0x1742   :  { %v4152_v33 = vpack.c.bf16 %v4140_v24, %v4139_v23 }
0x1744   :  { %8651 = vmatmul.mubr.msk.bf16.gmra.mxu1 %vm69_vm0, %v4152_v33 }
0x177b   :  { %v8604_v49 = vpop.f32.mrf.mxu1 }
0x177c   :  { %v11931_v37 = vadd.f32 %v8604_v49, %v11573_v18 }
0x177d   :  { %v3519_v55 = vpop.f32.mrf.mxu1 }
0x177e   :  { %v3576_v45 = vmul.f32 0.044715, %v11931_v37  ;;  %v11935_v1 = vadd.f32 %v3519_v55, %v11573_v18 }
0x177f   :  { %v8605_v40 = vpop.f32.mrf.mxu1 }
0x1780   :  { %v3592_v22 = vmul.f32 %v3576_v45, %v11931_v37  ;;  %v3574_v59 = vmul.f32 0.044715, %v11935_v1  ;;  %v3531_v2 = vadd.f32 %v8605_v40, %v11573_v18 }
0x1781   :  { %v3522_v27 = vpop.f32.mrf.mxu1 }
0x1782   :  { %v3608_v16 = vmul.f32 %v3592_v22, %v11931_v37  ;;  %v3590_v61 = vmul.f32 %v3574_v59, %v11935_v1  ;;  %v3577_v15 = vmul.f32 0.044715, %v3531_v2  ;;  %v3523_v30 = vadd.f32 %v3522_v27, %v11573_v18 }
0x1783   :  { %v8608_v63 = vpop.f32.mrf.mxu1 }
0x1784   :  { %v3606_v36 = vmul.f32 %v3590_v61, %v11935_v1  ;;  %v3593_v57 = vmul.f32 %v3577_v15, %v3531_v2  ;;  %v3575_v0 = vmul.f32 0.044715, %v3523_v30  ;;  %v11945_v9 = vadd.f32 %v8608_v63, %v11573_v18 }
0x1785   :  { %v3535_v44 = vpop.f32.mrf.mxu1  ;;  %v3624_v12 = vadd.f32 %v3608_v16, %v11931_v37 }
0x1786   :  { %v3609_v52 = vmul.f32 %v3593_v57, %v3531_v2  ;;  %v3591_v41 = vmul.f32 %v3575_v0, %v3523_v30  ;;  %v3580_v53 = vmul.f32 0.044715, %v11945_v9  ;;  %v11950_v29 = vadd.f32 %v3535_v44, %v11573_v18 }
0x1787   :  { %v8609_v10 = vpop.f32.mrf.mxu1  ;;  %v3622_v7 = vadd.f32 %v3606_v36, %v11935_v1  ;;  %v3640_v19 = vmul.f32 0.7978846, %v3624_v12 }
0x1788   :  { %v3607_v28 = vmul.f32 %v3591_v41, %v3523_v30  ;;  %v3596_v50 = vmul.f32 %v3580_v53, %v11945_v9  ;;  %v3578_v51 = vmul.f32 0.044715, %v11950_v29  ;;  %v3547_v62 = vadd.f32 %v8609_v10, %v11573_v18 }
0x1789   :  { %v3538_v35 = vpop.f32.mrf.mxu1  ;;  %v3638_v6 = vmul.f32 0.7978846, %v3622_v7  ;;  %v3625_v23 = vadd.f32 %v3609_v52, %v3531_v2 }
0x178a   :  { %v3612_v24 = vmul.f32 %v3596_v50, %v11945_v9  ;;  %v3594_v33 = vmul.f32 %v3578_v51, %v11950_v29  ;;  %v3581_v49 = vmul.f32 0.044715, %v3547_v62  ;;  %v3539_v55 = vadd.f32 %v3538_v35, %v11573_v18 }
0x178b   :  { %v3623_v45 = vadd.f32 %v3607_v28, %v3523_v30  ;;  %9688 = vtanh.f32 %v3638_v6  ;;  %v3641_v40 = vmul.f32 0.7978846, %v3625_v23  ;;  %v3561_v51 = vmul.f32 0.5, %v3531_v2 }
0x178c   :  { %v3610_v22 = vmul.f32 %v3594_v33, %v11950_v29  ;;  %v3597_v59 = vmul.f32 %v3581_v49, %v3547_v62  ;;  %v3579_v27 = vmul.f32 0.044715, %v3539_v55  ;;  %9690 = vtanh.f32 %v3640_v19 }
0x178d   :  { %v3639_v16 = vmul.f32 0.7978846, %v3623_v45  ;;  %9692 = vtanh.f32 %v3641_v40  ;;  %v3628_v61 = vadd.f32 %v3612_v24, %v11945_v9  ;;  %v3558_v6 = vmul.f32 0.5, %v11935_v1 }
0x178e   :  { %v3613_v15 = vmul.f32 %v3597_v59, %v3547_v62  ;;  %v3595_v63 = vmul.f32 %v3579_v27, %v3539_v55  ;;  %v3626_v36 = vadd.f32 %v3610_v22, %v11950_v29  ;;  %v3559_v23 = vmul.f32 0.5, %v3523_v30 }
0x178f   :  { %9694 = vtanh.f32 %v3639_v16  ;;  %v3644_v57 = vmul.f32 0.7978846, %v3628_v61  ;;  %v3560_v33 = vmul.f32 0.5, %v11931_v37  ;;  %v3562_v2 = vmul.f32 0.5, %v11950_v29 }
0x1790   :  { %v3611_v0 = vmul.f32 %v3595_v63, %v3539_v55  ;;  %v3642_v18 = vmul.f32 0.7978846, %v3626_v36  ;;  %v3629_v44 = vadd.f32 %v3613_v15, %v3547_v62  ;;  %v3563_v1 = vmul.f32 0.5, %v3539_v55 }
0x1791   :  { %v13638_v29 = vsub.s32 4, %v10242_v26 }
0x1792   :  { %v3627_v12 = vadd.f32 %v3611_v0, %v3539_v55  ;;  %9696 = vtanh.f32 %v3642_v18  ;;  %v3645_v52 = vmul.f32 0.7978846, %v3629_v44  ;;  %v3565_v0 = vmul.f32 0.5, %v3547_v62 }
0x1793   :  { %9698 = vtanh.f32 %v3644_v57  ;;  %v11969_v55 = vrot.slane %v11890_v11, %v13638_v29 }
0x1794   :  { %v3643_v41 = vmul.f32 0.7978846, %v3627_v12  ;;  %9700 = vtanh.f32 %v3645_v52  ;;  %v3564_v12 = vmul.f32 0.5, %v11945_v9 }
0x1796   :  { %9702 = vtanh.f32 %v3643_v41 }
0x1798   :  { %v9689_v53 = vpop.eup %9688 }
0x1799   :  { %v9691_v10 = vpop.eup %9690  ;;  %v3670_v19 = vadd.f32 1.0, %v9689_v53 }
0x179a   :  { %v9693_v7 = vpop.eup %9692  ;;  %v3672_v35 = vadd.f32 1.0, %v9691_v10 }
0x179b   :  { %v3673_v28 = vadd.f32 1.0, %v9693_v7  ;;  %v3686_v40 = vmul.f32 %v3670_v19, %v3558_v6 }
0x179c   :  { %v9695_v50 = vpop.eup %9694  ;;  %v3688_v27 = vmul.f32 %v3672_v35, %v3560_v33 }
0x179d   :  { %v3671_v24 = vadd.f32 1.0, %v9695_v50  ;;  %v3689_v49 = vmul.f32 %v3673_v28, %v3561_v51 }
0x179f   :  { %v9697_v45 = vpop.eup %9696  ;;  %v3687_v22 = vmul.f32 %v3671_v24, %v3559_v23  ;;  %v3699_v15 = vpack.c.bf16 %v3689_v49, %v3688_v27 }
0x17a0   :  { %v9699_v59 = vpop.eup %9698  ;;  %v3674_v63 = vadd.f32 1.0, %v9697_v45 }
0x17a1   :  { %v9701_v16 = vpop.eup %9700  ;;  %v3698_v61 = vpack.c.bf16 %v3687_v22, %v3686_v40  ;;  %v3676_v37 = vadd.f32 1.0, %v9699_v59 }
0x17a2   :  { %v3677_v36 = vadd.f32 1.0, %v9701_v16  ;;  %v3690_v18 = vmul.f32 %v3674_v63, %v3562_v2 }
0x17a3   :  { %v9703_v57 = vpop.eup %9702  ;;  %8634 = vmatprep.mubr.bf16.mxu0 %v3698_v61  ;;  %v3692_v53 = vmul.f32 %v3676_v37, %v3564_v12 }
0x17a4   :  { %8635 = vmatmul.mubr.bf16.gmra.mxu0 %v3699_v15  ;;  %v3675_v30 = vadd.f32 1.0, %v9703_v57  ;;  %v3693_v52 = vmul.f32 %v3677_v36, %v3565_v0 }
0x17a6   :  { %v3691_v44 = vmul.f32 %v3675_v30, %v3563_v1  ;;  %v3701_v10 = vpack.c.bf16 %v3693_v52, %v3692_v53 }
0x17a8   :  { %v3700_v41 = vpack.c.bf16 %v3691_v44, %v3690_v18 }
0x17aa   :  { %8638 = vmatprep.mubr.bf16.mxu0 %v3700_v41 }
0x17ac   :  { %8639 = vmatmul.mubr.bf16.gmra.mxu0 %v3701_v10 }
0x17fb   :  { %v8648_v7 = vpop.f32.mrf.mxu1 }
0x17fc   :  { %v4240_v27 = vadd.f32 %v8648_v7, %v11969_v55 }
0x17fd   :  { %v4231_v19 = vpop.f32.mrf.mxu1 }
0x17fe   :  { %v4232_v50 = vadd.f32 %v4231_v19, %v11969_v55 }
0x17ff   :  { %v8649_v28 = vpop.f32.mrf.mxu1 }
0x1800   :  { %v4243_v22 = vadd.f32 %v8649_v28, %v11969_v55 }
0x1801   :  { %v4234_v62 = vpop.f32.mrf.mxu1 }
0x1802   :  { %v4235_v51 = vadd.f32 %v4234_v62, %v11969_v55  ;;  %v11991_v16 = vpack.c.bf16 %v4243_v22, %v4240_v27 }
0x1804   :  { %v11973_v9 = vpack.c.bf16 %v4235_v51, %v4232_v50  ;;  %v8652_v35 = vpop.f32.mrf.mxu1 }
0x1805   :  { %v4256_v24 = vadd.f32 %v8652_v35, %v11969_v55 }
0x1806   :  { %8670 = vmatprep.mubr.msk.bf16.mxu0 %vm484_vm1, %v11973_v9  ;;  %v4247_v6 = vpop.f32.mrf.mxu1 }
0x1807   :  { %v4248_v11 = vadd.f32 %v4247_v6, %v11969_v55 }
0x1808   :  { %v8653_v23 = vpop.f32.mrf.mxu1 }
0x1809   :  { %v4259_v33 = vadd.f32 %v8653_v23, %v11969_v55 }
0x180a   :  { %v4250_v49 = vpop.f32.mrf.mxu1 }
0x180b   :  { %v11980_v45 = vpack.c.bf16 %v4259_v33, %v4256_v24  ;;  %v4251_v40 = vadd.f32 %v4250_v49, %v11969_v55 }
0x180d   :  { %v11984_v59 = vpack.c.bf16 %v4251_v40, %v4248_v11  ;;  %4312 = vrot.lane.b32.xlu0 %v11980_v45, %s10059_s11 }
0x180f   :  { %4310 = vrot.lane.b32.xlu1 %v11984_v59, %s10059_s11 }
0x1811   :  { %4598 = vrot.lane.b32.xlu0 %v11980_v45, %s10060_s12 }
0x1813   :  { %4308 = vrot.lane.b32.xlu1 %v11991_v16, %s10059_s11 }
0x1815   :  { %4594 = vrot.lane.b32.xlu0 %v11991_v16, %s10060_s12 }
0x1817   :  { %4306 = vrot.lane.b32.xlu1 %v11973_v9, %s10059_s11 }
0x1819   :  { %4584 = vrot.lane.b32.xlu0 %v11973_v9, %s10061_s13 }
0x181b   :  { %4596 = vrot.lane.b32.xlu1 %v11984_v59, %s10060_s12 }
0x181d   :  { %4588 = vrot.lane.b32.xlu0 %v11984_v59, %s10061_s13 }
0x181f   :  { %4592 = vrot.lane.b32.xlu1 %v11973_v9, %s10060_s12 }
0x1823   :  { %4586 = vrot.lane.b32.xlu1 %v11991_v16, %s10061_s13 }
0x1827   :  { %4590 = vrot.lane.b32.xlu1 %v11980_v45, %s10061_s13 }
0x1864   :  { %v8636_v61 = vpop.f32.mrf.mxu0 }
0x1865   :  { %v3829_v63 = vadd.f32 %v8636_v61, %v11707_v3 }
0x1866   :  { %v3820_v15 = vpop.f32.mrf.mxu0 }
0x1867   :  { %v3821_v36 = vadd.f32 %v3820_v15, %v11707_v3  ;;  %v12019_v30 = vadd.f32 %v3829_v63, %v11595_v39 }
0x1868   :  { %v8637_v57 = vpop.f32.mrf.mxu0 }
0x1869   :  { %v12016_v2 = vadd.f32 %v3821_v36, %v11600_v5  ;;  %13640 = vst [vmem:[#allocation5_spill] sm:$0xff] %v12019_v30  ;;  %v3832_v0 = vadd.f32 %v8637_v57, %v11707_v3  ;;  %v3931_v39 = vsel %vm69_vm0, %v12019_v30, 0.0 }
0x186a   :  { %v3823_v1 = vpop.f32.mrf.mxu0 }
0x186b   :  { %13639 = vst [vmem:[#allocation4_spill] sm:$0xff] %v12016_v2  ;;  %v3824_v37 = vadd.f32 %v3823_v1, %v11707_v3  ;;  %v3925_v18 = vsel %vm69_vm0, %v12016_v2, 0.0  ;;  %v12029_v5 = vadd.f32 %v3832_v0, %v11626_v47 }
0x186c   :  { %v8640_v44 = vpop.f32.mrf.mxu0  ;;  %3926 = vadd.xlane.f32.xlu0 %v3925_v18 }
0x186d   :  { %v12026_v12 = vadd.f32 %v3824_v37, %v11620_v42  ;;  %13642 = vst [vmem:[#allocation8_spill] sm:$0xff] %v12029_v5  ;;  %v3845_v7 = vadd.f32 %v8640_v44, %v11707_v3  ;;  %v3934_v29 = vsel %vm69_vm0, %v12029_v5, 0.0 }
0x186e   :  { %v3836_v52 = vpop.f32.mrf.mxu0 }
0x186f   :  { %13641 = vst [vmem:[#allocation3_spill] sm:$0xff] %v12026_v12  ;;  %v3837_v41 = vadd.f32 %v3836_v52, %v11707_v3  ;;  %v3928_v53 = vsel %vm69_vm0, %v12026_v12, 0.0  ;;  %v12048_v50 = vadd.f32 %v3845_v7, %v11667_v58 }
0x1870   :  { %v8641_v10 = vpop.f32.mrf.mxu0  ;;  %3932 = vadd.xlane.f32.xlu0 %v3931_v39  ;;  %3929 = vadd.xlane.f32.xlu1 %v3928_v53 }
0x1871   :  { %v12038_v42 = vadd.f32 %v3837_v41, %v11661_v21  ;;  %v3848_v47 = vadd.f32 %v8641_v10, %v11707_v3  ;;  %13645 = vst [vmem:[#allocation7_spill] sm:$0xff] %v12048_v50 }
0x1872   :  { %v3839_v19 = vpop.f32.mrf.mxu0 }
0x1873   :  { %13643 = vst [vmem:[#allocation10_spill] sm:$0xff] %v12038_v42  ;;  %v3840_v28 = vadd.f32 %v3839_v19, %v11707_v3  ;;  %v12051_v51 = vadd.f32 %v3848_v47, %v11686_v43  ;;  %v3937_v21 = vsel %vm69_vm0, %v12038_v42, 0.0  ;;  %v3943_v3 = vsel %vm69_vm0, %v12048_v50, 0.0 }
0x1874   :  { %3935 = vadd.xlane.f32.xlu0 %v3934_v29 }
0x1875   :  { %v12045_v62 = vadd.f32 %v3840_v28, %v11679_v20  ;;  %13646 = vst [vmem:[#allocation18_spill] sm:$0xff] %v12051_v51  ;;  %v3946_v20 = vsel %vm69_vm0, %v12051_v51, 0.0 }
0x1877   :  { %13644 = vst [vmem:[#allocation9_spill] sm:$0xff] %v12045_v62  ;;  %v3940_v35 = vsel %vm69_vm0, %v12045_v62, 0.0 }
0x1878   :  { %3938 = vadd.xlane.f32.xlu0 %v3937_v21  ;;  %3941 = vadd.xlane.f32.xlu1 %v3940_v35 }
0x187c   :  { %3944 = vadd.xlane.f32.xlu0 %v3943_v3  ;;  %3947 = vadd.xlane.f32.xlu1 %v3946_v20 }
0x187f   :  { %v4313_v58 = vpop.permute.xlu0 %4312 }
0x1880   :  { %9022 = vmatprep.subr.msk.bf16.mxu0 %vm484_vm1, %v4313_v58  ;;  %v4336_v43 = vsel %vm484_vm1, %v4313_v58, 0 }
0x1881   :  { %8663 = vmatpush3.bf16.xpose.msra.mxu0 %v4336_v43  ;;  %v4311_v6 = vpop.permute.xlu1 %4310 }
0x1882   :  { %9023 = vmatprep.subr.msk.bf16.mxu0 %vm484_vm1, %v4311_v6  ;;  %v4333_v23 = vsel %vm484_vm1, %v4311_v6, 0 }
0x1883   :  { %v4599_v40 = vpop.permute.xlu0 %4598 }
0x1884   :  { %v4622_v22 = vsel %vm484_vm1, %v4599_v40, 0 }
0x1885   :  { %v4309_v24 = vpop.permute.xlu1 %4308 }
0x1886   :  { %v4330_v33 = vsel %vm484_vm1, %v4309_v24, 0 }
0x1887   :  { %v4595_v61 = vpop.permute.xlu0 %4594 }
0x1888   :  { %v4616_v36 = vsel %vm484_vm1, %v4595_v61, 0 }
0x1889   :  { %8665 = vmatpush3.bf16.xpose.msra.mxu0 %v4333_v23  ;;  %v4307_v49 = vpop.permute.xlu1 %4306 }
0x188a   :  { %9024 = vmatprep.subr.msk.bf16.mxu0 %vm484_vm1, %v4309_v24  ;;  %v4327_v11 = vsel %vm484_vm1, %v4307_v49, 0 }
0x188b   :  { %v4585_v15 = vpop.permute.xlu0 %4584 }
0x188d   :  { %v4597_v27 = vpop.permute.xlu1 %4596 }
0x188e   :  { %v4619_v63 = vsel %vm484_vm1, %v4597_v27, 0 }
0x188f   :  { %v4589_v37 = vpop.permute.xlu0 %4588 }
0x1891   :  { %8667 = vmatpush3.bf16.xpose.msra.mxu0 %v4330_v33  ;;  %v4593_v57 = vpop.permute.xlu1 %4592 }
0x1892   :  { %9025 = vmatprep.subr.msk.bf16.mxu0 %vm484_vm1, %v4307_v49  ;;  %v4613_v1 = vsel %vm484_vm1, %v4593_v57, 0 }
0x1895   :  { %v4587_v0 = vpop.permute.xlu1 %4586 }
0x1899   :  { %8669 = vmatpush3.bf16.xpose.msra.mxu0 %v4327_v11  ;;  %v4591_v18 = vpop.permute.xlu1 %4590 }
0x189a   :  { %9026 = vmatprep.subr.msk.bf16.mxu0 %vm484_vm1, %v4599_v40 }
0x18a0   :  { %8671 = vmatmul.mubr.msk.bf16.vlgmr.msra.gmra.mxu0 %vm484_vm1, %v11991_v16 }
0x18a1   :  { %8674 = vmatprep.mubr.msk.bf16.mxu0 %vm484_vm1, %v11984_v59  ;;  %8695 = vmatpush3.bf16.xpose.msra.mxu0 %v4622_v22 }
0x18a2   :  { %9027 = vmatprep.subr.msk.bf16.mxu0 %vm484_vm1, %v4597_v27 }
0x18a8   :  { %8675 = vmatmul.mubr.msk.bf16.gmra.mxu0 %vm484_vm1, %v11980_v45 }
0x18a9   :  { %8697 = vmatpush3.bf16.xpose.msra.mxu0 %v4619_v63  ;;  %8702 = vmatprep.mubr.msk.bf16.mxu0 %vm484_vm1, %v4585_v15 }
0x18aa   :  { %9028 = vmatprep.subr.msk.bf16.mxu0 %vm484_vm1, %v4595_v61 }
0x18b1   :  { %8699 = vmatpush3.bf16.xpose.msra.mxu0 %v4616_v36 }
0x18b2   :  { %9029 = vmatprep.subr.msk.bf16.mxu0 %vm484_vm1, %v4593_v57 }
0x18b9   :  { %8701 = vmatpush3.bf16.xpose.msra.mxu0 %v4613_v1 }
0x18c0   :  { %8703 = vmatmul.mubr.msk.bf16.vlgmr.msra.gmra.mxu0 %vm484_vm1, %v4587_v0 }
0x18c1   :  { %8706 = vmatprep.mubr.msk.bf16.mxu0 %vm484_vm1, %v4589_v37 }
0x18c8   :  { %8707 = vmatmul.mubr.msk.bf16.gmra.mxu0 %vm484_vm1, %v4591_v18 }
0x18f5   :  { %v3927_v44 = vpop.xlane.xlu0 %3926 }
0x18f6   :  { %v3957_v52 = vmul.f32 0.03125, %v3927_v44 }
0x18f8   :  { %v12088_v41 = vsub.f32 %v12016_v2, %v3957_v52 }
0x18f9   :  { %v3933_v39 = vpop.xlane.xlu0 %3932  ;;  %v3930_v53 = vpop.xlane.xlu1 %3929 }
0x18fa   :  { %v3959_v10 = vmul.f32 0.03125, %v3933_v39  ;;  %v3958_v7 = vmul.f32 0.03125, %v3930_v53  ;;  %v3989_v19 = vmul.f32 %v12088_v41, %v12088_v41 }
0x18fc   :  { %v12093_v47 = vsub.f32 %v12019_v30, %v3959_v10  ;;  %v12096_v28 = vsub.f32 %v12026_v12, %v3958_v7  ;;  %v4021_v29 = vsel %vm69_vm0, %v3989_v19, 0.0 }
0x18fd   :  { %4022 = vadd.xlane.f32.xlu0 %v4021_v29  ;;  %v3936_v21 = vpop.xlane.xlu0 %3935 }
0x18fe   :  { %v3960_v35 = vmul.f32 0.03125, %v3936_v21  ;;  %v3991_v3 = vmul.f32 %v12093_v47, %v12093_v47  ;;  %v3990_v20 = vmul.f32 %v12096_v28, %v12096_v28 }
0x1900   :  { %v12104_v58 = vsub.f32 %v12029_v5, %v3960_v35  ;;  %v4027_v43 = vsel %vm69_vm0, %v3991_v3, 0.0  ;;  %v4024_v6 = vsel %vm69_vm0, %v3990_v20, 0.0 }
0x1901   :  { %4028 = vadd.xlane.f32.xlu0 %v4027_v43  ;;  %v3939_v23 = vpop.xlane.xlu0 %3938  ;;  %4025 = vadd.xlane.f32.xlu1 %v4024_v6  ;;  %v3942_v24 = vpop.xlane.xlu1 %3941 }
0x1902   :  { %v3961_v33 = vmul.f32 0.03125, %v3939_v23  ;;  %v3962_v49 = vmul.f32 0.03125, %v3942_v24  ;;  %v3992_v11 = vmul.f32 %v12104_v58, %v12104_v58 }
0x1904   :  { %v12111_v40 = vsub.f32 %v12038_v42, %v3961_v33  ;;  %v12114_v22 = vsub.f32 %v12045_v62, %v3962_v49  ;;  %v4030_v27 = vsel %vm69_vm0, %v3992_v11, 0.0 }
0x1905   :  { %v3945_v61 = vpop.xlane.xlu0 %3944  ;;  %4031 = vadd.xlane.f32.xlu1 %v4030_v27  ;;  %v3948_v15 = vpop.xlane.xlu1 %3947 }
0x1906   :  { %v3963_v63 = vmul.f32 0.03125, %v3945_v61  ;;  %v3964_v36 = vmul.f32 0.03125, %v3948_v15  ;;  %v3993_v57 = vmul.f32 %v12111_v40, %v12111_v40  ;;  %v3994_v1 = vmul.f32 %v12114_v22, %v12114_v22 }
0x1908   :  { %v12122_v0 = vsub.f32 %v12048_v50, %v3963_v63  ;;  %v12125_v37 = vsub.f32 %v12051_v51, %v3964_v36  ;;  %v4033_v18 = vsel %vm69_vm0, %v3993_v57, 0.0  ;;  %v4036_v44 = vsel %vm69_vm0, %v3994_v1, 0.0 }
0x1909   :  { %4034 = vadd.xlane.f32.xlu0 %v4033_v18  ;;  %4037 = vadd.xlane.f32.xlu1 %v4036_v44 }
0x190a   :  { %v3995_v52 = vmul.f32 %v12122_v0, %v12122_v0  ;;  %v3996_v39 = vmul.f32 %v12125_v37, %v12125_v37 }
0x190c   :  { %v4039_v53 = vsel %vm69_vm0, %v3995_v52, 0.0  ;;  %v4042_v10 = vsel %vm69_vm0, %v3996_v39, 0.0 }
0x190d   :  { %4040 = vadd.xlane.f32.xlu0 %v4039_v53  ;;  %4043 = vadd.xlane.f32.xlu1 %v4042_v10 }
0x191e   :  { %4499 = vrot.lane.b32.xlu1 %v11984_v59, %s10062_s14 }
0x1923   :  { %4501 = vrot.lane.b32.xlu0 %v11980_v45, %s10062_s14 }
0x1927   :  { %4497 = vrot.lane.b32.xlu0 %v11991_v16, %s10062_s14 }
0x192b   :  { %4495 = vrot.lane.b32.xlu0 %v11973_v9, %s10062_s14 }
0x1960   :  { %v12143_v7 = vpop.f32.mrf.mxu0 }
0x1961   :  { %v4409_v19 = vsel %vm574_vm2, %v12143_v7, -inf }
0x1962   :  { %4410 = vmax.xlane.f32.xlu0 %v4409_v19  ;;  %v12147_v29 = vpop.f32.mrf.mxu0 }
0x1963   :  { %v4403_v35 = vsel %vm574_vm2, %v12147_v29, -inf }
0x1964   :  { %v12149_v21 = vpop.f32.mrf.mxu0 }
0x1965   :  { %v4412_v3 = vsel %vm574_vm2, %v12149_v21, -inf }
0x1966   :  { %4404 = vmax.xlane.f32.xlu0 %v4403_v35  ;;  %v12155_v20 = vpop.f32.mrf.mxu0  ;;  %4413 = vmax.xlane.f32.xlu1 %v4412_v3 }
0x1967   :  { %v4406_v23 = vsel %vm574_vm2, %v12155_v20, -inf }
0x1968   :  { %v12157_v43 = vpop.f32.mrf.mxu0 }
0x1969   :  { %v4421_v6 = vsel %vm574_vm2, %v12157_v43, -inf }
0x196a   :  { %4422 = vmax.xlane.f32.xlu0 %v4421_v6  ;;  %v12163_v24 = vpop.f32.mrf.mxu0  ;;  %4407 = vmax.xlane.f32.xlu1 %v4406_v23 }
0x196b   :  { %v4415_v49 = vsel %vm574_vm2, %v12163_v24, -inf }
0x196c   :  { %v12165_v33 = vpop.f32.mrf.mxu0 }
0x196d   :  { %v4424_v11 = vsel %vm574_vm2, %v12165_v33, -inf }
0x196e   :  { %4416 = vmax.xlane.f32.xlu0 %v4415_v49  ;;  %v12171_v27 = vpop.f32.mrf.mxu0  ;;  %4425 = vmax.xlane.f32.xlu1 %v4424_v11 }
0x196f   :  { %v4418_v61 = vsel %vm574_vm2, %v12171_v27, -inf }
0x1972   :  { %4419 = vmax.xlane.f32.xlu1 %v4418_v61 }
0x1980   :  { %v12175_v15 = vpop.f32.mrf.mxu0 }
0x1981   :  { %v4695_v63 = vsel %vm574_vm2, %v12175_v15, -inf }
0x1982   :  { %4696 = vmax.xlane.f32.xlu0 %v4695_v63  ;;  %v12179_v36 = vpop.f32.mrf.mxu0 }
0x1983   :  { %4785 = vrot.lane.b32.xlu1 %v11984_v59, %s10063_s15  ;;  %v4689_v57 = vsel %vm574_vm2, %v12179_v36, -inf }
0x1986   :  { %v4023_v1 = vpop.xlane.xlu0 %4022  ;;  %4690 = vmax.xlane.f32.xlu0 %v4689_v57 }
0x1987   :  { %v4053_v18 = vmul.f32 0.03125, %v4023_v1 }
0x1989   :  { %v4069_v44 = vadd.f32 1e-06, %v4053_v18 }
0x198a   :  { %v4029_v52 = vpop.xlane.xlu0 %4028  ;;  %v4026_v39 = vpop.xlane.xlu1 %4025 }
0x198b   :  { %9704 = vrsqrt.f32 %v4069_v44  ;;  %v4055_v53 = vmul.f32 0.03125, %v4029_v52  ;;  %v4054_v10 = vmul.f32 0.03125, %v4026_v39 }
0x198d   :  { %v4071_v19 = vadd.f32 1e-06, %v4055_v53  ;;  %v4070_v35 = vadd.f32 1e-06, %v4054_v10 }
0x198e   :  { %v4032_v3 = vpop.xlane.xlu1 %4031 }
0x198f   :  { %9706 = vrsqrt.f32 %v4071_v19  ;;  %v4056_v6 = vmul.f32 0.03125, %v4032_v3  ;;  %v12186_v3 = vpop.f32.mrf.mxu0 }
0x1990   :  { %9708 = vrsqrt.f32 %v4070_v35 }
0x1991   :  { %v4072_v23 = vadd.f32 1e-06, %v4056_v6 }
0x1992   :  { %v4035_v49 = vpop.xlane.xlu0 %4034  ;;  %v4038_v11 = vpop.xlane.xlu1 %4037 }
0x1993   :  { %9710 = vrsqrt.f32 %v4072_v23  ;;  %v4057_v61 = vmul.f32 0.03125, %v4035_v49  ;;  %v4058_v63 = vmul.f32 0.03125, %v4038_v11 }
0x1995   :  { %v4073_v57 = vadd.f32 1e-06, %v4057_v61  ;;  %v4074_v1 = vadd.f32 1e-06, %v4058_v63  ;;  %v12193_v63 = vpop.f32.mrf.mxu0 }
0x1996   :  { %v4041_v18 = vpop.xlane.xlu0 %4040  ;;  %v4044_v56 = vpop.xlane.xlu1 %4043 }
0x1997   :  { %9712 = vrsqrt.f32 %v4073_v57  ;;  %v4059_v44 = vmul.f32 0.03125, %v4041_v18  ;;  %v4060_v52 = vmul.f32 0.03125, %v4044_v56 }
0x1998   :  { %v9705_v39 = vpop.eup %9704  ;;  %9714 = vrsqrt.f32 %v4074_v1 }
0x1999   :  { %v4075_v53 = vadd.f32 1e-06, %v4059_v44  ;;  %v4076_v10 = vadd.f32 1e-06, %v4060_v52  ;;  %v4101_v35 = vmul.f32 %v9705_v39, %v12088_v41  ;;  %v12200_v39 = vpop.f32.mrf.mxu0 }
0x199a   :  { %v4502_v19 = vpop.permute.xlu0 %4501  ;;  %v4500_v23 = vpop.permute.xlu1 %4499 }
0x199b   :  { %9716 = vrsqrt.f32 %v4075_v53  ;;  %8678 = vmatprep.subr.bf16.mxu1 %v4502_v19  ;;  %v4121_v41 = vmul.f32 %v11895_v48, %v4101_v35 }
0x199c   :  { %v9707_v6 = vpop.eup %9706  ;;  %9718 = vrsqrt.f32 %v4076_v10  ;;  %8679 = vmatpush3.bf16.msra.mxu1 %v4502_v19  ;;  %4787 = vrot.lane.b32.xlu0 %v11980_v45, %s10063_s15 }
0x199d   :  { %v9709_v49 = vpop.eup %9708  ;;  %8680 = vmatprep.subr.bf16.mxu1 %v4500_v23  ;;  %v4103_v56 = vmul.f32 %v9707_v6, %v12093_v47  ;;  %v4141_v52 = vadd.f32 %v11901_v34, %v4121_v41 }
0x199e   :  { %v4498_v11 = vpop.permute.xlu0 %4497  ;;  %v4102_v61 = vmul.f32 %v9709_v49, %v12096_v28  ;;  %v4698_v49 = vsel %vm574_vm2, %v12186_v3, -inf }
0x199f   :  { %v4123_v44 = vmul.f32 %v11895_v48, %v4103_v56 }
0x19a0   :  { %v9711_v57 = vpop.eup %9710  ;;  %8681 = vmatpush3.bf16.msra.mxu1 %v4500_v23  ;;  %v4122_v1 = vmul.f32 %v11895_v48, %v4102_v61  ;;  %v12210_v61 = vpop.f32.mrf.mxu0 }
0x19a1   :  { %8682 = vmatprep.subr.bf16.mxu1 %v4498_v11  ;;  %v4104_v18 = vmul.f32 %v9711_v57, %v12104_v58  ;;  %v4143_v6 = vadd.f32 %v11901_v34, %v4123_v44 }
0x19a2   :  { %v4142_v47 = vadd.f32 %v11901_v34, %v4122_v1  ;;  %v4496_v10 = vpop.permute.xlu0 %4495 }
0x19a3   :  { %v4124_v28 = vmul.f32 %v11895_v48, %v4104_v18 }
0x19a4   :  { %v9713_v53 = vpop.eup %9712  ;;  %8683 = vmatpush3.bf16.msra.mxu1 %v4498_v11  ;;  %v4153_v19 = vpack.c.bf16 %v4142_v47, %v4141_v52 }
0x19a5   :  { %v9715_v35 = vpop.eup %9714  ;;  %8684 = vmatprep.subr.bf16.mxu1 %v4496_v10  ;;  %v4144_v58 = vadd.f32 %v11901_v34, %v4124_v28  ;;  %v4105_v23 = vmul.f32 %v9713_v53, %v12111_v40  ;;  %v12221_v28 = vpop.f32.mrf.mxu0 }
0x19a6   :  { %8654 = vmatprep.mubr.msk.bf16.mxu1 %vm69_vm0, %v4153_v19  ;;  %v4106_v56 = vmul.f32 %v9715_v35, %v12114_v22  ;;  %v4692_v22 = vsel %vm574_vm2, %v12193_v63, -inf }
0x19a7   :  { %4699 = vmax.xlane.f32.xlu1 %v4698_v49  ;;  %v4154_v11 = vpack.c.bf16 %v4144_v58, %v4143_v6  ;;  %v4125_v41 = vmul.f32 %v11895_v48, %v4105_v23  ;;  %v12230_v58 = vpop.f32.mrf.mxu0  ;;  %v4701_v49 = vsel %vm574_vm2, %v12210_v61, -inf }
0x19a8   :  { %v9717_v57 = vpop.eup %9716  ;;  %8685 = vmatpush3.bf16.msra.mxu1 %v4496_v10  ;;  %v4126_v1 = vmul.f32 %v11895_v48, %v4106_v56  ;;  %v4704_v23 = vsel %vm574_vm2, %v12230_v58, -inf }
0x19a9   :  { %v9719_v18 = vpop.eup %9718  ;;  %8655 = vmatmul.mubr.msk.bf16.gmra.mxu1 %vm69_vm0, %v4154_v11  ;;  %v4145_v40 = vadd.f32 %v11901_v34, %v4125_v41  ;;  %v4107_v44 = vmul.f32 %v9717_v57, %v12122_v0  ;;  %v4710_v0 = vsel %vm574_vm2, %v12221_v28, -inf }
0x19aa   :  { %v4146_v52 = vadd.f32 %v11901_v34, %v4126_v1  ;;  %v4108_v47 = vmul.f32 %v9719_v18, %v12125_v37 }
0x19ab   :  { %4693 = vmax.xlane.f32.xlu1 %v4692_v22  ;;  %v4127_v53 = vmul.f32 %v11895_v48, %v4107_v44 }
0x19ac   :  { %v4155_v10 = vpack.c.bf16 %v4146_v52, %v4145_v40  ;;  %v4128_v19 = vmul.f32 %v11895_v48, %v4108_v47  ;;  %v4707_v48 = vsel %vm574_vm2, %v12200_v39, -inf }
0x19ad   :  { %v4147_v35 = vadd.f32 %v11901_v34, %v4127_v53 }
0x19ae   :  { %8658 = vmatprep.mubr.msk.bf16.mxu1 %vm69_vm0, %v4155_v10  ;;  %v4148_v6 = vadd.f32 %v11901_v34, %v4128_v19 }
0x19af   :  { %4711 = vmax.xlane.f32.xlu1 %v4710_v0 }
0x19b0   :  { %v4156_v37 = vpack.c.bf16 %v4148_v6, %v4147_v35 }
0x19b2   :  { %8659 = vmatmul.mubr.msk.bf16.gmra.mxu1 %vm69_vm0, %v4156_v37 }
0x19b3   :  { %4705 = vmax.xlane.f32.xlu1 %v4704_v23 }
0x19bb   :  { %4708 = vmax.xlane.f32.xlu0 %v4707_v48 }
0x19bf   :  { %4702 = vmax.xlane.f32.xlu0 %v4701_v49 }
0x19c4   :  { %4781 = vrot.lane.b32.xlu1 %v11973_v9, %s10063_s15 }
0x19d5   :  { %4783 = vrot.lane.b32.xlu0 %v11991_v16, %s10063_s15 }
0x19eb   :  { %v4411_v34 = vpop.xlane.xlu0 %4410 }
0x19ec   :  { %v4429_v56 = vsub.f32 %v12143_v7, %v4411_v34 }
0x19ee   :  { %v4439_v11 = vmul.f32 1.442695, %v4429_v56 }
0x19ef   :  { %v4405_v41 = vpop.xlane.xlu0 %4404  ;;  %v4414_v57 = vpop.xlane.xlu1 %4413 }
0x19f0   :  { %9720 = vpow2.f32 %v4439_v11  ;;  %v4427_v1 = vsub.f32 %v12147_v29, %v4405_v41  ;;  %v4430_v18 = vsub.f32 %v12149_v21, %v4414_v57 }
0x19f2   :  { %v4435_v40 = vmul.f32 1.442695, %v4427_v1  ;;  %v4441_v44 = vmul.f32 1.442695, %v4430_v18 }
0x19f3   :  { %v4423_v22 = vpop.xlane.xlu0 %4422  ;;  %v4408_v52 = vpop.xlane.xlu1 %4407 }
0x19f4   :  { %9722 = vpow2.f32 %v4435_v40  ;;  %v4433_v47 = vsub.f32 %v12157_v43, %v4423_v22  ;;  %v4428_v53 = vsub.f32 %v12155_v20, %v4408_v52 }
0x19f5   :  { %9724 = vpow2.f32 %v4441_v44 }
0x19f6   :  { %v4447_v10 = vmul.f32 1.442695, %v4433_v47  ;;  %v4437_v7 = vmul.f32 1.442695, %v4428_v53 }
0x19f7   :  { %v4417_v19 = vpop.xlane.xlu0 %4416  ;;  %v4426_v35 = vpop.xlane.xlu1 %4425 }
0x19f8   :  { %9726 = vpow2.f32 %v4447_v10  ;;  %v4431_v0 = vsub.f32 %v12163_v24, %v4417_v19  ;;  %v4434_v29 = vsub.f32 %v12165_v33, %v4426_v35 }
0x19f9   :  { %9728 = vpow2.f32 %v4437_v7 }
0x19fa   :  { %v4443_v21 = vmul.f32 1.442695, %v4431_v0  ;;  %v4449_v6 = vmul.f32 1.442695, %v4434_v29 }
0x19fb   :  { %v4420_v37 = vpop.xlane.xlu1 %4419 }
0x19fc   :  { %9730 = vpow2.f32 %v4443_v21  ;;  %v4432_v23 = vsub.f32 %v12171_v27, %v4420_v37 }
0x19fd   :  { %v12251_v43 = vpop.eup %9720  ;;  %9732 = vpow2.f32 %v4449_v6 }
0x19fe   :  { %v4445_v20 = vmul.f32 1.442695, %v4432_v23  ;;  %v4457_v48 = vsel %vm574_vm2, %v12251_v43, 0.0 }
0x19ff   :  { %4458 = vadd.xlane.f32.xlu0 %v4457_v48 }
0x1a00   :  { %9734 = vpow2.f32 %v4445_v20 }
0x1a01   :  { %v12255_v49 = vpop.eup %9722 }
0x1a02   :  { %v12257_v24 = vpop.eup %9724  ;;  %v4451_v33 = vsel %vm574_vm2, %v12255_v49, 0.0 }
0x1a03   :  { %4452 = vadd.xlane.f32.xlu0 %v4451_v33  ;;  %v4460_v27 = vsel %vm574_vm2, %v12257_v24, 0.0 }
0x1a04   :  { %4461 = vadd.xlane.f32.xlu1 %v4460_v27 }
0x1a05   :  { %v12263_v34 = vpop.eup %9726 }
0x1a06   :  { %v12265_v56 = vpop.eup %9728  ;;  %v4469_v11 = vsel %vm574_vm2, %v12263_v34, 0.0 }
0x1a07   :  { %4470 = vadd.xlane.f32.xlu0 %v4469_v11  ;;  %v4454_v41 = vsel %vm574_vm2, %v12265_v56, 0.0 }
0x1a08   :  { %4455 = vadd.xlane.f32.xlu1 %v4454_v41 }
0x1a09   :  { %v12271_v57 = vpop.eup %9730 }
0x1a0a   :  { %v12273_v1 = vpop.eup %9732  ;;  %v4463_v18 = vsel %vm574_vm2, %v12271_v57, 0.0 }
0x1a0b   :  { %v4697_v40 = vpop.xlane.xlu0 %4696  ;;  %4464 = vadd.xlane.f32.xlu0 %v4463_v18  ;;  %v4472_v44 = vsel %vm574_vm2, %v12273_v1, 0.0 }
0x1a0c   :  { %v4715_v22 = vsub.f32 %v12175_v15, %v4697_v40  ;;  %4473 = vadd.xlane.f32.xlu1 %v4472_v44 }
0x1a0d   :  { %v12280_v52 = vpop.eup %9734 }
0x1a0e   :  { %v4725_v47 = vmul.f32 1.442695, %v4715_v22  ;;  %v4466_v53 = vsel %vm574_vm2, %v12280_v52, 0.0 }
0x1a0f   :  { %v4691_v10 = vpop.xlane.xlu0 %4690 }
0x1a10   :  { %9736 = vpow2.f32 %v4725_v47  ;;  %v4713_v7 = vsub.f32 %v12179_v36, %v4691_v10  ;;  %4467 = vadd.xlane.f32.xlu1 %v4466_v53  ;;  %v12296_v36 = vpop.permute.xlu1 %4785 }
0x1a12   :  { %v4721_v19 = vmul.f32 1.442695, %v4713_v7 }
0x1a13   :  { %v12285_v35 = vpop.permute.xlu0 %4787 }
0x1a14   :  { %9738 = vpow2.f32 %v4721_v19  ;;  %8710 = vmatprep.subr.bf16.mxu1 %v12285_v35 }
0x1a1d   :  { %v12288_v0 = vpop.eup %9736 }
0x1a1e   :  { %v4743_v15 = vsel %vm574_vm2, %v12288_v0, 0.0 }
0x1a1f   :  { %4744 = vadd.xlane.f32.xlu1 %v4743_v15 }
0x1a21   :  { %v12292_v29 = vpop.eup %9738 }
0x1a22   :  { %v4737_v21 = vsel %vm574_vm2, %v12292_v29, 0.0 }
0x1a23   :  { %4738 = vadd.xlane.f32.xlu1 %v4737_v21 }
0x1a30   :  { %v4700_v6 = vpop.xlane.xlu1 %4699 }
0x1a31   :  { %v4716_v37 = vsub.f32 %v12186_v3, %v4700_v6 }
0x1a33   :  { %v4727_v23 = vmul.f32 1.442695, %v4716_v37 }
0x1a34   :  { %v4694_v20 = vpop.xlane.xlu1 %4693 }
0x1a35   :  { %9740 = vpow2.f32 %v4727_v23  ;;  %v4714_v48 = vsub.f32 %v12193_v63, %v4694_v20 }
0x1a37   :  { %v4723_v33 = vmul.f32 1.442695, %v4714_v48 }
0x1a38   :  { %v4712_v27 = vpop.xlane.xlu1 %4711 }
0x1a39   :  { %9742 = vpow2.f32 %v4723_v33  ;;  %v4720_v41 = vsub.f32 %v12221_v28, %v4712_v27 }
0x1a3b   :  { %v4735_v47 = vmul.f32 1.442695, %v4720_v41 }
0x1a3c   :  { %v4706_v40 = vpop.xlane.xlu1 %4705 }
0x1a3d   :  { %v4718_v63 = vsub.f32 %v12230_v58, %v4706_v40 }
0x1a3f   :  { %v4731_v19 = vmul.f32 1.442695, %v4718_v63 }
0x1a42   :  { %v12300_v11 = vpop.eup %9740 }
0x1a43   :  { %v4746_v18 = vsel %vm574_vm2, %v12300_v11, 0.0 }
0x1a44   :  { %v4709_v44 = vpop.xlane.xlu0 %4708  ;;  %4747 = vadd.xlane.f32.xlu1 %v4746_v18 }
0x1a45   :  { %v4719_v3 = vsub.f32 %v12200_v39, %v4709_v44 }
0x1a46   :  { %v12306_v22 = vpop.eup %9742 }
0x1a47   :  { %v4733_v53 = vmul.f32 1.442695, %v4719_v3  ;;  %v4740_v10 = vsel %vm574_vm2, %v12306_v22, 0.0 }
0x1a48   :  { %v4703_v7 = vpop.xlane.xlu0 %4702  ;;  %4741 = vadd.xlane.f32.xlu1 %v4740_v10 }
0x1a49   :  { %9744 = vpow2.f32 %v4733_v53  ;;  %v4717_v28 = vsub.f32 %v12210_v61, %v4703_v7 }
0x1a4a   :  { %9746 = vpow2.f32 %v4735_v47 }
0x1a4b   :  { %v4729_v15 = vmul.f32 1.442695, %v4717_v28 }
0x1a4d   :  { %9748 = vpow2.f32 %v4729_v15 }
0x1a4e   :  { %9750 = vpow2.f32 %v4731_v19 }
0x1a56   :  { %v12312_v39 = vpop.eup %9744 }
0x1a57   :  { %v4755_v21 = vsel %vm574_vm2, %v12312_v39, 0.0  ;;  %v12316_v58 = vpop.eup %9746 }
0x1a58   :  { %4756 = vadd.xlane.f32.xlu0 %v4755_v21  ;;  %v4758_v61 = vsel %vm574_vm2, %v12316_v58, 0.0  ;;  %v4784_v21 = vpop.permute.xlu0 %4783 }
0x1a5a   :  { %v12318_v6 = vpop.eup %9748 }
0x1a5b   :  { %v4749_v37 = vsel %vm574_vm2, %v12318_v6, 0.0  ;;  %v12324_v23 = vpop.eup %9750 }
0x1a5c   :  { %4750 = vadd.xlane.f32.xlu1 %v4749_v37  ;;  %4759 = vadd.xlane.f32.xlu0 %v4758_v61  ;;  %v4752_v20 = vsel %vm574_vm2, %v12324_v23, 0.0  ;;  %v4782_v61 = vpop.permute.xlu1 %4781 }
0x1a60   :  { %4753 = vadd.xlane.f32.xlu0 %v4752_v20 }
0x1a69   :  { %v8656_v48 = vpop.f32.mrf.mxu1 }
0x1a6a   :  { %v4272_v41 = vadd.f32 %v8656_v48, %v11969_v55 }
0x1a6b   :  { %v4263_v33 = vpop.f32.mrf.mxu1 }
0x1a6c   :  { %v4264_v44 = vadd.f32 %v4263_v33, %v11969_v55 }
0x1a6d   :  { %v8657_v27 = vpop.f32.mrf.mxu1  ;;  %4882 = vrot.lane.b32.xlu1 %v11984_v59, %s10064_s16 }
0x1a6e   :  { %v4275_v18 = vadd.f32 %v8657_v27, %v11969_v55 }
0x1a6f   :  { %v4266_v40 = vpop.f32.mrf.mxu1 }
0x1a70   :  { %v12333_v3 = vpack.c.bf16 %v4275_v18, %v4272_v41  ;;  %v4267_v47 = vadd.f32 %v4266_v40, %v11969_v55 }
0x1a71   :  { %4880 = vrot.lane.b32.xlu1 %v11991_v16, %s10064_s16 }
0x1a72   :  { %v12338_v63 = vpack.c.bf16 %v4267_v47, %v4264_v44  ;;  %v8660_v53 = vpop.f32.mrf.mxu1 }
0x1a73   :  { %v4288_v28 = vadd.f32 %v8660_v53, %v11969_v55 }
0x1a74   :  { %v12340_v10 = vpop.f32.mrf.mxu1 }
0x1a75   :  { %4878 = vrot.lane.b32.xlu1 %v11973_v9, %s10064_s16 }
0x1a76   :  { %v8661_v7 = vpop.f32.mrf.mxu1  ;;  %4884 = vrot.lane.b32.xlu0 %v11980_v45, %s10064_s16 }
0x1a77   :  { %v4291_v19 = vadd.f32 %v8661_v7, %v11969_v55 }
0x1a79   :  { %v12348_v15 = vpack.c.bf16 %v4291_v19, %v4288_v28  ;;  %4872 = vrot.lane.b32.xlu1 %v11991_v16, %s10065_s17 }
0x1a7a   :  { %4870 = vrot.lane.b32.xlu0 %v11973_v9, %s10065_s17 }
0x1a7d   :  { %4876 = vrot.lane.b32.xlu1 %v11980_v45, %s10065_s17 }
0x1a7e   :  { %4874 = vrot.lane.b32.xlu0 %v11984_v59, %s10065_s17 }
0x1a88   :  { %v4459_v37 = vpop.xlane.xlu0 %4458 }
0x1a8c   :  { %v4453_v20 = vpop.xlane.xlu0 %4452 }
0x1a8d   :  { %v4462_v48 = vpop.xlane.xlu1 %4461 }
0x1a8e   :  { %9752 = vrcp.f32 %v4462_v48 }
0x1a8f   :  { %9754 = vrcp.f32 %v4453_v20 }
0x1a90   :  { %v4471_v33 = vpop.xlane.xlu0 %4470  ;;  %9756 = vrcp.f32 %v4459_v37 }
0x1a91   :  { %v4456_v27 = vpop.xlane.xlu1 %4455 }
0x1a92   :  { %9758 = vrcp.f32 %v4456_v27 }
0x1a94   :  { %v4465_v41 = vpop.xlane.xlu0 %4464 }
0x1a95   :  { %v4474_v18 = vpop.xlane.xlu1 %4473 }
0x1a96   :  { %9760 = vrcp.f32 %v4474_v18 }
0x1a97   :  { %9762 = vrcp.f32 %v4465_v41 }
0x1a98   :  { %9764 = vrcp.f32 %v4471_v33 }
0x1a99   :  { %v4468_v40 = vpop.xlane.xlu1 %4467 }
0x1a9a   :  { %9766 = vrcp.f32 %v4468_v40 }
0x1a9b   :  { %v9753_v44 = vpop.eup %9752 }
0x1a9c   :  { %v9755_v47 = vpop.eup %9754  ;;  %v4486_v28 = vmul.f32 %v9753_v44, %v12257_v24 }
0x1a9d   :  { %v9757_v53 = vpop.eup %9756  ;;  %v4483_v19 = vmul.f32 %v9755_v47, %v12255_v49 }
0x1a9e   :  { %v4485_v37 = vmul.f32 %v9757_v53, %v12251_v43 }
0x1a9f   :  { %v9759_v7 = vpop.eup %9758 }
0x1aa0   :  { %v4484_v20 = vmul.f32 %v9759_v7, %v12265_v56  ;;  %v4492_v27 = vpack.c.bf16 %v4486_v28, %v4485_v37 }
0x1aa2   :  { %v4491_v48 = vpack.c.bf16 %v4484_v20, %v4483_v19 }
0x1aa3   :  { %v9761_v13 = vpop.eup %9760 }
0x1aa4   :  { %8686 = vmatprep.mubr.msk.bf16.mxu1 %vm574_vm2, %v4491_v48  ;;  %v9763_v33 = vpop.eup %9762  ;;  %v4490_v49 = vmul.f32 %v9761_v13, %v12273_v1 }
0x1aa5   :  { %8687 = vmatmul.mubr.msk.bf16.vlgmr.msra.gmra.mxu1 %vm574_vm2, %v4492_v27  ;;  %v9765_v41 = vpop.eup %9764  ;;  %v4487_v24 = vmul.f32 %v9763_v33, %v12271_v57 }
0x1aa6   :  { %8711 = vmatpush3.bf16.msra.mxu1 %v12285_v35  ;;  %v4489_v56 = vmul.f32 %v9765_v41, %v12263_v34 }
0x1aa7   :  { %v9767_v18 = vpop.eup %9766  ;;  %8712 = vmatprep.subr.bf16.mxu1 %v12296_v36 }
0x1aa8   :  { %v4488_v43 = vmul.f32 %v9767_v18, %v12280_v52  ;;  %v4494_v44 = vpack.c.bf16 %v4490_v49, %v4489_v56  ;;  %v4745_v35 = vpop.xlane.xlu1 %4744 }
0x1aaa   :  { %8713 = vmatpush3.bf16.msra.mxu1 %v12296_v36  ;;  %v4493_v40 = vpack.c.bf16 %v4488_v43, %v4487_v24 }
0x1aab   :  { %8714 = vmatprep.subr.bf16.mxu1 %v4784_v21 }
0x1aac   :  { %8690 = vmatprep.mubr.msk.bf16.mxu1 %vm574_vm2, %v4493_v40  ;;  %v4739_v13 = vpop.xlane.xlu1 %4738 }
0x1aad   :  { %8691 = vmatmul.mubr.msk.bf16.gmra.mxu1 %vm574_vm2, %v4494_v44 }
0x1aae   :  { %8715 = vmatpush3.bf16.msra.mxu1 %v4784_v21 }
0x1aaf   :  { %8716 = vmatprep.subr.bf16.mxu1 %v4782_v61 }
0x1ab2   :  { %8717 = vmatpush3.bf16.msra.mxu1 %v4782_v61 }
0x1acd   :  { %v4748_v1 = vpop.xlane.xlu1 %4747 }
0x1ace   :  { %9768 = vrcp.f32 %v4748_v1 }
0x1acf   :  { %9770 = vrcp.f32 %v4739_v13 }
0x1ad0   :  { %9772 = vrcp.f32 %v4745_v35 }
0x1ad1   :  { %v4742_v57 = vpop.xlane.xlu1 %4741 }
0x1ad2   :  { %9774 = vrcp.f32 %v4742_v57 }
0x1adb   :  { %v9769_v34 = vpop.eup %9768 }
0x1adc   :  { %v9771_v52 = vpop.eup %9770  ;;  %v4772_v53 = vmul.f32 %v9769_v34, %v12300_v11 }
0x1add   :  { %v9773_v36 = vpop.eup %9772  ;;  %v4769_v7 = vmul.f32 %v9771_v52, %v12292_v29  ;;  %v12397_v52 = vpop.f32.mrf.mxu1 }
0x1ade   :  { %v4771_v61 = vmul.f32 %v9773_v36, %v12288_v0 }
0x1adf   :  { %v9775_v47 = vpop.eup %9774 }
0x1ae0   :  { %v4770_v21 = vmul.f32 %v9775_v47, %v12306_v22  ;;  %v4778_v20 = vpack.c.bf16 %v4772_v53, %v4771_v61 }
0x1ae1   :  { %v4757_v28 = vpop.xlane.xlu0 %4756 }
0x1ae2   :  { %v4777_v19 = vpack.c.bf16 %v4770_v21, %v4769_v7 }
0x1ae4   :  { %8718 = vmatprep.mubr.msk.bf16.mxu1 %vm574_vm2, %v4777_v19 }
0x1ae5   :  { %v4760_v37 = vpop.xlane.xlu0 %4759  ;;  %8719 = vmatmul.mubr.msk.bf16.vlgmr.msra.gmra.mxu1 %vm574_vm2, %v4778_v20  ;;  %v4751_v48 = vpop.xlane.xlu1 %4750 }
0x1ae6   :  { %9776 = vrcp.f32 %v4760_v37 }
0x1ae7   :  { %9778 = vrcp.f32 %v4751_v48 }
0x1ae8   :  { %9780 = vrcp.f32 %v4757_v28 }
0x1ae9   :  { %v4754_v27 = vpop.xlane.xlu0 %4753  ;;  %v4883_v0 = vpop.permute.xlu1 %4882 }
0x1aea   :  { %9782 = vrcp.f32 %v4754_v27  ;;  %v4905_v18 = vsel %vm484_vm1, %v4883_v0, 0 }
0x1aed   :  { %v4885_v11 = vpop.permute.xlu0 %4884  ;;  %v4881_v24 = vpop.permute.xlu1 %4880 }
0x1aee   :  { %9030 = vmatprep.subr.msk.bf16.mxu1 %vm484_vm1, %v4885_v11  ;;  %v4908_v29 = vsel %vm484_vm1, %v4885_v11, 0  ;;  %v4902_v57 = vsel %vm484_vm1, %v4881_v24, 0 }
0x1aef   :  { %8727 = vmatpush3.bf16.xpose.msra.mxu1 %v4908_v29 }
0x1af0   :  { %9031 = vmatprep.subr.msk.bf16.mxu1 %vm484_vm1, %v4883_v0 }
0x1af1   :  { %v4871_v1 = vpop.permute.xlu0 %4870 }
0x1af3   :  { %v9777_v22 = vpop.eup %9776 }
0x1af4   :  { %v9779_v33 = vpop.eup %9778  ;;  %v4776_v43 = vmul.f32 %v9777_v22, %v12316_v58  ;;  %v4879_v58 = vpop.permute.xlu1 %4878 }
0x1af5   :  { %v9781_v41 = vpop.eup %9780  ;;  %v4773_v56 = vmul.f32 %v9779_v33, %v12318_v6  ;;  %v4899_v6 = vsel %vm484_vm1, %v4879_v58, 0 }
0x1af6   :  { %v4775_v44 = vmul.f32 %v9781_v41, %v12312_v39  ;;  %v4875_v39 = vpop.permute.xlu0 %4874 }
0x1af7   :  { %v9783_v49 = vpop.eup %9782  ;;  %8729 = vmatpush3.bf16.xpose.msra.mxu1 %v4905_v18 }
0x1af8   :  { %9032 = vmatprep.subr.msk.bf16.mxu1 %vm484_vm1, %v4881_v24  ;;  %v4774_v40 = vmul.f32 %v9783_v49, %v12324_v23  ;;  %v4780_v13 = vpack.c.bf16 %v4776_v43, %v4775_v44  ;;  %v4873_v23 = vpop.permute.xlu1 %4872 }
0x1afa   :  { %v4779_v35 = vpack.c.bf16 %v4774_v40, %v4773_v56 }
0x1afc   :  { %8722 = vmatprep.mubr.msk.bf16.mxu1 %vm574_vm2, %v4779_v35  ;;  %v4877_v34 = vpop.permute.xlu1 %4876 }
0x1afd   :  { %8723 = vmatmul.mubr.msk.bf16.gmra.mxu1 %vm574_vm2, %v4780_v13 }
0x1afe   :  { %8734 = vmatprep.mubr.msk.bf16.mxu1 %vm484_vm1, %v4871_v1 }
0x1aff   :  { %8731 = vmatpush3.bf16.xpose.msra.mxu1 %v4902_v57 }
0x1b00   :  { %9033 = vmatprep.subr.msk.bf16.mxu1 %vm484_vm1, %v4879_v58 }
0x1b07   :  { %8733 = vmatpush3.bf16.xpose.msra.mxu1 %v4899_v6 }
0x1b0e   :  { %8735 = vmatmul.mubr.msk.bf16.vlgmr.msra.gmra.mxu1 %vm484_vm1, %v4873_v23 }
0x1b0f   :  { %8738 = vmatprep.mubr.msk.bf16.mxu1 %vm484_vm1, %v4875_v39 }
0x1b16   :  { %8739 = vmatmul.mubr.msk.bf16.gmra.mxu1 %vm484_vm1, %v4877_v34 }
0x1b65   :  { %v12399_v36 = vpop.f32.mrf.mxu1 }
0x1b66   :  { %13647 = vst [vmem:[#allocation19_spill] sm:$0xff] %v12399_v36 }
0x1b67   :  { %v12401_v47 = vpop.f32.mrf.mxu1 }
0x1b68   :  { %13648 = vst [vmem:[#allocation20_spill] sm:$0xff] %v12401_v47 }
0x1b69   :  { %v12403_v53 = vpop.f32.mrf.mxu1 }
0x1b6a   :  { %13649 = vst [vmem:[#allocation21_spill] sm:$0xff] %v12403_v53 }
0x1b6b   :  { %v12405_v7 = vpop.f32.mrf.mxu1 }
0x1b6c   :  { %13650 = vst [vmem:[#allocation22_spill] sm:$0xff] %v12405_v7 }
0x1b6d   :  { %v12407_v21 = vpop.f32.mrf.mxu1 }
0x1b6e   :  { %13651 = vst [vmem:[#allocation23_spill] sm:$0xff] %v12407_v21 }
0x1b6f   :  { %v12409_v61 = vpop.f32.mrf.mxu1 }
0x1b70   :  { %13652 = vst [vmem:[#allocation24_spill] sm:$0xff] %v12409_v61 }
0x1b71   :  { %v12411_v28 = vpop.f32.mrf.mxu1 }
0x1b72   :  { %13653 = vst [vmem:[#allocation25_spill] sm:$0xff] %v12411_v28 }
0x1b73   :  { %v12413_v19 = vpop.f32.mrf.mxu1 }
0x1b74   :  { %13654 = vst [vmem:[#allocation26_spill] sm:$0xff] %v12413_v19 }
0x1ba5   :  { %v12415_v20 = vpop.f32.mrf.mxu1 }
0x1ba7   :  { %v12417_v37 = vpop.f32.mrf.mxu1 }
0x1ba9   :  { %v12419_v48 = vpop.f32.mrf.mxu1 }
0x1bab   :  { %v12423_v11 = vpop.f32.mrf.mxu1 }
0x1bbd   :  { %v12427_v0 = vpop.f32.mrf.mxu1 }
0x1bbf   :  { %v12429_v22 = vpop.f32.mrf.mxu1 }
0x1bc1   :  { %v12431_v33 = vpop.f32.mrf.mxu1 }
0x1bc3   :  { %v12435_v18 = vpop.f32.mrf.mxu1 }
0x1bce   :  { %v8736_v24 = vpop.f32.mrf.mxu1 }
0x1bcf   :  { %v4981_v35 = vsel %vm574_vm2, %v8736_v24, -inf }
0x1bd0   :  { %v4944_v43 = vpop.f32.mrf.mxu1 }
0x1bd1   :  { %v4975_v56 = vsel %vm574_vm2, %v4944_v43, -inf }
0x1bd2   :  { %4976 = vmax.xlane.f32.xlu0 %v4975_v56  ;;  %v8737_v40 = vpop.f32.mrf.mxu1 }
0x1bd3   :  { %v4984_v58 = vsel %vm574_vm2, %v8737_v40, -inf }
0x1bd4   :  { %v4947_v44 = vpop.f32.mrf.mxu1 }
0x1bd5   :  { %v4978_v13 = vsel %vm574_vm2, %v4947_v44, -inf }
0x1bd6   :  { %4982 = vmax.xlane.f32.xlu0 %v4981_v35  ;;  %4979 = vmax.xlane.f32.xlu1 %v4978_v13  ;;  %v8740_v1 = vpop.f32.mrf.mxu1 }
0x1bd7   :  { %v4993_v34 = vsel %vm574_vm2, %v8740_v1, -inf }
0x1bd8   :  { %v4960_v57 = vpop.f32.mrf.mxu1 }
0x1bd9   :  { %v4987_v60 = vsel %vm574_vm2, %v4960_v57, -inf }
0x1bda   :  { %4985 = vmax.xlane.f32.xlu0 %v4984_v58  ;;  %v8741_v6 = vpop.f32.mrf.mxu1 }
0x1bdb   :  { %v4996_v23 = vsel %vm574_vm2, %v8741_v6, -inf }
0x1bdc   :  { %4997 = vmax.xlane.f32.xlu1 %v4996_v23  ;;  %v4963_v39 = vpop.f32.mrf.mxu1 }
0x1bdd   :  { %v4990_v56 = vsel %vm574_vm2, %v4963_v39, -inf }
0x1bde   :  { %4994 = vmax.xlane.f32.xlu0 %v4993_v34 }
0x1be0   :  { %4991 = vmax.xlane.f32.xlu1 %v4990_v56 }
0x1be2   :  { %4988 = vmax.xlane.f32.xlu0 %v4987_v60 }
0x1bf1   :  { %5071 = vrot.lane.b32.xlu1 %v11984_v59, %s10066_s18 }
0x1bf5   :  { %5069 = vrot.lane.b32.xlu1 %v11991_v16, %s10066_s18 }
0x1bf8   :  { %5073 = vrot.lane.b32.xlu0 %v11980_v45, %s10066_s18 }
0x1bf9   :  { %5067 = vrot.lane.b32.xlu1 %v11973_v9, %s10066_s18 }
0x1c5b   :  { %v4977_v35 = vpop.xlane.xlu0 %4976 }
0x1c5c   :  { %v4999_v13 = vsub.f32 %v4944_v43, %v4977_v35 }
0x1c5e   :  { %v5007_v56 = vmul.f32 1.442695, %v4999_v13 }
0x1c5f   :  { %v4983_v58 = vpop.xlane.xlu0 %4982  ;;  %v4980_v23 = vpop.xlane.xlu1 %4979 }
0x1c60   :  { %v5001_v34 = vsub.f32 %v8736_v24, %v4983_v58  ;;  %v5000_v60 = vsub.f32 %v4947_v44, %v4980_v23 }
0x1c62   :  { %v5011_v25 = vmul.f32 1.442695, %v5001_v34  ;;  %v5009_v49 = vmul.f32 1.442695, %v5000_v60 }
0x1c63   :  { %v4986_v14 = vpop.xlane.xlu0 %4985 }
0x1c64   :  { %9784 = vpow2.f32 %v5011_v25  ;;  %v5002_v41 = vsub.f32 %v8737_v40, %v4986_v14 }
0x1c65   :  { %v4998_v27 = vpop.xlane.xlu1 %4997  ;;  %9786 = vpow2.f32 %v5007_v56 }
0x1c66   :  { %v5013_v29 = vmul.f32 1.442695, %v5002_v41  ;;  %v5006_v51 = vsub.f32 %v8741_v6, %v4998_v27 }
0x1c67   :  { %v4995_v62 = vpop.xlane.xlu0 %4994 }
0x1c68   :  { %9788 = vpow2.f32 %v5013_v29  ;;  %v5005_v50 = vsub.f32 %v8740_v1, %v4995_v62  ;;  %v5021_v43 = vmul.f32 1.442695, %v5006_v51 }
0x1c69   :  { %v4992_v42 = vpop.xlane.xlu1 %4991  ;;  %9790 = vpow2.f32 %v5009_v49 }
0x1c6a   :  { %v5019_v35 = vmul.f32 1.442695, %v5005_v50  ;;  %v5004_v5 = vsub.f32 %v4963_v39, %v4992_v42 }
0x1c6b   :  { %v4989_v24 = vpop.xlane.xlu0 %4988 }
0x1c6c   :  { %9792 = vpow2.f32 %v5019_v35  ;;  %v5003_v13 = vsub.f32 %v4960_v57, %v4989_v24  ;;  %v5017_v25 = vmul.f32 1.442695, %v5004_v5 }
0x1c6d   :  { %v5072_v44 = vpop.permute.xlu1 %5071  ;;  %9794 = vpow2.f32 %v5021_v43 }
0x1c6e   :  { %v5015_v14 = vmul.f32 1.442695, %v5003_v13 }
0x1c6f   :  { %v5074_v40 = vpop.permute.xlu0 %5073 }
0x1c70   :  { %9796 = vpow2.f32 %v5015_v14  ;;  %8742 = vmatprep.subr.bf16.mxu0 %v5074_v40 }
0x1c71   :  { %v12455_v41 = vpop.eup %9784  ;;  %8743 = vmatpush3.bf16.msra.mxu0 %v5074_v40  ;;  %9798 = vpow2.f32 %v5017_v25  ;;  %v5070_v42 = vpop.permute.xlu1 %5069 }
0x1c72   :  { %8744 = vmatprep.subr.bf16.mxu0 %v5072_v44  ;;  %v5029_v62 = vsel %vm574_vm2, %v12455_v41, 0.0  ;;  %v9787_v50 = vpop.eup %9786 }
0x1c73   :  { %5030 = vadd.xlane.f32.xlu0 %v5029_v62  ;;  %v5023_v5 = vsel %vm574_vm2, %v9787_v50, 0.0 }
0x1c75   :  { %v9789_v51 = vpop.eup %9788  ;;  %8745 = vmatpush3.bf16.msra.mxu0 %v5072_v44  ;;  %v5068_v1 = vpop.permute.xlu1 %5067 }
0x1c76   :  { %8746 = vmatprep.subr.bf16.mxu0 %v5070_v42  ;;  %v5032_v27 = vsel %vm574_vm2, %v9789_v51, 0.0  ;;  %v9791_v29 = vpop.eup %9790 }
0x1c77   :  { %5024 = vadd.xlane.f32.xlu0 %v5023_v5  ;;  %5033 = vadd.xlane.f32.xlu1 %v5032_v27  ;;  %v5026_v6 = vsel %vm574_vm2, %v9791_v29, 0.0 }
0x1c79   :  { %v12461_v49 = vpop.eup %9792  ;;  %8747 = vmatpush3.bf16.msra.mxu0 %v5070_v42 }
0x1c7a   :  { %8748 = vmatprep.subr.bf16.mxu0 %v5068_v1  ;;  %v5041_v57 = vsel %vm574_vm2, %v12461_v49, 0.0  ;;  %v9795_v39 = vpop.eup %9794 }
0x1c7b   :  { %5042 = vadd.xlane.f32.xlu0 %v5041_v57  ;;  %5027 = vadd.xlane.f32.xlu1 %v5026_v6  ;;  %v5044_v34 = vsel %vm574_vm2, %v9795_v39, 0.0 }
0x1c7d   :  { %v9797_v58 = vpop.eup %9796  ;;  %8749 = vmatpush3.bf16.msra.mxu0 %v5068_v1 }
0x1c7e   :  { %v5035_v23 = vsel %vm574_vm2, %v9797_v58, 0.0  ;;  %v9799_v56 = vpop.eup %9798 }
0x1c7f   :  { %5036 = vadd.xlane.f32.xlu1 %v5035_v23  ;;  %5045 = vadd.xlane.f32.xlu0 %v5044_v34  ;;  %v5038_v60 = vsel %vm574_vm2, %v9799_v56, 0.0 }
0x1c83   :  { %5039 = vadd.xlane.f32.xlu0 %v5038_v60 }
0x1c90   :  { %5168 = vrot.lane.b32.xlu1 %v11984_v59, %s10067_s19 }
0x1c94   :  { %5166 = vrot.lane.b32.xlu1 %v11991_v16, %s10067_s19 }
0x1c98   :  { %5164 = vrot.lane.b32.xlu1 %v11973_v9, %s10067_s19 }
0x1c99   :  { %5170 = vrot.lane.b32.xlu0 %v11980_v45, %s10067_s19 }
0x1c9c   :  { %5158 = vrot.lane.b32.xlu1 %v11991_v16, %s10068_s20 }
0x1c9d   :  { %5156 = vrot.lane.b32.xlu0 %v11973_v9, %s10068_s20 }
0x1ca0   :  { %5162 = vrot.lane.b32.xlu1 %v11980_v45, %s10068_s20 }
0x1ca1   :  { %5160 = vrot.lane.b32.xlu0 %v11984_v59, %s10068_s20 }
0x1cfc   :  { %v5031_v43 = vpop.xlane.xlu0 %5030 }
0x1d00   :  { %v5025_v35 = vpop.xlane.xlu0 %5024  ;;  %v5034_v24 = vpop.xlane.xlu1 %5033 }
0x1d01   :  { %9800 = vrcp.f32 %v5034_v24 }
0x1d02   :  { %9802 = vrcp.f32 %v5025_v35 }
0x1d03   :  { %9804 = vrcp.f32 %v5031_v43 }
0x1d04   :  { %v5043_v13 = vpop.xlane.xlu0 %5042  ;;  %v5028_v44 = vpop.xlane.xlu1 %5027 }
0x1d05   :  { %9806 = vrcp.f32 %v5028_v44 }
0x1d08   :  { %v5046_v25 = vpop.xlane.xlu0 %5045  ;;  %v5037_v14 = vpop.xlane.xlu1 %5036 }
0x1d09   :  { %9808 = vrcp.f32 %v5046_v25 }
0x1d0a   :  { %9810 = vrcp.f32 %v5037_v14 }
0x1d0b   :  { %9812 = vrcp.f32 %v5043_v13 }
0x1d0c   :  { %v5040_v40 = vpop.xlane.xlu0 %5039  ;;  %v5169_v14 = vpop.permute.xlu1 %5168 }
0x1d0d   :  { %9814 = vrcp.f32 %v5040_v40 }
0x1d0e   :  { %v9801_v62 = vpop.eup %9800 }
0x1d0f   :  { %v9803_v5 = vpop.eup %9802  ;;  %v5058_v57 = vmul.f32 %v9801_v62, %v9789_v51 }
0x1d10   :  { %v5171_v42 = vpop.permute.xlu0 %5170  ;;  %v9805_v27 = vpop.eup %9804  ;;  %v5055_v6 = vmul.f32 %v9803_v5, %v9787_v50 }
0x1d11   :  { %9034 = vmatprep.subr.msk.bf16.mxu0 %vm484_vm1, %v5171_v42  ;;  %v5057_v34 = vmul.f32 %v9805_v27, %v12455_v41  ;;  %v5194_v44 = vsel %vm484_vm1, %v5171_v42, 0  ;;  %v5191_v27 = vsel %vm484_vm1, %v5169_v14, 0  ;;  %v5167_v42 = vpop.permute.xlu1 %5166 }
0x1d12   :  { %v9807_v1 = vpop.eup %9806 }
0x1d13   :  { %v5056_v23 = vmul.f32 %v9807_v1, %v9791_v29  ;;  %v5064_v35 = vpack.c.bf16 %v5058_v57, %v5057_v34 }
0x1d14   :  { %v5157_v5 = vpop.permute.xlu0 %5156 }
0x1d15   :  { %v5063_v60 = vpack.c.bf16 %v5056_v23, %v5055_v6 }
0x1d16   :  { %v9809_v43 = vpop.eup %9808 }
0x1d17   :  { %v9811_v24 = vpop.eup %9810  ;;  %8750 = vmatprep.mubr.msk.bf16.mxu0 %vm574_vm2, %v5063_v60  ;;  %v5062_v29 = vmul.f32 %v9809_v43, %v9795_v39  ;;  %v5165_v39 = vpop.permute.xlu1 %5164 }
0x1d18   :  { %v9813_v13 = vpop.eup %9812  ;;  %8751 = vmatmul.mubr.msk.bf16.vlgmr.msra.gmra.mxu0 %vm574_vm2, %v5064_v35  ;;  %v5059_v50 = vmul.f32 %v9811_v24, %v9797_v58  ;;  %v5188_v58 = vsel %vm484_vm1, %v5167_v42, 0  ;;  %v5161_v1 = vpop.permute.xlu0 %5160 }
0x1d19   :  { %8759 = vmatpush3.bf16.xpose.msra.mxu0 %v5194_v44  ;;  %v5061_v40 = vmul.f32 %v9813_v13, %v12461_v49  ;;  %v5185_v49 = vsel %vm484_vm1, %v5165_v39, 0 }
0x1d1a   :  { %v9815_v25 = vpop.eup %9814  ;;  %9035 = vmatprep.subr.msk.bf16.mxu0 %vm484_vm1, %v5169_v14 }
0x1d1b   :  { %v5060_v51 = vmul.f32 %v9815_v25, %v9799_v56  ;;  %v5066_v62 = vpack.c.bf16 %v5062_v29, %v5061_v40  ;;  %v5159_v56 = vpop.permute.xlu1 %5158 }
0x1d1d   :  { %v5065_v41 = vpack.c.bf16 %v5060_v51, %v5059_v50 }
0x1d1f   :  { %8754 = vmatprep.mubr.msk.bf16.mxu0 %vm574_vm2, %v5065_v41  ;;  %v5163_v57 = vpop.permute.xlu1 %5162 }
0x1d20   :  { %8755 = vmatmul.mubr.msk.bf16.gmra.mxu0 %vm574_vm2, %v5066_v62 }
0x1d21   :  { %8761 = vmatpush3.bf16.xpose.msra.mxu0 %v5191_v27  ;;  %8766 = vmatprep.mubr.msk.bf16.mxu0 %vm484_vm1, %v5157_v5 }
0x1d22   :  { %9036 = vmatprep.subr.msk.bf16.mxu0 %vm484_vm1, %v5167_v42 }
0x1d29   :  { %8763 = vmatpush3.bf16.xpose.msra.mxu0 %v5188_v58 }
0x1d2a   :  { %9037 = vmatprep.subr.msk.bf16.mxu0 %vm484_vm1, %v5165_v39 }
0x1d31   :  { %8765 = vmatpush3.bf16.xpose.msra.mxu0 %v5185_v49 }
0x1d38   :  { %8767 = vmatmul.mubr.msk.bf16.vlgmr.msra.gmra.mxu0 %vm484_vm1, %v5159_v56 }
0x1d39   :  { %8770 = vmatprep.mubr.msk.bf16.mxu0 %vm484_vm1, %v5161_v1 }
0x1d40   :  { %8771 = vmatmul.mubr.msk.bf16.gmra.mxu0 %vm484_vm1, %v5163_v57 }
0x1dd8   :  { %v12503_v6 = vpop.f32.mrf.mxu0 }
0x1dda   :  { %v12505_v23 = vpop.f32.mrf.mxu0 }
0x1ddc   :  { %v12507_v34 = vpop.f32.mrf.mxu0 }
0x1dde   :  { %v12511_v43 = vpop.f32.mrf.mxu0 }
0x1de0   :  { %v12515_v24 = vpop.f32.mrf.mxu0 }
0x1de2   :  { %v12517_v13 = vpop.f32.mrf.mxu0 }
0x1de4   :  { %v12519_v44 = vpop.f32.mrf.mxu0 }
0x1de6   :  { %v12523_v14 = vpop.f32.mrf.mxu0 }
0x1df8   :  { %v8768_v51 = vpop.f32.mrf.mxu0 }
0x1df9   :  { %v5267_v5 = vsel %vm574_vm2, %v8768_v51, -inf }
0x1dfa   :  { %v5230_v29 = vpop.f32.mrf.mxu0 }
0x1dfb   :  { %v5261_v41 = vsel %vm574_vm2, %v5230_v29, -inf }
0x1dfc   :  { %5262 = vmax.xlane.f32.xlu0 %v5261_v41  ;;  %v8769_v40 = vpop.f32.mrf.mxu0 }
0x1dfd   :  { %v5270_v39 = vsel %vm574_vm2, %v8769_v40, -inf }
0x1dfe   :  { %v5233_v62 = vpop.f32.mrf.mxu0 }
0x1dff   :  { %v5264_v27 = vsel %vm574_vm2, %v5233_v62, -inf }
0x1e00   :  { %5268 = vmax.xlane.f32.xlu0 %v5267_v5  ;;  %5265 = vmax.xlane.f32.xlu1 %v5264_v27  ;;  %v8772_v42 = vpop.f32.mrf.mxu0 }
0x1e01   :  { %v5279_v57 = vsel %vm574_vm2, %v8772_v42, -inf }
0x1e02   :  { %v5246_v58 = vpop.f32.mrf.mxu0 }
0x1e03   :  { %v5273_v25 = vsel %vm574_vm2, %v5246_v58, -inf }
0x1e04   :  { %5271 = vmax.xlane.f32.xlu0 %v5270_v39  ;;  %v8773_v49 = vpop.f32.mrf.mxu0 }
0x1e05   :  { %v5282_v56 = vsel %vm574_vm2, %v8773_v49, -inf }
0x1e06   :  { %5283 = vmax.xlane.f32.xlu1 %v5282_v56  ;;  %v5249_v1 = vpop.f32.mrf.mxu0 }
0x1e07   :  { %v5276_v41 = vsel %vm574_vm2, %v5249_v1, -inf }
0x1e08   :  { %5280 = vmax.xlane.f32.xlu0 %v5279_v57 }
0x1e0a   :  { %5277 = vmax.xlane.f32.xlu1 %v5276_v41 }
0x1e0c   :  { %5274 = vmax.xlane.f32.xlu0 %v5273_v25 }
0x1e1b   :  { %5357 = vrot.lane.b32.xlu1 %v11984_v59, %s10069_s21 }
0x1e1f   :  { %5355 = vrot.lane.b32.xlu1 %v11991_v16, %s10069_s21 }
0x1e22   :  { %5359 = vrot.lane.b32.xlu0 %v11980_v45, %s10069_s21 }
0x1e23   :  { %5353 = vrot.lane.b32.xlu1 %v11973_v9, %s10069_s21 }
0x1e85   :  { %v5263_v5 = vpop.xlane.xlu0 %5262 }
0x1e86   :  { %v5285_v27 = vsub.f32 %v5230_v29, %v5263_v5 }
0x1e88   :  { %v5293_v41 = vmul.f32 1.442695, %v5285_v27 }
0x1e89   :  { %v5269_v39 = vpop.xlane.xlu0 %5268  ;;  %v5266_v56 = vpop.xlane.xlu1 %5265 }
0x1e8a   :  { %v5287_v57 = vsub.f32 %v8768_v51, %v5269_v39  ;;  %v5286_v25 = vsub.f32 %v5233_v62, %v5266_v56 }
0x1e8c   :  { %v5297_v60 = vmul.f32 1.442695, %v5287_v57  ;;  %v5295_v16 = vmul.f32 1.442695, %v5286_v25 }
0x1e8d   :  { %v5272_v50 = vpop.xlane.xlu0 %5271 }
0x1e8e   :  { %9816 = vpow2.f32 %v5297_v60  ;;  %v5288_v59 = vsub.f32 %v8769_v40, %v5272_v50 }
0x1e8f   :  { %v5284_v35 = vpop.xlane.xlu1 %5283  ;;  %9818 = vpow2.f32 %v5293_v41 }
0x1e90   :  { %v5299_v12 = vmul.f32 1.442695, %v5288_v59  ;;  %v5292_v30 = vsub.f32 %v8773_v49, %v5284_v35 }
0x1e91   :  { %v5281_v45 = vpop.xlane.xlu0 %5280 }
0x1e92   :  { %9820 = vpow2.f32 %v5299_v12  ;;  %v5291_v2 = vsub.f32 %v8772_v42, %v5281_v45  ;;  %v5307_v29 = vmul.f32 1.442695, %v5292_v30 }
0x1e93   :  { %v5278_v9 = vpop.xlane.xlu1 %5277  ;;  %9822 = vpow2.f32 %v5295_v16 }
0x1e94   :  { %v5305_v5 = vmul.f32 1.442695, %v5291_v2  ;;  %v5290_v31 = vsub.f32 %v5249_v1, %v5278_v9 }
0x1e95   :  { %v5275_v51 = vpop.xlane.xlu0 %5274 }
0x1e96   :  { %9824 = vpow2.f32 %v5305_v5  ;;  %v5289_v27 = vsub.f32 %v5246_v58, %v5275_v51  ;;  %v5303_v60 = vmul.f32 1.442695, %v5290_v31  ;;  %v4280_v5 = vadd.f32 %v12340_v10, %v11969_v55 }
0x1e97   :  { %v5358_v62 = vpop.permute.xlu1 %5357  ;;  %9826 = vpow2.f32 %v5307_v29  ;;  %v4283_v29 = vadd.f32 %v12397_v52, %v11969_v55 }
0x1e98   :  { %v5301_v50 = vmul.f32 1.442695, %v5289_v27 }
0x1e99   :  { %v5360_v40 = vpop.permute.xlu0 %5359  ;;  %v12561_v51 = vpack.c.bf16 %v4283_v29, %v4280_v5 }
0x1e9a   :  { %9828 = vpow2.f32 %v5301_v50  ;;  %8774 = vmatprep.subr.bf16.mxu1 %v5360_v40 }
0x1e9b   :  { %v12543_v39 = vpop.eup %9816  ;;  %8775 = vmatpush3.bf16.msra.mxu1 %v5360_v40  ;;  %9830 = vpow2.f32 %v5303_v60  ;;  %v5356_v12 = vpop.permute.xlu1 %5355 }
0x1e9c   :  { %8776 = vmatprep.subr.bf16.mxu1 %v5358_v62  ;;  %v5315_v30 = vsel %vm574_vm2, %v12543_v39, 0.0  ;;  %v9819_v2 = vpop.eup %9818 }
0x1e9d   :  { %5316 = vadd.xlane.f32.xlu0 %v5315_v30  ;;  %v5309_v31 = vsel %vm574_vm2, %v9819_v2, 0.0 }
0x1e9f   :  { %v9821_v35 = vpop.eup %9820  ;;  %8777 = vmatpush3.bf16.msra.mxu1 %v5358_v62  ;;  %v5354_v1 = vpop.permute.xlu1 %5353 }
0x1ea0   :  { %8778 = vmatprep.subr.bf16.mxu1 %v5356_v12  ;;  %v5318_v42 = vsel %vm574_vm2, %v9821_v35, 0.0  ;;  %v9823_v58 = vpop.eup %9822 }
0x1ea1   :  { %5310 = vadd.xlane.f32.xlu0 %v5309_v31  ;;  %5319 = vadd.xlane.f32.xlu1 %v5318_v42  ;;  %v5312_v57 = vsel %vm574_vm2, %v9823_v58, 0.0 }
0x1ea3   :  { %v12549_v49 = vpop.eup %9824  ;;  %8779 = vmatpush3.bf16.msra.mxu1 %v5356_v12 }
0x1ea4   :  { %8780 = vmatprep.subr.bf16.mxu1 %v5354_v1  ;;  %v5327_v56 = vsel %vm574_vm2, %v12549_v49, 0.0  ;;  %v9827_v41 = vpop.eup %9826 }
0x1ea5   :  { %5328 = vadd.xlane.f32.xlu0 %v5327_v56  ;;  %5313 = vadd.xlane.f32.xlu1 %v5312_v57  ;;  %v5330_v16 = vsel %vm574_vm2, %v9827_v41, 0.0 }
0x1ea7   :  { %v9829_v25 = vpop.eup %9828  ;;  %8781 = vmatpush3.bf16.msra.mxu1 %v5354_v1 }
0x1ea8   :  { %v5321_v59 = vsel %vm574_vm2, %v9829_v25, 0.0  ;;  %v9831_v45 = vpop.eup %9830 }
0x1ea9   :  { %5322 = vadd.xlane.f32.xlu1 %v5321_v59  ;;  %5331 = vadd.xlane.f32.xlu0 %v5330_v16  ;;  %v5324_v9 = vsel %vm574_vm2, %v9831_v45, 0.0 }
0x1ead   :  { %5325 = vadd.xlane.f32.xlu0 %v5324_v9 }
0x1eba   :  { %5570 = vrot.lane.b32.xlu1 %v12561_v51, %s10059_s11 }
0x1ebe   :  { %5568 = vrot.lane.b32.xlu1 %v12333_v3, %s10059_s11 }
0x1ec2   :  { %5566 = vrot.lane.b32.xlu1 %v12338_v63, %s10059_s11 }
0x1ec3   :  { %5572 = vrot.lane.b32.xlu0 %v12348_v15, %s10059_s11 }
0x1f26   :  { %v5317_v27 = vpop.xlane.xlu0 %5316 }
0x1f2a   :  { %v5311_v62 = vpop.xlane.xlu0 %5310  ;;  %v5320_v52 = vpop.xlane.xlu1 %5319 }
0x1f2b   :  { %9832 = vrcp.f32 %v5320_v52 }
0x1f2c   :  { %9834 = vrcp.f32 %v5311_v62 }
0x1f2d   :  { %9836 = vrcp.f32 %v5317_v27 }
0x1f2e   :  { %v5329_v55 = vpop.xlane.xlu0 %5328  ;;  %v5314_v10 = vpop.xlane.xlu1 %5313 }
0x1f2f   :  { %9838 = vrcp.f32 %v5314_v10 }
0x1f32   :  { %v5332_v60 = vpop.xlane.xlu0 %5331  ;;  %v5323_v50 = vpop.xlane.xlu1 %5322 }
0x1f33   :  { %9840 = vrcp.f32 %v5332_v60 }
0x1f34   :  { %9842 = vrcp.f32 %v5323_v50 }
0x1f35   :  { %9844 = vrcp.f32 %v5329_v55 }
0x1f36   :  { %v5326_v40 = vpop.xlane.xlu0 %5325  ;;  %v5571_v10 = vpop.permute.xlu1 %5570 }
0x1f37   :  { %9846 = vrcp.f32 %v5326_v40  ;;  %v5593_v40 = vsel %vm484_vm1, %v5571_v10, 0 }
0x1f38   :  { %v9833_v30 = vpop.eup %9832 }
0x1f39   :  { %v9835_v31 = vpop.eup %9834  ;;  %v5344_v56 = vmul.f32 %v9833_v30, %v9821_v35 }
0x1f3a   :  { %v5573_v12 = vpop.permute.xlu0 %5572  ;;  %v9837_v42 = vpop.eup %9836  ;;  %v5341_v57 = vmul.f32 %v9835_v31, %v9819_v2 }
0x1f3b   :  { %9038 = vmatprep.subr.msk.bf16.mxu1 %vm484_vm1, %v5573_v12  ;;  %v5343_v16 = vmul.f32 %v9837_v42, %v12543_v39  ;;  %v5596_v52 = vsel %vm484_vm1, %v5573_v12, 0  ;;  %v5569_v30 = vpop.permute.xlu1 %5568 }
0x1f3c   :  { %v9839_v1 = vpop.eup %9838 }
0x1f3d   :  { %v5342_v59 = vmul.f32 %v9839_v1, %v9823_v58  ;;  %v5350_v5 = vpack.c.bf16 %v5344_v56, %v5343_v16 }
0x1f3f   :  { %v5349_v9 = vpack.c.bf16 %v5342_v59, %v5341_v57 }
0x1f40   :  { %v9841_v29 = vpop.eup %9840 }
0x1f41   :  { %v9843_v27 = vpop.eup %9842  ;;  %8782 = vmatprep.mubr.msk.bf16.mxu1 %vm574_vm2, %v5349_v9  ;;  %v5348_v58 = vmul.f32 %v9841_v29, %v9827_v41  ;;  %v5567_v41 = vpop.permute.xlu1 %5566 }
0x1f42   :  { %v9845_v62 = vpop.eup %9844  ;;  %8783 = vmatmul.mubr.msk.bf16.vlgmr.msra.gmra.mxu1 %vm574_vm2, %v5350_v5  ;;  %v5345_v2 = vmul.f32 %v9843_v27, %v9829_v25  ;;  %v5590_v25 = vsel %vm484_vm1, %v5569_v30, 0 }
0x1f43   :  { %8791 = vmatpush3.bf16.xpose.msra.mxu1 %v5596_v52  ;;  %v5347_v60 = vmul.f32 %v9845_v62, %v12549_v49  ;;  %v5587_v49 = vsel %vm484_vm1, %v5567_v41, 0 }
0x1f44   :  { %v9847_v55 = vpop.eup %9846  ;;  %9039 = vmatprep.subr.msk.bf16.mxu1 %vm484_vm1, %v5571_v10 }
0x1f45   :  { %v5346_v35 = vmul.f32 %v9847_v55, %v9831_v45  ;;  %v5352_v50 = vpack.c.bf16 %v5348_v58, %v5347_v60 }
0x1f47   :  { %v5351_v39 = vpack.c.bf16 %v5346_v35, %v5345_v2 }
0x1f49   :  { %8786 = vmatprep.mubr.msk.bf16.mxu1 %vm574_vm2, %v5351_v39 }
0x1f4a   :  { %8787 = vmatmul.mubr.msk.bf16.gmra.mxu1 %vm574_vm2, %v5352_v50 }
0x1f4b   :  { %8793 = vmatpush3.bf16.xpose.msra.mxu1 %v5593_v40  ;;  %8798 = vmatprep.mubr.msk.bf16.mxu1 %vm484_vm1, %v12338_v63 }
0x1f4c   :  { %9040 = vmatprep.subr.msk.bf16.mxu1 %vm484_vm1, %v5569_v30 }
0x1f53   :  { %8795 = vmatpush3.bf16.xpose.msra.mxu1 %v5590_v25 }
0x1f54   :  { %9041 = vmatprep.subr.msk.bf16.mxu1 %vm484_vm1, %v5567_v41 }
0x1f5b   :  { %8797 = vmatpush3.bf16.xpose.msra.mxu1 %v5587_v49 }
0x1f62   :  { %8799 = vmatmul.mubr.msk.bf16.vlgmr.msra.gmra.mxu1 %vm484_vm1, %v12333_v3 }
0x1f63   :  { %8802 = vmatprep.mubr.msk.bf16.mxu1 %vm484_vm1, %v12561_v51 }
0x1f6a   :  { %8803 = vmatmul.mubr.msk.bf16.gmra.mxu1 %vm484_vm1, %v12348_v15 }
0x2002   :  { %v12593_v45 = vpop.f32.mrf.mxu1 }
0x2004   :  { %v12595_v12 = vpop.f32.mrf.mxu1 }
0x2006   :  { %v12597_v31 = vpop.f32.mrf.mxu1 }
0x2008   :  { %v12601_v1 = vpop.f32.mrf.mxu1 }
0x200a   :  { %v12605_v57 = vpop.f32.mrf.mxu1 }
0x200c   :  { %v12607_v59 = vpop.f32.mrf.mxu1 }
0x200e   :  { %v12609_v16 = vpop.f32.mrf.mxu1 }
0x2010   :  { %v12613_v29 = vpop.f32.mrf.mxu1 }
0x2022   :  { %v8800_v27 = vpop.f32.mrf.mxu1 }
0x2023   :  { %v5669_v2 = vsel %vm574_vm2, %v8800_v27, -inf }
0x2024   :  { %v5632_v62 = vpop.f32.mrf.mxu1 }
0x2025   :  { %v5663_v52 = vsel %vm574_vm2, %v5632_v62, -inf }
0x2026   :  { %5664 = vmax.xlane.f32.xlu0 %v5663_v52  ;;  %v8801_v55 = vpop.f32.mrf.mxu1 }
0x2027   :  { %v5672_v60 = vsel %vm574_vm2, %v8801_v55, -inf }
0x2028   :  { %v5635_v10 = vpop.f32.mrf.mxu1 }
0x2029   :  { %v5666_v35 = vsel %vm574_vm2, %v5635_v10, -inf }
0x202a   :  { %5670 = vmax.xlane.f32.xlu0 %v5669_v2  ;;  %5667 = vmax.xlane.f32.xlu1 %v5666_v35  ;;  %v8804_v58 = vpop.f32.mrf.mxu1 }
0x202b   :  { %v5681_v25 = vsel %vm574_vm2, %v8804_v58, -inf }
0x202c   :  { %v5648_v39 = vpop.f32.mrf.mxu1 }
0x202d   :  { %v5675_v49 = vsel %vm574_vm2, %v5648_v39, -inf }
0x202e   :  { %5673 = vmax.xlane.f32.xlu0 %v5672_v60  ;;  %v8805_v50 = vpop.f32.mrf.mxu1 }
0x202f   :  { %v5684_v40 = vsel %vm574_vm2, %v8805_v50, -inf }
0x2030   :  { %5685 = vmax.xlane.f32.xlu1 %v5684_v40  ;;  %v5651_v30 = vpop.f32.mrf.mxu1 }
0x2031   :  { %v5678_v41 = vsel %vm574_vm2, %v5651_v30, -inf }
0x2032   :  { %5682 = vmax.xlane.f32.xlu0 %v5681_v25 }
0x2034   :  { %5679 = vmax.xlane.f32.xlu1 %v5678_v41 }
0x2036   :  { %5676 = vmax.xlane.f32.xlu0 %v5675_v49 }
0x2045   :  { %5759 = vrot.lane.b32.xlu1 %v12561_v51, %s10062_s14 }
0x2049   :  { %5757 = vrot.lane.b32.xlu1 %v12333_v3, %s10062_s14 }
0x204c   :  { %5761 = vrot.lane.b32.xlu0 %v12348_v15, %s10062_s14 }
0x204d   :  { %5755 = vrot.lane.b32.xlu1 %v12338_v63, %s10062_s14 }
0x20af   :  { %v5665_v52 = vpop.xlane.xlu0 %5664 }
0x20b0   :  { %v5687_v2 = vsub.f32 %v5632_v62, %v5665_v52 }
0x20b2   :  { %v5695_v25 = vmul.f32 1.442695, %v5687_v2 }
0x20b3   :  { %v5671_v35 = vpop.xlane.xlu0 %5670  ;;  %v5668_v60 = vpop.xlane.xlu1 %5667 }
0x20b4   :  { %v5689_v40 = vsub.f32 %v8800_v27, %v5671_v35  ;;  %v5688_v49 = vsub.f32 %v5635_v10, %v5668_v60 }
0x20b6   :  { %v5699_v41 = vmul.f32 1.442695, %v5689_v40  ;;  %v5697_v56 = vmul.f32 1.442695, %v5688_v49 }
0x20b7   :  { %v5674_v9 = vpop.xlane.xlu0 %5673 }
0x20b8   :  { %9848 = vpow2.f32 %v5699_v41  ;;  %v5690_v42 = vsub.f32 %v8801_v55, %v5674_v9 }
0x20b9   :  { %v5686_v5 = vpop.xlane.xlu1 %5685  ;;  %9850 = vpow2.f32 %v5695_v25 }
0x20ba   :  { %v5701_v46 = vmul.f32 1.442695, %v5690_v42  ;;  %v5694_v8 = vsub.f32 %v8805_v50, %v5686_v5 }
0x20bb   :  { %v5683_v54 = vpop.xlane.xlu0 %5682 }
0x20bc   :  { %9852 = vpow2.f32 %v5701_v46  ;;  %v5693_v17 = vsub.f32 %v8804_v58, %v5683_v54  ;;  %v5709_v62 = vmul.f32 1.442695, %v5694_v8 }
0x20bd   :  { %v5680_v4 = vpop.xlane.xlu1 %5679  ;;  %9854 = vpow2.f32 %v5697_v56 }
0x20be   :  { %v5707_v52 = vmul.f32 1.442695, %v5693_v17  ;;  %v5692_v38 = vsub.f32 %v5651_v30, %v5680_v4 }
0x20bf   :  { %v5677_v27 = vpop.xlane.xlu0 %5676 }
0x20c0   :  { %9856 = vpow2.f32 %v5707_v52  ;;  %v5691_v2 = vsub.f32 %v5648_v39, %v5677_v27  ;;  %v5705_v35 = vmul.f32 1.442695, %v5692_v38 }
0x20c1   :  { %v5760_v10 = vpop.permute.xlu1 %5759  ;;  %9858 = vpow2.f32 %v5709_v62 }
0x20c2   :  { %v5703_v9 = vmul.f32 1.442695, %v5691_v2 }
0x20c3   :  { %v5762_v55 = vpop.permute.xlu0 %5761 }
0x20c4   :  { %9860 = vpow2.f32 %v5703_v9  ;;  %8806 = vmatprep.subr.bf16.mxu0 %v5762_v55 }
0x20c5   :  { %v12633_v42 = vpop.eup %9848  ;;  %8807 = vmatpush3.bf16.msra.mxu0 %v5762_v55  ;;  %9862 = vpow2.f32 %v5705_v35  ;;  %v5758_v4 = vpop.permute.xlu1 %5757 }
0x20c6   :  { %8808 = vmatprep.subr.bf16.mxu0 %v5760_v10  ;;  %v5717_v54 = vsel %vm574_vm2, %v12633_v42, 0.0  ;;  %v9851_v46 = vpop.eup %9850 }
0x20c7   :  { %5718 = vadd.xlane.f32.xlu0 %v5717_v54  ;;  %v5711_v38 = vsel %vm574_vm2, %v9851_v46, 0.0 }
0x20c9   :  { %v9853_v17 = vpop.eup %9852  ;;  %8809 = vmatpush3.bf16.msra.mxu0 %v5760_v10  ;;  %v5756_v58 = vpop.permute.xlu1 %5755 }
0x20ca   :  { %8810 = vmatprep.subr.bf16.mxu0 %v5758_v4  ;;  %v5720_v8 = vsel %vm574_vm2, %v9853_v17, 0.0  ;;  %v9855_v56 = vpop.eup %9854 }
0x20cb   :  { %5712 = vadd.xlane.f32.xlu0 %v5711_v38  ;;  %5721 = vadd.xlane.f32.xlu1 %v5720_v8  ;;  %v5714_v50 = vsel %vm574_vm2, %v9855_v56, 0.0 }
0x20cd   :  { %v12639_v5 = vpop.eup %9856  ;;  %8811 = vmatpush3.bf16.msra.mxu0 %v5758_v4 }
0x20ce   :  { %8812 = vmatprep.subr.bf16.mxu0 %v5756_v58  ;;  %v5729_v39 = vsel %vm574_vm2, %v12639_v5, 0.0  ;;  %v9859_v30 = vpop.eup %9858 }
0x20cf   :  { %5730 = vadd.xlane.f32.xlu0 %v5729_v39  ;;  %5715 = vadd.xlane.f32.xlu1 %v5714_v50  ;;  %v5732_v40 = vsel %vm574_vm2, %v9859_v30, 0.0 }
0x20d1   :  { %v9861_v60 = vpop.eup %9860  ;;  %8813 = vmatpush3.bf16.msra.mxu0 %v5756_v58 }
0x20d2   :  { %v5723_v25 = vsel %vm574_vm2, %v9861_v60, 0.0  ;;  %v9863_v41 = vpop.eup %9862 }
0x20d3   :  { %5733 = vadd.xlane.f32.xlu0 %v5732_v40  ;;  %5724 = vadd.xlane.f32.xlu1 %v5723_v25  ;;  %v5726_v49 = vsel %vm574_vm2, %v9863_v41, 0.0 }
0x20d7   :  { %5727 = vadd.xlane.f32.xlu0 %v5726_v49 }
0x20e4   :  { %5856 = vrot.lane.b32.xlu1 %v12561_v51, %s10060_s12 }
0x20e8   :  { %5854 = vrot.lane.b32.xlu1 %v12333_v3, %s10060_s12 }
0x20ec   :  { %5852 = vrot.lane.b32.xlu1 %v12338_v63, %s10060_s12 }
0x20ed   :  { %5858 = vrot.lane.b32.xlu0 %v12348_v15, %s10060_s12 }
0x20f0   :  { %5846 = vrot.lane.b32.xlu1 %v12333_v3, %s10061_s13 }
0x20f1   :  { %5844 = vrot.lane.b32.xlu0 %v12338_v63, %s10061_s13 }
0x20f4   :  { %5850 = vrot.lane.b32.xlu1 %v12348_v15, %s10061_s13 }
0x20f5   :  { %5848 = vrot.lane.b32.xlu0 %v12561_v51, %s10061_s13 }
0x2150   :  { %v5719_v62 = vpop.xlane.xlu0 %5718 }
0x2154   :  { %v5713_v52 = vpop.xlane.xlu0 %5712  ;;  %v5722_v27 = vpop.xlane.xlu1 %5721 }
0x2155   :  { %9864 = vrcp.f32 %v5722_v27 }
0x2156   :  { %9866 = vrcp.f32 %v5713_v52 }
0x2157   :  { %9868 = vrcp.f32 %v5719_v62 }
0x2158   :  { %v5731_v2 = vpop.xlane.xlu0 %5730  ;;  %v5716_v10 = vpop.xlane.xlu1 %5715 }
0x2159   :  { %9870 = vrcp.f32 %v5716_v10 }
0x215c   :  { %v5734_v35 = vpop.xlane.xlu0 %5733  ;;  %v5725_v9 = vpop.xlane.xlu1 %5724 }
0x215d   :  { %9872 = vrcp.f32 %v5734_v35 }
0x215e   :  { %9874 = vrcp.f32 %v5725_v9 }
0x215f   :  { %9876 = vrcp.f32 %v5731_v2 }
0x2160   :  { %v5728_v55 = vpop.xlane.xlu0 %5727  ;;  %v5857_v9 = vpop.permute.xlu1 %5856 }
0x2161   :  { %9878 = vrcp.f32 %v5728_v55 }
0x2162   :  { %v9865_v54 = vpop.eup %9864 }
0x2163   :  { %v9867_v38 = vpop.eup %9866  ;;  %v5746_v39 = vmul.f32 %v9865_v54, %v9853_v17 }
0x2164   :  { %v5859_v4 = vpop.permute.xlu0 %5858  ;;  %v9869_v8 = vpop.eup %9868  ;;  %v5743_v50 = vmul.f32 %v9867_v38, %v9851_v46 }
0x2165   :  { %9042 = vmatprep.subr.msk.bf16.mxu0 %vm484_vm1, %v5859_v4  ;;  %v5745_v25 = vmul.f32 %v9869_v8, %v12633_v42  ;;  %v5882_v10 = vsel %vm484_vm1, %v5859_v4, 0  ;;  %v5879_v8 = vsel %vm484_vm1, %v5857_v9, 0  ;;  %v5855_v4 = vpop.permute.xlu1 %5854 }
0x2166   :  { %v9871_v58 = vpop.eup %9870 }
0x2167   :  { %v5744_v40 = vmul.f32 %v9871_v58, %v9855_v56  ;;  %v5752_v52 = vpack.c.bf16 %v5746_v39, %v5745_v25 }
0x2168   :  { %v5845_v38 = vpop.permute.xlu0 %5844 }
0x2169   :  { %v5751_v49 = vpack.c.bf16 %v5744_v40, %v5743_v50 }
0x216a   :  { %v9873_v62 = vpop.eup %9872 }
0x216b   :  { %v9875_v27 = vpop.eup %9874  ;;  %8814 = vmatprep.mubr.msk.bf16.mxu0 %vm574_vm2, %v5751_v49  ;;  %v5750_v56 = vmul.f32 %v9873_v62, %v9859_v30  ;;  %v5853_v30 = vpop.permute.xlu1 %5852 }
0x216c   :  { %v9877_v2 = vpop.eup %9876  ;;  %8815 = vmatmul.mubr.msk.bf16.vlgmr.msra.gmra.mxu0 %vm574_vm2, %v5752_v52  ;;  %v5747_v46 = vmul.f32 %v9875_v27, %v9861_v60  ;;  %v5876_v60 = vsel %vm484_vm1, %v5855_v4, 0  ;;  %v5849_v58 = vpop.permute.xlu0 %5848 }
0x216d   :  { %8823 = vmatpush3.bf16.xpose.msra.mxu0 %v5882_v10  ;;  %v5749_v55 = vmul.f32 %v9877_v2, %v12639_v5  ;;  %v5873_v5 = vsel %vm484_vm1, %v5853_v30, 0 }
0x216e   :  { %v9879_v35 = vpop.eup %9878  ;;  %9043 = vmatprep.subr.msk.bf16.mxu0 %vm484_vm1, %v5857_v9 }
0x216f   :  { %v5748_v17 = vmul.f32 %v9879_v35, %v9863_v41  ;;  %v5754_v54 = vpack.c.bf16 %v5750_v56, %v5749_v55  ;;  %v5847_v41 = vpop.permute.xlu1 %5846 }
0x2171   :  { %v5753_v42 = vpack.c.bf16 %v5748_v17, %v5747_v46 }
0x2173   :  { %8818 = vmatprep.mubr.msk.bf16.mxu0 %vm574_vm2, %v5753_v42  ;;  %v5851_v39 = vpop.permute.xlu1 %5850 }
0x2174   :  { %8819 = vmatmul.mubr.msk.bf16.gmra.mxu0 %vm574_vm2, %v5754_v54 }
0x2175   :  { %8825 = vmatpush3.bf16.xpose.msra.mxu0 %v5879_v8  ;;  %8830 = vmatprep.mubr.msk.bf16.mxu0 %vm484_vm1, %v5845_v38 }
0x2176   :  { %9044 = vmatprep.subr.msk.bf16.mxu0 %vm484_vm1, %v5855_v4 }
0x217d   :  { %8827 = vmatpush3.bf16.xpose.msra.mxu0 %v5876_v60 }
0x217e   :  { %9045 = vmatprep.subr.msk.bf16.mxu0 %vm484_vm1, %v5853_v30 }
0x2185   :  { %8829 = vmatpush3.bf16.xpose.msra.mxu0 %v5873_v5 }
0x218c   :  { %8831 = vmatmul.mubr.msk.bf16.vlgmr.msra.gmra.mxu0 %vm484_vm1, %v5847_v41 }
0x218d   :  { %8834 = vmatprep.mubr.msk.bf16.mxu0 %vm484_vm1, %v5849_v58 }
0x2194   :  { %8835 = vmatmul.mubr.msk.bf16.gmra.mxu0 %vm484_vm1, %v5851_v39 }
0x222c   :  { %v12681_v50 = vpop.f32.mrf.mxu0 }
0x222d   :  { %13655 = vst [vmem:[#allocation27_spill] sm:$0xff] %v12681_v50 }
0x222e   :  { %v12683_v40 = vpop.f32.mrf.mxu0 }
0x222f   :  { %13656 = vst [vmem:[#allocation28_spill] sm:$0xff] %v12683_v40 }
0x2230   :  { %v12685_v25 = vpop.f32.mrf.mxu0 }
0x2231   :  { %13657 = vst [vmem:[#allocation29_spill] sm:$0xff] %v12685_v25 }
0x2232   :  { %v12687_v49 = vpop.f32.mrf.mxu0 }
0x2233   :  { %13658 = vst [vmem:[#allocation30_spill] sm:$0xff] %v12687_v49 }
0x2234   :  { %v12689_v62 = vpop.f32.mrf.mxu0 }
0x2235   :  { %13659 = vst [vmem:[#allocation31_spill] sm:$0xff] %v12689_v62 }
0x2236   :  { %v12691_v52 = vpop.f32.mrf.mxu0 }
0x2237   :  { %13660 = vst [vmem:[#allocation32_spill] sm:$0xff] %v12691_v52 }
0x2238   :  { %v12693_v27 = vpop.f32.mrf.mxu0 }
0x2239   :  { %13661 = vst [vmem:[#allocation33_spill] sm:$0xff] %v12693_v27 }
0x223a   :  { %v12695_v2 = vpop.f32.mrf.mxu0 }
0x223b   :  { %13662 = vst [vmem:[#allocation34_spill] sm:$0xff] %v12695_v2 }
0x224c   :  { %v8832_v10 = vpop.f32.mrf.mxu0 }
0x224d   :  { %v5955_v56 = vsel %vm574_vm2, %v8832_v10, -inf }
0x224e   :  { %v5918_v35 = vpop.f32.mrf.mxu0 }
0x224f   :  { %v5949_v9 = vsel %vm574_vm2, %v5918_v35, -inf }
0x2250   :  { %5950 = vmax.xlane.f32.xlu0 %v5949_v9  ;;  %v8833_v46 = vpop.f32.mrf.mxu0 }
0x2251   :  { %v5958_v38 = vsel %vm574_vm2, %v8833_v46, -inf }
0x2252   :  { %v5921_v17 = vpop.f32.mrf.mxu0 }
0x2253   :  { %v5952_v42 = vsel %vm574_vm2, %v5921_v17, -inf }
0x2254   :  { %5956 = vmax.xlane.f32.xlu0 %v5955_v56  ;;  %5953 = vmax.xlane.f32.xlu1 %v5952_v42  ;;  %v8836_v55 = vpop.f32.mrf.mxu0 }
0x2255   :  { %v5967_v30 = vsel %vm574_vm2, %v8836_v55, -inf }
0x2256   :  { %v5934_v54 = vpop.f32.mrf.mxu0 }
0x2257   :  { %v5961_v41 = vsel %vm574_vm2, %v5934_v54, -inf }
0x2258   :  { %5959 = vmax.xlane.f32.xlu0 %v5958_v38  ;;  %v8837_v8 = vpop.f32.mrf.mxu0 }
0x2259   :  { %v5970_v4 = vsel %vm574_vm2, %v8837_v8, -inf }
0x225a   :  { %5971 = vmax.xlane.f32.xlu1 %v5970_v4  ;;  %v5937_v60 = vpop.f32.mrf.mxu0 }
0x225b   :  { %v5964_v5 = vsel %vm574_vm2, %v5937_v60, -inf }
0x225c   :  { %5968 = vmax.xlane.f32.xlu0 %v5967_v30 }
0x225e   :  { %5965 = vmax.xlane.f32.xlu1 %v5964_v5 }
0x2260   :  { %5962 = vmax.xlane.f32.xlu0 %v5961_v41 }
0x226f   :  { %6045 = vrot.lane.b32.xlu1 %v12561_v51, %s10063_s15 }
0x2273   :  { %6043 = vrot.lane.b32.xlu1 %v12333_v3, %s10063_s15 }
0x2276   :  { %6047 = vrot.lane.b32.xlu0 %v12348_v15, %s10063_s15 }
0x2277   :  { %6041 = vrot.lane.b32.xlu1 %v12338_v63, %s10063_s15 }
0x22d9   :  { %v5951_v58 = vpop.xlane.xlu0 %5950 }
0x22da   :  { %v5973_v39 = vsub.f32 %v5918_v35, %v5951_v58 }
0x22dc   :  { %v5981_v38 = vmul.f32 1.442695, %v5973_v39 }
0x22dd   :  { %v5957_v9 = vpop.xlane.xlu0 %5956  ;;  %v5954_v56 = vpop.xlane.xlu1 %5953 }
0x22de   :  { %v5975_v42 = vsub.f32 %v8832_v10, %v5957_v9  ;;  %v5974_v30 = vsub.f32 %v5921_v17, %v5954_v56 }
0x22e0   :  { %v5985_v4 = vmul.f32 1.442695, %v5975_v42  ;;  %v5983_v27 = vmul.f32 1.442695, %v5974_v30 }
0x22e1   :  { %v5960_v5 = vpop.xlane.xlu0 %5959 }
0x22e2   :  { %9880 = vpow2.f32 %v5985_v4  ;;  %v5976_v41 = vsub.f32 %v8833_v46, %v5960_v5 }
0x22e3   :  { %v5972_v62 = vpop.xlane.xlu1 %5971  ;;  %9882 = vpow2.f32 %v5981_v38 }
0x22e4   :  { %v5987_v52 = vmul.f32 1.442695, %v5976_v41  ;;  %v5980_v2 = vsub.f32 %v8837_v8, %v5972_v62 }
0x22e5   :  { %v5969_v50 = vpop.xlane.xlu0 %5968 }
0x22e6   :  { %9884 = vpow2.f32 %v5987_v52  ;;  %v5979_v25 = vsub.f32 %v8836_v55, %v5969_v50  ;;  %v5995_v35 = vmul.f32 1.442695, %v5980_v2 }
0x22e7   :  { %v5966_v40 = vpop.xlane.xlu1 %5965  ;;  %9886 = vpow2.f32 %v5983_v27 }
0x22e8   :  { %v5993_v58 = vmul.f32 1.442695, %v5979_v25  ;;  %v5978_v49 = vsub.f32 %v5937_v60, %v5966_v40 }
0x22e9   :  { %v5963_v10 = vpop.xlane.xlu0 %5962 }
0x22ea   :  { %9888 = vpow2.f32 %v5993_v58  ;;  %v5977_v39 = vsub.f32 %v5934_v54, %v5963_v10  ;;  %v5991_v9 = vmul.f32 1.442695, %v5978_v49 }
0x22eb   :  { %v6046_v17 = vpop.permute.xlu1 %6045  ;;  %9890 = vpow2.f32 %v5995_v35 }
0x22ec   :  { %v5989_v46 = vmul.f32 1.442695, %v5977_v39 }
0x22ed   :  { %v6048_v56 = vpop.permute.xlu0 %6047 }
0x22ee   :  { %9892 = vpow2.f32 %v5989_v46  ;;  %8838 = vmatprep.subr.bf16.mxu1 %v6048_v56 }
0x22ef   :  { %v12713_v42 = vpop.eup %9880  ;;  %8839 = vmatpush3.bf16.msra.mxu1 %v6048_v56  ;;  %9894 = vpow2.f32 %v5991_v9  ;;  %v6044_v40 = vpop.permute.xlu1 %6043 }
0x22f0   :  { %8840 = vmatprep.subr.bf16.mxu1 %v6046_v17  ;;  %v6003_v50 = vsel %vm574_vm2, %v12713_v42, 0.0  ;;  %v9883_v25 = vpop.eup %9882 }
0x22f1   :  { %6004 = vadd.xlane.f32.xlu0 %v6003_v50  ;;  %v5997_v49 = vsel %vm574_vm2, %v9883_v25, 0.0 }
0x22f3   :  { %v9885_v62 = vpop.eup %9884  ;;  %8841 = vmatpush3.bf16.msra.mxu1 %v6046_v17  ;;  %v6042_v55 = vpop.permute.xlu1 %6041 }
0x22f4   :  { %8842 = vmatprep.subr.bf16.mxu1 %v6044_v40  ;;  %v6006_v52 = vsel %vm574_vm2, %v9885_v62, 0.0  ;;  %v9887_v27 = vpop.eup %9886 }
0x22f5   :  { %5998 = vadd.xlane.f32.xlu0 %v5997_v49  ;;  %6007 = vadd.xlane.f32.xlu1 %v6006_v52  ;;  %v6000_v8 = vsel %vm574_vm2, %v9887_v27, 0.0 }
0x22f7   :  { %v12719_v2 = vpop.eup %9888  ;;  %8843 = vmatpush3.bf16.msra.mxu1 %v6044_v40 }
0x22f8   :  { %8844 = vmatprep.subr.bf16.mxu1 %v6042_v55  ;;  %v6015_v54 = vsel %vm574_vm2, %v12719_v2, 0.0  ;;  %v9891_v60 = vpop.eup %9890 }
0x22f9   :  { %6016 = vadd.xlane.f32.xlu0 %v6015_v54  ;;  %6001 = vadd.xlane.f32.xlu1 %v6000_v8  ;;  %v6018_v30 = vsel %vm574_vm2, %v9891_v60, 0.0 }
0x22fb   :  { %v9893_v38 = vpop.eup %9892  ;;  %8845 = vmatpush3.bf16.msra.mxu1 %v6042_v55 }
0x22fc   :  { %v6009_v4 = vsel %vm574_vm2, %v9893_v38, 0.0  ;;  %v9895_v5 = vpop.eup %9894 }
0x22fd   :  { %6010 = vadd.xlane.f32.xlu1 %v6009_v4  ;;  %6019 = vadd.xlane.f32.xlu0 %v6018_v30  ;;  %v6012_v41 = vsel %vm574_vm2, %v9895_v5, 0.0 }
0x2301   :  { %6013 = vadd.xlane.f32.xlu0 %v6012_v41 }
0x230e   :  { %6142 = vrot.lane.b32.xlu1 %v12561_v51, %s10064_s16 }
0x2312   :  { %6140 = vrot.lane.b32.xlu1 %v12333_v3, %s10064_s16 }
0x2316   :  { %6138 = vrot.lane.b32.xlu1 %v12338_v63, %s10064_s16 }
0x2317   :  { %6144 = vrot.lane.b32.xlu0 %v12348_v15, %s10064_s16 }
0x231a   :  { %6132 = vrot.lane.b32.xlu1 %v12333_v3, %s10065_s17 }
0x231b   :  { %6130 = vrot.lane.b32.xlu0 %v12338_v63, %s10065_s17 }
0x231e   :  { %6136 = vrot.lane.b32.xlu1 %v12348_v15, %s10065_s17 }
0x231f   :  { %6134 = vrot.lane.b32.xlu0 %v12561_v51, %s10065_s17 }
0x237a   :  { %v6005_v35 = vpop.xlane.xlu0 %6004 }
0x237e   :  { %v5999_v58 = vpop.xlane.xlu0 %5998  ;;  %v6008_v10 = vpop.xlane.xlu1 %6007 }
0x237f   :  { %9896 = vrcp.f32 %v6008_v10 }
0x2380   :  { %9898 = vrcp.f32 %v5999_v58 }
0x2381   :  { %9900 = vrcp.f32 %v6005_v35 }
0x2382   :  { %v6017_v39 = vpop.xlane.xlu0 %6016  ;;  %v6002_v17 = vpop.xlane.xlu1 %6001 }
0x2383   :  { %9902 = vrcp.f32 %v6002_v17 }
0x2386   :  { %v6020_v9 = vpop.xlane.xlu0 %6019  ;;  %v6011_v46 = vpop.xlane.xlu1 %6010 }
0x2387   :  { %9904 = vrcp.f32 %v6020_v9 }
0x2388   :  { %9906 = vrcp.f32 %v6011_v46 }
0x2389   :  { %9908 = vrcp.f32 %v6017_v39 }
0x238a   :  { %v6014_v56 = vpop.xlane.xlu0 %6013  ;;  %v6143_v46 = vpop.permute.xlu1 %6142 }
0x238b   :  { %9910 = vrcp.f32 %v6014_v56 }
0x238c   :  { %v9897_v50 = vpop.eup %9896 }
0x238d   :  { %v9899_v49 = vpop.eup %9898  ;;  %v6032_v54 = vmul.f32 %v9897_v50, %v9885_v62 }
0x238e   :  { %v6145_v40 = vpop.permute.xlu0 %6144  ;;  %v9901_v52 = vpop.eup %9900  ;;  %v6029_v8 = vmul.f32 %v9899_v49, %v9883_v25 }
0x238f   :  { %9046 = vmatprep.subr.msk.bf16.mxu1 %vm484_vm1, %v6145_v40  ;;  %v6031_v30 = vmul.f32 %v9901_v52, %v12713_v42  ;;  %v6168_v17 = vsel %vm484_vm1, %v6145_v40, 0  ;;  %v6165_v52 = vsel %vm484_vm1, %v6143_v46, 0  ;;  %v6141_v40 = vpop.permute.xlu1 %6140 }
0x2390   :  { %v9903_v55 = vpop.eup %9902 }
0x2391   :  { %v6030_v4 = vmul.f32 %v9903_v55, %v9887_v27  ;;  %v6038_v58 = vpack.c.bf16 %v6032_v54, %v6031_v30 }
0x2392   :  { %v6131_v49 = vpop.permute.xlu0 %6130 }
0x2393   :  { %v6037_v41 = vpack.c.bf16 %v6030_v4, %v6029_v8 }
0x2394   :  { %v9905_v35 = vpop.eup %9904 }
0x2395   :  { %v9907_v10 = vpop.eup %9906  ;;  %8846 = vmatprep.mubr.msk.bf16.mxu1 %vm574_vm2, %v6037_v41  ;;  %v6036_v27 = vmul.f32 %v9905_v35, %v9891_v60  ;;  %v6139_v60 = vpop.permute.xlu1 %6138 }
0x2396   :  { %v9909_v39 = vpop.eup %9908  ;;  %8847 = vmatmul.mubr.msk.bf16.vlgmr.msra.gmra.mxu1 %vm574_vm2, %v6038_v58  ;;  %v6033_v25 = vmul.f32 %v9907_v10, %v9893_v38  ;;  %v6162_v38 = vsel %vm484_vm1, %v6141_v40, 0  ;;  %v6135_v55 = vpop.permute.xlu0 %6134 }
0x2397   :  { %8855 = vmatpush3.bf16.xpose.msra.mxu1 %v6168_v17  ;;  %v6035_v56 = vmul.f32 %v9909_v39, %v12719_v2  ;;  %v6159_v2 = vsel %vm484_vm1, %v6139_v60, 0 }
0x2398   :  { %v9911_v9 = vpop.eup %9910  ;;  %9047 = vmatprep.subr.msk.bf16.mxu1 %vm484_vm1, %v6143_v46 }
0x2399   :  { %v6034_v62 = vmul.f32 %v9911_v9, %v9895_v5  ;;  %v6040_v50 = vpack.c.bf16 %v6036_v27, %v6035_v56  ;;  %v6133_v5 = vpop.permute.xlu1 %6132 }
0x239b   :  { %v6039_v42 = vpack.c.bf16 %v6034_v62, %v6033_v25 }
0x239d   :  { %8850 = vmatprep.mubr.msk.bf16.mxu1 %vm574_vm2, %v6039_v42  ;;  %v6137_v54 = vpop.permute.xlu1 %6136 }
0x239e   :  { %8851 = vmatmul.mubr.msk.bf16.gmra.mxu1 %vm574_vm2, %v6040_v50 }
0x239f   :  { %8857 = vmatpush3.bf16.xpose.msra.mxu1 %v6165_v52  ;;  %8862 = vmatprep.mubr.msk.bf16.mxu1 %vm484_vm1, %v6131_v49 }
0x23a0   :  { %9048 = vmatprep.subr.msk.bf16.mxu1 %vm484_vm1, %v6141_v40 }
0x23a7   :  { %8859 = vmatpush3.bf16.xpose.msra.mxu1 %v6162_v38 }
0x23a8   :  { %9049 = vmatprep.subr.msk.bf16.mxu1 %vm484_vm1, %v6139_v60 }
0x23af   :  { %8861 = vmatpush3.bf16.xpose.msra.mxu1 %v6159_v2 }
0x23b6   :  { %8863 = vmatmul.mubr.msk.bf16.vlgmr.msra.gmra.mxu1 %vm484_vm1, %v6133_v5 }
0x23b7   :  { %8866 = vmatprep.mubr.msk.bf16.mxu1 %vm484_vm1, %v6135_v55 }
0x23be   :  { %8867 = vmatmul.mubr.msk.bf16.gmra.mxu1 %vm484_vm1, %v6137_v54 }
0x2456   :  { %v12761_v8 = vpop.f32.mrf.mxu1 }
0x2458   :  { %v12763_v4 = vpop.f32.mrf.mxu1 }
0x245a   :  { %v12765_v30 = vpop.f32.mrf.mxu1 }
0x245c   :  { %v12769_v35 = vpop.f32.mrf.mxu1 }
0x245e   :  { %v12773_v10 = vpop.f32.mrf.mxu1 }
0x245f   :  { %13663 = vst [vmem:[#allocation35_spill] sm:$0xff] %v12773_v10 }
0x2460   :  { %v12775_v39 = vpop.f32.mrf.mxu1 }
0x2462   :  { %v12777_v17 = vpop.f32.mrf.mxu1 }
0x2464   :  { %v12781_v46 = vpop.f32.mrf.mxu1 }
0x2476   :  { %v8864_v62 = vpop.f32.mrf.mxu1 }
0x2477   :  { %v6241_v49 = vsel %vm574_vm2, %v8864_v62, -inf }
0x2478   :  { %v6204_v27 = vpop.f32.mrf.mxu1 }
0x2479   :  { %v6235_v42 = vsel %vm574_vm2, %v6204_v27, -inf }
0x247a   :  { %6236 = vmax.xlane.f32.xlu0 %v6235_v42  ;;  %v8865_v56 = vpop.f32.mrf.mxu1 }
0x247b   :  { %v6244_v60 = vsel %vm574_vm2, %v8865_v56, -inf }
0x247c   :  { %v6207_v50 = vpop.f32.mrf.mxu1 }
0x247d   :  { %v6238_v52 = vsel %vm574_vm2, %v6207_v50, -inf }
0x247e   :  { %6242 = vmax.xlane.f32.xlu0 %v6241_v49  ;;  %6239 = vmax.xlane.f32.xlu1 %v6238_v52  ;;  %v8868_v40 = vpop.f32.mrf.mxu1 }
0x247f   :  { %v6253_v54 = vsel %vm574_vm2, %v8868_v40, -inf }
0x2480   :  { %v6220_v38 = vpop.f32.mrf.mxu1 }
0x2481   :  { %v6247_v9 = vsel %vm574_vm2, %v6220_v38, -inf }
0x2482   :  { %6245 = vmax.xlane.f32.xlu0 %v6244_v60  ;;  %v8869_v2 = vpop.f32.mrf.mxu1 }
0x2483   :  { %v6256_v5 = vsel %vm574_vm2, %v8869_v2, -inf }
0x2484   :  { %6257 = vmax.xlane.f32.xlu1 %v6256_v5  ;;  %v6223_v55 = vpop.f32.mrf.mxu1 }
0x2485   :  { %v6250_v42 = vsel %vm574_vm2, %v6223_v55, -inf }
0x2486   :  { %6254 = vmax.xlane.f32.xlu0 %v6253_v54 }
0x2488   :  { %6251 = vmax.xlane.f32.xlu1 %v6250_v42 }
0x248a   :  { %6248 = vmax.xlane.f32.xlu0 %v6247_v9 }
0x2499   :  { %6331 = vrot.lane.b32.xlu1 %v12561_v51, %s10066_s18 }
0x249d   :  { %6329 = vrot.lane.b32.xlu1 %v12333_v3, %s10066_s18 }
0x24a0   :  { %6333 = vrot.lane.b32.xlu0 %v12348_v15, %s10066_s18 }
0x24a1   :  { %6327 = vrot.lane.b32.xlu1 %v12338_v63, %s10066_s18 }
0x2503   :  { %v6237_v49 = vpop.xlane.xlu0 %6236 }
0x2504   :  { %v6259_v52 = vsub.f32 %v6204_v27, %v6237_v49 }
0x2506   :  { %v6267_v42 = vmul.f32 1.442695, %v6259_v52 }
0x2507   :  { %v6243_v60 = vpop.xlane.xlu0 %6242  ;;  %v6240_v5 = vpop.xlane.xlu1 %6239 }
0x2508   :  { %v6261_v54 = vsub.f32 %v8864_v62, %v6243_v60  ;;  %v6260_v9 = vsub.f32 %v6207_v50, %v6240_v5 }
0x250a   :  { %v6271_v41 = vmul.f32 1.442695, %v6261_v54  ;;  %v6269_v26 = vmul.f32 1.442695, %v6260_v9 }
0x250b   :  { %v6246_v25 = vpop.xlane.xlu0 %6245 }
0x250c   :  { %9912 = vpow2.f32 %v6271_v41  ;;  %v6262_v58 = vsub.f32 %v8865_v56, %v6246_v25 }
0x250d   :  { %v6258_v32 = vpop.xlane.xlu1 %6257  ;;  %9914 = vpow2.f32 %v6267_v42 }
0x250e   :  { %v6273_v21 = vmul.f32 1.442695, %v6262_v58  ;;  %v6266_v28 = vsub.f32 %v8869_v2, %v6258_v32 }
0x250f   :  { %v6255_v61 = vpop.xlane.xlu0 %6254 }
0x2510   :  { %9916 = vpow2.f32 %v6273_v21  ;;  %v6265_v19 = vsub.f32 %v8868_v40, %v6255_v61  ;;  %v6281_v27 = vmul.f32 1.442695, %v6266_v28 }
0x2511   :  { %v6252_v36 = vpop.xlane.xlu1 %6251  ;;  %9918 = vpow2.f32 %v6269_v26 }
0x2512   :  { %v6279_v49 = vmul.f32 1.442695, %v6265_v19  ;;  %v6264_v53 = vsub.f32 %v6223_v55, %v6252_v36 }
0x2513   :  { %v6249_v62 = vpop.xlane.xlu0 %6248 }
0x2514   :  { %9920 = vpow2.f32 %v6279_v49  ;;  %v6263_v52 = vsub.f32 %v6220_v38, %v6249_v62  ;;  %v6277_v41 = vmul.f32 1.442695, %v6264_v53 }
0x2515   :  { %v6332_v50 = vpop.permute.xlu1 %6331  ;;  %9922 = vpow2.f32 %v6281_v27 }
0x2516   :  { %v6275_v25 = vmul.f32 1.442695, %v6263_v52 }
0x2517   :  { %v6334_v56 = vpop.permute.xlu0 %6333 }
0x2518   :  { %9924 = vpow2.f32 %v6275_v25  ;;  %8870 = vmatprep.subr.bf16.mxu0 %v6334_v56 }
0x2519   :  { %v12801_v58 = vpop.eup %9912  ;;  %8871 = vmatpush3.bf16.msra.mxu0 %v6334_v56  ;;  %9926 = vpow2.f32 %v6277_v41  ;;  %v6330_v36 = vpop.permute.xlu1 %6329 }
0x251a   :  { %8872 = vmatprep.subr.bf16.mxu0 %v6332_v50  ;;  %v6289_v26 = vsel %vm574_vm2, %v12801_v58, 0.0  ;;  %v9915_v32 = vpop.eup %9914 }
0x251b   :  { %6290 = vadd.xlane.f32.xlu0 %v6289_v26  ;;  %v6283_v53 = vsel %vm574_vm2, %v9915_v32, 0.0 }
0x251d   :  { %v9917_v21 = vpop.eup %9916  ;;  %8873 = vmatpush3.bf16.msra.mxu0 %v6332_v50  ;;  %v6328_v40 = vpop.permute.xlu1 %6327 }
0x251e   :  { %8874 = vmatprep.subr.bf16.mxu0 %v6330_v36  ;;  %v6292_v61 = vsel %vm574_vm2, %v9917_v21, 0.0  ;;  %v9919_v28 = vpop.eup %9918 }
0x251f   :  { %6284 = vadd.xlane.f32.xlu0 %v6283_v53  ;;  %6293 = vadd.xlane.f32.xlu1 %v6292_v61  ;;  %v6286_v2 = vsel %vm574_vm2, %v9919_v28, 0.0 }
0x2521   :  { %v12807_v19 = vpop.eup %9920  ;;  %8875 = vmatpush3.bf16.msra.mxu0 %v6330_v36 }
0x2522   :  { %8876 = vmatprep.subr.bf16.mxu0 %v6328_v40  ;;  %v6301_v38 = vsel %vm574_vm2, %v12807_v19, 0.0  ;;  %v9923_v55 = vpop.eup %9922 }
0x2523   :  { %6302 = vadd.xlane.f32.xlu0 %v6301_v38  ;;  %6287 = vadd.xlane.f32.xlu1 %v6286_v2  ;;  %v6304_v54 = vsel %vm574_vm2, %v9923_v55, 0.0 }
0x2525   :  { %v9925_v60 = vpop.eup %9924  ;;  %8877 = vmatpush3.bf16.msra.mxu0 %v6328_v40 }
0x2526   :  { %v6295_v5 = vsel %vm574_vm2, %v9925_v60, 0.0  ;;  %v9927_v42 = vpop.eup %9926 }
0x2527   :  { %6296 = vadd.xlane.f32.xlu1 %v6295_v5  ;;  %6305 = vadd.xlane.f32.xlu0 %v6304_v54  ;;  %v6298_v9 = vsel %vm574_vm2, %v9927_v42, 0.0 }
0x252b   :  { %6299 = vadd.xlane.f32.xlu0 %v6298_v9 }
0x2538   :  { %6428 = vrot.lane.b32.xlu1 %v12561_v51, %s10067_s19 }
0x253c   :  { %6426 = vrot.lane.b32.xlu1 %v12333_v3, %s10067_s19 }
0x2540   :  { %6424 = vrot.lane.b32.xlu1 %v12338_v63, %s10067_s19 }
0x2541   :  { %6430 = vrot.lane.b32.xlu0 %v12348_v15, %s10067_s19 }
0x2544   :  { %6418 = vrot.lane.b32.xlu1 %v12333_v3, %s10068_s20 }
0x2545   :  { %6416 = vrot.lane.b32.xlu0 %v12338_v63, %s10068_s20 }
0x2548   :  { %6422 = vrot.lane.b32.xlu1 %v12348_v15, %s10068_s20 }
0x2549   :  { %6420 = vrot.lane.b32.xlu0 %v12561_v51, %s10068_s20 }
0x25a4   :  { %v6291_v27 = vpop.xlane.xlu0 %6290 }
0x25a8   :  { %v6285_v49 = vpop.xlane.xlu0 %6284  ;;  %v6294_v62 = vpop.xlane.xlu1 %6293 }
0x25a9   :  { %9928 = vrcp.f32 %v6294_v62 }
0x25aa   :  { %9930 = vrcp.f32 %v6285_v49 }
0x25ab   :  { %9932 = vrcp.f32 %v6291_v27 }
0x25ac   :  { %v6303_v52 = vpop.xlane.xlu0 %6302  ;;  %v6288_v50 = vpop.xlane.xlu1 %6287 }
0x25ad   :  { %9934 = vrcp.f32 %v6288_v50 }
0x25b0   :  { %v6306_v41 = vpop.xlane.xlu0 %6305  ;;  %v6297_v25 = vpop.xlane.xlu1 %6296 }
0x25b1   :  { %9936 = vrcp.f32 %v6306_v41 }
0x25b2   :  { %9938 = vrcp.f32 %v6297_v25 }
0x25b3   :  { %9940 = vrcp.f32 %v6303_v52 }
0x25b4   :  { %v6300_v56 = vpop.xlane.xlu0 %6299  ;;  %v6429_v25 = vpop.permute.xlu1 %6428 }
0x25b5   :  { %9942 = vrcp.f32 %v6300_v56 }
0x25b6   :  { %v9929_v26 = vpop.eup %9928 }
0x25b7   :  { %v9931_v53 = vpop.eup %9930  ;;  %v6318_v38 = vmul.f32 %v9929_v26, %v9917_v21 }
0x25b8   :  { %v6431_v36 = vpop.permute.xlu0 %6430  ;;  %v9933_v61 = vpop.eup %9932  ;;  %v6315_v2 = vmul.f32 %v9931_v53, %v9915_v32  ;;  %v6451_v53 = vsel %vm484_vm1, %v6429_v25, 0 }
0x25b9   :  { %9050 = vmatprep.subr.msk.bf16.mxu0 %vm484_vm1, %v6431_v36  ;;  %v6317_v54 = vmul.f32 %v9933_v61, %v12801_v58  ;;  %v6454_v50 = vsel %vm484_vm1, %v6431_v36, 0  ;;  %v6427_v36 = vpop.permute.xlu1 %6426 }
0x25ba   :  { %v9935_v40 = vpop.eup %9934 }
0x25bb   :  { %v6316_v5 = vmul.f32 %v9935_v40, %v9919_v28  ;;  %v6324_v49 = vpack.c.bf16 %v6318_v38, %v6317_v54 }
0x25bc   :  { %v6417_v61 = vpop.permute.xlu0 %6416 }
0x25bd   :  { %v6323_v9 = vpack.c.bf16 %v6316_v5, %v6315_v2 }
0x25be   :  { %v9937_v27 = vpop.eup %9936 }
0x25bf   :  { %v9939_v62 = vpop.eup %9938  ;;  %8878 = vmatprep.mubr.msk.bf16.mxu0 %vm574_vm2, %v6323_v9  ;;  %v6322_v28 = vmul.f32 %v9937_v27, %v9923_v55  ;;  %v6425_v55 = vpop.permute.xlu1 %6424 }
0x25c0   :  { %v9941_v52 = vpop.eup %9940  ;;  %8879 = vmatmul.mubr.msk.bf16.vlgmr.msra.gmra.mxu0 %vm574_vm2, %v6324_v49  ;;  %v6319_v32 = vmul.f32 %v9939_v62, %v9925_v60  ;;  %v6448_v60 = vsel %vm484_vm1, %v6427_v36, 0  ;;  %v6421_v40 = vpop.permute.xlu0 %6420 }
0x25c1   :  { %8887 = vmatpush3.bf16.xpose.msra.mxu0 %v6454_v50  ;;  %v6321_v56 = vmul.f32 %v9941_v52, %v12807_v19  ;;  %v6445_v19 = vsel %vm484_vm1, %v6425_v55, 0 }
0x25c2   :  { %v9943_v41 = vpop.eup %9942  ;;  %9051 = vmatprep.subr.msk.bf16.mxu0 %vm484_vm1, %v6429_v25 }
0x25c3   :  { %v6320_v21 = vmul.f32 %v9943_v41, %v9927_v42  ;;  %v6326_v26 = vpack.c.bf16 %v6322_v28, %v6321_v56  ;;  %v6419_v42 = vpop.permute.xlu1 %6418 }
0x25c5   :  { %v6325_v58 = vpack.c.bf16 %v6320_v21, %v6319_v32 }
0x25c7   :  { %8882 = vmatprep.mubr.msk.bf16.mxu0 %vm574_vm2, %v6325_v58  ;;  %v6423_v38 = vpop.permute.xlu1 %6422 }
0x25c8   :  { %8883 = vmatmul.mubr.msk.bf16.gmra.mxu0 %vm574_vm2, %v6326_v26 }
0x25c9   :  { %8889 = vmatpush3.bf16.xpose.msra.mxu0 %v6451_v53  ;;  %8894 = vmatprep.mubr.msk.bf16.mxu0 %vm484_vm1, %v6417_v61 }
0x25ca   :  { %9052 = vmatprep.subr.msk.bf16.mxu0 %vm484_vm1, %v6427_v36 }
0x25d1   :  { %8891 = vmatpush3.bf16.xpose.msra.mxu0 %v6448_v60 }
0x25d2   :  { %9053 = vmatprep.subr.msk.bf16.mxu0 %vm484_vm1, %v6425_v55 }
0x25d9   :  { %8893 = vmatpush3.bf16.xpose.msra.mxu0 %v6445_v19 }
0x25e0   :  { %8895 = vmatmul.mubr.msk.bf16.vlgmr.msra.gmra.mxu0 %vm484_vm1, %v6419_v42 }
0x25e1   :  { %8898 = vmatprep.mubr.msk.bf16.mxu0 %vm484_vm1, %v6421_v40 }
0x25e8   :  { %8899 = vmatmul.mubr.msk.bf16.gmra.mxu0 %vm484_vm1, %v6423_v38 }
0x2680   :  { %v12849_v2 = vpop.f32.mrf.mxu0 }
0x2682   :  { %v12851_v5 = vpop.f32.mrf.mxu0 }
0x2684   :  { %v12853_v54 = vpop.f32.mrf.mxu0 }
0x2686   :  { %v12857_v27 = vpop.f32.mrf.mxu0 }
0x2688   :  { %v12861_v62 = vpop.f32.mrf.mxu0 }
0x2689   :  { %13664 = vst [vmem:[#allocation36_spill] sm:$0xff] %v12861_v62 }
0x268a   :  { %v12863_v52 = vpop.f32.mrf.mxu0 }
0x268b   :  { %13665 = vst [vmem:[#allocation37_spill] sm:$0xff] %v12863_v52 }
0x268c   :  { %v12865_v50 = vpop.f32.mrf.mxu0 }
0x268d   :  { %13666 = vst [vmem:[#allocation38_spill] sm:$0xff] %v12865_v50 }
0x268e   :  { %v12869_v25 = vpop.f32.mrf.mxu0 }
0x268f   :  { %13667 = vst [vmem:[#allocation39_spill] sm:$0xff] %v12869_v25 }
0x26a0   :  { %v8896_v21 = vpop.f32.mrf.mxu0 }
0x26a1   :  { %v6527_v53 = vsel %vm574_vm2, %v8896_v21, -inf }
0x26a2   :  { %v6490_v28 = vpop.f32.mrf.mxu0 }
0x26a3   :  { %v6521_v58 = vsel %vm574_vm2, %v6490_v28, -inf }
0x26a4   :  { %6522 = vmax.xlane.f32.xlu0 %v6521_v58  ;;  %v8897_v56 = vpop.f32.mrf.mxu0 }
0x26a5   :  { %v6530_v55 = vsel %vm574_vm2, %v8897_v56, -inf }
0x26a6   :  { %v6493_v26 = vpop.f32.mrf.mxu0 }
0x26a7   :  { %v6524_v61 = vsel %vm574_vm2, %v6493_v26, -inf }
0x26a8   :  { %6528 = vmax.xlane.f32.xlu0 %v6527_v53  ;;  %6525 = vmax.xlane.f32.xlu1 %v6524_v61  ;;  %v8900_v36 = vpop.f32.mrf.mxu0 }
0x26a9   :  { %v6539_v58 = vsel %vm574_vm2, %v8900_v36, -inf }
0x26aa   :  { %v6506_v60 = vpop.f32.mrf.mxu0 }
0x26ab   :  { %v6533_v40 = vsel %vm574_vm2, %v6506_v60, -inf }
0x26ac   :  { %6531 = vmax.xlane.f32.xlu0 %v6530_v55  ;;  %v8901_v19 = vpop.f32.mrf.mxu0 }
0x26ad   :  { %v6542_v32 = vsel %vm574_vm2, %v8901_v19, -inf }
0x26ae   :  { %v6509_v42 = vpop.f32.mrf.mxu0 }
0x26af   :  { %v6536_v38 = vsel %vm574_vm2, %v6509_v42, -inf }
0x26b0   :  { %6534 = vmax.xlane.f32.xlu0 %v6533_v40  ;;  %6537 = vmax.xlane.f32.xlu1 %v6536_v38 }
0x26b4   :  { %6540 = vmax.xlane.f32.xlu0 %v6539_v58  ;;  %6543 = vmax.xlane.f32.xlu1 %v6542_v32 }
0x272d   :  { %v6523_v53 = vpop.xlane.xlu0 %6522 }
0x272e   :  { %v6545_v61 = vsub.f32 %v6490_v28, %v6523_v53 }
0x2730   :  { %v6553_v55 = vmul.f32 1.442695, %v6545_v61 }
0x2731   :  { %v6529_v41 = vpop.xlane.xlu0 %6528  ;;  %v6526_v9 = vpop.xlane.xlu1 %6525 }
0x2732   :  { %v6547_v49 = vsub.f32 %v8896_v21, %v6529_v41  ;;  %v6546_v25 = vsub.f32 %v6493_v26, %v6526_v9 }
0x2734   :  { %v6557_v52 = vmul.f32 1.442695, %v6547_v49  ;;  %v6555_v40 = vmul.f32 1.442695, %v6546_v25 }
0x2735   :  { %v6532_v62 = vpop.xlane.xlu0 %6531 }
0x2736   :  { %9944 = vpow2.f32 %v6557_v52  ;;  %v6548_v50 = vsub.f32 %v8897_v56, %v6532_v62 }
0x2737   :  { %9946 = vpow2.f32 %v6553_v55 }
0x2738   :  { %v6559_v38 = vmul.f32 1.442695, %v6548_v50 }
0x2739   :  { %v6535_v47 = vpop.xlane.xlu0 %6534  ;;  %v6538_v56 = vpop.xlane.xlu1 %6537 }
0x273a   :  { %9948 = vpow2.f32 %v6559_v38  ;;  %v6549_v7 = vsub.f32 %v6506_v60, %v6535_v47  ;;  %v13668_v60 = vpack.i.bf16 %v12423_v11, %v12417_v37  ;;  %v6550_v61 = vsub.f32 %v6509_v42, %v6538_v56 }
0x273b   :  { %9950 = vpow2.f32 %v6555_v40  ;;  %v13672_v37 = vpack.i.bf16 %v12523_v14, %v12517_v13  ;;  %v13675_v13 = vpack.i.bf16 %v12857_v27, %v12851_v5  ;;  %v13676_v14 = vpack.i.bf16 %v12781_v46, %v12775_v39 }
0x273c   :  { %v6561_v10 = vmul.f32 1.442695, %v6549_v7  ;;  %v6563_v40 = vmul.f32 1.442695, %v6550_v61 }
0x273d   :  { %v6541_v58 = vpop.xlane.xlu0 %6540  ;;  %v6544_v26 = vpop.xlane.xlu1 %6543 }
0x273e   :  { %v6551_v32 = vsub.f32 %v8900_v36, %v6541_v58  ;;  %v6552_v36 = vsub.f32 %v8901_v19, %v6544_v26 }
0x2740   :  { %v6565_v28 = vmul.f32 1.442695, %v6551_v32  ;;  %v6567_v55 = vmul.f32 1.442695, %v6552_v36 }
0x2742   :  { %9952 = vpow2.f32 %v6565_v28  ;;  %v9324_v28 = vld [vmem:[%s13551_s2 + $0x18] sm:$0xff]  }
0x2743   :  { %v12881_v53 = vpop.eup %9944  ;;  %9954 = vpow2.f32 %v6561_v10 }
0x2744   :  { %v6575_v9 = vsel %vm574_vm2, %v12881_v53, 0.0  ;;  %v12885_v49 = vpop.eup %9946  ;;  %9956 = vpow2.f32 %v6567_v55  ;;  %v13688_v55 = vld [vmem:[#allocation20_spill] sm:$0xff] }
0x2745   :  { %6576 = vadd.xlane.f32.xlu0 %v6575_v9  ;;  %v6569_v52 = vsel %vm574_vm2, %v12885_v49, 0.0  ;;  %9958 = vpow2.f32 %v6563_v40 }
0x2747   :  { %v12887_v62 = vpop.eup %9948 }
0x2748   :  { %v6578_v47 = vsel %vm574_vm2, %v12887_v62, 0.0  ;;  %v12893_v7 = vpop.eup %9950 }
0x2749   :  { %6570 = vadd.xlane.f32.xlu0 %v6569_v52  ;;  %6579 = vadd.xlane.f32.xlu1 %v6578_v47  ;;  %v6572_v10 = vsel %vm574_vm2, %v12893_v7, 0.0 }
0x274d   :  { %6573 = vadd.xlane.f32.xlu1 %v6572_v10 }
0x274f   :  { %v12897_v50 = vpop.eup %9952 }
0x2750   :  { %v6587_v41 = vsel %vm574_vm2, %v12897_v50, 0.0  ;;  %v12901_v25 = vpop.eup %9954 }
0x2751   :  { %6588 = vadd.xlane.f32.xlu0 %v6587_v41  ;;  %v6581_v21 = vsel %vm574_vm2, %v12901_v25, 0.0  ;;  %v12931_v11 = vpop.eup %9956  ;;  %v9325_v41 = vld [vmem:[%s13551_s2 + $0x10] sm:$0xff]  }
0x2755   :  { %6582 = vadd.xlane.f32.xlu0 %v6581_v21 }
0x275e   :  { %6617 = vrot.lane.b32.xlu1 %v12561_v51, %s10069_s21  ;;  %v13669_v51 = vpack.i.bf16 %v12511_v43, %v12505_v23  ;;  %v13673_v23 = vpack.i.bf16 %v12613_v29, %v12607_v59  ;;  %v6590_v43 = vsel %vm574_vm2, %v12931_v11, 0.0  ;;  %v13678_v59 = vpack.i.bf16 %v12507_v34, %v12503_v6 }
0x275f   :  { %v13679_v29 = vpack.i.bf16 %v12597_v31, %v12593_v45 }
0x2762   :  { %6615 = vrot.lane.b32.xlu1 %v12333_v3, %s10069_s21  ;;  %v13670_v3 = vpack.i.bf16 %v12601_v1, %v12595_v12  ;;  %v12939_v12 = vpop.eup %9958  ;;  %v13677_v1 = vpack.i.bf16 %v12419_v48, %v12415_v20  ;;  %v13682_v20 = vpack.i.bf16 %v12609_v16, %v12605_v57  ;;  %v13683_v48 = vpack.i.bf16 %v12765_v30, %v12761_v8 }
0x276b   :  { %6619 = vrot.lane.b32.xlu0 %v12348_v15, %s10069_s21  ;;  %v13671_v15 = vpack.i.bf16 %v12435_v18, %v12429_v22  ;;  %v13674_v22 = vpack.i.bf16 %v12769_v35, %v12763_v4  ;;  %v6584_v18 = vsel %vm574_vm2, %v12939_v12, 0.0  ;;  %v13680_v4 = vpack.i.bf16 %v12431_v33, %v12427_v0  ;;  %v13685_v33 = vld [vmem:[#allocation35_spill] sm:$0xff] }
0x276c   :  { %v13684_v0 = vpack.i.bf16 %v12853_v54, %v12849_v2  ;;  %v13686_v6 = vpack.i.bf16 %v12777_v17, %v13685_v33 }
0x276f   :  { %9189 = vrot.lane.b32.xlu0 %v13668_v60, %s10070_s22  ;;  %v13687_v60 = vld [vmem:[#allocation22_spill] sm:$0xff] }
0x2773   :  { %9199 = vrot.lane.b32.xlu0 %v13669_v51, %s10071_s23 }
0x2777   :  { %9209 = vrot.lane.b32.xlu0 %v13670_v3, %s10072_s24 }
0x277b   :  { %9219 = vrot.lane.b32.xlu0 %v13671_v15, %s10070_s22 }
0x277f   :  { %9229 = vrot.lane.b32.xlu0 %v13672_v37, %s10071_s23 }
0x2783   :  { %9239 = vrot.lane.b32.xlu0 %v13673_v23, %s10072_s24 }
0x2786   :  { %6591 = vadd.xlane.f32.xlu1 %v6590_v43 }
0x2787   :  { %9249 = vrot.lane.b32.xlu0 %v13674_v22, %s10070_s22 }
0x278a   :  { %6585 = vadd.xlane.f32.xlu1 %v6584_v18 }
0x278b   :  { %9259 = vrot.lane.b32.xlu0 %v13675_v13, %s10071_s23 }
0x278f   :  { %9269 = vrot.lane.b32.xlu0 %v13676_v14, %s10070_s22 }
0x279b   :  { %6613 = vrot.lane.b32.xlu1 %v12338_v63, %s10069_s21  ;;  %v13681_v63 = vpack.i.bf16 %v12519_v44, %v12515_v24 }
0x279f   :  { %9194 = vrot.lane.b32.xlu1 %v13677_v1, %s10070_s22 }
0x27a3   :  { %9204 = vrot.lane.b32.xlu1 %v13678_v59, %s10071_s23 }
0x27a7   :  { %9214 = vrot.lane.b32.xlu1 %v13679_v29, %s10072_s24 }
0x27ab   :  { %9224 = vrot.lane.b32.xlu1 %v13680_v4, %s10070_s22 }
0x27af   :  { %9234 = vrot.lane.b32.xlu1 %v13681_v63, %s10071_s23 }
0x27b3   :  { %9244 = vrot.lane.b32.xlu1 %v13682_v20, %s10072_s24 }
0x27b7   :  { %9254 = vrot.lane.b32.xlu1 %v13683_v48, %s10070_s22 }
0x27bb   :  { %9264 = vrot.lane.b32.xlu1 %v13684_v0, %s10071_s23 }
0x27bf   :  { %9274 = vrot.lane.b32.xlu1 %v13686_v6, %s10070_s22 }
0x27ce   :  { %v6577_v34 = vpop.xlane.xlu0 %6576 }
0x27d2   :  { %v6571_v24 = vpop.xlane.xlu0 %6570  ;;  %v6580_v44 = vpop.xlane.xlu1 %6579 }
0x27d3   :  { %9960 = vrcp.f32 %v6571_v24 }
0x27d6   :  { %v6574_v45 = vpop.xlane.xlu1 %6573 }
0x27d7   :  { %9962 = vrcp.f32 %v6574_v45 }
0x27d8   :  { %9964 = vrcp.f32 %v6580_v44 }
0x27d9   :  { %9966 = vrcp.f32 %v6577_v34 }
0x27da   :  { %v6589_v31 = vpop.xlane.xlu0 %6588  ;;  %v6618_v8 = vpop.permute.xlu1 %6617 }
0x27de   :  { %v6583_v57 = vpop.xlane.xlu0 %6582  ;;  %v6616_v2 = vpop.permute.xlu1 %6615 }
0x27e0   :  { %v9961_v16 = vpop.eup %9960 }
0x27e1   :  { %v6601_v39 = vmul.f32 %v9961_v16, %v12885_v49 }
0x27e2   :  { %v6620_v30 = vpop.permute.xlu0 %6619 }
0x27e3   :  { %8902 = vmatprep.subr.bf16.mxu1 %v6620_v30 }
0x27e4   :  { %v9963_v35 = vpop.eup %9962  ;;  %8903 = vmatpush3.bf16.msra.mxu1 %v6620_v30 }
0x27e5   :  { %8904 = vmatprep.subr.bf16.mxu1 %v6618_v8  ;;  %v6602_v17 = vmul.f32 %v9963_v35, %v12893_v7  ;;  %v9965_v42 = vpop.eup %9964  ;;  %v13690_v35 = vld [vmem:[#allocation19_spill] sm:$0xff] }
0x27e6   :  { %v9190_v5 = vpop.permute.xlu0 %9189  ;;  %v9967_v58 = vpop.eup %9966  ;;  %v6604_v32 = vmul.f32 %v9965_v42, %v12887_v62 }
0x27e7   :  { %v6609_v46 = vpack.c.bf16 %v6602_v17, %v6601_v39  ;;  %v6603_v49 = vmul.f32 %v9967_v58, %v12881_v53  ;;  %v9192_v7 = vunpack.i.h.bf16 %v9190_v5  ;;  %v9191_v10 = vunpack.i.l.bf16 %v9190_v5  ;;  %v13691_v17 = vld [vmem:[#allocation26_spill] sm:$0xff] }
0x27e8   :  { %8905 = vmatpush3.bf16.msra.mxu1 %v6618_v8  ;;  %v13689_v8 = vld [vmem:[#allocation21_spill] sm:$0xff] }
0x27e9   :  { %8906 = vmatprep.subr.bf16.mxu1 %v6616_v2  ;;  %8910 = vmatprep.mubr.msk.bf16.mxu1 %vm574_vm2, %v6609_v46  ;;  %v6610_v47 = vpack.c.bf16 %v6604_v32, %v6603_v49  ;;  %v5539_v61 = vsel %vm484_vm1, %v13687_v60, %v9192_v7  ;;  %v5538_v51 = vsel %vm484_vm1, %v13688_v55, %v9191_v10 }
0x27ea   :  { %v9200_v54 = vpop.permute.xlu0 %9199 }
0x27eb   :  { %v9202_v21 = vunpack.i.h.bf16 %v9200_v54  ;;  %v9201_v62 = vunpack.i.l.bf16 %v9200_v54 }
0x27ec   :  { %8907 = vmatpush3.bf16.msra.mxu1 %v6616_v2  ;;  %v13692_v2 = vld [vmem:[#allocation24_spill] sm:$0xff] }
0x27ed   :  { %v5546_v15 = vsel %vm1718_vm3, %v5538_v51, %v9201_v62  ;;  %v5547_v37 = vsel %vm1718_vm3, %v5539_v61, %v9202_v21  ;;  %v13693_v62 = vld [vmem:[#allocation25_spill] sm:$0xff] }
0x27ee   :  { %v9210_v19 = vpop.permute.xlu0 %9209 }
0x27ef   :  { %v9212_v26 = vunpack.i.h.bf16 %v9210_v19  ;;  %v9211_v36 = vunpack.i.l.bf16 %v9210_v19 }
0x27f1   :  { %v5554_v22 = vsel %vm1727_vm4, %v5546_v15, %v9211_v36  ;;  %v5555_v18 = vsel %vm1727_vm4, %v5547_v37, %v9212_v26  ;;  %v13694_v26 = vld [vmem:[#allocation23_spill] sm:$0xff] }
0x27f2   :  { %v9220_v52 = vpop.permute.xlu0 %9219  ;;  %v6822_v29 = vpack.c.bf16 %v5555_v18, %v5554_v22 }
0x27f3   :  { %v9222_v20 = vunpack.i.h.bf16 %v9220_v52  ;;  %v9221_v34 = vunpack.i.l.bf16 %v9220_v52 }
0x27f5   :  { %v5543_v46 = vsel %vm484_vm1, %v13691_v17, %v9222_v20  ;;  %v5542_v5 = vsel %vm484_vm1, %v13692_v2, %v9221_v34  ;;  %v13704_v2 = vld [vmem:[#allocation13_spill] sm:$0xff] }
0x27f6   :  { %v9230_v40 = vpop.permute.xlu0 %9229 }
0x27fa   :  { %v9240_v48 = vpop.permute.xlu0 %9239 }
0x280f   :  { %v6592_v27 = vpop.xlane.xlu1 %6591 }
0x2810   :  { %9968 = vrcp.f32 %v6592_v27 }
0x2811   :  { %9970 = vrcp.f32 %v6583_v57 }
0x2812   :  { %9972 = vrcp.f32 %v6589_v31  ;;  %v9232_v31 = vunpack.i.h.bf16 %v9230_v40 }
0x2813   :  { %v6586_v38 = vpop.xlane.xlu1 %6585 }
0x2814   :  { %9974 = vrcp.f32 %v6586_v38  ;;  %v5551_v42 = vsel %vm1718_vm3, %v5543_v46, %v9232_v31 }
0x2817   :  { %v6614_v9 = vpop.permute.xlu1 %6613 }
0x2818   :  { %8908 = vmatprep.subr.bf16.mxu1 %v6614_v9 }
0x2819   :  { %8909 = vmatpush3.bf16.msra.mxu1 %v6614_v9 }
0x281a   :  { %8918 = vmatprep.subr.bf16.mxu1 %v9324_v28 }
0x281b   :  { %v9195_v56 = vpop.permute.xlu1 %9194 }
0x281c   :  { %8911 = vmatmul.mubr.msk.bf16.vlgmr.msra.gmra.mxu1 %vm574_vm2, %v6610_v47  ;;  %v9197_v0 = vunpack.i.h.bf16 %v9195_v56  ;;  %v9196_v33 = vunpack.i.l.bf16 %v9195_v56 }
0x281d   :  { %8919 = vmatpush3.bf16.msra.mxu1 %v9324_v28  ;;  %v9969_v53 = vpop.eup %9968 }
0x281e   :  { %8920 = vmatprep.subr.bf16.mxu1 %v9325_v41  ;;  %v9971_v3 = vpop.eup %9970  ;;  %v6608_v14 = vmul.f32 %v9969_v53, %v12931_v11  ;;  %v9231_v11 = vunpack.i.l.bf16 %v9230_v40  ;;  %v5541_v30 = vsel %vm484_vm1, %v13689_v8, %v9197_v0  ;;  %v5540_v39 = vsel %vm484_vm1, %v13690_v35, %v9196_v33 }
0x281f   :  { %v9205_v23 = vpop.permute.xlu1 %9204  ;;  %v9973_v43 = vpop.eup %9972  ;;  %v6605_v1 = vmul.f32 %v9971_v3, %v12901_v25  ;;  %v9242_v25 = vunpack.i.h.bf16 %v9240_v48 }
0x2820   :  { %v6607_v63 = vmul.f32 %v9973_v43, %v12897_v50  ;;  %v9207_v24 = vunpack.i.h.bf16 %v9205_v23  ;;  %v9206_v44 = vunpack.i.l.bf16 %v9205_v23  ;;  %v5550_v19 = vsel %vm1718_vm3, %v5542_v5, %v9231_v11 }
0x2821   :  { %v9975_v13 = vpop.eup %9974  ;;  %8921 = vmatpush3.bf16.msra.mxu1 %v9325_v41  ;;  %v5559_v28 = vsel %vm1727_vm4, %v5551_v42, %v9242_v25 }
0x2822   :  { %v6606_v59 = vmul.f32 %v9975_v13, %v12939_v12  ;;  %v6612_v45 = vpack.c.bf16 %v6608_v14, %v6607_v63  ;;  %v9241_v12 = vunpack.i.l.bf16 %v9240_v48  ;;  %v5548_v54 = vsel %vm1718_vm3, %v5540_v39, %v9206_v44  ;;  %v13695_v13 = vld [vmem:[#allocation38_spill] sm:$0xff]  ;;  %v13696_v14 = vld [vmem:[#allocation36_spill] sm:$0xff]  ;;  %v13703_v39 = vld [vmem:[#allocation11_spill] sm:$0xff] }
0x2823   :  { %v9215_v4 = vpop.permute.xlu1 %9214  ;;  %v5549_v27 = vsel %vm1718_vm3, %v5541_v30, %v9207_v24 }
0x2824   :  { %v6611_v6 = vpack.c.bf16 %v6606_v59, %v6605_v1  ;;  %v9217_v57 = vunpack.i.h.bf16 %v9215_v4  ;;  %v9216_v16 = vunpack.i.l.bf16 %v9215_v4  ;;  %v5558_v32 = vsel %vm1727_vm4, %v5550_v19, %v9241_v12  ;;  %v13699_v4 = vld [vmem:[#allocation37_spill] sm:$0xff] }
0x2825   :  { %v6824_v41 = vpack.c.bf16 %v5559_v28, %v5558_v32  ;;  %v13697_v1 = vpack.i.bf16 %v13695_v13, %v13696_v14  ;;  %v13706_v32 = vld [vmem:[#allocation14_spill] sm:$0xff] }
0x2826   :  { %8914 = vmatprep.mubr.msk.bf16.mxu1 %vm574_vm2, %v6611_v6  ;;  %v5556_v38 = vsel %vm1727_vm4, %v5548_v54, %v9216_v16  ;;  %v5557_v58 = vsel %vm1727_vm4, %v5549_v27, %v9217_v57  ;;  %v13062_v57 = vld [vmem:[%s13550_s5 + $0x8] sm:$0xff]  ;;  %v13701_v16 = vld [vmem:[#allocation2_spill] sm:$0xff]  ;;  %v13705_v27 = vld [vmem:[#allocation12_spill] sm:$0xff] }
0x2827   :  { %8915 = vmatmul.mubr.msk.bf16.gmra.mxu1 %vm574_vm2, %v6612_v45  ;;  %v9225_v50 = vpop.permute.xlu1 %9224  ;;  %v6823_v47 = vpack.c.bf16 %v5557_v58, %v5556_v38  ;;  %v13702_v25 = vsub.s32 5, %v13701_v16 }
0x2828   :  { %8922 = vmatprep.mubr.msk.bf16.mxu1 %vm69_vm0, %v6822_v29  ;;  %v9227_v49 = vunpack.i.h.bf16 %v9225_v50  ;;  %v9226_v52 = vunpack.i.l.bf16 %v9225_v50  ;;  %v13698_v29 = vld [vmem:[#allocation39_spill] sm:$0xff] }
0x2829   :  { %v13700_v63 = vpack.i.bf16 %v13698_v29, %v13699_v4  ;;  %v13067_v12 = vrot.slane %v13062_v57, %v13702_v25 }
0x282a   :  { %v5545_v56 = vsel %vm484_vm1, %v13693_v62, %v9227_v49  ;;  %v5544_v36 = vsel %vm484_vm1, %v13694_v26, %v9226_v52  ;;  %v13707_v49 = vld [vmem:[#allocation15_spill] sm:$0xff] }
0x282b   :  { %v9235_v9 = vpop.permute.xlu1 %9234 }
0x282c   :  { %v9237_v7 = vunpack.i.h.bf16 %v9235_v9  ;;  %v9236_v10 = vunpack.i.l.bf16 %v9235_v9 }
0x282e   :  { %v5552_v61 = vsel %vm1718_vm3, %v5544_v36, %v9236_v10  ;;  %v5553_v55 = vsel %vm1718_vm3, %v5545_v56, %v9237_v7  ;;  %v13708_v10 = vld [vmem:[#allocation6_spill] sm:$0xff]  ;;  %v13709_v56 = vld [vmem:[#allocation17_spill] sm:$0xff] }
0x282f   :  { %v9245_v21 = vpop.permute.xlu1 %9244  ;;  %8923 = vmatmul.mubr.msk.bf16.vlgmr.msra.gmra.mxu1 %vm69_vm0, %v6823_v47 }
0x2830   :  { %v9247_v53 = vunpack.i.h.bf16 %v9245_v21  ;;  %v9246_v60 = vunpack.i.l.bf16 %v9245_v21  ;;  %8926 = vmatprep.mubr.msk.bf16.mxu1 %vm69_vm0, %v6824_v41 }
0x2832   :  { %v5560_v51 = vsel %vm1727_vm4, %v5552_v61, %v9246_v60  ;;  %v5561_v40 = vsel %vm1727_vm4, %v5553_v55, %v9247_v53  ;;  %v13710_v60 = vld [vmem:[#allocation16_spill] sm:$0xff] }
0x2833   :  { %v6825_v3 = vpack.c.bf16 %v5561_v40, %v5560_v51  ;;  %v9255_v40 = vpop.permute.xlu1 %9254 }
0x2834   :  { %v9257_v13 = vunpack.i.h.bf16 %v9255_v40  ;;  %v9256_v14 = vunpack.i.l.bf16 %v9255_v40  ;;  %v13716_v40 = vld [vmem:[#allocation32_spill] sm:$0xff] }
0x2837   :  { %8927 = vmatmul.mubr.msk.bf16.gmra.mxu1 %vm69_vm0, %v6825_v3  ;;  %v9250_v3 = vpop.permute.xlu0 %9249 }
0x28dc   :  { %v8912_v15 = vpop.f32.mrf.mxu1 }
0x28de   :  { %v6671_v37 = vpop.f32.mrf.mxu1 }
0x28e0   :  { %v8913_v23 = vpop.f32.mrf.mxu1 }
0x28e1   :  { %v9278_v43 = vpack.i.bf16 %v8913_v23, %v8912_v15  ;;  %v9265_v15 = vpop.permute.xlu1 %9264 }
0x28e2   :  { %v6674_v22 = vpop.f32.mrf.mxu1 }
0x28e3   :  { %v9283_v18 = vpack.i.bf16 %v6674_v22, %v6671_v37  ;;  %9279 = vrot.lane.b32.xlu1 %v9278_v43, %s10072_s24  ;;  %v9260_v37 = vpop.permute.xlu0 %9259  ;;  %v9252_v43 = vunpack.i.h.bf16 %v9250_v3  ;;  %v9251_v22 = vunpack.i.l.bf16 %v9250_v3 }
0x28e4   :  { %v9262_v29 = vunpack.i.h.bf16 %v9260_v37  ;;  %v9261_v4 = vunpack.i.l.bf16 %v9260_v37 }
0x28e5   :  { %9284 = vrot.lane.b32.xlu0 %v9283_v18, %s10072_s24  ;;  %v9275_v23 = vpop.permute.xlu1 %9274 }
0x28e7   :  { %9294 = vrot.lane.b32.xlu1 %v13697_v1, %s10071_s23  ;;  %v8916_v59 = vpop.f32.mrf.mxu1  ;;  %v9270_v18 = vpop.permute.xlu0 %9269  ;;  %v9267_v1 = vunpack.i.h.bf16 %v9265_v15 }
0x28e9   :  { %9289 = vrot.lane.b32.xlu0 %v13700_v63, %s10071_s23  ;;  %v6687_v20 = vpop.f32.mrf.mxu1 }
0x28eb   :  { %v8917_v48 = vpop.f32.mrf.mxu1 }
0x28ec   :  { %v9303_v0 = vpack.i.bf16 %v8917_v48, %v8916_v59  ;;  %v9266_v59 = vunpack.i.l.bf16 %v9265_v15  ;;  %v13717_v15 = vld [vmem:[#allocation33_spill] sm:$0xff] }
0x28ed   :  { %v6690_v33 = vpop.f32.mrf.mxu1 }
0x28ee   :  { %v9298_v6 = vpack.i.bf16 %v6690_v33, %v6687_v20  ;;  %9304 = vrot.lane.b32.xlu1 %v9303_v0, %s10072_s24  ;;  %v13711_v0 = vld [vmem:[#allocation30_spill] sm:$0xff] }
0x28ef   :  { %v8924_v34 = vpop.f32.mrf.mxu1  ;;  %v6799_v33 = vsel %vm484_vm1, %v13711_v0, %v9252_v43  ;;  %v13718_v43 = vld [vmem:[#allocation31_spill] sm:$0xff] }
0x28f0   :  { %9299 = vrot.lane.b32.xlu0 %v9298_v6, %s10072_s24  ;;  %v6913_v35 = vadd.f32 %v8924_v34, %v13067_v12  ;;  %v13712_v6 = vld [vmem:[#allocation28_spill] sm:$0xff] }
0x28f1   :  { %v6904_v24 = vpop.f32.mrf.mxu1  ;;  %v6798_v34 = vsel %vm484_vm1, %v13712_v6, %v9251_v22 }
0x28f2   :  { %v6905_v50 = vadd.f32 %v6904_v24, %v13067_v12  ;;  %v13080_v19 = vadd.f32 %v6913_v35, %v13705_v27  ;;  %v13713_v24 = vld [vmem:[#allocation29_spill] sm:$0xff]  ;;  %v6806_v35 = vsel %vm1718_vm3, %v6798_v34, %v9261_v4 }
0x28f3   :  { %v8925_v44 = vpop.f32.mrf.mxu1 }
0x28f4   :  { %v13073_v17 = vadd.f32 %v6905_v50, %v13703_v39  ;;  %v6916_v42 = vadd.f32 %v8925_v44, %v13067_v12  ;;  %v6989_v7 = vsel %vm69_vm0, %v13080_v19, 0.0  ;;  %v6801_v44 = vsel %vm484_vm1, %v13713_v24, %v9257_v13 }
0x28f5   :  { %v6907_v45 = vpop.f32.mrf.mxu1  ;;  %v6809_v50 = vsel %vm1718_vm3, %v6801_v44, %v9267_v1  ;;  %v6807_v39 = vsel %vm1718_vm3, %v6799_v33, %v9262_v29 }
0x28f6   :  { %v6908_v30 = vadd.f32 %v6907_v45, %v13067_v12  ;;  %v6983_v38 = vsel %vm69_vm0, %v13073_v17, 0.0  ;;  %v13092_v52 = vadd.f32 %v6916_v42, %v13707_v49  ;;  %v13714_v45 = vld [vmem:[#allocation27_spill] sm:$0xff]  ;;  %v9271_v49 = vunpack.i.l.bf16 %v9270_v18 }
0x28f7   :  { %v8928_v31 = vpop.f32.mrf.mxu1 }
0x28f8   :  { %v13076_v5 = vadd.f32 %v6908_v30, %v13704_v2  ;;  %v6929_v62 = vadd.f32 %v8928_v31, %v13067_v12  ;;  %v6992_v36 = vsel %vm69_vm0, %v13092_v52, 0.0  ;;  %v6800_v31 = vsel %vm484_vm1, %v13714_v45, %v9256_v14 }
0x28f9   :  { %v6920_v11 = vpop.f32.mrf.mxu1  ;;  %v6808_v25 = vsel %vm1718_vm3, %v6800_v31, %v9266_v59  ;;  %v6802_v3 = vsel %vm484_vm1, %v13716_v40, %v9271_v49 }
0x28fa   :  { %v6986_v9 = vsel %vm69_vm0, %v13076_v5, 0.0  ;;  %v6921_v47 = vadd.f32 %v6920_v11, %v13067_v12  ;;  %v13111_v61 = vadd.f32 %v6929_v62, %v13710_v60 }
0x28fb   :  { %v8929_v8 = vpop.f32.mrf.mxu1 }
0x28fc   :  { %v6932_v58 = vadd.f32 %v8929_v8, %v13067_v12  ;;  %v13104_v26 = vadd.f32 %v6921_v47, %v13709_v56  ;;  %v7001_v51 = vsel %vm69_vm0, %v13111_v61, 0.0  ;;  %v9277_v47 = vunpack.i.h.bf16 %v9275_v23 }
0x28fd   :  { %v6923_v46 = vpop.f32.mrf.mxu1 }
0x28fe   :  { %v6924_v54 = vadd.f32 %v6923_v46, %v13067_v12  ;;  %v13098_v41 = vadd.f32 %v6932_v58, %v13708_v10  ;;  %v6995_v55 = vsel %vm69_vm0, %v13104_v26, 0.0  ;;  %v6805_v37 = vsel %vm484_vm1, %v13717_v15, %v9277_v47 }
0x2900   :  { %v13087_v28 = vadd.f32 %v6924_v54, %v13706_v32  ;;  %v7004_v53 = vsel %vm69_vm0, %v13098_v41, 0.0 }
0x2902   :  { %v6998_v21 = vsel %vm69_vm0, %v13087_v28, 0.0 }
0x290f   :  { %6984 = vadd.xlane.f32.xlu0 %v6983_v38 }
0x2912   :  { %6987 = vadd.xlane.f32.xlu1 %v6986_v9  ;;  %v9272_v9 = vunpack.i.h.bf16 %v9270_v18 }
0x2913   :  { %6990 = vadd.xlane.f32.xlu0 %v6989_v7  ;;  %v9276_v7 = vunpack.i.l.bf16 %v9275_v23 }
0x2915   :  { %v6804_v23 = vsel %vm484_vm1, %v13718_v43, %v9276_v7 }
0x2916   :  { %6999 = vadd.xlane.f32.xlu1 %v6998_v21 }
0x2917   :  { %6993 = vadd.xlane.f32.xlu0 %v6992_v36 }
0x291a   :  { %7005 = vadd.xlane.f32.xlu1 %v7004_v53 }
0x291b   :  { %6996 = vadd.xlane.f32.xlu0 %v6995_v55  ;;  %v13715_v55 = vld [vmem:[#allocation34_spill] sm:$0xff] }
0x291f   :  { %7002 = vadd.xlane.f32.xlu0 %v7001_v51  ;;  %v6803_v51 = vsel %vm484_vm1, %v13715_v55, %v9272_v9 }
0x2955   :  { %v9280_v63 = vpop.permute.xlu1 %9279 }
0x2956   :  { %v9282_v20 = vunpack.i.h.bf16 %v9280_v63  ;;  %v9281_v48 = vunpack.i.l.bf16 %v9280_v63 }
0x2957   :  { %v9285_v11 = vpop.permute.xlu0 %9284 }
0x2958   :  { %v9287_v8 = vunpack.i.h.bf16 %v9285_v11  ;;  %v9286_v30 = vunpack.i.l.bf16 %v9285_v11  ;;  %v6816_v46 = vsel %vm1727_vm4, %v6808_v25, %v9281_v48  ;;  %v6817_v2 = vsel %vm1727_vm4, %v6809_v50, %v9282_v20  ;;  %v13719_v25 = vld [vmem:[#allocation4_spill] sm:$0xff] }
0x2959   :  { %v6827_v38 = vpack.c.bf16 %v6817_v2, %v6816_v46  ;;  %v9295_v58 = vpop.permute.xlu1 %9294 }
0x295a   :  { %v6815_v54 = vsel %vm1727_vm4, %v6807_v39, %v9287_v8  ;;  %v6814_v27 = vsel %vm1727_vm4, %v6806_v35, %v9286_v30  ;;  %v9297_v10 = vunpack.i.h.bf16 %v9295_v58  ;;  %v9296_v21 = vunpack.i.l.bf16 %v9295_v58  ;;  %v13720_v30 = vld [vmem:[#allocation5_spill] sm:$0xff] }
0x295b   :  { %v6826_v42 = vpack.c.bf16 %v6815_v54, %v6814_v27  ;;  %v9290_v32 = vpop.permute.xlu0 %9289  ;;  %v13721_v54 = vld [vmem:[#allocation3_spill] sm:$0xff] }
0x295c   :  { %v9292_v62 = vunpack.i.h.bf16 %v9290_v32  ;;  %v9291_v56 = vunpack.i.l.bf16 %v9290_v32  ;;  %v6812_v18 = vsel %vm1718_vm3, %v6804_v23, %v9296_v21  ;;  %v6813_v13 = vsel %vm1718_vm3, %v6805_v37, %v9297_v10  ;;  %v13724_v37 = vld [vmem:[#allocation7_spill] sm:$0xff] }
0x295d   :  { %8930 = vmatprep.mubr.msk.bf16.mxu1 %vm69_vm0, %v6826_v42 }
0x295e   :  { %8931 = vmatmul.mubr.msk.bf16.gmra.mxu1 %vm69_vm0, %v6827_v38  ;;  %v6811_v59 = vsel %vm1718_vm3, %v6803_v51, %v9292_v62  ;;  %v6810_v29 = vsel %vm1718_vm3, %v6802_v3, %v9291_v56  ;;  %v13722_v38 = vld [vmem:[#allocation8_spill] sm:$0xff] }
0x2960   :  { %v9305_v36 = vpop.permute.xlu1 %9304 }
0x2961   :  { %v9307_v53 = vunpack.i.h.bf16 %v9305_v36  ;;  %v9306_v60 = vunpack.i.l.bf16 %v9305_v36 }
0x2962   :  { %v9300_v22 = vpop.permute.xlu0 %9299 }
0x2963   :  { %v9302_v14 = vunpack.i.h.bf16 %v9300_v22  ;;  %v9301_v1 = vunpack.i.l.bf16 %v9300_v22  ;;  %v6820_v4 = vsel %vm1727_vm4, %v6812_v18, %v9306_v60  ;;  %v6821_v63 = vsel %vm1727_vm4, %v6813_v13, %v9307_v53  ;;  %v13723_v53 = vld [vmem:[#allocation10_spill] sm:$0xff]  ;;  %v13725_v13 = vld [vmem:[#allocation9_spill] sm:$0xff] }
0x2964   :  { %v6829_v33 = vpack.c.bf16 %v6821_v63, %v6820_v4 }
0x2965   :  { %v6819_v20 = vsel %vm1727_vm4, %v6811_v59, %v9302_v14  ;;  %v6818_v48 = vsel %vm1727_vm4, %v6810_v29, %v9301_v1 }
0x2966   :  { %v6828_v0 = vpack.c.bf16 %v6819_v20, %v6818_v48 }
0x2968   :  { %8934 = vmatprep.mubr.msk.bf16.mxu1 %vm69_vm0, %v6828_v0 }
0x2969   :  { %8935 = vmatmul.mubr.msk.bf16.gmra.mxu1 %vm69_vm0, %v6829_v33 }
0x2998   :  { %v6985_v6 = vpop.xlane.xlu0 %6984 }
0x2999   :  { %v7031_v47 = vmul.f32 0.03125, %v6985_v6 }
0x299b   :  { %v6988_v10 = vpop.xlane.xlu1 %6987  ;;  %v13183_v55 = vsub.f32 %v13073_v17, %v7031_v47 }
0x299c   :  { %v6991_v11 = vpop.xlane.xlu0 %6990  ;;  %v7032_v51 = vmul.f32 0.03125, %v6988_v10 }
0x299d   :  { %v7033_v40 = vmul.f32 0.03125, %v6991_v11  ;;  %v7063_v63 = vmul.f32 %v13183_v55, %v13183_v55 }
0x299e   :  { %v13196_v1 = vsub.f32 %v13076_v5, %v7032_v51  ;;  %v9327_v51 = vld [vmem:[%s13552_s3 + $0x10] sm:$0xff]  }
0x299f   :  { %v13199_v59 = vsub.f32 %v13080_v19, %v7033_v40  ;;  %v7000_v29 = vpop.xlane.xlu1 %6999 }
0x29a0   :  { %v6994_v42 = vpop.xlane.xlu0 %6993 }
0x29a1   :  { %v7034_v4 = vmul.f32 0.03125, %v6994_v42 }
0x29a4   :  { %v6997_v3 = vpop.xlane.xlu0 %6996 }
0x29a5   :  { %v7035_v20 = vmul.f32 0.03125, %v6997_v3 }
0x29a7   :  { %v13219_v11 = vsub.f32 %v13104_v26, %v7035_v20 }
0x29a8   :  { %v7003_v6 = vpop.xlane.xlu0 %7002 }
0x2a1e   :  { %v8932_v34 = vpop.f32.mrf.mxu1 }
0x2a1f   :  { %v6945_v44 = vadd.f32 %v8932_v34, %v13067_v12  ;;  %v7036_v34 = vmul.f32 0.03125, %v7000_v29 }
0x2a20   :  { %v6936_v24 = vpop.f32.mrf.mxu1 }
0x2a21   :  { %v6937_v45 = vadd.f32 %v6936_v24, %v13067_v12  ;;  %v13159_v35 = vadd.f32 %v6945_v44, %v13720_v30  ;;  %v7079_v24 = vsel %vm69_vm0, %v7063_v63, 0.0  ;;  %v7064_v44 = vmul.f32 %v13196_v1, %v13196_v1  ;;  %v7006_v30 = vpop.xlane.xlu1 %7005 }
0x2a22   :  { %v8933_v31 = vpop.f32.mrf.mxu1 }
0x2a23   :  { %v13156_v50 = vadd.f32 %v6937_v45, %v13719_v25  ;;  %v6948_v39 = vadd.f32 %v8933_v31, %v13067_v12  ;;  %v7013_v49 = vsel %vm69_vm0, %v13159_v35, 0.0  ;;  %v7065_v45 = vmul.f32 %v13199_v59, %v13199_v59 }
0x2a24   :  { %v6939_v8 = vpop.f32.mrf.mxu1  ;;  %v13216_v31 = vsub.f32 %v13092_v52, %v7034_v4  ;;  %v7037_v25 = vmul.f32 0.03125, %v7003_v6 }
0x2a25   :  { %v6940_v46 = vadd.f32 %v6939_v8, %v13067_v12  ;;  %v7007_v2 = vsel %vm69_vm0, %v13156_v50, 0.0  ;;  %v13169_v58 = vadd.f32 %v6948_v39, %v13722_v38  ;;  %v13224_v39 = vsub.f32 %v13087_v28, %v7036_v34 }
0x2a26   :  { %7008 = vadd.xlane.f32.xlu0 %v7007_v2  ;;  %v7085_v2 = vsel %vm69_vm0, %v7065_v45, 0.0  ;;  %v13229_v42 = vsub.f32 %v13111_v61, %v7037_v25  ;;  %v7066_v38 = vmul.f32 %v13216_v31, %v13216_v31 }
0x2a27   :  { %v13166_v27 = vadd.f32 %v6940_v46, %v13721_v54  ;;  %v7016_v36 = vsel %vm69_vm0, %v13169_v58, 0.0  ;;  %v7082_v46 = vsel %vm69_vm0, %v7064_v44, 0.0  ;;  %v7038_v54 = vmul.f32 0.03125, %v7006_v30 }
0x2a28   :  { %v7088_v47 = vsel %vm69_vm0, %v7066_v38, 0.0  ;;  %v7069_v10 = vmul.f32 %v13229_v42, %v13229_v42 }
0x2a29   :  { %v8936_v32 = vpop.f32.mrf.mxu1  ;;  %v7010_v9 = vsel %vm69_vm0, %v13166_v27, 0.0 }
0x2a2a   :  { %7011 = vadd.xlane.f32.xlu1 %v7010_v9  ;;  %7014 = vadd.xlane.f32.xlu0 %v7013_v49  ;;  %v6961_v21 = vadd.f32 %v8936_v32, %v13067_v12  ;;  %v7067_v32 = vmul.f32 %v13219_v11, %v13219_v11  ;;  %v7068_v9 = vmul.f32 %v13224_v39, %v13224_v39 }
0x2a2b   :  { %v6952_v7 = vpop.f32.mrf.mxu1  ;;  %v13238_v49 = vsub.f32 %v13098_v41, %v7038_v54 }
0x2a2c   :  { %v6953_v62 = vadd.f32 %v6952_v7, %v13067_v12  ;;  %v13186_v43 = vadd.f32 %v6961_v21, %v13724_v37  ;;  %v7091_v7 = vsel %vm69_vm0, %v7067_v32, 0.0  ;;  %v7094_v21 = vsel %vm69_vm0, %v7068_v9, 0.0 }
0x2a2d   :  { %v8937_v56 = vpop.f32.mrf.mxu1 }
0x2a2e   :  { %v13180_v60 = vadd.f32 %v6953_v62, %v13723_v53  ;;  %7017 = vadd.xlane.f32.xlu1 %v7016_v36  ;;  %v6964_v23 = vadd.f32 %v8937_v56, %v13067_v12  ;;  %v7025_v33 = vsel %vm69_vm0, %v13186_v43, 0.0  ;;  %v7097_v62 = vsel %vm69_vm0, %v7069_v10, 0.0  ;;  %v9326_v53 = vld [vmem:[%s13552_s3 + $0x18] sm:$0xff]  }
0x2a2f   :  { %v6955_v15 = vpop.f32.mrf.mxu1  ;;  %v7070_v56 = vmul.f32 %v13238_v49, %v13238_v49  ;;  %8938 = vmatprep.subr.bf16.mxu0 %v9326_v53 }
0x2a30   :  { %v6956_v22 = vadd.f32 %v6955_v15, %v13067_v12  ;;  %v7019_v18 = vsel %vm69_vm0, %v13180_v60, 0.0  ;;  %v13726_v12 = vld [vmem:[#allocation18_spill] sm:$0xff]  ;;  %8939 = vmatpush3.bf16.msra.mxu0 %v9326_v53 }
0x2a31   :  { %7020 = vadd.xlane.f32.xlu0 %v7019_v18  ;;  %v13204_v48 = vadd.f32 %v6964_v23, %v13726_v12  ;;  %v7100_v36 = vsel %vm69_vm0, %v7070_v56, 0.0  ;;  %8940 = vmatprep.subr.bf16.mxu0 %v9327_v51 }
0x2a32   :  { %v13193_v14 = vadd.f32 %v6956_v22, %v13725_v13 }
0x2a33   :  { %v7028_v8 = vsel %vm69_vm0, %v13204_v48, 0.0 }
0x2a34   :  { %v7022_v0 = vsel %vm69_vm0, %v13193_v14, 0.0  ;;  %8941 = vmatpush3.bf16.msra.mxu0 %v9327_v51 }
0x2a35   :  { %7023 = vadd.xlane.f32.xlu1 %v7022_v0  ;;  %7026 = vadd.xlane.f32.xlu0 %v7025_v33 }
0x2a39   :  { %7029 = vadd.xlane.f32.xlu1 %v7028_v8  ;;  %7080 = vadd.xlane.f32.xlu0 %v7079_v24 }
0x2a3d   :  { %7083 = vadd.xlane.f32.xlu1 %v7082_v46  ;;  %7086 = vadd.xlane.f32.xlu0 %v7085_v2 }
0x2a41   :  { %7089 = vadd.xlane.f32.xlu1 %v7088_v47  ;;  %7092 = vadd.xlane.f32.xlu0 %v7091_v7 }
0x2a45   :  { %7095 = vadd.xlane.f32.xlu1 %v7094_v21  ;;  %7098 = vadd.xlane.f32.xlu0 %v7097_v62 }
0x2a49   :  { %7101 = vadd.xlane.f32.xlu1 %v7100_v36 }
0x2aaf   :  { %v7009_v40 = vpop.xlane.xlu0 %7008 }
0x2ab0   :  { %v7039_v3 = vmul.f32 0.03125, %v7009_v40 }
0x2ab2   :  { %v13256_v15 = vsub.f32 %v13156_v50, %v7039_v3 }
0x2ab3   :  { %v7012_v37 = vpop.xlane.xlu1 %7011  ;;  %v7015_v23 = vpop.xlane.xlu0 %7014 }
0x2ab4   :  { %v7040_v22 = vmul.f32 0.03125, %v7012_v37  ;;  %v7041_v18 = vmul.f32 0.03125, %v7015_v23  ;;  %v7071_v13 = vmul.f32 %v13256_v15, %v13256_v15 }
0x2ab6   :  { %v13261_v29 = vsub.f32 %v13166_v27, %v7040_v22  ;;  %v13264_v4 = vsub.f32 %v13159_v35, %v7041_v18  ;;  %v7103_v63 = vsel %vm69_vm0, %v7071_v13, 0.0 }
0x2ab7   :  { %v7018_v20 = vpop.xlane.xlu1 %7017  ;;  %7104 = vadd.xlane.f32.xlu0 %v7103_v63 }
0x2ab8   :  { %v7042_v12 = vmul.f32 0.03125, %v7018_v20  ;;  %v7072_v0 = vmul.f32 %v13261_v29, %v13261_v29  ;;  %v7073_v33 = vmul.f32 %v13264_v4, %v13264_v4 }
0x2aba   :  { %v13272_v6 = vsub.f32 %v13169_v58, %v7042_v12  ;;  %v7021_v34 = vpop.xlane.xlu0 %7020  ;;  %v7106_v24 = vsel %vm69_vm0, %v7072_v0, 0.0  ;;  %v7109_v44 = vsel %vm69_vm0, %v7073_v33, 0.0 }
0x2abb   :  { %v7043_v45 = vmul.f32 0.03125, %v7021_v34  ;;  %7107 = vadd.xlane.f32.xlu1 %v7106_v24  ;;  %7110 = vadd.xlane.f32.xlu0 %v7109_v44 }
0x2abc   :  { %v7074_v25 = vmul.f32 %v13272_v6, %v13272_v6 }
0x2abd   :  { %v13279_v8 = vsub.f32 %v13180_v60, %v7043_v45 }
0x2abe   :  { %v7024_v30 = vpop.xlane.xlu1 %7023  ;;  %v7027_v46 = vpop.xlane.xlu0 %7026  ;;  %v7112_v2 = vsel %vm69_vm0, %v7074_v25, 0.0 }
0x2abf   :  { %v7044_v54 = vmul.f32 0.03125, %v7024_v30  ;;  %v7045_v38 = vmul.f32 0.03125, %v7027_v46  ;;  %7113 = vadd.xlane.f32.xlu1 %v7112_v2  ;;  %v7075_v32 = vmul.f32 %v13279_v8, %v13279_v8 }
0x2ac1   :  { %v13285_v9 = vsub.f32 %v13193_v14, %v7044_v54  ;;  %v13288_v47 = vsub.f32 %v13186_v43, %v7045_v38  ;;  %v7115_v7 = vsel %vm69_vm0, %v7075_v32, 0.0 }
0x2ac2   :  { %v7030_v10 = vpop.xlane.xlu1 %7029  ;;  %7116 = vadd.xlane.f32.xlu0 %v7115_v7  ;;  %v7081_v21 = vpop.xlane.xlu0 %7080 }
0x2ac3   :  { %v7046_v62 = vmul.f32 0.03125, %v7030_v10  ;;  %v7127_v56 = vmul.f32 0.03125, %v7081_v21  ;;  %v7076_v36 = vmul.f32 %v13285_v9, %v13285_v9  ;;  %v7077_v53 = vmul.f32 %v13288_v47, %v13288_v47 }
0x2ac5   :  { %v13296_v51 = vsub.f32 %v13204_v48, %v7046_v62  ;;  %v7143_v40 = vadd.f32 1e-06, %v7127_v56  ;;  %v7118_v3 = vsel %vm69_vm0, %v7076_v36, 0.0  ;;  %v7121_v37 = vsel %vm69_vm0, %v7077_v53, 0.0 }
0x2ac6   :  { %v7084_v23 = vpop.xlane.xlu1 %7083  ;;  %7119 = vadd.xlane.f32.xlu1 %v7118_v3  ;;  %7122 = vadd.xlane.f32.xlu0 %v7121_v37  ;;  %v7087_v22 = vpop.xlane.xlu0 %7086  ;;  %v13727_v62 = vsub.s32 2, %v13701_v16  ;;  %v13728_v37 = vsub.s32 3, %v13701_v16 }
0x2ac7   :  { %9976 = vrsqrt.f32 %v7143_v40  ;;  %v7128_v18 = vmul.f32 0.03125, %v7084_v23  ;;  %v7129_v13 = vmul.f32 0.03125, %v7087_v22  ;;  %v7078_v63 = vmul.f32 %v13296_v51, %v13296_v51 }
0x2ac8   :  { %v13306_v56 = vrot.slane %v13062_v57, %v13727_v62  ;;  %v13312_v23 = vrot.slane %v13062_v57, %v13728_v37  ;;  %v9331_v37 = vld [vmem:[%s13553_s4 + $0x60] sm:$0xff]  }
0x2ac9   :  { %v7144_v20 = vadd.f32 1e-06, %v7128_v18  ;;  %v7145_v12 = vadd.f32 1e-06, %v7129_v13  ;;  %v7124_v0 = vsel %vm69_vm0, %v7078_v63, 0.0 }
0x2aca   :  { %7125 = vadd.xlane.f32.xlu1 %v7124_v0  ;;  %v7090_v33 = vpop.xlane.xlu1 %7089  ;;  %v7093_v34 = vpop.xlane.xlu0 %7092 }
0x2acb   :  { %9978 = vrsqrt.f32 %v7144_v20  ;;  %v7130_v24 = vmul.f32 0.03125, %v7090_v33  ;;  %v7131_v44 = vmul.f32 0.03125, %v7093_v34 }
0x2acc   :  { %9980 = vrsqrt.f32 %v7145_v12 }
0x2acd   :  { %v7146_v45 = vadd.f32 1e-06, %v7130_v24  ;;  %v7147_v25 = vadd.f32 1e-06, %v7131_v44 }
0x2ace   :  { %v7096_v30 = vpop.xlane.xlu1 %7095  ;;  %v7099_v46 = vpop.xlane.xlu0 %7098 }
0x2acf   :  { %9982 = vrsqrt.f32 %v7146_v45  ;;  %v7132_v2 = vmul.f32 0.03125, %v7096_v30  ;;  %v7133_v54 = vmul.f32 0.03125, %v7099_v46 }
0x2ad0   :  { %9984 = vrsqrt.f32 %v7147_v25 }
0x2ad1   :  { %v7148_v38 = vadd.f32 1e-06, %v7132_v2  ;;  %v7149_v32 = vadd.f32 1e-06, %v7133_v54 }
0x2ad2   :  { %v7102_v7 = vpop.xlane.xlu1 %7101 }
0x2ad3   :  { %9986 = vrsqrt.f32 %v7148_v38  ;;  %v7134_v10 = vmul.f32 0.03125, %v7102_v7 }
0x2ad4   :  { %v9977_v21 = vpop.eup %9976  ;;  %9988 = vrsqrt.f32 %v7149_v32 }
0x2ad5   :  { %v7150_v36 = vadd.f32 1e-06, %v7134_v10  ;;  %v7175_v53 = vmul.f32 %v9977_v21, %v13183_v55 }
0x2ad7   :  { %9990 = vrsqrt.f32 %v7150_v36  ;;  %v7195_v18 = vmul.f32 %v13306_v56, %v7175_v53 }
0x2ad8   :  { %v9979_v40 = vpop.eup %9978 }
0x2ad9   :  { %v9981_v3 = vpop.eup %9980  ;;  %v7176_v22 = vmul.f32 %v9979_v40, %v13196_v1  ;;  %v7215_v33 = vadd.f32 %v13312_v23, %v7195_v18  ;;  %v9329_v40 = vld [vmem:[%s13553_s4 + $0x70] sm:$0xff]  }
0x2ada   :  { %v7177_v13 = vmul.f32 %v9981_v3, %v13199_v59  ;;  %v9330_v3 = vld [vmem:[%s13553_s4 + $0x68] sm:$0xff]  }
0x2adb   :  { %v7196_v63 = vmul.f32 %v13306_v56, %v7176_v22  ;;  %v9332_v22 = vld [vmem:[%s13553_s4 + $0x58] sm:$0xff]  }
0x2adc   :  { %v9983_v20 = vpop.eup %9982  ;;  %v7197_v55 = vmul.f32 %v13306_v56, %v7177_v13  ;;  %v9333_v13 = vld [vmem:[%s13553_s4 + $0x50] sm:$0xff]  }
0x2add   :  { %v9985_v12 = vpop.eup %9984  ;;  %v7178_v0 = vmul.f32 %v9983_v20, %v13216_v31  ;;  %v7216_v34 = vadd.f32 %v13312_v23, %v7196_v63 }
0x2ade   :  { %v7179_v24 = vmul.f32 %v9985_v12, %v13219_v11  ;;  %v7217_v59 = vadd.f32 %v13312_v23, %v7197_v55 }
0x2adf   :  { %v7198_v1 = vmul.f32 %v13306_v56, %v7178_v0  ;;  %v7231_v44 = vpack.c.bf16 %v7216_v34, %v7215_v33  ;;  %v9334_v0 = vld [vmem:[%s13553_s4 + $0x48] sm:$0xff]  }
0x2ae0   :  { %v9987_v45 = vpop.eup %9986  ;;  %v7199_v31 = vmul.f32 %v13306_v56, %v7179_v24 }
0x2ae1   :  { %v9989_v25 = vpop.eup %9988  ;;  %v7218_v30 = vadd.f32 %v13312_v23, %v7198_v1  ;;  %8942 = vmatprep.mubr.msk.bf16.mxu0 %vm69_vm0, %v7231_v44  ;;  %v7180_v46 = vmul.f32 %v9987_v45, %v13224_v39  ;;  %v9335_v45 = vld [vmem:[%s13553_s4 + $0x40] sm:$0xff]  }
0x2ae2   :  { %v7181_v2 = vmul.f32 %v9989_v25, %v13229_v42  ;;  %v7219_v7 = vadd.f32 %v13312_v23, %v7199_v31 }
0x2ae3   :  { %v7232_v54 = vpack.c.bf16 %v7218_v30, %v7217_v59  ;;  %v7200_v11 = vmul.f32 %v13306_v56, %v7180_v46 }
0x2ae4   :  { %v9991_v38 = vpop.eup %9990  ;;  %v7201_v21 = vmul.f32 %v13306_v56, %v7181_v2 }
0x2ae5   :  { %v7182_v32 = vmul.f32 %v9991_v38, %v13238_v49  ;;  %8943 = vmatmul.mubr.msk.bf16.vlgmr.msra.gmra.mxu0 %vm69_vm0, %v7232_v54  ;;  %v7220_v10 = vadd.f32 %v13312_v23, %v7200_v11  ;;  %v9328_v49 = vld [vmem:[%s13553_s4 + $0x78] sm:$0xff]  }
0x2ae6   :  { %v7221_v42 = vadd.f32 %v13312_v23, %v7201_v21  ;;  %8958 = vmatprep.subr.bf16.mxu1 %v9328_v49 }
0x2ae7   :  { %v7233_v62 = vpack.c.bf16 %v7220_v10, %v7219_v7  ;;  %v7202_v39 = vmul.f32 %v13306_v56, %v7182_v32  ;;  %8959 = vmatpush3.bf16.msra.mxu1 %v9328_v49 }
0x2ae8   :  { %8960 = vmatprep.subr.bf16.mxu1 %v9329_v40 }
0x2ae9   :  { %8946 = vmatprep.mubr.msk.bf16.mxu0 %vm69_vm0, %v7233_v62  ;;  %v7222_v36 = vadd.f32 %v13312_v23, %v7202_v39 }
0x2aeb   :  { %v7234_v53 = vpack.c.bf16 %v7222_v36, %v7221_v42  ;;  %8961 = vmatpush3.bf16.msra.mxu1 %v9329_v40 }
0x2aec   :  { %8962 = vmatprep.subr.bf16.mxu1 %v9330_v3 }
0x2aed   :  { %8947 = vmatmul.mubr.msk.bf16.gmra.mxu0 %vm69_vm0, %v7234_v53 }
0x2aef   :  { %8963 = vmatpush3.bf16.msra.mxu1 %v9330_v3 }
0x2af0   :  { %8964 = vmatprep.subr.bf16.mxu1 %v9331_v37 }
0x2af3   :  { %8965 = vmatpush3.bf16.msra.mxu1 %v9331_v37 }
0x2af4   :  { %8966 = vmatprep.subr.bf16.mxu1 %v9332_v22 }
0x2af7   :  { %8967 = vmatpush3.bf16.msra.mxu1 %v9332_v22 }
0x2af8   :  { %8968 = vmatprep.subr.bf16.mxu1 %v9333_v13 }
0x2afb   :  { %8969 = vmatpush3.bf16.msra.mxu1 %v9333_v13 }
0x2afc   :  { %8970 = vmatprep.subr.bf16.mxu1 %v9334_v0 }
0x2aff   :  { %8971 = vmatpush3.bf16.msra.mxu1 %v9334_v0 }
0x2b00   :  { %8972 = vmatprep.subr.bf16.mxu1 %v9335_v45 }
0x2b03   :  { %8973 = vmatpush3.bf16.msra.mxu1 %v9335_v45 }
0x2b40   :  { %v7105_v18 = vpop.xlane.xlu0 %7104 }
0x2b41   :  { %v7135_v63 = vmul.f32 0.03125, %v7105_v18 }
0x2b43   :  { %v7151_v20 = vadd.f32 1e-06, %v7135_v63 }
0x2b44   :  { %v7108_v12 = vpop.xlane.xlu1 %7107  ;;  %v7111_v55 = vpop.xlane.xlu0 %7110 }
0x2b45   :  { %9992 = vrsqrt.f32 %v7151_v20  ;;  %v7136_v33 = vmul.f32 0.03125, %v7108_v12  ;;  %v7137_v34 = vmul.f32 0.03125, %v7111_v55 }
0x2b47   :  { %v7152_v24 = vadd.f32 1e-06, %v7136_v33  ;;  %v7153_v1 = vadd.f32 1e-06, %v7137_v34 }
0x2b48   :  { %v7114_v44 = vpop.xlane.xlu1 %7113 }
0x2b49   :  { %9994 = vrsqrt.f32 %v7152_v24  ;;  %v7138_v25 = vmul.f32 0.03125, %v7114_v44 }
0x2b4a   :  { %9996 = vrsqrt.f32 %v7153_v1 }
0x2b4b   :  { %v7154_v59 = vadd.f32 1e-06, %v7138_v25  ;;  %v7117_v30 = vpop.xlane.xlu0 %7116 }
0x2b4c   :  { %v7139_v46 = vmul.f32 0.03125, %v7117_v30 }
0x2b4d   :  { %9998 = vrsqrt.f32 %v7154_v59 }
0x2b4e   :  { %v7155_v31 = vadd.f32 1e-06, %v7139_v46 }
0x2b4f   :  { %v7120_v2 = vpop.xlane.xlu1 %7119  ;;  %v7123_v54 = vpop.xlane.xlu0 %7122 }
0x2b50   :  { %10000 = vrsqrt.f32 %v7155_v31  ;;  %v7140_v11 = vmul.f32 0.03125, %v7120_v2  ;;  %v7141_v38 = vmul.f32 0.03125, %v7123_v54 }
0x2b52   :  { %v9993_v32 = vpop.eup %9992  ;;  %v7156_v7 = vadd.f32 1e-06, %v7140_v11  ;;  %v7157_v10 = vadd.f32 1e-06, %v7141_v38 }
0x2b53   :  { %v7126_v21 = vpop.xlane.xlu1 %7125  ;;  %v7183_v62 = vmul.f32 %v9993_v32, %v13256_v15 }
0x2b54   :  { %10002 = vrsqrt.f32 %v7156_v7  ;;  %v7142_v39 = vmul.f32 0.03125, %v7126_v21 }
0x2b55   :  { %10004 = vrsqrt.f32 %v7157_v10  ;;  %v7203_v40 = vmul.f32 %v13306_v56, %v7183_v62 }
0x2b56   :  { %v9995_v42 = vpop.eup %9994  ;;  %v7158_v36 = vadd.f32 1e-06, %v7142_v39 }
0x2b57   :  { %v9997_v53 = vpop.eup %9996  ;;  %v7184_v49 = vmul.f32 %v9995_v42, %v13261_v29  ;;  %v7223_v15 = vadd.f32 %v13312_v23, %v7203_v40 }
0x2b58   :  { %v7185_v3 = vmul.f32 %v9997_v53, %v13264_v4  ;;  %10006 = vrsqrt.f32 %v7158_v36 }
0x2b59   :  { %v7204_v37 = vmul.f32 %v13306_v56, %v7184_v49 }
0x2b5a   :  { %v9999_v22 = vpop.eup %9998  ;;  %v7205_v63 = vmul.f32 %v13306_v56, %v7185_v3 }
0x2b5b   :  { %v7186_v18 = vmul.f32 %v9999_v22, %v13272_v6  ;;  %v7224_v13 = vadd.f32 %v13312_v23, %v7204_v37 }
0x2b5c   :  { %v7225_v4 = vadd.f32 %v13312_v23, %v7205_v63 }
0x2b5d   :  { %v10001_v20 = vpop.eup %10000  ;;  %v7235_v12 = vpack.c.bf16 %v7224_v13, %v7223_v15  ;;  %v7206_v29 = vmul.f32 %v13306_v56, %v7186_v18 }
0x2b5e   :  { %v7187_v55 = vmul.f32 %v10001_v20, %v13279_v8 }
0x2b5f   :  { %8950 = vmatprep.mubr.msk.bf16.mxu0 %vm69_vm0, %v7235_v12  ;;  %v7226_v0 = vadd.f32 %v13312_v23, %v7206_v29 }
0x2b60   :  { %v7207_v1 = vmul.f32 %v13306_v56, %v7187_v55 }
0x2b61   :  { %v10003_v33 = vpop.eup %10002  ;;  %v7236_v6 = vpack.c.bf16 %v7226_v0, %v7225_v4 }
0x2b62   :  { %v10005_v34 = vpop.eup %10004  ;;  %v7188_v24 = vmul.f32 %v10003_v33, %v13285_v9  ;;  %v7227_v59 = vadd.f32 %v13312_v23, %v7207_v1 }
0x2b63   :  { %v7189_v44 = vmul.f32 %v10005_v34, %v13288_v47  ;;  %8951 = vmatmul.mubr.msk.bf16.gmra.mxu0 %vm69_vm0, %v7236_v6 }
0x2b64   :  { %v7208_v45 = vmul.f32 %v13306_v56, %v7188_v24 }
0x2b65   :  { %v10007_v8 = vpop.eup %10006  ;;  %v7209_v46 = vmul.f32 %v13306_v56, %v7189_v44 }
0x2b66   :  { %v7190_v25 = vmul.f32 %v10007_v8, %v13296_v51  ;;  %v7228_v30 = vadd.f32 %v13312_v23, %v7208_v45  ;;  %v13729_v51 = vsub.s32 6, %v13701_v16 }
0x2b67   :  { %v7229_v47 = vadd.f32 %v13312_v23, %v7209_v46 }
0x2b68   :  { %v7237_v31 = vpack.c.bf16 %v7228_v30, %v7227_v59  ;;  %v7210_v9 = vmul.f32 %v13306_v56, %v7190_v25  ;;  %v13396_v11 = vrot.slane %v13062_v57, %v13729_v51 }
0x2b6a   :  { %8954 = vmatprep.mubr.msk.bf16.mxu0 %vm69_vm0, %v7237_v31  ;;  %v7230_v2 = vadd.f32 %v13312_v23, %v7210_v9 }
0x2b6c   :  { %v7238_v54 = vpack.c.bf16 %v7230_v2, %v7229_v47 }
0x2b6e   :  { %8955 = vmatmul.mubr.msk.bf16.gmra.mxu0 %vm69_vm0, %v7238_v54 }
0x2ba5   :  { %v8944_v38 = vpop.f32.mrf.mxu0 }
0x2ba6   :  { %v13399_v32 = vadd.f32 %v8944_v38, %v13396_v11 }
0x2ba7   :  { %v7313_v7 = vpop.f32.mrf.mxu0 }
0x2ba8   :  { %v7394_v56 = vmul.f32 0.044715, %v13399_v32  ;;  %v13403_v10 = vadd.f32 %v7313_v7, %v13396_v11 }
0x2ba9   :  { %v8945_v21 = vpop.f32.mrf.mxu0 }
0x2baa   :  { %v7410_v23 = vmul.f32 %v7394_v56, %v13399_v32  ;;  %v7392_v62 = vmul.f32 0.044715, %v13403_v10  ;;  %v7325_v39 = vadd.f32 %v8945_v21, %v13396_v11 }
0x2bab   :  { %v7316_v42 = vpop.f32.mrf.mxu0 }
0x2bac   :  { %v7426_v57 = vmul.f32 %v7410_v23, %v13399_v32  ;;  %v7408_v36 = vmul.f32 %v7392_v62, %v13403_v10  ;;  %v7395_v53 = vmul.f32 0.044715, %v7325_v39  ;;  %v7317_v49 = vadd.f32 %v7316_v42, %v13396_v11 }
0x2bad   :  { %v8948_v40 = vpop.f32.mrf.mxu0 }
0x2bae   :  { %v7442_v3 = vadd.f32 %v7426_v57, %v13399_v32  ;;  %v7424_v37 = vmul.f32 %v7408_v36, %v13403_v10  ;;  %v7411_v22 = vmul.f32 %v7395_v53, %v7325_v39  ;;  %v13414_v18 = vadd.f32 %v8948_v40, %v13396_v11 }
0x2baf   :  { %v7393_v15 = vmul.f32 0.044715, %v7317_v49  ;;  %v7329_v13 = vpop.f32.mrf.mxu0 }
0x2bb0   :  { %v7458_v63 = vmul.f32 0.7978846, %v7442_v3  ;;  %v7427_v20 = vmul.f32 %v7411_v22, %v7325_v39  ;;  %v7398_v12 = vmul.f32 0.044715, %v13414_v18  ;;  %v13418_v29 = vadd.f32 %v7329_v13, %v13396_v11 }
0x2bb1   :  { %v7409_v55 = vmul.f32 %v7393_v15, %v7317_v49  ;;  %v8949_v4 = vpop.f32.mrf.mxu0  ;;  %v7440_v0 = vadd.f32 %v7424_v37, %v13403_v10 }
0x2bb2   :  { %v7443_v33 = vadd.f32 %v7427_v20, %v7325_v39  ;;  %v7414_v6 = vmul.f32 %v7398_v12, %v13414_v18  ;;  %v7396_v34 = vmul.f32 0.044715, %v13418_v29  ;;  %10008 = vtanh.f32 %v7458_v63 }
0x2bb3   :  { %v7425_v24 = vmul.f32 %v7409_v55, %v7317_v49  ;;  %v7341_v1 = vadd.f32 %v8949_v4, %v13396_v11  ;;  %v7332_v44 = vpop.f32.mrf.mxu0  ;;  %v7456_v45 = vmul.f32 0.7978846, %v7440_v0  ;;  %v7379_v20 = vmul.f32 0.5, %v7325_v39 }
0x2bb4   :  { %v7459_v8 = vmul.f32 0.7978846, %v7443_v33  ;;  %v7430_v25 = vmul.f32 %v7414_v6, %v13414_v18  ;;  %v7412_v59 = vmul.f32 %v7396_v34, %v13418_v29  ;;  %v7333_v30 = vadd.f32 %v7332_v44, %v13396_v11 }
0x2bb5   :  { %v7399_v46 = vmul.f32 0.044715, %v7341_v1  ;;  %v7441_v31 = vadd.f32 %v7425_v24, %v7317_v49  ;;  %10010 = vtanh.f32 %v7456_v45  ;;  %v7376_v12 = vmul.f32 0.5, %v13403_v10 }
0x2bb6   :  { %10012 = vtanh.f32 %v7459_v8  ;;  %v7446_v9 = vadd.f32 %v7430_v25, %v13414_v18  ;;  %v7428_v47 = vmul.f32 %v7412_v59, %v13418_v29  ;;  %v7397_v2 = vmul.f32 0.044715, %v7333_v30 }
0x2bb7   :  { %v7415_v54 = vmul.f32 %v7399_v46, %v7341_v1  ;;  %v7457_v51 = vmul.f32 0.7978846, %v7441_v31  ;;  %v7377_v55 = vmul.f32 0.5, %v7317_v49  ;;  %v7378_v0 = vmul.f32 0.5, %v13399_v32 }
0x2bb8   :  { %v7413_v38 = vmul.f32 %v7397_v2, %v7333_v30  ;;  %v7444_v7 = vadd.f32 %v7428_v47, %v13418_v29  ;;  %v7462_v21 = vmul.f32 0.7978846, %v7446_v9  ;;  %v7380_v39 = vmul.f32 0.5, %v13418_v29 }
0x2bb9   :  { %v7431_v56 = vmul.f32 %v7415_v54, %v7341_v1  ;;  %10014 = vtanh.f32 %v7457_v51  ;;  %v7381_v10 = vmul.f32 0.5, %v7333_v30  ;;  %v7383_v47 = vmul.f32 0.5, %v7341_v1 }
0x2bba   :  { %v7429_v23 = vmul.f32 %v7413_v38, %v7333_v30  ;;  %v7460_v62 = vmul.f32 0.7978846, %v7444_v7  ;;  %v7382_v51 = vmul.f32 0.5, %v13414_v18 }
0x2bbb   :  { %v7447_v42 = vadd.f32 %v7431_v56, %v7341_v1 }
0x2bbc   :  { %v7445_v57 = vadd.f32 %v7429_v23, %v7333_v30  ;;  %10016 = vtanh.f32 %v7460_v62 }
0x2bbd   :  { %v7463_v36 = vmul.f32 0.7978846, %v7447_v42  ;;  %10018 = vtanh.f32 %v7462_v21 }
0x2bbe   :  { %v7461_v53 = vmul.f32 0.7978846, %v7445_v57 }
0x2bbf   :  { %10020 = vtanh.f32 %v7463_v36  ;;  %v10009_v40 = vpop.eup %10008 }
0x2bc0   :  { %10022 = vtanh.f32 %v7461_v53  ;;  %v7490_v63 = vadd.f32 1.0, %v10009_v40 }
0x2bc2   :  { %v10011_v3 = vpop.eup %10010  ;;  %v7506_v44 = vmul.f32 %v7490_v63, %v7378_v0 }
0x2bc3   :  { %v10013_v37 = vpop.eup %10012  ;;  %v7488_v15 = vadd.f32 1.0, %v10011_v3 }
0x2bc4   :  { %v7491_v22 = vadd.f32 1.0, %v10013_v37 }
0x2bc5   :  { %v7504_v34 = vmul.f32 %v7488_v15, %v7376_v12 }
0x2bc6   :  { %v10015_v13 = vpop.eup %10014  ;;  %v7507_v33 = vmul.f32 %v7491_v22, %v7379_v20 }
0x2bc7   :  { %v7489_v4 = vadd.f32 1.0, %v10015_v13 }
0x2bc8   :  { %v7521_v59 = vpack.c.bf16 %v7507_v33, %v7506_v44 }
0x2bc9   :  { %v10017_v6 = vpop.eup %10016  ;;  %v7505_v24 = vmul.f32 %v7489_v4, %v7377_v55 }
0x2bca   :  { %v10019_v45 = vpop.eup %10018  ;;  %v7492_v46 = vadd.f32 1.0, %v10017_v6 }
0x2bcb   :  { %v7520_v8 = vpack.c.bf16 %v7505_v24, %v7504_v34  ;;  %v7494_v32 = vadd.f32 1.0, %v10019_v45 }
0x2bcc   :  { %v10021_v25 = vpop.eup %10020  ;;  %v7508_v2 = vmul.f32 %v7492_v46, %v7380_v39 }
0x2bcd   :  { %v10023_v31 = vpop.eup %10022  ;;  %8974 = vmatprep.mubr.bf16.mxu1 %v7520_v8  ;;  %v7495_v9 = vadd.f32 1.0, %v10021_v25  ;;  %v7510_v56 = vmul.f32 %v7494_v32, %v7382_v51 }
0x2bce   :  { %8975 = vmatmul.mubr.bf16.vlgmr.msra.gmra.mxu1 %v7521_v59  ;;  %v7493_v49 = vadd.f32 1.0, %v10023_v31 }
0x2bcf   :  { %v7511_v38 = vmul.f32 %v7495_v9, %v7383_v47 }
0x2bd0   :  { %v7509_v54 = vmul.f32 %v7493_v49, %v7381_v10 }
0x2bd1   :  { %v7523_v21 = vpack.c.bf16 %v7511_v38, %v7510_v56 }
0x2bd2   :  { %v7522_v7 = vpack.c.bf16 %v7509_v54, %v7508_v2 }
0x2bd4   :  { %8978 = vmatprep.mubr.bf16.mxu1 %v7522_v7 }
0x2bd6   :  { %8979 = vmatmul.mubr.bf16.gmra.mxu1 %v7523_v21 }
0x2c23   :  { %v8952_v23 = vpop.f32.mrf.mxu0 }
0x2c24   :  { %v13435_v62 = vadd.f32 %v8952_v23, %v13396_v11 }
0x2c25   :  { %v7345_v29 = vpop.f32.mrf.mxu0 }
0x2c26   :  { %v7402_v30 = vmul.f32 0.044715, %v13435_v62  ;;  %v13439_v1 = vadd.f32 %v7345_v29, %v13396_v11 }
0x2c27   :  { %v8953_v42 = vpop.f32.mrf.mxu0 }
0x2c28   :  { %v7418_v57 = vmul.f32 %v7402_v30, %v13435_v62  ;;  %v7400_v18 = vmul.f32 0.044715, %v13439_v1  ;;  %v7357_v36 = vadd.f32 %v8953_v42, %v13396_v11 }
0x2c29   :  { %v7348_v53 = vpop.f32.mrf.mxu0 }
0x2c2a   :  { %v7434_v40 = vmul.f32 %v7418_v57, %v13435_v62  ;;  %v7416_v3 = vmul.f32 %v7400_v18, %v13439_v1  ;;  %v7403_v37 = vmul.f32 0.044715, %v7357_v36  ;;  %v7349_v22 = vadd.f32 %v7348_v53, %v13396_v11 }
0x2c2c   :  { %v7450_v15 = vadd.f32 %v7434_v40, %v13435_v62  ;;  %v7432_v13 = vmul.f32 %v7416_v3, %v13439_v1  ;;  %v7419_v63 = vmul.f32 %v7403_v37, %v7357_v36  ;;  %v7401_v20 = vmul.f32 0.044715, %v7349_v22 }
0x2c2e   :  { %v7435_v12 = vmul.f32 %v7419_v63, %v7357_v36  ;;  %v7417_v55 = vmul.f32 %v7401_v20, %v7349_v22  ;;  %v8956_v4 = vpop.f32.mrf.mxu0  ;;  %v7448_v0 = vadd.f32 %v7432_v13, %v13439_v1  ;;  %v7466_v33 = vmul.f32 0.7978846, %v7450_v15 }
0x2c2f   :  { %v13451_v6 = vadd.f32 %v8956_v4, %v13396_v11 }
0x2c30   :  { %v7451_v34 = vadd.f32 %v7435_v12, %v7357_v36  ;;  %v7433_v24 = vmul.f32 %v7417_v55, %v7349_v22  ;;  %v7361_v44 = vpop.f32.mrf.mxu0  ;;  %v7464_v45 = vmul.f32 0.7978846, %v7448_v0  ;;  %v7387_v55 = vmul.f32 0.5, %v7357_v36 }
0x2c31   :  { %v7406_v8 = vmul.f32 0.044715, %v13451_v6  ;;  %v7362_v25 = vadd.f32 %v7361_v44, %v13396_v11  ;;  %v7384_v0 = vmul.f32 0.5, %v13439_v1 }
0x2c32   :  { %v7467_v59 = vmul.f32 0.7978846, %v7451_v34  ;;  %v8957_v46 = vpop.f32.mrf.mxu0  ;;  %v7449_v31 = vadd.f32 %v7433_v24, %v7349_v22  ;;  %10024 = vtanh.f32 %v7464_v45  ;;  %v7386_v24 = vmul.f32 0.5, %v13435_v62 }
0x2c33   :  { %10026 = vtanh.f32 %v7466_v33  ;;  %v7422_v39 = vmul.f32 %v7406_v8, %v13451_v6  ;;  %v7404_v9 = vmul.f32 0.044715, %v7362_v25  ;;  %v7373_v10 = vadd.f32 %v8957_v46, %v13396_v11 }
0x2c34   :  { %10028 = vtanh.f32 %v7467_v59  ;;  %v7364_v49 = vpop.f32.mrf.mxu0  ;;  %v7465_v47 = vmul.f32 0.7978846, %v7449_v31  ;;  %v7385_v33 = vmul.f32 0.5, %v7349_v22  ;;  %v7388_v22 = vmul.f32 0.5, %v7362_v25 }
0x2c35   :  { %v7438_v32 = vmul.f32 %v7422_v39, %v13451_v6  ;;  %v7420_v2 = vmul.f32 %v7404_v9, %v7362_v25  ;;  %v7407_v54 = vmul.f32 0.044715, %v7373_v10  ;;  %v7365_v51 = vadd.f32 %v7364_v49, %v13396_v11 }
0x2c36   :  { %10030 = vtanh.f32 %v7465_v47  ;;  %v7390_v62 = vmul.f32 0.5, %v13451_v6 }
0x2c37   :  { %v7454_v38 = vadd.f32 %v7438_v32, %v13451_v6  ;;  %v7436_v7 = vmul.f32 %v7420_v2, %v7362_v25  ;;  %v7423_v56 = vmul.f32 %v7407_v54, %v7373_v10  ;;  %v7405_v21 = vmul.f32 0.044715, %v7365_v51 }
0x2c38   :  { %v7391_v2 = vmul.f32 0.5, %v7373_v10  ;;  %v7389_v54 = vmul.f32 0.5, %v7365_v51 }
0x2c39   :  { %v7439_v23 = vmul.f32 %v7423_v56, %v7373_v10  ;;  %v7421_v29 = vmul.f32 %v7405_v21, %v7365_v51  ;;  %v7452_v30 = vadd.f32 %v7436_v7, %v7362_v25  ;;  %v7470_v42 = vmul.f32 0.7978846, %v7454_v38 }
0x2c3b   :  { %v7455_v57 = vadd.f32 %v7439_v23, %v7373_v10  ;;  %v7437_v18 = vmul.f32 %v7421_v29, %v7365_v51  ;;  %v7468_v53 = vmul.f32 0.7978846, %v7452_v30  ;;  %v13730_v10 = vsub.s32 7, %v13701_v16 }
0x2c3d   :  { %v7471_v40 = vmul.f32 0.7978846, %v7455_v57  ;;  %v7453_v3 = vadd.f32 %v7437_v18, %v7365_v51  ;;  %10032 = vtanh.f32 %v7468_v53 }
0x2c3e   :  { %10034 = vtanh.f32 %v7470_v42  ;;  %v10058_v42 = vld [vmem:[%s13550_s5 + $0x8] sm:$0xff] }
0x2c3f   :  { %v10025_v37 = vpop.eup %10024  ;;  %10036 = vtanh.f32 %v7471_v40  ;;  %v7469_v11 = vmul.f32 0.7978846, %v7453_v3  ;;  %v7531_v57 = vrot.slane %v10058_v42, %v13730_v10 }
0x2c40   :  { %v10027_v15 = vpop.eup %10026  ;;  %v7496_v63 = vadd.f32 1.0, %v10025_v37 }
0x2c41   :  { %v10029_v13 = vpop.eup %10028  ;;  %10038 = vtanh.f32 %v7469_v11  ;;  %v7498_v4 = vadd.f32 1.0, %v10027_v15 }
0x2c42   :  { %v7499_v20 = vadd.f32 1.0, %v10029_v13  ;;  %v7512_v45 = vmul.f32 %v7496_v63, %v7384_v0 }
0x2c43   :  { %v10031_v12 = vpop.eup %10030  ;;  %v7514_v59 = vmul.f32 %v7498_v4, %v7386_v24 }
0x2c44   :  { %v7497_v34 = vadd.f32 1.0, %v10031_v12  ;;  %v7515_v44 = vmul.f32 %v7499_v20, %v7387_v55 }
0x2c46   :  { %v7513_v8 = vmul.f32 %v7497_v34, %v7385_v33  ;;  %v7525_v31 = vpack.c.bf16 %v7515_v44, %v7514_v59 }
0x2c48   :  { %v7524_v46 = vpack.c.bf16 %v7513_v8, %v7512_v45 }
0x2c4a   :  { %v10033_v39 = vpop.eup %10032  ;;  %8982 = vmatprep.mubr.bf16.mxu1 %v7524_v46 }
0x2c4b   :  { %v10035_v9 = vpop.eup %10034  ;;  %8983 = vmatmul.mubr.bf16.gmra.mxu1 %v7525_v31  ;;  %v7500_v47 = vadd.f32 1.0, %v10033_v39 }
0x2c4c   :  { %v10037_v49 = vpop.eup %10036  ;;  %v7502_v1 = vadd.f32 1.0, %v10035_v9 }
0x2c4d   :  { %v7503_v36 = vadd.f32 1.0, %v10037_v49  ;;  %v7516_v56 = vmul.f32 %v7500_v47, %v7388_v22 }
0x2c4e   :  { %v10039_v32 = vpop.eup %10038  ;;  %v7518_v23 = vmul.f32 %v7502_v1, %v7390_v62 }
0x2c4f   :  { %v7501_v38 = vadd.f32 1.0, %v10039_v32  ;;  %v7519_v7 = vmul.f32 %v7503_v36, %v7391_v2 }
0x2c51   :  { %v7517_v21 = vmul.f32 %v7501_v38, %v7389_v54  ;;  %v7527_v30 = vpack.c.bf16 %v7519_v7, %v7518_v23 }
0x2c53   :  { %v7526_v29 = vpack.c.bf16 %v7517_v21, %v7516_v56 }
0x2c55   :  { %8986 = vmatprep.mubr.bf16.mxu1 %v7526_v29 }
0x2c56   :  { %8987 = vmatmul.mubr.bf16.gmra.mxu1 %v7527_v30 }
0x2c8e   :  { %v8976_v25 = vpop.f32.mrf.mxu1 }
0x2c8f   :  { %v7623_v51 = vadd.f32 %v8976_v25, %v7531_v57 }
0x2c90   :  { %v7614_v18 = vpop.f32.mrf.mxu1 }
0x2c91   :  { %v7679_v6 = vadd.f32 %v7623_v51, %v13080_v19  ;;  %v7615_v53 = vadd.f32 %v7614_v18, %v7531_v57 }
0x2c92   :  { %v8977_v40 = vpop.f32.mrf.mxu1 }
0x2c93   :  { %7695 = vst.msk [vmem:[%s13554_s6 + $0x10] sm:$0xff] %vm69_vm0, %v7679_v6  ;;  %v7677_v3 = vadd.f32 %v7615_v53, %v13073_v17  ;;  %v7626_v37 = vadd.f32 %v8977_v40, %v7531_v57 }
0x2c94   :  { %v7617_v11 = vpop.f32.mrf.mxu1 }
0x2c95   :  { %7693 = vst.msk [vmem:[%s13554_s6] sm:$0xff] %vm69_vm0, %v7677_v3  ;;  %v7680_v16 = vadd.f32 %v7626_v37, %v13092_v52  ;;  %v7618_v15 = vadd.f32 %v7617_v11, %v7531_v57 }
0x2c96   :  { %v8980_v19 = vpop.f32.mrf.mxu1 }
0x2c97   :  { %7696 = vst.msk [vmem:[%s13554_s6 + $0x18] sm:$0xff] %vm69_vm0, %v7680_v16  ;;  %v7678_v13 = vadd.f32 %v7618_v15, %v13076_v5  ;;  %v7639_v63 = vadd.f32 %v8980_v19, %v7531_v57 }
0x2c98   :  { %v7630_v17 = vpop.f32.mrf.mxu1 }
0x2c99   :  { %7694 = vst.msk [vmem:[%s13554_s6 + $0x8] sm:$0xff] %vm69_vm0, %v7678_v13  ;;  %v7683_v20 = vadd.f32 %v7639_v63, %v13111_v61  ;;  %v7631_v12 = vadd.f32 %v7630_v17, %v7531_v57 }
0x2c9a   :  { %v8981_v52 = vpop.f32.mrf.mxu1 }
0x2c9b   :  { %7699 = vst.msk [vmem:[%s13554_s6 + $0x30] sm:$0xff] %vm69_vm0, %v7683_v20  ;;  %v7681_v55 = vadd.f32 %v7631_v12, %v13104_v26  ;;  %v7642_v4 = vadd.f32 %v8981_v52, %v7531_v57 }
0x2c9c   :  { %v7633_v5 = vpop.f32.mrf.mxu1 }
0x2c9d   :  { %7697 = vst.msk [vmem:[%s13554_s6 + $0x20] sm:$0xff] %vm69_vm0, %v7681_v55  ;;  %v7684_v0 = vadd.f32 %v7642_v4, %v13098_v41  ;;  %v7634_v33 = vadd.f32 %v7633_v5, %v7531_v57 }
0x2c9f   :  { %7700 = vst.msk [vmem:[%s13554_s6 + $0x38] sm:$0xff] %vm69_vm0, %v7684_v0  ;;  %v7682_v61 = vadd.f32 %v7634_v33, %v13087_v28 }
0x2ca1   :  { %7698 = vst.msk [vmem:[%s13554_s6 + $0x28] sm:$0xff] %vm69_vm0, %v7682_v61 }
0x2d0b   :  { %v8984_v26 = vpop.f32.mrf.mxu1 }
0x2d0c   :  { %v7655_v34 = vadd.f32 %v8984_v26, %v7531_v57 }
0x2d0d   :  { %v7646_v24 = vpop.f32.mrf.mxu1 }
0x2d0e   :  { %v7687_v44 = vadd.f32 %v7655_v34, %v13159_v35  ;;  %v7647_v45 = vadd.f32 %v7646_v24, %v7531_v57 }
0x2d0f   :  { %v8985_v41 = vpop.f32.mrf.mxu1 }
0x2d10   :  { %7703 = vst.msk [vmem:[%s13554_s6 + $0x50] sm:$0xff] %vm69_vm0, %v7687_v44  ;;  %v7685_v8 = vadd.f32 %v7647_v45, %v13156_v50  ;;  %v7658_v28 = vadd.f32 %v8985_v41, %v7531_v57 }
0x2d11   :  { %v7649_v59 = vpop.f32.mrf.mxu1 }
0x2d12   :  { %7701 = vst.msk [vmem:[%s13554_s6 + $0x40] sm:$0xff] %vm69_vm0, %v7685_v8  ;;  %v7688_v46 = vadd.f32 %v7658_v28, %v13169_v58  ;;  %v7650_v31 = vadd.f32 %v7649_v59, %v7531_v57 }
0x2d14   :  { %7704 = vst.msk [vmem:[%s13554_s6 + $0x58] sm:$0xff] %vm69_vm0, %v7688_v46  ;;  %v7686_v35 = vadd.f32 %v7650_v31, %v13166_v27 }
0x2d16   :  { %7702 = vst.msk [vmem:[%s13554_s6 + $0x48] sm:$0xff] %vm69_vm0, %v7686_v35  ;;  %v8988_v50 = vpop.f32.mrf.mxu1 }
0x2d17   :  { %v7671_v39 = vadd.f32 %v8988_v50, %v7531_v57 }
0x2d18   :  { %v7662_v9 = vpop.f32.mrf.mxu1 }
0x2d19   :  { %v7691_v49 = vadd.f32 %v7671_v39, %v13186_v43  ;;  %v7663_v47 = vadd.f32 %v7662_v9, %v7531_v57 }
0x2d1a   :  { %v8989_v58 = vpop.f32.mrf.mxu1 }
0x2d1b   :  { %7707 = vst.msk [vmem:[%s13554_s6 + $0x70] sm:$0xff] %vm69_vm0, %v7691_v49  ;;  %v7689_v36 = vadd.f32 %v7663_v47, %v13180_v60  ;;  %v7674_v27 = vadd.f32 %v8989_v58, %v7531_v57 }
0x2d1c   :  { %v7665_v32 = vpop.f32.mrf.mxu1 }
0x2d1d   :  { %7705 = vst.msk [vmem:[%s13554_s6 + $0x60] sm:$0xff] %vm69_vm0, %v7689_v36  ;;  %v7692_v2 = vadd.f32 %v7674_v27, %v13204_v48  ;;  %v7666_v1 = vadd.f32 %v7665_v32, %v7531_v57 }
0x2d1f   :  { %7708 = vst.msk [vmem:[%s13554_s6 + $0x78] sm:$0xff] %vm69_vm0, %v7692_v2  ;;  %v7690_v43 = vadd.f32 %v7666_v1, %v13193_v14 }
0x2d21   :  { %7706 = vst.msk [vmem:[%s13554_s6 + $0x68] sm:$0xff] %vm69_vm0, %v7690_v43 }

</bundles_post_ra>
